<compile_context>
chip_gen: v7x
topology: tpu7x:2x2x1
jax: 0.10.0
libtpu: 0.0.40
codegen_flags: <defaults>
</compile_context>

<pallas_src>
import functools
import math

import jax
import jax.numpy as jnp
from jax.experimental import pallas as pl
from jax.experimental.pallas import tpu as pltpu


def _gat_heads_kernel(x_ref, adj_ref, wt_ref, wa_ref, out_ref, *,
                      u, v, alpha, compute_dtype):
    """One (head, batch-block) step of the GAT layer.

    x_ref   : (Bb, N, D)  node features for Bb graphs of this head
    adj_ref : (Bb, u, v)  int8 mask (nonzero -> logit = -9e15)
    wt_ref  : (D, D)      W.weight.T for this head
    wa_ref  : (D, 2)      W.weight.T @ [a1 | a2] for this head
    out_ref : (Bb, N, D)  ELU(h_prime)
    """
    bb, n, d = x_ref.shape

    # --- One big MXU matmul for all Bb*N rows (plus the tiny, independent
    # --- logit projection); accumulate in f32.
    h2 = x_ref[...].reshape(bb * n, d).astype(compute_dtype)
    w_t = wt_ref[...].astype(compute_dtype)
    wa = wa_ref[...].astype(compute_dtype)

    wh2 = jnp.dot(h2, w_t, preferred_element_type=jnp.float32)   # (Bb*N, D)
    s2 = jnp.dot(h2, wa, preferred_element_type=jnp.float32)     # (Bb*N, 2)

    wh = wh2.reshape(bb, n, d)                                    # (Bb, N, D)
    s = s2.reshape(bb, n, 2)                                      # (Bb, N, 2)

    def leaky(z):
        return jnp.where(z >= 0, z, alpha * z)

    # Column / row views of the logit projections.
    su_u = s[:, :u, 0:1]                       # (Bb, u, 1)
    sv_u = s[:, :u, 1:2]                       # (Bb, u, 1)
    su_vc = s[:, u:, 0:1]                      # (Bb, v, 1)
    sv_vc = s[:, u:, 1:2]                      # (Bb, v, 1)
    sv_vr = jnp.swapaxes(sv_vc, 1, 2)          # (Bb, 1, v)  tiny relayout

    # e[b,i,j] = leakyrelu(a1·Wh_u[b,i] + a2·Wh_v[b,j]); mask with adj.
    e = leaky(su_u + sv_vr)                                        # (Bb, u, v)
    e = jnp.where(adj_ref[...] != 0, jnp.float32(-9e15), e)
    e_self_u = leaky(su_u + sv_u)                                  # (Bb, u, 1)
    e_self_v = leaky(su_vc + sv_vc)                                # (Bb, v, 1)

    # attentionU: softmax([e | e_self_u], axis=-1) without the concat.
    m_u = jnp.maximum(jnp.max(e, axis=2, keepdims=True), e_self_u)
    p = jnp.exp(e - m_u)
    p_s = jnp.exp(e_self_u - m_u)
    inv_u = pl.reciprocal(jnp.sum(p, axis=2, keepdims=True) + p_s, approx=True)
    att_u = p * inv_u                                              # (Bb, u, v)
    att_u_self = p_s * inv_u                                       # (Bb, u, 1)

    # attentionV: softmax([e ; e_self_v^T], axis=u).T — transpose the (u,v)
    # logits once (not the softmax output) so the reduction stays on lanes.
    e_t = jnp.swapaxes(e, 1, 2)                                    # (Bb, v, u)
    m_v = jnp.maximum(jnp.max(e_t, axis=2, keepdims=True), e_self_v)
    q = jnp.exp(e_t - m_v)
    q_s = jnp.exp(e_self_v - m_v)
    inv_v = pl.reciprocal(jnp.sum(q, axis=2, keepdims=True) + q_s, approx=True)
    att_v = q * inv_v                                              # (Bb, v, u)
    att_v_self = q_s * inv_v                                       # (Bb, v, 1)

    wh_u = wh[:, :u, :]                                            # (Bb, u, D)
    wh_v = wh[:, u:, :]                                            # (Bb, v, D)

    hu = (jnp.einsum('buv,bvd->bud',
                     att_u.astype(compute_dtype), wh_v.astype(compute_dtype),
                     preferred_element_type=jnp.float32)
          + wh_u * att_u_self)                                     # (Bb, u, D)
    hv = (jnp.einsum('bvu,bud->bvd',
                     att_v.astype(compute_dtype), wh_u.astype(compute_dtype),
                     preferred_element_type=jnp.float32)
          + wh_v * att_v_self)                                     # (Bb, v, D)

    def elu(z):
        return jnp.where(z > 0, z, jnp.exp(z) - 1.0)

    # Write the two node groups straight into the output block (no concat).
    out_ref[:, :u, :] = elu(hu).astype(out_ref.dtype)
    out_ref[:, u:, :] = elu(hv).astype(out_ref.dtype)


def _pick_block_b(batch, n_nodes, target_rows=256):
    """Largest divisor of `batch` whose block gives ~target_rows matmul rows."""
    best = 1
    cap = max(target_rows, n_nodes)
    for cand in range(1, batch + 1):
        if batch % cand == 0 and cand * n_nodes <= cap:
            best = cand
    return best


def multi_head_attention_layer(x, adj, w_t, a_both, *, u, alpha=0.01,
                               block_b=None, compute_dtype=jnp.float32):
    """Multi-head GAT forward (eval mode).

    x:      (B, H, N, D) f32 node features.
    adj:    (B, u, v) bool/int mask (nonzero -> logit = -9e15).
    w_t:    (H, D, D)  per-head W.weight.T (so Wh = x @ w_t).
    a_both: (H, D, 2)  per-head [a1 | a2] columns of the `a` Linear weight.
    Returns (B, H, N, D) = ELU(h_prime) per head.
    """
    B, H, N, D = x.shape
    v = N - u
    assert adj.shape == (B, u, v)
    assert w_t.shape == (H, D, D) and a_both.shape == (H, D, 2)

    if block_b is None:
        block_b = _pick_block_b(B, N)
    assert B % block_b == 0, (B, block_b)

    # Hoist the dependent (N,D)x(D,2) matmul out of the kernel:
    #   s = (x @ W^T) @ a  ==  x @ (W^T @ a).
    wa = jnp.einsum('hde,hek->hdk', w_t, a_both)      # (H, D, 2)
    adj_i8 = adj.astype(jnp.int8)                     # 4x less mask DMA

    kernel = functools.partial(_gat_heads_kernel, u=u, v=v, alpha=alpha,
                               compute_dtype=compute_dtype)

    # Head axis outermost: per-head weight blocks keep the same block index
    # across the inner batch axis and are not re-fetched every step.
    grid = (H, B // block_b)

    return pl.pallas_call(
        kernel,
        out_shape=jax.ShapeDtypeStruct((B, H, N, D), jnp.float32),
        grid=grid,
        in_specs=[
            pl.BlockSpec((block_b, None, N, D), lambda h, b: (b, h, 0, 0)),
            pl.BlockSpec((block_b, u, v), lambda h, b: (b, 0, 0)),
            pl.BlockSpec((None, D, D), lambda h, b: (h, 0, 0)),
            pl.BlockSpec((None, D, 2), lambda h, b: (h, 0, 0)),
        ],
        out_specs=pl.BlockSpec((block_b, None, N, D), lambda h, b: (b, h, 0, 0)),
        compiler_params=pltpu.CompilerParams(
            dimension_semantics=("parallel", "parallel"),
            vmem_limit_bytes=32 * 1024 * 1024),
    )(x, adj_i8, w_t, wa)


def _reference(x, adj, w_t, a_both, *, u, alpha=0.01):
    """Plain-JAX reference mirroring the PyTorch forward (eval mode)."""
    B, H, N, D = x.shape
    v = N - u
    wh = jnp.einsum('bhnd,hde->bhne', x, w_t)
    s = jnp.einsum('bhnd,hdk->bhnk', wh, a_both)
    su, sv = s[..., 0], s[..., 1]
    leaky = lambda z: jnp.where(z >= 0, z, alpha * z)
    e = leaky(su[:, :, :u, None] + sv[:, :, None, u:])               # (B,H,u,v)
    e_self = leaky(su + sv)                                          # (B,H,N)
    e = jnp.where(adj[:, None, :, :], -9e15, e)
    att_u = jax.nn.softmax(
        jnp.concatenate([e, e_self[:, :, :u, None]], axis=3), axis=3)
    att_v = jnp.swapaxes(jax.nn.softmax(
        jnp.concatenate([e, e_self[:, :, None, u:]], axis=2), axis=2), 2, 3)
    hu = (jnp.einsum('bhuv,bhvd->bhud', att_u[..., :v], wh[:, :, u:])
          + wh[:, :, :u] * att_u[..., v:v + 1])
    hv = (jnp.einsum('bhvu,bhud->bhvd', att_v[..., :u], wh[:, :, :u])
          + att_v[..., u:u + 1] * wh[:, :, u:])
    hp = jnp.concatenate([hu, hv], axis=2)
    return jnp.where(hp > 0, hp, jnp.exp(hp) - 1.0)


def _xavier_uniform(key, shape, gain):
    fan_out, fan_in = shape[-2], shape[-1]
    bound = gain * math.sqrt(6.0 / (fan_in + fan_out))
    return jax.random.uniform(key, shape, jnp.float32, -bound, bound)


if __name__ == "__main__":
    # Small, module-consistent shapes (batch-blocked grid: (H=2, B/Bb=2)).
    B, H, D = 64, 2, 32         # batch, n_heads, embed_dim
    u_size = 3
    u = u_size + 1              # 4
    v_nodes = 4
    N = u + v_nodes             # graph_size = 8

    key = jax.random.PRNGKey(0)
    kx, kadj, kw, ka = jax.random.split(key, 4)

    # Inputs: x is [batch, n_heads, graph_size, embed_dim].
    x = jax.random.normal(kx, (B, H, N, D), jnp.float32)
    adj_bool = jax.random.bernoulli(kadj, 0.3, (B, u, v_nodes))

    # Per-head parameters (deterministic xavier_uniform, gain=1.414).
    gain = 1.414
    w_keys = jax.random.split(kw, H)
    a_keys = jax.random.split(ka, H)
    # nn.Linear(D, D, bias=False): weight (D, D); we pass W.T (in, out).
    w_t = jnp.stack([_xavier_uniform(w_keys[i], (D, D), gain).T for i in range(H)])
    # nn.Linear(2D, 1, bias=False): weight (1, 2D); split into a1, a2 columns.
    a_w = jnp.stack([_xavier_uniform(a_keys[i], (1, 2 * D), gain)[0] for i in range(H)])
    a_both = jnp.stack([a_w[:, :D], a_w[:, D:]], axis=-1)            # (H, D, 2)

    out = multi_head_attention_layer(x, adj_bool, w_t, a_both, u=u, alpha=0.01)
    out = jax.block_until_ready(out)

    ref = _reference(x, adj_bool, w_t, a_both, u=u, alpha=0.01)
    assert out.shape == (B, H, N, D)
    # Tolerance accounts for the approx-reciprocal softmax denominator and the
    # wa = W^T @ a re-association; matmuls stay f32 in this demo.
    assert jnp.allclose(out, ref, atol=1e-2, rtol=1e-2), "mismatch vs reference"

    print("KERNEL_OK")
</pallas_src>

<mosaic_0001>
module attributes {stable_mosaic.version = 11 : i64} {
  func.func @_gat_heads_kernel(%arg0: i32, %arg1: i32, %arg2: memref<32x1x8x32xf32, #tpu.memory_space<vmem>>, %arg3: memref<32x4x4xi8, #tpu.memory_space<vmem>>, %arg4: memref<1x32x32xf32, #tpu.memory_space<vmem>>, %arg5: memref<1x32x2xf32, #tpu.memory_space<vmem>>, %arg6: memref<32x1x8x32xf32, #tpu.memory_space<vmem>>) attributes {dimension_semantics = [#tpu.dimension_semantics<parallel>, #tpu.dimension_semantics<parallel>], iteration_bounds = array<i64: 2, 2>, scalar_prefetch = 0 : i64, scratch_operands = 0 : i64, tpu.core_type = #tpu.core_type<tc>, window_params = [{transform_indices = @transform_0, window_bounds = array<i64: 32, 1, 8, 32>}, {transform_indices = @transform_1, window_bounds = array<i64: 32, 4, 4>}, {transform_indices = @transform_2, window_bounds = array<i64: 1, 32, 32>}, {transform_indices = @transform_3, window_bounds = array<i64: 1, 32, 2>}, {transform_indices = @transform_4, window_bounds = array<i64: 32, 1, 8, 32>}]} {
    %c0 = arith.constant 0 : index
    %c0_0 = arith.constant 0 : index
    %c0_1 = arith.constant 0 : index
    %c0_2 = arith.constant 0 : index
    %0 = vector.load %arg2[%c0, %c0_0, %c0_1, %c0_2] : memref<32x1x8x32xf32, #tpu.memory_space<vmem>>, vector<32x1x8x32xf32>
    %1 = vector.shape_cast %0 : vector<32x1x8x32xf32> to vector<32x8x32xf32>
    %2 = vector.shape_cast %1 : vector<32x8x32xf32> to vector<256x32xf32>
    %c0_3 = arith.constant 0 : index
    %c0_4 = arith.constant 0 : index
    %c0_5 = arith.constant 0 : index
    %3 = vector.load %arg4[%c0_3, %c0_4, %c0_5] : memref<1x32x32xf32, #tpu.memory_space<vmem>>, vector<1x32x32xf32>
    %4 = vector.shape_cast %3 : vector<1x32x32xf32> to vector<32x32xf32>
    %c0_6 = arith.constant 0 : index
    %c0_7 = arith.constant 0 : index
    %c0_8 = arith.constant 0 : index
    %5 = vector.load %arg5[%c0_6, %c0_7, %c0_8] : memref<1x32x2xf32, #tpu.memory_space<vmem>>, vector<1x32x2xf32>
    %6 = vector.shape_cast %5 : vector<1x32x2xf32> to vector<32x2xf32>
    %cst = arith.constant dense<0.000000e+00> : vector<256x32xf32>
    %7 = tpu.matmul %2, %4, %cst {dimension_numbers = #tpu.dot_dimension_numbers<[1], [0], [0], [1], [0, 0, 1, 1], [], []>} : vector<256x32xf32>, vector<32x32xf32>, vector<256x32xf32> -> vector<256x32xf32>
    %cst_9 = arith.constant dense<0.000000e+00> : vector<256x2xf32>
    %8 = tpu.matmul %2, %6, %cst_9 {dimension_numbers = #tpu.dot_dimension_numbers<[1], [0], [0], [1], [0, 0, 1, 1], [], []>} : vector<256x32xf32>, vector<32x2xf32>, vector<256x2xf32> -> vector<256x2xf32>
    %9 = vector.shape_cast %7 : vector<256x32xf32> to vector<32x8x32xf32>
    %10 = vector.shape_cast %8 : vector<256x2xf32> to vector<32x8x2xf32>
    %11 = vector.extract_strided_slice %10 {offsets = [0, 0, 0], sizes = [32, 4, 1], strides = [1, 1, 1]} : vector<32x8x2xf32> to vector<32x4x1xf32>
    %12 = vector.extract_strided_slice %10 {offsets = [0, 0, 1], sizes = [32, 4, 1], strides = [1, 1, 1]} : vector<32x8x2xf32> to vector<32x4x1xf32>
    %13 = vector.extract_strided_slice %10 {offsets = [0, 4, 0], sizes = [32, 4, 1], strides = [1, 1, 1]} : vector<32x8x2xf32> to vector<32x4x1xf32>
    %14 = vector.extract_strided_slice %10 {offsets = [0, 4, 1], sizes = [32, 4, 1], strides = [1, 1, 1]} : vector<32x8x2xf32> to vector<32x4x1xf32>
    %15 = tpu.transpose %14, [0, 2, 1] : vector<32x4x1xf32> -> vector<32x1x4xf32>
    %16 = vector.broadcast %11 : vector<32x4x1xf32> to vector<32x4x4xf32>
    %17 = vector.broadcast %15 : vector<32x1x4xf32> to vector<32x4x4xf32>
    %18 = arith.addf %16, %17 : vector<32x4x4xf32>
    %cst_10 = arith.constant 0.000000e+00 : f32
    %19 = vector.broadcast %cst_10 : f32 to vector<32x4x4xf32>
    %20 = arith.cmpf oge, %18, %19 : vector<32x4x4xf32>
    %cst_11 = arith.constant 0.00999999977 : f32
    %21 = vector.broadcast %cst_11 : f32 to vector<32x4x4xf32>
    %22 = arith.mulf %21, %18 : vector<32x4x4xf32>
    %23 = arith.select %20, %18, %22 : vector<32x4x4xi1>, vector<32x4x4xf32>
    %c0_12 = arith.constant 0 : index
    %c0_13 = arith.constant 0 : index
    %c0_14 = arith.constant 0 : index
    %24 = vector.load %arg3[%c0_12, %c0_13, %c0_14] : memref<32x4x4xi8, #tpu.memory_space<vmem>>, vector<32x4x4xi8>
    %c0_i8 = arith.constant 0 : i8
    %25 = vector.broadcast %c0_i8 : i8 to vector<32x4x4xi8>
    %26 = arith.cmpi ne, %24, %25 : vector<32x4x4xi8>
    %cst_15 = arith.constant -9.000000e+15 : f32
    %27 = vector.broadcast %cst_15 : f32 to vector<32x4x4xf32>
    %28 = arith.select %26, %27, %23 : vector<32x4x4xi1>, vector<32x4x4xf32>
    %29 = arith.addf %11, %12 : vector<32x4x1xf32>
    %cst_16 = arith.constant 0.000000e+00 : f32
    %30 = vector.broadcast %cst_16 : f32 to vector<32x4x1xf32>
    %31 = arith.cmpf oge, %29, %30 : vector<32x4x1xf32>
    %cst_17 = arith.constant 0.00999999977 : f32
    %32 = vector.broadcast %cst_17 : f32 to vector<32x4x1xf32>
    %33 = arith.mulf %32, %29 : vector<32x4x1xf32>
    %34 = arith.select %31, %29, %33 : vector<32x4x1xi1>, vector<32x4x1xf32>
    %35 = arith.addf %13, %14 : vector<32x4x1xf32>
    %cst_18 = arith.constant 0.000000e+00 : f32
    %36 = vector.broadcast %cst_18 : f32 to vector<32x4x1xf32>
    %37 = arith.cmpf oge, %35, %36 : vector<32x4x1xf32>
    %cst_19 = arith.constant 0.00999999977 : f32
    %38 = vector.broadcast %cst_19 : f32 to vector<32x4x1xf32>
    %39 = arith.mulf %38, %35 : vector<32x4x1xf32>
    %40 = arith.select %37, %35, %39 : vector<32x4x1xi1>, vector<32x4x1xf32>
    %cst_20 = arith.constant dense<0xFF800000> : vector<32x4xf32>
    %41 = vector.multi_reduction <maximumf>, %28, %cst_20 [2] : vector<32x4x4xf32> to vector<32x4xf32>
    %42 = vector.shape_cast %41 : vector<32x4xf32> to vector<32x4x1xf32>
    %43 = arith.maximumf %42, %34 : vector<32x4x1xf32>
    %44 = vector.broadcast %43 : vector<32x4x1xf32> to vector<32x4x4xf32>
    %45 = arith.subf %28, %44 : vector<32x4x4xf32>
    %46 = math.exp %45 : vector<32x4x4xf32>
    %47 = arith.subf %34, %43 : vector<32x4x1xf32>
    %48 = math.exp %47 : vector<32x4x1xf32>
    %cst_21 = arith.constant dense<0.000000e+00> : vector<32x4xf32>
    %49 = vector.multi_reduction <add>, %46, %cst_21 [2] : vector<32x4x4xf32> to vector<32x4xf32>
    %50 = vector.shape_cast %49 : vector<32x4xf32> to vector<32x4x1xf32>
    %51 = arith.addf %50, %48 : vector<32x4x1xf32>
    %52 = tpu.reciprocal %51 {approx = true} : vector<32x4x1xf32> -> vector<32x4x1xf32>
    %53 = vector.broadcast %52 : vector<32x4x1xf32> to vector<32x4x4xf32>
    %54 = arith.mulf %46, %53 : vector<32x4x4xf32>
    %55 = arith.mulf %48, %52 : vector<32x4x1xf32>
    %56 = tpu.transpose %28, [0, 2, 1] : vector<32x4x4xf32> -> vector<32x4x4xf32>
    %cst_22 = arith.constant dense<0xFF800000> : vector<32x4xf32>
    %57 = vector.multi_reduction <maximumf>, %56, %cst_22 [2] : vector<32x4x4xf32> to vector<32x4xf32>
    %58 = vector.shape_cast %57 : vector<32x4xf32> to vector<32x4x1xf32>
    %59 = arith.maximumf %58, %40 : vector<32x4x1xf32>
    %60 = vector.broadcast %59 : vector<32x4x1xf32> to vector<32x4x4xf32>
    %61 = arith.subf %56, %60 : vector<32x4x4xf32>
    %62 = math.exp %61 : vector<32x4x4xf32>
    %63 = arith.subf %40, %59 : vector<32x4x1xf32>
    %64 = math.exp %63 : vector<32x4x1xf32>
    %cst_23 = arith.constant dense<0.000000e+00> : vector<32x4xf32>
    %65 = vector.multi_reduction <add>, %62, %cst_23 [2] : vector<32x4x4xf32> to vector<32x4xf32>
    %66 = vector.shape_cast %65 : vector<32x4xf32> to vector<32x4x1xf32>
    %67 = arith.addf %66, %64 : vector<32x4x1xf32>
    %68 = tpu.reciprocal %67 {approx = true} : vector<32x4x1xf32> -> vector<32x4x1xf32>
    %69 = vector.broadcast %68 : vector<32x4x1xf32> to vector<32x4x4xf32>
    %70 = arith.mulf %62, %69 : vector<32x4x4xf32>
    %71 = arith.mulf %64, %68 : vector<32x4x1xf32>
    %72 = vector.extract_strided_slice %9 {offsets = [0, 0, 0], sizes = [32, 4, 32], strides = [1, 1, 1]} : vector<32x8x32xf32> to vector<32x4x32xf32>
    %73 = vector.extract_strided_slice %9 {offsets = [0, 4, 0], sizes = [32, 4, 32], strides = [1, 1, 1]} : vector<32x8x32xf32> to vector<32x4x32xf32>
    "tpu.trace_start"() <{level = 10 : i32, message = "buv,bvd->bud"}> : () -> ()
    %cst_24 = arith.constant dense<0.000000e+00> : vector<32x4x32xf32>
    %74 = tpu.matmul %54, %73, %cst_24 {dimension_numbers = #tpu.dot_dimension_numbers<[2], [1], [1], [2], [0, 0, 0, 1, 1, 2], [0], [0]>} : vector<32x4x4xf32>, vector<32x4x32xf32>, vector<32x4x32xf32> -> vector<32x4x32xf32>
    "tpu.trace_stop"() : () -> ()
    %75 = vector.broadcast %55 : vector<32x4x1xf32> to vector<32x4x32xf32>
    %76 = arith.mulf %72, %75 : vector<32x4x32xf32>
    %77 = arith.addf %74, %76 : vector<32x4x32xf32>
    "tpu.trace_start"() <{level = 10 : i32, message = "bvu,bud->bvd"}> : () -> ()
    %cst_25 = arith.constant dense<0.000000e+00> : vector<32x4x32xf32>
    %78 = tpu.matmul %70, %72, %cst_25 {dimension_numbers = #tpu.dot_dimension_numbers<[2], [1], [1], [2], [0, 0, 0, 1, 1, 2], [0], [0]>} : vector<32x4x4xf32>, vector<32x4x32xf32>, vector<32x4x32xf32> -> vector<32x4x32xf32>
    "tpu.trace_stop"() : () -> ()
    %79 = vector.broadcast %71 : vector<32x4x1xf32> to vector<32x4x32xf32>
    %80 = arith.mulf %73, %79 : vector<32x4x32xf32>
    %81 = arith.addf %78, %80 : vector<32x4x32xf32>
    %cst_26 = arith.constant 0.000000e+00 : f32
    %82 = vector.broadcast %cst_26 : f32 to vector<32x4x32xf32>
    %83 = arith.cmpf ogt, %77, %82 : vector<32x4x32xf32>
    %84 = math.exp %77 : vector<32x4x32xf32>
    %cst_27 = arith.constant 1.000000e+00 : f32
    %85 = vector.broadcast %cst_27 : f32 to vector<32x4x32xf32>
    %86 = arith.subf %84, %85 : vector<32x4x32xf32>
    %87 = arith.select %83, %77, %86 : vector<32x4x32xi1>, vector<32x4x32xf32>
    %c0_28 = arith.constant 0 : index
    %c0_29 = arith.constant 0 : index
    %c0_30 = arith.constant 0 : index
    %c0_31 = arith.constant 0 : index
    %88 = vector.load %arg6[%c0_28, %c0_29, %c0_30, %c0_31] : memref<32x1x8x32xf32, #tpu.memory_space<vmem>>, vector<32x1x4x32xf32>
    %89 = vector.shape_cast %88 : vector<32x1x4x32xf32> to vector<32x4x32xf32>
    %90 = vector.shape_cast %87 : vector<32x4x32xf32> to vector<32x1x4x32xf32>
    tpu.vector_store %arg6[%c0_28, %c0_29, %c0_30, %c0_31], %90 {strides = array<i32>} : memref<32x1x8x32xf32, #tpu.memory_space<vmem>>, vector<32x1x4x32xf32>,
    %cst_32 = arith.constant 0.000000e+00 : f32
    %91 = vector.broadcast %cst_32 : f32 to vector<32x4x32xf32>
    %92 = arith.cmpf ogt, %81, %91 : vector<32x4x32xf32>
    %93 = math.exp %81 : vector<32x4x32xf32>
    %cst_33 = arith.constant 1.000000e+00 : f32
    %94 = vector.broadcast %cst_33 : f32 to vector<32x4x32xf32>
    %95 = arith.subf %93, %94 : vector<32x4x32xf32>
    %96 = arith.select %92, %81, %95 : vector<32x4x32xi1>, vector<32x4x32xf32>
    %c0_34 = arith.constant 0 : index
    %c0_35 = arith.constant 0 : index
    %c4 = arith.constant 4 : index
    %c0_36 = arith.constant 0 : index
    %97 = vector.load %arg6[%c0_34, %c0_35, %c4, %c0_36] : memref<32x1x8x32xf32, #tpu.memory_space<vmem>>, vector<32x1x4x32xf32>
    %98 = vector.shape_cast %97 : vector<32x1x4x32xf32> to vector<32x4x32xf32>
    %99 = vector.shape_cast %96 : vector<32x4x32xf32> to vector<32x1x4x32xf32>
    tpu.vector_store %arg6[%c0_34, %c0_35, %c4, %c0_36], %99 {strides = array<i32>} : memref<32x1x8x32xf32, #tpu.memory_space<vmem>>, vector<32x1x4x32xf32>,
    return
  }
  func.func @transform_0(%arg0: i32, %arg1: i32) -> (i32, i32, i32, i32) {
    %c0_i32 = arith.constant 0 : i32
    %c0_i32_0 = arith.constant 0 : i32
    %c0_i32_1 = arith.constant 0 : i32
    return %arg1, %arg0, %c0_i32, %c0_i32_0 : i32, i32, i32, i32
  }
  func.func @transform_1(%arg0: i32, %arg1: i32) -> (i32, i32, i32) {
    %c0_i32 = arith.constant 0 : i32
    %c0_i32_0 = arith.constant 0 : i32
    %c0_i32_1 = arith.constant 0 : i32
    return %arg1, %c0_i32, %c0_i32_0 : i32, i32, i32
  }
  func.func @transform_2(%arg0: i32, %arg1: i32) -> (i32, i32, i32) {
    %c0_i32 = arith.constant 0 : i32
    %c0_i32_0 = arith.constant 0 : i32
    %c0_i32_1 = arith.constant 0 : i32
    return %arg0, %c0_i32, %c0_i32_0 : i32, i32, i32
  }
  func.func @transform_3(%arg0: i32, %arg1: i32) -> (i32, i32, i32) {
    %c0_i32 = arith.constant 0 : i32
    %c0_i32_0 = arith.constant 0 : i32
    %c0_i32_1 = arith.constant 0 : i32
    return %arg0, %c0_i32, %c0_i32_0 : i32, i32, i32
  }
  func.func @transform_4(%arg0: i32, %arg1: i32) -> (i32, i32, i32, i32) {
    %c0_i32 = arith.constant 0 : i32
    %c0_i32_0 = arith.constant 0 : i32
    %c0_i32_1 = arith.constant 0 : i32
    return %arg1, %arg0, %c0_i32, %c0_i32_0 : i32, i32, i32, i32
  }
}

</mosaic_0001>

<bundles_post_ra>
// kernel: tpu_custom_call.1
= control target key start
LH: loop header
LB: loop body
LE: loop exit
PB: predicated region body
PF: predicated region fallthrough
CT: control target
= control target key end

     0   :  { %s13700_s15 = smov 0   ;;  %s13702_s16 = smov 0   ;;  %s17226_s0 = inlined_call_operand.vmem [shape: f32[64,2,8,32], index: 0, kind: input, shape index: {}]   ;;  %s17227_s1 = inlined_call_operand.vmem [shape: s8[64,4,4], index: 1, kind: input, shape index: {}]   ;;  %s17228_s2 = inlined_call_operand.vmem [shape: f32[2,32,32], index: 2, kind: input, shape index: {}]   ;;  %s17229_s3 = inlined_call_operand.vmem [shape: f32[2,32,2], index: 3, kind: input, shape index: {}]   ;;  %s17230_s4 = inlined_call_operand.vmem [shape: f32[64,2,8,32], index: 4, kind: output, shape index: {}]  }
   0x1   :  { %s13704_s17 = smov 0   ;;  %s13706_s18 = smov 0  }
   0x2   :  { %s13708_s19 = smov 0   ;;  %s13710_s20 = smov 0  }
   0x3   :  { %s13712_s21 = smov 0  }
   0x4 LB: > { %s23_s22 = sadd.s32 1, %s13661_s19  ;;  %s26_s23 = sadd.s32 1, %s13665_s20  ;;  %s13669_s21 = sphi %s13712_s21, %s14_s21   ;;  %s13665_s20 = sphi %s13710_s20, %s18266_s20   ;;  %s13661_s19 = sphi %s13708_s19, %s18265_s19   ;;  %s13657_s18 = sphi %s13706_s18, %s18264_s18   ;;  %s13653_s17 = sphi %s13704_s17, %s18263_s17   ;;  %s13649_s16 = sphi %s13702_s16, %s18262_s16   ;;  %s13645_s15 = sphi %s13700_s15, %s18261_s15  }
   0x5   : > { %p24_p0 = scmp.ge.s32.totalorder %s23_s22, 2  ;;  %s12080_s24 = sadd.s32 4294967295, %s13669_s21  }
   0x6   : > { %p42_p1 = scmp.ne.s32.totalorder %s13649_s16, %s13645_s15  ;;  %p43_p2 = scmp.eq.s32.totalorder %s13669_s21, 0 }
   0x7   : > { %s18268_s22 = smov (%p24_p0, %s23_s22), 0  ;;  %s18270_s23 = smov (!%p24_p0, %s26_s23), %s13665_s20 }
   0x8   : > { %p28_p3 = scmp.ge.s32.totalorder %s18270_s23, 2  ;;  %p152_p4 = scmp.eq.s32.totalorder %s12080_s24, 3 }
   0x9   : > { %s30_s25 = ssub.s32 %s13661_s19, %s18268_s22  ;;  %p44_p5 = por %p43_p2, %p42_p1 }
   0xa   : > { %s18272_s23 = smov (%p28_p3, %s18270_s23), 0  ;;  %p13748_p6 = por %p152_p4, %p42_p1 }
   0xb   : > { %s31_s27 = ssub.s32 %s13665_s20, %s18272_s23  ;;  %s35_s29 = sadd.s32 1, %s13649_s16 }
   0xc   : > { %s32_s28 = sor.u32 %s31_s27, %s30_s25  ;;  %p12083_p8 = scmp.ge.s32.totalorder %s13669_s21, 4 }
   0xd   : > { %p33_p7 = scmp.eq.s32.totalorder %s32_s28, 0 }
   0xe   : > { %174 = sbr.rel (%p12083_p8) target bundleno = 43 (0x2b), region = 16 }
   0xf   : > { %s13756_s30 = scalar_select %p33_p7, %s13649_s16, %s35_s29  }
  0x15   : > { %177 = sbr.rel (!%p44_p5) target bundleno = 43 (0x2b), region = 20  ;;  %s179_s5 = sand.u32 (%p44_p5), 1, %s13649_s16  }
  0x16   : > { %s12358_s6 = sshll.u32 (%p44_p5), %s13661_s19, 6  ;;  %s12084_s7 = sshll.u32 (%p44_p5), %s179_s5, 8 }
  0x17   : > { %s184_s8 = sadd.s32 (%p44_p5), %s13665_s20, %s12358_s6  ;;  %s13770_s13 = scalar_lea.vmem (%p44_p5), [#allocation2], %s12084_s7 }
  0x18   : > { %s12087_s9 = sshll.u32 (%p44_p5), %s184_s8, 3 }
  0x19   : > { %s13765_s12 = scalar_lea.vmem (%p44_p5), %s17226_s0, %s12087_s9 }
  0x1a   : > { %v276_v0 = vld [vmem:[%s13765_s12] sm:$0xff] (%p44_p5)  ;;  %v278_v1 = vld [vmem:[%s13765_s12 + $0x10] sm:$0xff] (%p44_p5) }
  0x1b   : > { %v280_v2 = vld [vmem:[%s13765_s12 + $0x20] sm:$0xff] (%p44_p5)  ;;  %277 = vst [vmem:[%s13770_s13] sm:$0xff] (%p44_p5), %v276_v0  ;;  %279 = vst [vmem:[%s13770_s13 + $0x8] sm:$0xff] (%p44_p5), %v278_v1  ;;  %v282_v3 = vld [vmem:[%s13765_s12 + $0x30] sm:$0xff] (%p44_p5) }
  0x1c   : > { %281 = vst [vmem:[%s13770_s13 + $0x10] sm:$0xff] %v280_v2  ;;  %v284_v4 = vld [vmem:[%s13765_s12 + $0x40] sm:$0xff]  ;;  %v286_v5 = vld [vmem:[%s13765_s12 + $0x50] sm:$0xff]  ;;  %283 = vst [vmem:[%s13770_s13 + $0x18] sm:$0xff] %v282_v3 }
  0x1d   : > { %285 = vst [vmem:[%s13770_s13 + $0x20] sm:$0xff] %v284_v4  ;;  %287 = vst [vmem:[%s13770_s13 + $0x28] sm:$0xff] %v286_v5  ;;  %v288_v6 = vld [vmem:[%s13765_s12 + $0x60] sm:$0xff]  ;;  %v290_v7 = vld [vmem:[%s13765_s12 + $0x70] sm:$0xff] }
  0x1e   : > { %v292_v8 = vld [vmem:[%s13765_s12 + $0x80] sm:$0xff]  ;;  %289 = vst [vmem:[%s13770_s13 + $0x30] sm:$0xff] %v288_v6  ;;  %291 = vst [vmem:[%s13770_s13 + $0x38] sm:$0xff] %v290_v7  ;;  %v294_v9 = vld [vmem:[%s13765_s12 + $0x90] sm:$0xff] }
  0x1f   : > { %293 = vst [vmem:[%s13770_s13 + $0x40] sm:$0xff] %v292_v8  ;;  %v296_v10 = vld [vmem:[%s13765_s12 + $0xa0] sm:$0xff]  ;;  %v298_v11 = vld [vmem:[%s13765_s12 + $0xb0] sm:$0xff]  ;;  %295 = vst [vmem:[%s13770_s13 + $0x48] sm:$0xff] %v294_v9 }
  0x20   : > { %297 = vst [vmem:[%s13770_s13 + $0x50] sm:$0xff] %v296_v10  ;;  %299 = vst [vmem:[%s13770_s13 + $0x58] sm:$0xff] %v298_v11  ;;  %v300_v12 = vld [vmem:[%s13765_s12 + $0xc0] sm:$0xff]  ;;  %v302_v13 = vld [vmem:[%s13765_s12 + $0xd0] sm:$0xff] }
  0x21   : > { %v304_v14 = vld [vmem:[%s13765_s12 + $0xe0] sm:$0xff]  ;;  %301 = vst [vmem:[%s13770_s13 + $0x60] sm:$0xff] %v300_v12  ;;  %303 = vst [vmem:[%s13770_s13 + $0x68] sm:$0xff] %v302_v13  ;;  %v306_v15 = vld [vmem:[%s13765_s12 + $0xf0] sm:$0xff] }
  0x22   : > { %305 = vst [vmem:[%s13770_s13 + $0x70] sm:$0xff] %v304_v14  ;;  %v308_v16 = vld [vmem:[%s13765_s12 + $0x100] sm:$0xff]  ;;  %v310_v17 = vld [vmem:[%s13765_s12 + $0x110] sm:$0xff]  ;;  %307 = vst [vmem:[%s13770_s13 + $0x78] sm:$0xff] %v306_v15 }
  0x23   : > { %309 = vst [vmem:[%s13770_s13 + $0x80] sm:$0xff] %v308_v16  ;;  %311 = vst [vmem:[%s13770_s13 + $0x88] sm:$0xff] %v310_v17  ;;  %v312_v18 = vld [vmem:[%s13765_s12 + $0x120] sm:$0xff]  ;;  %v314_v19 = vld [vmem:[%s13765_s12 + $0x130] sm:$0xff] }
  0x24   : > { %v316_v20 = vld [vmem:[%s13765_s12 + $0x140] sm:$0xff]  ;;  %313 = vst [vmem:[%s13770_s13 + $0x90] sm:$0xff] %v312_v18  ;;  %315 = vst [vmem:[%s13770_s13 + $0x98] sm:$0xff] %v314_v19  ;;  %v318_v21 = vld [vmem:[%s13765_s12 + $0x150] sm:$0xff] }
  0x25   : > { %317 = vst [vmem:[%s13770_s13 + $0xa0] sm:$0xff] %v316_v20  ;;  %v320_v22 = vld [vmem:[%s13765_s12 + $0x160] sm:$0xff]  ;;  %v322_v23 = vld [vmem:[%s13765_s12 + $0x170] sm:$0xff]  ;;  %319 = vst [vmem:[%s13770_s13 + $0xa8] sm:$0xff] %v318_v21 }
  0x26   : > { %321 = vst [vmem:[%s13770_s13 + $0xb0] sm:$0xff] %v320_v22  ;;  %323 = vst [vmem:[%s13770_s13 + $0xb8] sm:$0xff] %v322_v23  ;;  %v324_v24 = vld [vmem:[%s13765_s12 + $0x180] sm:$0xff]  ;;  %v326_v25 = vld [vmem:[%s13765_s12 + $0x190] sm:$0xff] }
  0x27   : > { %v328_v26 = vld [vmem:[%s13765_s12 + $0x1a0] sm:$0xff]  ;;  %325 = vst [vmem:[%s13770_s13 + $0xc0] sm:$0xff] %v324_v24  ;;  %327 = vst [vmem:[%s13770_s13 + $0xc8] sm:$0xff] %v326_v25  ;;  %v330_v27 = vld [vmem:[%s13765_s12 + $0x1b0] sm:$0xff] }
  0x28   : > { %329 = vst [vmem:[%s13770_s13 + $0xd0] sm:$0xff] %v328_v26  ;;  %v332_v28 = vld [vmem:[%s13765_s12 + $0x1c0] sm:$0xff]  ;;  %v334_v29 = vld [vmem:[%s13765_s12 + $0x1d0] sm:$0xff]  ;;  %331 = vst [vmem:[%s13770_s13 + $0xd8] sm:$0xff] %v330_v27 }
  0x29   : > { %333 = vst [vmem:[%s13770_s13 + $0xe0] sm:$0xff] %v332_v28  ;;  %335 = vst [vmem:[%s13770_s13 + $0xe8] sm:$0xff] %v334_v29  ;;  %v336_v30 = vld [vmem:[%s13765_s12 + $0x1e0] sm:$0xff]  ;;  %v338_v31 = vld [vmem:[%s13765_s12 + $0x1f0] sm:$0xff] }
  0x2a   : > { %337 = vst [vmem:[%s13770_s13 + $0xf0] sm:$0xff] %v336_v30  ;;  %339 = vst [vmem:[%s13770_s13 + $0xf8] sm:$0xff] %v338_v31 }
  0x2b PF: > { %p12088_p9 = scmp.ge.s32.totalorder %s13669_s21, 1  ;;  %p368_p10 = scmp.lt.s32.totalorder %s13669_s21, 5 }
  0x2d   : > { %p369_p11 = pnand %p12088_p9, %p368_p10 }
  0x2f   : > { %372 = sbr.rel (%p369_p11) target bundleno = 2836 (0xb14), region = 70 }
  0x36   : > { %p419_p12 = scmp.lt.s32.totalorder %s13657_s18, 1  ;;  %s375_s14 = sand.u32 1, %s13645_s15   ;;  %v17231_v32 = vmov 0   ;;  %vm472_vm0 = vcmask 261120  }
  0x37   : > { %s13837_s24 = sshll.u32 %s375_s14, 8  ;;  %13070 = vset.pattern.permute.xlu1 %v17231_v32  ;;  %13071 = vset.pattern.permute.xlu0 %v17231_v32  ;;  %s13672_s6 = smov 127  }
  0x38   : > { %s13842_s25 = scalar_select %p419_p12, %s13657_s18, 1 }
  0x39   : > { %s13846_s28 = scalar_lea.vmem [#allocation2], %s13837_s24  ;;  %s12091_s7 = sshll.u32 %s13653_s17, 5 }
  0x3a   : > { %s12359_s27 = sshll.u32 %s13842_s25, 5  ;;  %v432_v33 = vld [vmem:[%s13846_s28] sm:$0xff]  ;;  %v433_v40 = vld [vmem:[%s13846_s28 + $0x8] sm:$0xff]  ;;  %v434_v41 = vld [vmem:[%s13846_s28 + $0x10] sm:$0xff]  ;;  %p415_p13 = scmp.lt.s32.totalorder %s12091_s7, 63 }
  0x3b   : > { %s428_s5 = scalar_lea.vmem %s17229_s3, %s12359_s27  ;;  %12626 = vmatprep.mubr.msk.f32.mxu1 %vm472_vm0, %v432_v33  ;;  %12570 = vmatprep.mubr.msk.f32.mxu0 %vm472_vm0, %v432_v33  ;;  %v435_v42 = vld [vmem:[%s13846_s28 + $0x18] sm:$0xff]  ;;  %v436_v43 = vld [vmem:[%s13846_s28 + $0x20] sm:$0xff]  ;;  %v437_v44 = vld [vmem:[%s13846_s28 + $0x28] sm:$0xff]  ;;  %s423_s13 = scalar_lea.vmem %s17228_s2, %s12359_s27 }
  0x3c   : > { %v468_v34 = vld [vmem:[%s428_s5] sm:$0xff]  ;;  %v469_v35 = vld [vmem:[%s428_s5 + $0x8] sm:$0xff]  ;;  %v470_v36 = vld [vmem:[%s428_s5 + $0x10] sm:$0xff]  ;;  %s18274_s7 = smov (!%p415_p13, %s12091_s7), 63  ;;  %s16730_s14 = scalar_lea.vmem [#allocation3], %s13837_s24 }
  0x3d   : > { %v13002_v37 = vpack.c.bf16 %v469_v35, %v468_v34  ;;  %v471_v38 = vld [vmem:[%s428_s5 + $0x18] sm:$0xff]  ;;  %v438_v45 = vld [vmem:[%s13846_s28 + $0x30] sm:$0xff]  ;;  %v440_v47 = vld [vmem:[%s13846_s28 + $0x40] sm:$0xff]  ;;  %s14208_s10 = scalar_lea.vmem %s17227_s1, %s18274_s7  ;;  %s12361_s24 = sshll.u32 (%p13748_p6), %s13653_s17, 6 }
  0x3e   : > { %v13006_v39 = vpack.c.bf16 %v471_v38, %v470_v36  ;;  %v439_v46 = vld [vmem:[%s13846_s28 + $0x38] sm:$0xff]  ;;  %v441_v48 = vld [vmem:[%s13846_s28 + $0x48] sm:$0xff]  ;;  %v442_v49 = vld [vmem:[%s13846_s28 + $0x50] sm:$0xff]  ;;  %s11816_s26 = sadd.s32 (%p13748_p6), %s13657_s18, %s12361_s24 }
  0x3f   : > { %13003 = vmatprep.subr.bf16.mxu1 %v13002_v37  ;;  %v443_v50 = vld [vmem:[%s13846_s28 + $0x58] sm:$0xff]  ;;  %v444_v51 = vld [vmem:[%s13846_s28 + $0x60] sm:$0xff]  ;;  %v445_v52 = vld [vmem:[%s13846_s28 + $0x68] sm:$0xff]  ;;  %s12355_s25 = sshll.u32 (%p13748_p6), %s11816_s26, 3 }
  0x40   : > { %13005 = vmatpush3.bf16.msra.mxu1 %v13002_v37  ;;  %v446_v53 = vld [vmem:[%s13846_s28 + $0x70] sm:$0xff]  ;;  %v447_v54 = vld [vmem:[%s13846_s28 + $0x78] sm:$0xff]  ;;  %v448_v55 = vld [vmem:[%s13846_s28 + $0x80] sm:$0xff]  ;;  %s17148_s15 = scalar_lea.vmem (%p13748_p6), %s17230_s4, %s12355_s25 }
  0x41   : > { %13007 = vmatprep.subr.bf16.mxu1 %v13006_v39  ;;  %v449_v56 = vld [vmem:[%s13846_s28 + $0x88] sm:$0xff]  ;;  %v450_v57 = vld [vmem:[%s13846_s28 + $0x90] sm:$0xff]  ;;  %v451_v58 = vld [vmem:[%s13846_s28 + $0x98] sm:$0xff] }
  0x42   : > { %v452_v59 = vld [vmem:[%s13846_s28 + $0xa0] sm:$0xff]  ;;  %v453_v60 = vld [vmem:[%s13846_s28 + $0xa8] sm:$0xff]  ;;  %v454_v61 = vld [vmem:[%s13846_s28 + $0xb0] sm:$0xff] }
  0x43   : > { %v455_v62 = vld [vmem:[%s13846_s28 + $0xb8] sm:$0xff]  ;;  %v456_v63 = vld [vmem:[%s13846_s28 + $0xc0] sm:$0xff]  ;;  %v457_v0 = vld [vmem:[%s13846_s28 + $0xc8] sm:$0xff] }
  0x44   : > { %13009 = vmatpush3.bf16.msra.mxu1 %v13006_v39  ;;  %v458_v1 = vld [vmem:[%s13846_s28 + $0xd0] sm:$0xff]  ;;  %v459_v2 = vld [vmem:[%s13846_s28 + $0xd8] sm:$0xff]  ;;  %v460_v3 = vld [vmem:[%s13846_s28 + $0xe0] sm:$0xff] }
  0x45   : > { %v461_v4 = vld [vmem:[%s13846_s28 + $0xe8] sm:$0xff]  ;;  %v462_v5 = vld [vmem:[%s13846_s28 + $0xf0] sm:$0xff]  ;;  %v463_v6 = vld [vmem:[%s13846_s28 + $0xf8] sm:$0xff] }
  0x47   : > { %12627 = vmatmul.mubr.msk.f32.vlgmr.msra.gmra.mrb[0].mxu1 %vm472_vm0, %v433_v40 }
  0x48   : > { %12629 = vmatprep.mubr.msk.f32.mxu1 %vm472_vm0, %v434_v41 }
  0x4b   : > { %12630 = vmatmul.mubr.msk.f32.gmra.mrb[2].mxu1 %vm472_vm0, %v435_v42 }
  0x4c   : > { %12632 = vmatprep.mubr.msk.f32.mxu1 %vm472_vm0, %v436_v43 }
  0x4f   : > { %12633 = vmatmul.mubr.msk.f32.gmra.mrb[4].mxu1 %vm472_vm0, %v437_v44 }
  0x50   : > { %12635 = vmatprep.mubr.msk.f32.mxu1 %vm472_vm0, %v438_v45 }
  0x53   : > { %12636 = vmatmul.mubr.msk.f32.gmra.mrb[6].mxu1 %vm472_vm0, %v439_v46 }
  0x54   : > { %12638 = vmatprep.mubr.msk.f32.mxu1 %vm472_vm0, %v440_v47 }
  0x57   : > { %12639 = vmatmul.mubr.msk.f32.gmra.mrb[8].mxu1 %vm472_vm0, %v441_v48 }
  0x58   : > { %12641 = vmatprep.mubr.msk.f32.mxu1 %vm472_vm0, %v442_v49 }
  0x5b   : > { %12642 = vmatmul.mubr.msk.f32.gmra.mrb[10].mxu1 %vm472_vm0, %v443_v50 }
  0x5c   : > { %12644 = vmatprep.mubr.msk.f32.mxu1 %vm472_vm0, %v444_v51 }
  0x5f   : > { %12645 = vmatmul.mubr.msk.f32.gmra.mrb[12].mxu1 %vm472_vm0, %v445_v52 }
  0x60   : > { %12647 = vmatprep.mubr.msk.f32.mxu1 %vm472_vm0, %v446_v53 }
  0x63   : > { %12648 = vmatmul.mubr.msk.f32.gmra.mrb[14].mxu1 %vm472_vm0, %v447_v54 }
  0x64   : > { %12650 = vmatprep.mubr.msk.f32.mxu1 %vm472_vm0, %v448_v55 }
  0x67   : > { %12651 = vmatmul.mubr.msk.f32.gmra.mrb[16].mxu1 %vm472_vm0, %v449_v56 }
  0x68   : > { %12653 = vmatprep.mubr.msk.f32.mxu1 %vm472_vm0, %v450_v57 }
  0x6b   : > { %12654 = vmatmul.mubr.msk.f32.gmra.mrb[18].mxu1 %vm472_vm0, %v451_v58 }
  0x6c   : > { %12656 = vmatprep.mubr.msk.f32.mxu1 %vm472_vm0, %v452_v59 }
  0x6f   : > { %12657 = vmatmul.mubr.msk.f32.gmra.mrb[20].mxu1 %vm472_vm0, %v453_v60 }
  0x70   : > { %12659 = vmatprep.mubr.msk.f32.mxu1 %vm472_vm0, %v454_v61 }
  0x73   : > { %12660 = vmatmul.mubr.msk.f32.gmra.mrb[22].mxu1 %vm472_vm0, %v455_v62 }
  0x74   : > { %12662 = vmatprep.mubr.msk.f32.mxu1 %vm472_vm0, %v456_v63 }
  0x77   : > { %12663 = vmatmul.mubr.msk.f32.gmra.mrb[24].mxu1 %vm472_vm0, %v457_v0 }
  0x78   : > { %12665 = vmatprep.mubr.msk.f32.mxu1 %vm472_vm0, %v458_v1 }
  0x7b   : > { %12666 = vmatmul.mubr.msk.f32.gmra.mrb[26].mxu1 %vm472_vm0, %v459_v2 }
  0x7c   : > { %12668 = vmatprep.mubr.msk.f32.mxu1 %vm472_vm0, %v460_v3 }
  0x7f   : > { %12669 = vmatmul.mubr.msk.f32.gmra.mrb[28].mxu1 %vm472_vm0, %v461_v4 }
  0x80   : > { %12671 = vmatprep.mubr.msk.f32.mxu1 %vm472_vm0, %v462_v5 }
  0x83   : > { %12672 = vmatmul.mubr.msk.f32.gmra.mrb[30].mxu1 %vm472_vm0, %v463_v6 }
 0x11a   : > { %v13918_v7 = vpop.f32.mrb[0].mxu1 }
 0x11b   : > { %2208 = vperm.xlu1 %13070, %v13918_v7   ;;  %v13921_v8 = vpop.f32.mrb[1].mxu1  ;;  %v1052_v11 = vrot.slane %v13918_v7, 4 }
 0x11c   : > { %17551 = vst [vmem:[#allocation4_spill] sm:$0xff] %v13921_v8  ;;  %2204 = vperm.xlu0 %13071, %v13921_v8   ;;  %v1051_v15 = vrot.slane %v13921_v8, 4 }
 0x11e   : > { %v13924_v9 = vpop.f32.mrb[2].mxu1 }
 0x11f   : > { %2216 = vperm.xlu1 %13070, %v13924_v9   ;;  %v13927_v10 = vpop.f32.mrb[3].mxu1  ;;  %v1054_v13 = vrot.slane %v13924_v9, 4 }
 0x120   : > { %17552 = vst [vmem:[#allocation5_spill] sm:$0xff] %v13927_v10  ;;  %2779 = vrot.lane.b32.xlu0 %v13921_v8, %s13672_s6  ;;  %v1053_v17 = vrot.slane %v13927_v10, 4 }
 0x122   : > { %v13932_v12 = vpop.f32.mrb[4].mxu1 }
 0x123   : > { %2212 = vperm.xlu1 %13070, %v13927_v10   ;;  %v13936_v14 = vpop.f32.mrb[5].mxu1  ;;  %v1056_v23 = vrot.slane %v13932_v12, 4 }
 0x124   : > { %17553 = vst [vmem:[#allocation6_spill] sm:$0xff] %v13936_v14  ;;  %1085 = vrot.lane.b32.xlu0 %v1052_v11, %s13672_s6  ;;  %v1055_v26 = vrot.slane %v13936_v14, 4 }
 0x126   : > { %v13940_v16 = vpop.f32.mrb[6].mxu1 }
 0x127   : > { %1089 = vrot.lane.b32.xlu1 %v1054_v13, %s13672_s6  ;;  %v13944_v18 = vpop.f32.mrb[7].mxu1  ;;  %v1058_v28 = vrot.slane %v13940_v16, 4 }
 0x128   : > { %17554 = vst [vmem:[#allocation7_spill] sm:$0xff] %v13944_v18  ;;  %1083 = vrot.lane.b32.xlu0 %v1051_v15, %s13672_s6  ;;  %v1057_v36 = vrot.slane %v13944_v18, 4 }
 0x12a   : > { %v13947_v19 = vpop.f32.mrb[8].mxu1 }
 0x12b   : > { %1087 = vrot.lane.b32.xlu1 %v1053_v17, %s13672_s6  ;;  %v13950_v20 = vpop.f32.mrb[9].mxu1  ;;  %v1060_v34 = vrot.slane %v13947_v19, 4 }
 0x12c   : > { %17555 = vst [vmem:[#allocation8_spill] sm:$0xff] %v13950_v20  ;;  %2783 = vrot.lane.b32.xlu0 %v13927_v10, %s13672_s6  ;;  %v1059_v44 = vrot.slane %v13950_v20, 4 }
 0x12e   : > { %v13954_v21 = vpop.f32.mrb[10].mxu1 }
 0x12f   : > { %2224 = vperm.xlu1 %13070, %v13932_v12   ;;  %v13957_v22 = vpop.f32.mrb[11].mxu1  ;;  %v1062_v40 = vrot.slane %v13954_v21, 4 }
 0x130   : > { %17556 = vst [vmem:[#allocation9_spill] sm:$0xff] %v13957_v22  ;;  %2220 = vperm.xlu0 %13071, %v13936_v14   ;;  %v1061_v53 = vrot.slane %v13957_v22, 4 }
 0x132   : > { %v13961_v24 = vpop.f32.mrb[12].mxu1 }
 0x133   : > { %1093 = vrot.lane.b32.xlu1 %v1056_v23, %s13672_s6  ;;  %v13964_v25 = vpop.f32.mrb[13].mxu1  ;;  %v1064_v46 = vrot.slane %v13961_v24, 4 }
 0x134   : > { %17557 = vst [vmem:[#allocation10_spill] sm:$0xff] %v13964_v25  ;;  %2787 = vrot.lane.b32.xlu0 %v13936_v14, %s13672_s6  ;;  %v1063_v55 = vrot.slane %v13964_v25, 4 }
 0x136   : > { %v13969_v27 = vpop.f32.mrb[14].mxu1 }
 0x137   : > { %2232 = vperm.xlu1 %13070, %v13940_v16   ;;  %v13973_v29 = vpop.f32.mrb[15].mxu1  ;;  %v1066_v51 = vrot.slane %v13969_v27, 4 }
 0x138   : > { %17558 = vst [vmem:[#allocation11_spill] sm:$0xff] %v13973_v29  ;;  %1091 = vrot.lane.b32.xlu0 %v1055_v26, %s13672_s6  ;;  %v1065_v58 = vrot.slane %v13973_v29, 4 }
 0x13a   : > { %v13976_v30 = vpop.f32.mrb[16].mxu1 }
 0x13b   : > { %1097 = vrot.lane.b32.xlu1 %v1058_v28, %s13672_s6  ;;  %v13979_v31 = vpop.f32.mrb[17].mxu1  ;;  %v1068_v54 = vrot.slane %v13976_v30, 4 }
 0x13c   : > { %17559 = vst [vmem:[#allocation12_spill] sm:$0xff] %v13979_v31  ;;  %2228 = vperm.xlu0 %13071, %v13944_v18   ;;  %v1067_v60 = vrot.slane %v13979_v31, 4 }
 0x13e   : > { %v13982_v33 = vpop.f32.mrb[18].mxu1 }
 0x13f   : > { %2240 = vperm.xlu1 %13070, %v13947_v19   ;;  %v13986_v35 = vpop.f32.mrb[19].mxu1  ;;  %v1070_v56 = vrot.slane %v13982_v33, 4 }
 0x140   : > { %17560 = vst [vmem:[#allocation13_spill] sm:$0xff] %v13986_v35  ;;  %2791 = vrot.lane.b32.xlu0 %v13944_v18, %s13672_s6  ;;  %v1069_v63 = vrot.slane %v13986_v35, 4 }
 0x142   : > { %v13991_v37 = vpop.f32.mrb[20].mxu1 }
 0x143   : > { %1101 = vrot.lane.b32.xlu1 %v1060_v34, %s13672_s6  ;;  %v13994_v38 = vpop.f32.mrb[21].mxu1  ;;  %v1072_v57 = vrot.slane %v13991_v37, 4 }
 0x144   : > { %17561 = vst [vmem:[#allocation14_spill] sm:$0xff] %v13994_v38  ;;  %1095 = vrot.lane.b32.xlu0 %v1057_v36, %s13672_s6  ;;  %v1071_v1 = vrot.slane %v13994_v38, 4 }
 0x146   : > { %v13997_v39 = vpop.f32.mrb[22].mxu1 }
 0x147   : > { %2248 = vperm.xlu1 %13070, %v13954_v21   ;;  %v14001_v41 = vpop.f32.mrb[23].mxu1  ;;  %v1074_v59 = vrot.slane %v13997_v39, 4 }
 0x148   : > { %17562 = vst [vmem:[#allocation15_spill] sm:$0xff] %v14001_v41  ;;  %2236 = vperm.xlu0 %13071, %v13950_v20   ;;  %v1073_v13 = vrot.slane %v14001_v41, 4 }
 0x14a   : > { %v14004_v42 = vpop.f32.mrb[24].mxu1 }
 0x14b   : > { %1105 = vrot.lane.b32.xlu1 %v1062_v40, %s13672_s6  ;;  %v14007_v43 = vpop.f32.mrb[25].mxu1  ;;  %v1076_v61 = vrot.slane %v14004_v42, 4 }
 0x14c   : > { %17563 = vst [vmem:[#allocation16_spill] sm:$0xff] %v14007_v43  ;;  %2795 = vrot.lane.b32.xlu0 %v13950_v20, %s13672_s6  ;;  %v1075_v36 = vrot.slane %v14007_v43, 4 }
 0x14e   : > { %v14012_v45 = vpop.f32.mrb[26].mxu1 }
 0x14f   : > { %2256 = vperm.xlu1 %13070, %v13961_v24   ;;  %v14016_v47 = vpop.f32.mrb[27].mxu1  ;;  %v1078_v62 = vrot.slane %v14012_v45, 4 }
 0x150   : > { %17564 = vst [vmem:[#allocation17_spill] sm:$0xff] %v14016_v47  ;;  %1099 = vrot.lane.b32.xlu0 %v1059_v44, %s13672_s6 }
 0x152   : > { %v14019_v48 = vpop.f32.mrb[28].mxu1 }
 0x153   : > { %1109 = vrot.lane.b32.xlu1 %v1064_v46, %s13672_s6  ;;  %v14022_v49 = vpop.f32.mrb[29].mxu1  ;;  %v1080_v0 = vrot.slane %v14019_v48, 4 }
 0x154   : > { %17565 = vst [vmem:[#allocation18_spill] sm:$0xff] %v14022_v49  ;;  %2244 = vperm.xlu0 %13071, %v13957_v22  }
 0x156   : > { %v14025_v50 = vpop.f32.mrb[30].mxu1 }
 0x157   : > { %17566 = vst [vmem:[#allocation19_spill] sm:$0xff] %v14025_v50  ;;  %2264 = vperm.xlu1 %13070, %v13969_v27   ;;  %v14029_v52 = vpop.f32.mrb[31].mxu1  ;;  %v1082_v2 = vrot.slane %v14025_v50, 4 }
 0x158   : > { %17567 = vst [vmem:[#allocation20_spill] sm:$0xff] %v14029_v52  ;;  %2799 = vrot.lane.b32.xlu0 %v13957_v22, %s13672_s6 }
 0x15b   : > { %1113 = vrot.lane.b32.xlu1 %v1066_v51, %s13672_s6 }
 0x15c   : > { %1103 = vrot.lane.b32.xlu0 %v1061_v53, %s13672_s6 }
 0x15f   : > { %2272 = vperm.xlu1 %13070, %v13976_v30  }
 0x160   : > { %2252 = vperm.xlu0 %13071, %v13964_v25  }
 0x163   : > { %1117 = vrot.lane.b32.xlu1 %v1068_v54, %s13672_s6 }
 0x164   : > { %2803 = vrot.lane.b32.xlu0 %v13964_v25, %s13672_s6 }
 0x167   : > { %2280 = vperm.xlu1 %13070, %v13982_v33  }
 0x168   : > { %1107 = vrot.lane.b32.xlu0 %v1063_v55, %s13672_s6  ;;  %v1077_v55 = vrot.slane %v14016_v47, 4 }
 0x16b   : > { %1121 = vrot.lane.b32.xlu1 %v1070_v56, %s13672_s6 }
 0x16c   : > { %2260 = vperm.xlu0 %13071, %v13973_v29  }
 0x16f   : > { %2288 = vperm.xlu1 %13070, %v13991_v37  }
 0x170   : > { %2807 = vrot.lane.b32.xlu0 %v13973_v29, %s13672_s6 }
 0x173   : > { %1125 = vrot.lane.b32.xlu1 %v1072_v57, %s13672_s6 }
 0x174   : > { %1111 = vrot.lane.b32.xlu0 %v1065_v58, %s13672_s6 }
 0x177   : > { %2296 = vperm.xlu1 %13070, %v13997_v39  }
 0x178   : > { %2268 = vperm.xlu0 %13071, %v13979_v31  }
 0x17b   : > { %1129 = vrot.lane.b32.xlu1 %v1074_v59, %s13672_s6 }
 0x17c   : > { %2811 = vrot.lane.b32.xlu0 %v13979_v31, %s13672_s6 }
 0x17f   : > { %2304 = vperm.xlu1 %13070, %v14004_v42  }
 0x180   : > { %1115 = vrot.lane.b32.xlu0 %v1067_v60, %s13672_s6 }
 0x183   : > { %1133 = vrot.lane.b32.xlu1 %v1076_v61, %s13672_s6 }
 0x184   : > { %2276 = vperm.xlu0 %13071, %v13986_v35  }
 0x187   : > { %2312 = vperm.xlu1 %13070, %v14012_v45  }
 0x188   : > { %2815 = vrot.lane.b32.xlu0 %v13986_v35, %s13672_s6 }
 0x18b   : > { %1137 = vrot.lane.b32.xlu1 %v1078_v62, %s13672_s6  ;;  %v1079_v62 = vrot.slane %v14022_v49, 4 }
 0x18c   : > { %1119 = vrot.lane.b32.xlu0 %v1069_v63, %s13672_s6 }
 0x18f   : > { %2320 = vperm.xlu1 %13070, %v14019_v48  }
 0x190   : > { %2284 = vperm.xlu0 %13071, %v13994_v38  }
 0x193   : > { %1141 = vrot.lane.b32.xlu1 %v1080_v0, %s13672_s6 }
 0x194   : > { %2819 = vrot.lane.b32.xlu0 %v13994_v38, %s13672_s6 }
 0x197   : > { %2328 = vperm.xlu1 %13070, %v14025_v50  }
 0x198   : > { %1123 = vrot.lane.b32.xlu0 %v1071_v1, %s13672_s6 }
 0x19a   : > { %v14084_v3 = vpop.permute.xlu1 %2208 }
 0x19b   : > { %v14086_v4 = vpop.permute.xlu0 %2204  ;;  %1145 = vrot.lane.b32.xlu1 %v1082_v2, %s13672_s6 }
 0x19c   : > { %2292 = vperm.xlu0 %13071, %v14001_v41  }
 0x19e   : > { %v14090_v5 = vpop.permute.xlu1 %2216 }
 0x19f   : > { %v14092_v6 = vpop.permute.xlu0 %2779 }
 0x1a0   : > { %17568 = vst [vmem:[#allocation21_spill] sm:$0xff] %v14092_v6  ;;  %2823 = vrot.lane.b32.xlu0 %v14001_v41, %s13672_s6 }
 0x1a2   : > { %v14096_v11 = vpop.permute.xlu1 %2212 }
 0x1a3   : > { %v1086_v15 = vpop.permute.xlu0 %1085 }
 0x1a4   : > { %1127 = vrot.lane.b32.xlu0 %v1073_v13, %s13672_s6 }
 0x1a6   : > { %v14100_v17 = vpop.permute.xlu1 %1089 }
 0x1a7   : > { %v1084_v23 = vpop.permute.xlu0 %1083 }
 0x1a8   : > { %2300 = vperm.xlu0 %13071, %v14007_v43  }
 0x1aa   : > { %v14103_v26 = vpop.permute.xlu1 %1087 }
 0x1ab   : > { %v14105_v28 = vpop.permute.xlu0 %2783 }
 0x1ac   : > { %17569 = vst [vmem:[#allocation22_spill] sm:$0xff] %v14105_v28  ;;  %2827 = vrot.lane.b32.xlu0 %v14007_v43, %s13672_s6  ;;  %v2596_v28 = vld [vmem:[%s14208_s10 + $0x9] sm:$0x1] }
 0x1ad   : > { %vm2628_vm6 = vnez %v2596_v28 }
 0x1ae   : > { %v14109_v34 = vpop.permute.xlu1 %2224 }
 0x1af   : > { %v14112_v40 = vpop.permute.xlu0 %2220 }
 0x1b0   : > { %1131 = vrot.lane.b32.xlu0 %v1075_v36, %s13672_s6  ;;  %v1081_v36 = vrot.slane %v14029_v52, 4 }
 0x1b2   : > { %v1094_v44 = vpop.permute.xlu1 %1093 }
 0x1b3   : > { %v14115_v46 = vpop.permute.xlu0 %2787 }
 0x1b4   : > { %17570 = vst [vmem:[#allocation23_spill] sm:$0xff] %v14115_v46  ;;  %2308 = vperm.xlu0 %13071, %v14016_v47  }
 0x1b6   : > { %v14118_v51 = vpop.permute.xlu1 %2232 }
 0x1b7   : > { %v1092_v53 = vpop.permute.xlu0 %1091 }
 0x1b8   : > { %2831 = vrot.lane.b32.xlu0 %v14016_v47, %s13672_s6 }
 0x1ba   : > { %v1098_v54 = vpop.permute.xlu1 %1097 }
 0x1bb   : > { %v14123_v56 = vpop.permute.xlu0 %2228 }
 0x1bc   : > { %1135 = vrot.lane.b32.xlu0 %v1077_v55, %s13672_s6 }
 0x1be   : > { %v14126_v57 = vpop.permute.xlu1 %2240 }
 0x1bf   : > { %v14128_v58 = vpop.permute.xlu0 %2791 }
 0x1c0   : > { %17571 = vst [vmem:[#allocation24_spill] sm:$0xff] %v14128_v58  ;;  %2316 = vperm.xlu0 %13071, %v14022_v49   ;;  %v2594_v58 = vld [vmem:[%s14208_s10 + $0x7] sm:$0x1] }
 0x1c1   : > { %vm2626_vm3 = vnez %v2594_v58 }
 0x1c2   : > { %v1102_v59 = vpop.permute.xlu1 %1101 }
 0x1c3   : > { %v1096_v60 = vpop.permute.xlu0 %1095 }
 0x1c4   : > { %2835 = vrot.lane.b32.xlu0 %v14022_v49, %s13672_s6  ;;  %1211 = vxpose.xlu1.b32.start.end [1/1] (short) (narrow) %v1086_v15, 8 }
 0x1c6   : > { %v14133_v61 = vpop.permute.xlu1 %2248 }
 0x1c7   : > { %v14136_v63 = vpop.permute.xlu0 %2236 }
 0x1c8   : > { %1139 = vrot.lane.b32.xlu0 %v1079_v62, %s13672_s6  ;;  %1339 = vxpose.xlu1.b32.start.end [1/1] (short) (narrow) %v1094_v44, 8 }
 0x1ca   : > { %v1106_v0 = vpop.permute.xlu1 %1105 }
 0x1cb   : > { %v14139_v1 = vpop.permute.xlu0 %2795 }
 0x1cc   : > { %17572 = vst [vmem:[#allocation25_spill] sm:$0xff] %v14139_v1  ;;  %1403 = vxpose.xlu1.b32.start.end [1/1] (short) (narrow) %v1098_v54, 8  ;;  %2324 = vperm.xlu0 %13071, %v14029_v52  }
 0x1ce   : > { %v14142_v2 = vpop.permute.xlu1 %2256 }
 0x1cf   : > { %v1100_v13 = vpop.permute.xlu0 %1099 }
 0x1d0   : > { %1467 = vxpose.xlu1.b32.start.end [1/1] (short) (narrow) %v1102_v59, 8  ;;  %2839 = vrot.lane.b32.xlu0 %v14029_v52, %s13672_s6 }
 0x1d2   : > { %v1110_v15 = vpop.permute.xlu1 %1109 }
 0x1d3   : > { %v14147_v55 = vpop.permute.xlu0 %2244 }
 0x1d4   : > { %1531 = vxpose.xlu1.b32.start.end [1/1] (short) (narrow) %v1106_v0, 8  ;;  %1143 = vrot.lane.b32.xlu0 %v1081_v36, %s13672_s6 }
 0x1d6   : > { %v14150_v44 = vpop.permute.xlu1 %2264 }
 0x1d7   : > { %v14152_v54 = vpop.permute.xlu0 %2799 }
 0x1d8   : > { %17573 = vst [vmem:[#allocation26_spill] sm:$0xff] %v14152_v54  ;;  %1595 = vxpose.xlu1.b32.start.end [1/1] (short) (narrow) %v1110_v15, 8 }
 0x1da   : > { %v1114_v62 = vpop.permute.xlu1 %1113 }
 0x1db   : > { %v1104_v32 = vpop.permute.xlu0 %1103 }
 0x1dc   : > { %1659 = vxpose.xlu1.b32.start.end [1/1] (short) (narrow) %v1114_v62, 8 }
 0x1de   : > { %v14154_v59 = vpop.permute.xlu1 %2272 }
 0x1df   : > { %v14156_v49 = vpop.permute.xlu0 %2252 }
 0x1e2   : > { %v1118_v47 = vpop.permute.xlu1 %1117 }
 0x1e3   : > { %v14158_v43 = vpop.permute.xlu0 %2803  ;;  %1723 = vxpose.xlu1.b32.start.end [1/1] (short) (narrow) %v1118_v47, 8 }
 0x1e4   : > { %17574 = vst [vmem:[#allocation27_spill] sm:$0xff] %v14158_v43 }
 0x1e6   : > { %v14160_v52 = vpop.permute.xlu1 %2280 }
 0x1e7   : > { %v1108_v0 = vpop.permute.xlu0 %1107 }
 0x1ea   : > { %v1122_v36 = vpop.permute.xlu1 %1121 }
 0x1eb   : > { %v14162_v41 = vpop.permute.xlu0 %2260  ;;  %1787 = vxpose.xlu1.b32.start.end [1/1] (short) (narrow) %v1122_v36, 8 }
 0x1ee   : > { %v14164_v38 = vpop.permute.xlu1 %2288 }
 0x1ef   : > { %v14166_v15 = vpop.permute.xlu0 %2807 }
 0x1f0   : > { %17575 = vst [vmem:[#allocation28_spill] sm:$0xff] %v14166_v15 }
 0x1f2   : > { %v1126_v62 = vpop.permute.xlu1 %1125  ;;  %1179 = vxpose.xlu0.b32.start.end [1/1] (short) (narrow) %v1084_v23, 8 }
 0x1f3   : > { %v1112_v35 = vpop.permute.xlu0 %1111  ;;  %1851 = vxpose.xlu1.b32.start.end [1/1] (short) (narrow) %v1126_v62, 8 }
 0x1f6   : > { %v14168_v31 = vpop.permute.xlu1 %2296  ;;  %1275 = vxpose.xlu0.b32.start.end [1/1] (short) (narrow) %v14100_v17, 8 }
 0x1f7   : > { %v14171_v47 = vpop.permute.xlu0 %2268 }
 0x1fa   : > { %v1130_v29 = vpop.permute.xlu1 %1129  ;;  %1243 = vxpose.xlu0.b32.start.end [1/1] (short) (narrow) %v14103_v26, 8 }
 0x1fb   : > { %v14174_v43 = vpop.permute.xlu0 %2811  ;;  %1915 = vxpose.xlu1.b32.start.end [1/1] (short) (narrow) %v1130_v29, 8 }
 0x1fc   : > { %17576 = vst [vmem:[#allocation29_spill] sm:$0xff] %v14174_v43 }
 0x1fe   : > { %v14176_v36 = vpop.permute.xlu1 %2304  ;;  %1307 = vxpose.xlu0.b32.start.end [1/1] (short) (narrow) %v1092_v53, 8 }
 0x1ff   : > { %v1116_v15 = vpop.permute.xlu0 %1115 }
 0x202   : > { %v1134_v25 = vpop.permute.xlu1 %1133  ;;  %1371 = vxpose.xlu0.b32.start.end [1/1] (short) (narrow) %v1096_v60, 8 }
 0x203   : > { %v14178_v23 = vpop.permute.xlu0 %2276  ;;  %1979 = vxpose.xlu1.b32.start.end [1/1] (short) (narrow) %v1134_v25, 8 }
 0x206   : > { %v14180_v62 = vpop.permute.xlu1 %2312  ;;  %1435 = vxpose.xlu0.b32.start.end [1/1] (short) (narrow) %v1100_v13, 8 }
 0x207   : > { %v14182_v17 = vpop.permute.xlu0 %2815 }
 0x208   : > { %17577 = vst [vmem:[#allocation30_spill] sm:$0xff] %v14182_v17 }
 0x20a   : > { %v1138_v54 = vpop.permute.xlu1 %1137  ;;  %1499 = vxpose.xlu0.b32.start.end [1/1] (short) (narrow) %v1104_v32, 8 }
 0x20b   : > { %v1120_v26 = vpop.permute.xlu0 %1119  ;;  %2043 = vxpose.xlu1.b32.start.end [1/1] (short) (narrow) %v1138_v54, 8 }
 0x20e   : > { %v14184_v43 = vpop.permute.xlu1 %2320  ;;  %1563 = vxpose.xlu0.b32.start.end [1/1] (short) (narrow) %v1108_v0, 8 }
 0x20f   : > { %v14186_v29 = vpop.permute.xlu0 %2284 }
 0x212   : > { %v1142_v53 = vpop.permute.xlu1 %1141  ;;  %1627 = vxpose.xlu0.b32.start.end [1/1] (short) (narrow) %v1112_v35, 8 }
 0x213   : > { %v14188_v60 = vpop.permute.xlu0 %2819  ;;  %2107 = vxpose.xlu1.b32.start.end [1/1] (short) (narrow) %v1142_v53, 8 }
 0x214   : > { %17578 = vst [vmem:[#allocation31_spill] sm:$0xff] %v14188_v60 }
 0x216   : > { %v14190_v25 = vpop.permute.xlu1 %2328  ;;  %1691 = vxpose.xlu0.b32.start.end [1/1] (short) (narrow) %v1116_v15, 8 }
 0x217   : > { %v1124_v13 = vpop.permute.xlu0 %1123 }
 0x21a   : > { %v1146_v17 = vpop.permute.xlu1 %1145  ;;  %1755 = vxpose.xlu0.b32.start.end [1/1] (short) (narrow) %v1120_v26, 8 }
 0x21b   : > { %v14192_v32 = vpop.permute.xlu0 %2292  ;;  %2171 = vxpose.xlu1.b32.start.end [1/1] (short) (narrow) %v1146_v17, 8  ;;  %v2331_v17 = vlaneseq }
 0x21e   : > { %1819 = vxpose.xlu0.b32.start.end [1/1] (short) (narrow) %v1124_v13, 8 }
 0x21f   : > { %v14194_v54 = vpop.permute.xlu0 %2823 }
 0x220   : > { %17579 = vst [vmem:[#allocation32_spill] sm:$0xff] %v14194_v54  ;;  %v2592_v54 = vld [vmem:[%s14208_s10 + $0x5] sm:$0x1] }
 0x221   : > { %vm2624_vm2 = vnez %v2592_v54 }
 0x223   : > { %v1128_v0 = vpop.permute.xlu0 %1127 }
 0x224   : > { %1883 = vxpose.xlu0.b32.start.end [1/1] (short) (narrow) %v1128_v0, 8  ;;  %v2588_v0 = vld [vmem:[%s14208_s10 + $0x1] sm:$0x1] }
 0x225   : > { %vm2620_vm1 = vnez %v2588_v0 }
 0x227   : > { %v14196_v22 = vpop.permute.xlu0 %2300 }
 0x22b   : > { %v14198_v35 = vpop.permute.xlu0 %2827 }
 0x22c   : > { %17580 = vst [vmem:[#allocation33_spill] sm:$0xff] %v14198_v35  ;;  %v2332_v35 = vshrl.u32 %v2331_v17, 7 }
 0x22e   : > { %v14214_v60 = vsub.s32 0, %v2332_v35 }
 0x22f   : > { %v1132_v53 = vpop.permute.xlu0 %1131 }
 0x230   : > { %1947 = vxpose.xlu0.b32.start.end [1/1] (short) (narrow) %v1132_v53, 8 }
 0x233   : > { %v14201_v15 = vpop.permute.xlu0 %2308 }
 0x237   : > { %v14203_v26 = vpop.permute.xlu0 %2831 }
 0x238   : > { %17581 = vst [vmem:[#allocation34_spill] sm:$0xff] %v14203_v26  ;;  %v17582_v26 = vmov 0  }
 0x239   : > { %v2652_v1 = vsel %vm2620_vm1, 16843009, %v17582_v26  ;;  %v2660_v28 = vsel %vm2628_vm6, 16843009, %v17582_v26 }
 0x23a   : > { %v2684_v46 = vunpack.c.0.s8 %v2652_v1  ;;  %v2658_v1 = vsel %vm2626_vm3, 16843009, %v17582_v26 }
 0x23b   : > { %v1136_v13 = vpop.permute.xlu0 %1135 }
 0x23c   : > { %2011 = vxpose.xlu0.b32.start.end [1/1] (short) (narrow) %v1136_v13, 8  ;;  %v2656_v13 = vsel %vm2624_vm2, 16843009, %v17582_v26  ;;  %vm2716_vm4 = vcmp.ne.s32.totalorder %v2684_v46, 0  ;;  %v2690_v46 = vunpack.c.0.s8 %v2658_v1 }
 0x23d   : > { %v2688_v10 = vunpack.c.0.s8 %v2656_v13 }
 0x23e   : > { %vm2722_vm10 = vcmp.ne.s32.totalorder %v2690_v46, 0 }
 0x23f   : > { %v14211_v53 = vpop.permute.xlu0 %2316  ;;  %vm2720_vm7 = vcmp.ne.s32.totalorder %v2688_v10, 0  ;;  %v2692_v10 = vunpack.c.0.s8 %v2660_v28 }
 0x241   : > { %vm2724_vm13 = vcmp.ne.s32.totalorder %v2692_v10, 0 }
 0x243   : > { %v14217_v20 = vpop.permute.xlu0 %2835 }
 0x244   : > { %17583 = vst [vmem:[#allocation35_spill] sm:$0xff] %v14217_v20  ;;  %v1227_v18 = vpop.trf.xlu1 }
 0x245   : > { %v2338_v14 = vrot.slane %v1227_v18, %v14214_v60 }
 0x247   : > { %v2460_v17 = vadd.f32 %v2338_v14, %v14084_v3  ;;  %v1140_v0 = vpop.permute.xlu0 %1139  ;;  %v2598_v14 = vld [vmem:[%s14208_s10 + $0xb] sm:$0x1] }
 0x248   : > { %v1355_v35 = vpop.trf.xlu1  ;;  %2075 = vxpose.xlu0.b32.start.end [1/1] (short) (narrow) %v1140_v0, 8  ;;  %vm2630_vm9 = vnez %v2598_v14 }
 0x249   : > { %v2354_v54 = vrot.slane %v1355_v35, %v14214_v60  ;;  %vm2492_vm5 = vcmp.ge.f32.partialorder %v2460_v17, 0.0  ;;  %v2524_v20 = vmul.f32 0.01, %v2460_v17  ;;  %v2662_v14 = vsel %vm2630_vm9, 16843009, %v17582_v26 }
 0x24a   : > { %v2694_v46 = vunpack.c.0.s8 %v2662_v14 }
 0x24b   : > { %v2464_v18 = vadd.f32 %v2354_v54, %v14109_v34  ;;  %v14227_v6 = vpop.permute.xlu0 %2324  ;;  %v2556_v58 = vsel %vm2492_vm5, %v2460_v17, %v2524_v20  ;;  %v2600_v17 = vld [vmem:[%s14208_s10 + $0xd] sm:$0x1] }
 0x24c   : > { %v1419_v3 = vpop.trf.xlu1  ;;  %v14230_v8 = vsel %vm2716_vm4, -9e+15, %v2556_v58  ;;  %vm2632_vm12 = vnez %v2600_v17  ;;  %vm2726_vm1 = vcmp.ne.s32.totalorder %v2694_v46, 0 }
 0x24d   : > { %17584 = vst [vmem:[#allocation36_spill] sm:$0xff] %v14230_v8  ;;  %v2528_v13 = vmul.f32 0.01, %v2464_v18  ;;  %v2362_v0 = vrot.slane %v1419_v3, %v14214_v60  ;;  %3900 = vxpose.xlu1.b32.start.end [1/1] (short) (narrow) %v14230_v8, 8  ;;  %vm2496_vm8 = vcmp.ge.f32.partialorder %v2464_v18, 0.0 }
 0x24e   : > { %v2664_v17 = vsel %vm2632_vm12, 16843009, %v17582_v26 }
 0x24f   : > { %v2466_v34 = vadd.f32 %v2362_v0, %v14118_v51  ;;  %v14236_v35 = vpop.permute.xlu0 %2839  ;;  %v2560_v20 = vsel %vm2496_vm8, %v2464_v18, %v2528_v13  ;;  %v2602_v18 = vld [vmem:[%s14208_s10 + $0xf] sm:$0x1] }
 0x250   : > { %17585 = vst [vmem:[#allocation37_spill] sm:$0xff] %v14236_v35  ;;  %v1483_v54 = vpop.trf.xlu1  ;;  %v14239_v58 = vsel %vm2720_vm7, -9e+15, %v2560_v20  ;;  %vm2634_vm15 = vnez %v2602_v18  ;;  %v2604_v18 = vld [vmem:[%s14208_s10 + $0x11] sm:$0x1] }
 0x251   : > { %17586 = vst [vmem:[#allocation38_spill] sm:$0xff] %v14239_v58  ;;  %v2530_v1 = vmul.f32 0.01, %v2466_v34  ;;  %v2370_v3 = vrot.slane %v1483_v54, %v14214_v60  ;;  %4028 = vxpose.xlu1.b32.start.end [1/1] (short) (narrow) %v14239_v58, 8  ;;  %vm2498_vm11 = vcmp.ge.f32.partialorder %v2466_v34, 0.0  ;;  %vm2636_vm5 = vnez %v2604_v18 }
 0x253   : > { %v2468_v51 = vadd.f32 %v2370_v3, %v14126_v57  ;;  %v1144_v0 = vpop.permute.xlu0 %1143  ;;  %v2562_v35 = vsel %vm2498_vm11, %v2466_v34, %v2530_v1 }
 0x254   : > { %v1547_v13 = vpop.trf.xlu1  ;;  %2139 = vxpose.xlu0.b32.start.end [1/1] (short) (narrow) %v1144_v0, 8  ;;  %v14246_v20 = vsel %vm2722_vm10, -9e+15, %v2562_v35  ;;  %v2696_v35 = vunpack.c.0.s8 %v2664_v17  ;;  %v2666_v0 = vsel %vm2634_vm15, 16843009, %v17582_v26 }
 0x255   : > { %17587 = vst [vmem:[#allocation39_spill] sm:$0xff] %v14246_v20  ;;  %v2532_v28 = vmul.f32 0.01, %v2468_v51  ;;  %v2378_v54 = vrot.slane %v1547_v13, %v14214_v60  ;;  %4092 = vxpose.xlu1.b32.start.end [1/1] (short) (narrow) %v14246_v20, 8  ;;  %vm2500_vm14 = vcmp.ge.f32.partialorder %v2468_v51, 0.0 }
 0x256   : > { %vm2728_vm4 = vcmp.ne.s32.totalorder %v2696_v35, 0 }
 0x257   : > { %v2470_v57 = vadd.f32 %v2378_v54, %v14133_v61  ;;  %v2564_v34 = vsel %vm2500_vm14, %v2468_v51, %v2532_v28  ;;  %v2698_v51 = vunpack.c.0.s8 %v2666_v0 }
 0x258   : > { %v1611_v1 = vpop.trf.xlu1  ;;  %v14252_v3 = vsel %vm2724_vm13, -9e+15, %v2564_v34 }
 0x259   : > { %v2534_v10 = vmul.f32 0.01, %v2470_v57  ;;  %v2386_v14 = vrot.slane %v1611_v1, %v14214_v60  ;;  %4156 = vxpose.xlu1.b32.start.end [1/1] (short) (narrow) %v14252_v3, 8  ;;  %vm2502_vm2 = vcmp.ge.f32.partialorder %v2470_v57, 0.0  ;;  %vm2730_vm6 = vcmp.ne.s32.totalorder %v2698_v51, 0 }
 0x25a   : > { %v2606_v1 = vld [vmem:[%s14208_s10 + $0x13] sm:$0x1]  ;;  %v2587_v51 = vld [vmem:[%s14208_s10] sm:$0x1] }
 0x25b   : > { %v2472_v13 = vadd.f32 %v2386_v14, %v14142_v2  ;;  %v2566_v20 = vsel %vm2502_vm2, %v2470_v57, %v2534_v10  ;;  %vm2638_vm8 = vnez %v2606_v1  ;;  %vm2619_vm11 = vnez %v2587_v51 }
 0x25c   : > { %v1675_v58 = vpop.trf.xlu1  ;;  %v14259_v61 = vsel %vm2726_vm1, -9e+15, %v2566_v20  ;;  %v2668_v20 = vsel %vm2636_vm5, 16843009, %v17582_v26 }
 0x25d   : > { %v2536_v28 = vmul.f32 0.01, %v2472_v13  ;;  %v2394_v46 = vrot.slane %v1675_v58, %v14214_v60  ;;  %4220 = vxpose.xlu1.b32.start.end [1/1] (short) (narrow) %v14259_v61, 8  ;;  %vm2504_vm3 = vcmp.ge.f32.partialorder %v2472_v13, 0.0 }
 0x25f   : > { %v2474_v54 = vadd.f32 %v2394_v46, %v14150_v44  ;;  %v2568_v17 = vsel %vm2504_vm3, %v2472_v13, %v2536_v28  ;;  %v2700_v44 = vunpack.c.0.s8 %v2668_v20  ;;  %v2670_v13 = vsel %vm2638_vm8, 16843009, %v17582_v26 }
 0x260   : > { %v14264_v34 = vsel %vm2728_vm4, -9e+15, %v2568_v17 }
 0x261   : > { %v2538_v2 = vmul.f32 0.01, %v2474_v54  ;;  %4284 = vxpose.xlu1.b32.start.end [1/1] (short) (narrow) %v14264_v34, 8  ;;  %vm2506_vm7 = vcmp.ge.f32.partialorder %v2474_v54, 0.0  ;;  %vm2732_vm10 = vcmp.ne.s32.totalorder %v2700_v44, 0 }
 0x263   : > { %v1739_v57 = vpop.trf.xlu1  ;;  %v2570_v58 = vsel %vm2506_vm7, %v2474_v54, %v2538_v2  ;;  %v2608_v54 = vld [vmem:[%s14208_s10 + $0x15] sm:$0x1]  ;;  %v2702_v2 = vunpack.c.0.s8 %v2670_v13  ;;  %v2610_v13 = vld [vmem:[%s14208_s10 + $0x17] sm:$0x1] }
 0x264   : > { %v2402_v35 = vrot.slane %v1739_v57, %v14214_v60  ;;  %v14270_v10 = vsel %vm2730_vm6, -9e+15, %v2570_v58  ;;  %vm2640_vm12 = vnez %v2608_v54  ;;  %v2651_v57 = vsel %vm2619_vm11, 16843009, %v17582_v26 }
 0x265   : > { %4348 = vxpose.xlu1.b32.start.end [1/1] (short) (narrow) %v14270_v10, 8  ;;  %vm2734_vm14 = vcmp.ne.s32.totalorder %v2702_v2, 0  ;;  %v2672_v58 = vsel %vm2640_vm12, 16843009, %v17582_v26  ;;  %vm2642_vm15 = vnez %v2610_v13 }
 0x266   : > { %v2476_v14 = vadd.f32 %v2402_v35, %v14154_v59 }
 0x268   : > { %v2540_v0 = vmul.f32 0.01, %v2476_v14  ;;  %vm2508_vm9 = vcmp.ge.f32.partialorder %v2476_v14, 0.0 }
 0x26a   : > { %v2572_v18 = vsel %vm2508_vm9, %v2476_v14, %v2540_v0 }
 0x26b   : > { %v1803_v28 = vpop.trf.xlu1  ;;  %v14276_v46 = vsel %vm2732_vm10, -9e+15, %v2572_v18  ;;  %v2683_v18 = vunpack.c.0.s8 %v2651_v57 }
 0x26c   : > { %v2410_v17 = vrot.slane %v1803_v28, %v14214_v60  ;;  %4412 = vxpose.xlu1.b32.start.end [1/1] (short) (narrow) %v14276_v46, 8 }
 0x26d   : > { %vm2715_vm2 = vcmp.ne.s32.totalorder %v2683_v18, 0 }
 0x26e   : > { %v2478_v59 = vadd.f32 %v2410_v17, %v14160_v52  ;;  %v2704_v52 = vunpack.c.0.s8 %v2672_v58 }
 0x270   : > { %v2542_v20 = vmul.f32 0.01, %v2478_v59  ;;  %vm2510_vm13 = vcmp.ge.f32.partialorder %v2478_v59, 0.0  ;;  %vm2736_vm4 = vcmp.ne.s32.totalorder %v2704_v52, 0 }
 0x272   : > { %v1195_v1 = vpop.trf.xlu0  ;;  %v2574_v35 = vsel %vm2510_vm13, %v2478_v59, %v2542_v20  ;;  %v2674_v20 = vsel %vm2642_vm15, 16843009, %v17582_v26 }
 0x273   : > { %v2334_v44 = vrot.slane %v1195_v1, %v14214_v60  ;;  %v1867_v14 = vpop.trf.xlu1  ;;  %v14285_v0 = vsel %vm2734_vm14, -9e+15, %v2574_v35 }
 0x274   : > { %v2418_v51 = vrot.slane %v1867_v14, %v14214_v60  ;;  %4476 = vxpose.xlu1.b32.start.end [1/1] (short) (narrow) %v14285_v0, 8 }
 0x275   : > { %v2459_v28 = vadd.f32 %v2334_v44, %v14086_v4  ;;  %v2706_v44 = vunpack.c.0.s8 %v2674_v20 }
 0x276   : > { %v2480_v54 = vadd.f32 %v2418_v51, %v14164_v38  ;;  %v2612_v38 = vld [vmem:[%s14208_s10 + $0x19] sm:$0x1] }
 0x277   : > { %v2523_v17 = vmul.f32 0.01, %v2459_v28  ;;  %vm2491_vm1 = vcmp.ge.f32.partialorder %v2459_v28, 0.0  ;;  %vm2644_vm5 = vnez %v2612_v38  ;;  %vm2738_vm7 = vcmp.ne.s32.totalorder %v2706_v44, 0 }
 0x278   : > { %v2544_v2 = vmul.f32 0.01, %v2480_v54  ;;  %vm2512_vm3 = vcmp.ge.f32.partialorder %v2480_v54, 0.0  ;;  %v2676_v13 = vsel %vm2644_vm5, 16843009, %v17582_v26 }
 0x279   : > { %v2555_v59 = vsel %vm2491_vm1, %v2459_v28, %v2523_v17 }
 0x27a   : > { %v14293_v57 = vsel %vm2715_vm2, -9e+15, %v2555_v59  ;;  %v2576_v1 = vsel %vm2512_vm3, %v2480_v54, %v2544_v2  ;;  %v2614_v54 = vld [vmem:[%s14208_s10 + $0x1b] sm:$0x1]  ;;  %v2708_v2 = vunpack.c.0.s8 %v2676_v13 }
 0x27b   : > { %17588 = vst [vmem:[#allocation40_spill] sm:$0xff] %v14293_v57  ;;  %v1931_v35 = vpop.trf.xlu1  ;;  %3868 = vxpose.xlu0.b32.start.end [1/1] (short) (narrow) %v14293_v57, 8  ;;  %v14296_v4 = vsel %vm2736_vm4, -9e+15, %v2576_v1  ;;  %vm2646_vm8 = vnez %v2614_v54  ;;  %vm3003_vm4 = vcmask 27648  }
 0x27c   : > { %v2426_v58 = vrot.slane %v1931_v35, %v14214_v60  ;;  %4540 = vxpose.xlu1.b32.start.end [1/1] (short) (narrow) %v14296_v4, 8  ;;  %vm2740_vm10 = vcmp.ne.s32.totalorder %v2708_v2, 0  ;;  %v2678_v20 = vsel %vm2646_vm8, 16843009, %v17582_v26 }
 0x27e   : > { %v2482_v14 = vadd.f32 %v2426_v58, %v14168_v31  ;;  %v2616_v58 = vld [vmem:[%s14208_s10 + $0x1d] sm:$0x1] }
 0x27f   : > { %vm2648_vm11 = vnez %v2616_v58 }
 0x280   : > { %v2546_v18 = vmul.f32 0.01, %v2482_v14  ;;  %vm2514_vm6 = vcmp.ge.f32.partialorder %v2482_v14, 0.0  ;;  %v2680_v13 = vsel %vm2648_vm11, 16843009, %v17582_v26 }
 0x282   : > { %v2578_v51 = vsel %vm2514_vm6, %v2482_v14, %v2546_v18  ;;  %v2710_v14 = vunpack.c.0.s8 %v2678_v20 }
 0x283   : > { %v1995_v52 = vpop.trf.xlu1  ;;  %v14303_v28 = vsel %vm2738_vm7, -9e+15, %v2578_v51 }
 0x284   : > { %17589 = vst [vmem:[#allocation41_spill] sm:$0xff] %v14303_v28  ;;  %v2434_v17 = vrot.slane %v1995_v52, %v14214_v60  ;;  %4604 = vxpose.xlu1.b32.start.end [1/1] (short) (narrow) %v14303_v28, 8  ;;  %vm2742_vm13 = vcmp.ne.s32.totalorder %v2710_v14, 0 }
 0x286   : > { %v2484_v59 = vadd.f32 %v2434_v17, %v14176_v36  ;;  %v2618_v17 = vld [vmem:[%s14208_s10 + $0x1f] sm:$0x1] }
 0x287   : > { %vm2650_vm14 = vnez %v2618_v17  ;;  %v2590_v17 = vld [vmem:[%s14208_s10 + $0x3] sm:$0x1] }
 0x288   : > { %v2548_v31 = vmul.f32 0.01, %v2484_v59  ;;  %vm2516_vm9 = vcmp.ge.f32.partialorder %v2484_v59, 0.0  ;;  %v2682_v20 = vsel %vm2650_vm14, 16843009, %v17582_v26  ;;  %vm2622_vm5 = vnez %v2590_v17 }
 0x289   : > { %v2714_v14 = vunpack.c.0.s8 %v2682_v20 }
 0x28a   : > { %v2580_v1 = vsel %vm2516_vm9, %v2484_v59, %v2548_v31  ;;  %v2712_v59 = vunpack.c.0.s8 %v2680_v13 }
 0x28b   : > { %v2059_v35 = vpop.trf.xlu1  ;;  %v14310_v38 = vsel %vm2740_vm10, -9e+15, %v2580_v1  ;;  %vm2746_vm3 = vcmp.ne.s32.totalorder %v2714_v14, 0 }
 0x28c   : > { %17590 = vst [vmem:[#allocation42_spill] sm:$0xff] %v14310_v38  ;;  %v2442_v44 = vrot.slane %v2059_v35, %v14214_v60  ;;  %4668 = vxpose.xlu1.b32.start.end [1/1] (short) (narrow) %v14310_v38, 8  ;;  %vm2744_vm1 = vcmp.ne.s32.totalorder %v2712_v59, 0  ;;  %v2654_v59 = vsel %vm2622_vm5, 16843009, %v17582_v26 }
 0x28e   : > { %v2486_v18 = vadd.f32 %v2442_v44, %v14180_v62 }
 0x290   : > { %v2550_v36 = vmul.f32 0.01, %v2486_v18  ;;  %vm2518_vm12 = vcmp.ge.f32.partialorder %v2486_v18, 0.0 }
 0x292   : > { %v2582_v51 = vsel %vm2518_vm12, %v2486_v18, %v2550_v36 }
 0x293   : > { %v2123_v52 = vpop.trf.xlu1  ;;  %v14317_v54 = vsel %vm2742_vm13, -9e+15, %v2582_v51  ;;  %v3004_v51 = vsel %vm3003_vm4, %v14293_v57, -inf }
 0x294   : > { %17591 = vst [vmem:[#allocation43_spill] sm:$0xff] %v14317_v54  ;;  %v2450_v2 = vrot.slane %v2123_v52, %v14214_v60  ;;  %4732 = vxpose.xlu1.b32.start.end [1/1] (short) (narrow) %v14317_v54, 8  ;;  %v1291_v52 = vpop.trf.xlu0 }
 0x296   : > { %v2488_v31 = vadd.f32 %v2450_v2, %v14184_v43 }
 0x298   : > { %v2552_v62 = vmul.f32 0.01, %v2488_v31  ;;  %vm2520_vm15 = vcmp.ge.f32.partialorder %v2488_v31, 0.0 }
 0x29a   : > { %v2584_v1 = vsel %vm2520_vm15, %v2488_v31, %v2552_v62  ;;  %v2686_v62 = vunpack.c.0.s8 %v2654_v59 }
 0x29b   : > { %v2187_v35 = vpop.trf.xlu1  ;;  %v14324_v58 = vsel %vm2744_vm1, -9e+15, %v2584_v1 }
 0x29c   : > { %17592 = vst [vmem:[#allocation44_spill] sm:$0xff] %v14324_v58  ;;  %v2458_v44 = vrot.slane %v2187_v35, %v14214_v60  ;;  %4796 = vxpose.xlu1.b32.start.end [1/1] (short) (narrow) %v14324_v58, 8  ;;  %vm2718_vm7 = vcmp.ne.s32.totalorder %v2686_v62, 0 }
 0x29e   : > { %v2490_v18 = vadd.f32 %v2458_v44, %v14190_v25  ;;  %v2346_v25 = vrot.slane %v1291_v52, %v14214_v60  ;;  %v2593_v52 = vld [vmem:[%s14208_s10 + $0x6] sm:$0x1] }
 0x29f   : > { %vm2625_vm9 = vnez %v2593_v52 }
 0x2a0   : > { %v2554_v36 = vmul.f32 0.01, %v2490_v18  ;;  %vm2522_vm2 = vcmp.ge.f32.partialorder %v2490_v18, 0.0  ;;  %v2462_v2 = vadd.f32 %v2346_v25, %v14090_v5  ;;  %v1259_v5 = vpop.trf.xlu0 }
 0x2a2   : > { %v2586_v43 = vsel %vm2522_vm2, %v2490_v18, %v2554_v36  ;;  %v2526_v31 = vmul.f32 0.01, %v2462_v2  ;;  %vm2494_vm6 = vcmp.ge.f32.partialorder %v2462_v2, 0.0  ;;  %v2591_v36 = vld [vmem:[%s14208_s10 + $0x4] sm:$0x1] }
 0x2a3   : > { %v14329_v13 = vsel %vm2746_vm3, -9e+15, %v2586_v43  ;;  %vm2623_vm8 = vnez %v2591_v36  ;;  %v2597_v36 = vld [vmem:[%s14208_s10 + $0xa] sm:$0x1] }
 0x2a4   : > { %17593 = vst [vmem:[#allocation45_spill] sm:$0xff] %v14329_v13  ;;  %4860 = vxpose.xlu1.b32.start.end [1/1] (short) (narrow) %v14329_v13, 8  ;;  %v2558_v20 = vsel %vm2494_vm6, %v2462_v2, %v2526_v31  ;;  %v1323_v35 = vpop.trf.xlu0  ;;  %v2655_v2 = vsel %vm2623_vm8, 16843009, %v17582_v26  ;;  %v2595_v31 = vld [vmem:[%s14208_s10 + $0x8] sm:$0x1]  ;;  %vm2629_vm14 = vnez %v2597_v36 }
 0x2a5   : > { %v14348_v1 = vsel %vm2718_vm7, -9e+15, %v2558_v20  ;;  %v2687_v62 = vunpack.c.0.s8 %v2655_v2  ;;  %v2657_v20 = vsel %vm2625_vm9, 16843009, %v17582_v26  ;;  %vm2627_vm10 = vnez %v2595_v31 }
 0x2a6   : > { %17594 = vst [vmem:[#allocation46_spill] sm:$0xff] %v14348_v1  ;;  %v3013_v44 = vsel %vm3003_vm4, %v14348_v1, -inf  ;;  %v2659_v52 = vsel %vm2627_vm10, 16843009, %v17582_v26  ;;  %v3007_v31 = vsel %vm3003_vm4, %v14230_v8, -inf }
 0x2a7   : > { %vm2719_vm13 = vcmp.ne.s32.totalorder %v2687_v62, 0 }
 0x2a8   : > { %3005 = vmax.xlane.f32.xlu0 %v3004_v51  ;;  %v1387_v14 = vpop.trf.xlu0  ;;  %v2350_v51 = vrot.slane %v1323_v35, %v14214_v60 }
 0x2a9   : > { %v2358_v25 = vrot.slane %v1387_v14, %v14214_v60  ;;  %v2342_v14 = vrot.slane %v1259_v5, %v14214_v60  ;;  %v2691_v5 = vunpack.c.0.s8 %v2659_v52 }
 0x2aa   : > { %v2463_v17 = vadd.f32 %v2350_v51, %v14112_v40  ;;  %v2689_v40 = vunpack.c.0.s8 %v2657_v20 }
 0x2ab   : > { %v2465_v57 = vadd.f32 %v2358_v25, %v14123_v56  ;;  %vm14408_vm5 = vcmp.ne.s32.totalorder %v2691_v5, 0  ;;  %v2603_v5 = vld [vmem:[%s14208_s10 + $0x10] sm:$0x1] }
 0x2ac   : > { %v1451_v18 = vpop.trf.xlu0  ;;  %vm2495_vm11 = vcmp.ge.f32.partialorder %v2463_v17, 0.0  ;;  %vm14394_vm1 = vcmp.ne.s32.totalorder %v2689_v40, 0  ;;  %v2601_v40 = vld [vmem:[%s14208_s10 + $0xe] sm:$0x1] }
 0x2ad   : > { %v2366_v35 = vrot.slane %v1451_v18, %v14214_v60  ;;  %v2529_v2 = vmul.f32 0.01, %v2465_v57  ;;  %v2599_v18 = vld [vmem:[%s14208_s10 + $0xc] sm:$0x1]  ;;  %vm2497_vm15 = vcmp.ge.f32.partialorder %v2465_v57, 0.0  ;;  %vm2633_vm7 = vnez %v2601_v40 }
 0x2ae   : > { %vm2631_vm2 = vnez %v2599_v18 }
 0x2af   : > { %v2561_v36 = vsel %vm2497_vm15, %v2465_v57, %v2529_v2  ;;  %v2663_v18 = vsel %vm2631_vm2, 16843009, %v17582_v26 }
 0x2b0   : > { %v1515_v43 = vpop.trf.xlu0  ;;  %v14415_v57 = vsel %vm14394_vm1, -9e+15, %v2561_v36  ;;  %v2695_v36 = vunpack.c.0.s8 %v2663_v18 }
 0x2b1   : > { %v2374_v56 = vrot.slane %v1515_v43, %v14214_v60 }
 0x2b4   : > { %v1579_v59 = vpop.trf.xlu0 }
 0x2b8   : > { %v1643_v51 = vpop.trf.xlu0 }
 0x2bc   : > { %v1707_v8 = vpop.trf.xlu0 }
 0x2c0   : > { %v1771_v40 = vpop.trf.xlu0 }
 0x2c2   : > { %2781 = vrot.lane.b32.xlu1 %v13918_v7, %s13672_s6 }
 0x2c6   : > { %2785 = vrot.lane.b32.xlu1 %v13924_v9, %s13672_s6 }
 0x2ca   : > { %2789 = vrot.lane.b32.xlu1 %v13932_v12, %s13672_s6 }
 0x2ce   : > { %2793 = vrot.lane.b32.xlu1 %v13940_v16, %s13672_s6 }
 0x2d2   : > { %2797 = vrot.lane.b32.xlu1 %v13947_v19, %s13672_s6 }
 0x2d5   : > { %3964 = vxpose.xlu0.b32.start.end [1/1] (short) (narrow) %v14348_v1, 8  ;;  %v2527_v1 = vmul.f32 0.01, %v2463_v17 }
 0x2d6   : > { %2801 = vrot.lane.b32.xlu1 %v13954_v21, %s13672_s6 }
 0x2d7   : > { %v2559_v25 = vsel %vm2495_vm11, %v2463_v17, %v2527_v1  ;;  %v2661_v1 = vsel %vm2629_vm14, 16843009, %v17582_v26  ;;  %v2469_v17 = vadd.f32 %v2374_v56, %v14147_v55  ;;  %v2390_v56 = vrot.slane %v1643_v51, %v14214_v60 }
 0x2d8   : > { %v2665_v51 = vsel %vm2633_vm7, 16843009, %v17582_v26  ;;  %vm2635_vm11 = vnez %v2603_v5  ;;  %v2607_v5 = vld [vmem:[%s14208_s10 + $0x14] sm:$0x1] }
 0x2d9   : > { %vm2501_vm8 = vcmp.ge.f32.partialorder %v2469_v17, 0.0  ;;  %vm2639_vm2 = vnez %v2607_v5 }
 0x2da   : > { %2805 = vrot.lane.b32.xlu1 %v13961_v24, %s13672_s6 }
 0x2de   : > { %2809 = vrot.lane.b32.xlu1 %v13969_v27, %s13672_s6 }
 0x2e2   : > { %2813 = vrot.lane.b32.xlu1 %v13976_v30, %s13672_s6 }
 0x2e6   : > { %2817 = vrot.lane.b32.xlu1 %v13982_v33, %s13672_s6 }
 0x2ea   : > { %2821 = vrot.lane.b32.xlu1 %v13991_v37, %s13672_s6 }
 0x2ee   : > { %2825 = vrot.lane.b32.xlu1 %v13997_v39, %s13672_s6 }
 0x2f2   : > { %2829 = vrot.lane.b32.xlu1 %v14004_v42, %s13672_s6 }
 0x2f6   : > { %2833 = vrot.lane.b32.xlu1 %v14012_v45, %s13672_s6 }
 0x2fa   : > { %2837 = vrot.lane.b32.xlu1 %v14019_v48, %s13672_s6 }
 0x2fe   : > { %2841 = vrot.lane.b32.xlu1 %v14025_v50, %s13672_s6  ;;  %v2467_v50 = vadd.f32 %v2366_v35, %v14136_v63  ;;  %v14400_v63 = vsel %vm2719_vm13, -9e+15, %v2559_v25  ;;  %v2382_v35 = vrot.slane %v1579_v59, %v14214_v60  ;;  %v2693_v25 = vunpack.c.0.s8 %v2661_v1 }
 0x2ff   : > { %17597 = vst [vmem:[#allocation47_spill] sm:$0xff] %v14400_v63  ;;  %v2533_v59 = vmul.f32 0.01, %v2469_v17  ;;  %vm14441_vm13 = vcmp.ne.s32.totalorder %v2695_v36, 0 }
 0x300   : > { %v2531_v43 = vmul.f32 0.01, %v2467_v50  ;;  %vm2499_vm3 = vcmp.ge.f32.partialorder %v2467_v50, 0.0  ;;  %v2471_v2 = vadd.f32 %v2382_v35, %v14156_v49  ;;  %vm14426_vm10 = vcmp.ne.s32.totalorder %v2693_v25, 0  ;;  %v2605_v25 = vld [vmem:[%s14208_s10 + $0x12] sm:$0x1] }
 0x301   : > { %v2473_v35 = vadd.f32 %v2390_v56, %v14162_v41  ;;  %v2667_v41 = vsel %vm2635_vm11, 16843009, %v17582_v26  ;;  %vm2637_vm14 = vnez %v2605_v25  ;;  %v2406_v56 = vrot.slane %v1771_v40, %v14214_v60 }
 0x302   : > { %3014 = vmax.xlane.f32.xlu0 %v3013_v44  ;;  %v2589_v44 = vld [vmem:[%s14208_s10 + $0x2] sm:$0x1]  ;;  %v2699_v36 = vunpack.c.0.s8 %v2667_v41  ;;  %v2669_v40 = vsel %vm2637_vm14, 16843009, %v17582_v26 }
 0x303   : > { %vm2621_vm12 = vnez %v2589_v44  ;;  %v2461_v44 = vadd.f32 %v2342_v14, %v14096_v11  ;;  %v3016_v11 = vsel %vm3003_vm4, %v14400_v63, -inf  ;;  %vm2505_vm15 = vcmp.ge.f32.partialorder %v2473_v35, 0.0 }
 0x304   : > { %v2653_v62 = vsel %vm2621_vm12, 16843009, %v17582_v26  ;;  %vm2503_vm12 = vcmp.ge.f32.partialorder %v2471_v2, 0.0 }
 0x305   : > { %v2685_v52 = vunpack.c.0.s8 %v2653_v62  ;;  %vm2493_vm6 = vcmp.ge.f32.partialorder %v2461_v44, 0.0  ;;  %v2525_v55 = vmul.f32 0.01, %v2461_v44  ;;  %v3022_v62 = vsel %vm3003_vm4, %v14415_v57, -inf }
 0x307   : > { %vm14422_vm9 = vcmp.ne.s32.totalorder %v2685_v52, 0  ;;  %v2398_v52 = vrot.slane %v1707_v8, %v14214_v60 }
 0x322   : > { %3008 = vmax.xlane.f32.xlu1 %v3007_v31  ;;  %v2563_v31 = vsel %vm2499_vm3, %v2467_v50, %v2531_v43  ;;  %v2557_v50 = vsel %vm2493_vm6, %v2461_v44, %v2525_v55  ;;  %v2535_v43 = vmul.f32 0.01, %v2471_v2  ;;  %v2697_v44 = vunpack.c.0.s8 %v2665_v51 }
 0x323   : > { %v14432_v49 = vsel %vm14408_vm5, -9e+15, %v2563_v31  ;;  %v14447_v55 = vsel %vm14422_vm9, -9e+15, %v2557_v50  ;;  %v2477_v50 = vadd.f32 %v2406_v56, %v14178_v23  ;;  %vm2731_vm5 = vcmp.ne.s32.totalorder %v2699_v36, 0 }
 0x324   : > { %v3028_v18 = vsel %vm3003_vm4, %v14432_v49, -inf  ;;  %17606 = vst [vmem:[#allocation48_spill] sm:$0xff] %v14447_v55  ;;  %v2567_v31 = vsel %vm2503_vm12, %v2471_v2, %v2535_v43  ;;  %vm14460_vm1 = vcmp.ne.s32.totalorder %v2697_v44, 0  ;;  %v2671_v44 = vsel %vm2639_vm2, 16843009, %v17582_v26 }
 0x325   : > { %v2541_v23 = vmul.f32 0.01, %v2477_v50  ;;  %v2611_v56 = vld [vmem:[%s14208_s10 + $0x18] sm:$0x1]  ;;  %vm2509_vm7 = vcmp.ge.f32.partialorder %v2477_v50, 0.0  ;;  %v2703_v20 = vunpack.c.0.s8 %v2671_v44 }
 0x326   : > { %3017 = vmax.xlane.f32.xlu1 %v3016_v11  ;;  %v2565_v11 = vsel %vm2501_vm8, %v2469_v17, %v2533_v59  ;;  %v2537_v17 = vmul.f32 0.01, %v2473_v35  ;;  %v2475_v59 = vadd.f32 %v2398_v52, %v14171_v47  ;;  %v14466_v47 = vsel %vm14441_vm13, -9e+15, %v2567_v31  ;;  %v2609_v52 = vld [vmem:[%s14208_s10 + $0x16] sm:$0x1] }
 0x327   : > { %v14451_v8 = vsel %vm14426_vm10, -9e+15, %v2565_v11  ;;  %v3040_v25 = vsel %vm3003_vm4, %v14466_v47, -inf  ;;  %vm2641_vm6 = vnez %v2609_v52  ;;  %vm2643_vm9 = vnez %v2611_v56 }
 0x328   : > { %v3034_v1 = vsel %vm3003_vm4, %v14451_v8, -inf  ;;  %v2539_v2 = vmul.f32 0.01, %v2475_v59  ;;  %v2569_v43 = vsel %vm2505_vm15, %v2473_v35, %v2537_v17  ;;  %vm2507_vm3 = vcmp.ge.f32.partialorder %v2475_v59, 0.0 }
 0x329   : > { %v14476_v14 = vsel %vm14460_vm1, -9e+15, %v2569_v43  ;;  %vm2735_vm11 = vcmp.ne.s32.totalorder %v2703_v20, 0 }
 0x32a   : > { %3023 = vmax.xlane.f32.xlu1 %v3022_v62  ;;  %v1835_v62 = vpop.trf.xlu0  ;;  %v2571_v17 = vsel %vm2507_vm3, %v2475_v59, %v2539_v2  ;;  %v3046_v5 = vsel %vm3003_vm4, %v14476_v14, -inf  ;;  %v2573_v2 = vsel %vm2509_vm7, %v2477_v50, %v2541_v23 }
 0x32b   : > { %v2414_v51 = vrot.slane %v1835_v62, %v14214_v60  ;;  %v2615_v62 = vld [vmem:[%s14208_s10 + $0x1c] sm:$0x1] }
 0x32c   : > { %vm2647_vm1 = vnez %v2615_v62 }
 0x32d   : > { %v2479_v41 = vadd.f32 %v2414_v51, %v14186_v29  ;;  %v2673_v29 = vsel %vm2641_vm6, 16843009, %v17582_v26  ;;  %v2613_v51 = vld [vmem:[%s14208_s10 + $0x1a] sm:$0x1] }
 0x32e   : > { %3029 = vmax.xlane.f32.xlu1 %v3028_v18  ;;  %v1899_v11 = vpop.trf.xlu0  ;;  %v2701_v18 = vunpack.c.0.s8 %v2669_v40  ;;  %vm2645_vm12 = vnez %v2613_v51 }
 0x32f   : > { %3932 = vxpose.xlu0.b32.start.end [1/1] (short) (narrow) %v14447_v55, 8  ;;  %v2422_v35 = vrot.slane %v1899_v11, %v14214_v60  ;;  %v2543_v36 = vmul.f32 0.01, %v2479_v41  ;;  %vm2511_vm10 = vcmp.ge.f32.partialorder %v2479_v41, 0.0  ;;  %v2705_v11 = vunpack.c.0.s8 %v2673_v29 }
 0x330   : > { %vm14484_vm8 = vcmp.ne.s32.totalorder %v2701_v18, 0  ;;  %v2675_v18 = vsel %vm2643_vm9, 16843009, %v17582_v26 }
 0x331   : > { %v2481_v59 = vadd.f32 %v2422_v35, %v14192_v32  ;;  %v2575_v23 = vsel %vm2511_vm10, %v2479_v41, %v2543_v36  ;;  %vm2737_vm14 = vcmp.ne.s32.totalorder %v2705_v11, 0 }
 0x332   : > { %3035 = vmax.xlane.f32.xlu1 %v3034_v1  ;;  %v1963_v31 = vpop.trf.xlu0  ;;  %v14488_v1 = vsel %vm2731_vm5, -9e+15, %v2571_v17  ;;  %v14505_v56 = vsel %vm2735_vm11, -9e+15, %v2575_v23 }
 0x333   : > { %v2430_v40 = vrot.slane %v1963_v31, %v14214_v60  ;;  %v3052_v52 = vsel %vm3003_vm4, %v14488_v1, -inf  ;;  %v2545_v32 = vmul.f32 0.01, %v2481_v59  ;;  %vm2513_vm13 = vcmp.ge.f32.partialorder %v2481_v59, 0.0 }
 0x334   : > { %v2707_v31 = vunpack.c.0.s8 %v2675_v18 }
 0x335   : > { %v2483_v50 = vadd.f32 %v2430_v40, %v14196_v22  ;;  %v2577_v41 = vsel %vm2513_vm13, %v2481_v59, %v2545_v32  ;;  %v3064_v40 = vsel %vm3003_vm4, %v14505_v56, -inf  ;;  %v2679_v59 = vsel %vm2647_vm1, 16843009, %v17582_v26 }
 0x336   : > { %3041 = vmax.xlane.f32.xlu1 %v3040_v25  ;;  %v2027_v43 = vpop.trf.xlu0  ;;  %v14498_v25 = vsel %vm14484_vm8, -9e+15, %v2573_v2  ;;  %v14513_v2 = vsel %vm2737_vm14, -9e+15, %v2577_v41  ;;  %vm2739_vm2 = vcmp.ne.s32.totalorder %v2707_v31, 0  ;;  %v2711_v31 = vunpack.c.0.s8 %v2679_v59 }
 0x337   : > { %v2438_v44 = vrot.slane %v2027_v43, %v14214_v60  ;;  %v3058_v17 = vsel %vm3003_vm4, %v14498_v25, -inf  ;;  %v2547_v20 = vmul.f32 0.01, %v2483_v50  ;;  %vm2515_vm15 = vcmp.ge.f32.partialorder %v2483_v50, 0.0  ;;  %v2617_v43 = vld [vmem:[%s14208_s10 + $0x1e] sm:$0x1] }
 0x338   : > { %v3070_v32 = vsel %vm3003_vm4, %v14513_v2, -inf  ;;  %vm2649_vm5 = vnez %v2617_v43  ;;  %vm2743_vm8 = vcmp.ne.s32.totalorder %v2711_v31, 0 }
 0x339   : > { %v2485_v22 = vadd.f32 %v2438_v44, %v14201_v15  ;;  %v2579_v18 = vsel %vm2515_vm15, %v2483_v50, %v2547_v20 }
 0x33a   : > { %3047 = vmax.xlane.f32.xlu1 %v3046_v5  ;;  %v2091_v35 = vpop.trf.xlu0  ;;  %v2677_v5 = vsel %vm2645_vm12, 16843009, %v17582_v26  ;;  %v14521_v44 = vsel %vm2739_vm2, -9e+15, %v2579_v18 }
 0x33b   : > { %v2446_v29 = vrot.slane %v2091_v35, %v14214_v60  ;;  %v2709_v51 = vunpack.c.0.s8 %v2677_v5  ;;  %vm2517_vm3 = vcmp.ge.f32.partialorder %v2485_v22, 0.0  ;;  %17611 = vst [vmem:[#allocation49_spill] sm:$0xff] %v14521_v44 }
 0x33d   : > { %v2487_v11 = vadd.f32 %v2446_v29, %v14211_v53  ;;  %vm2741_vm6 = vcmp.ne.s32.totalorder %v2709_v51, 0  ;;  %v3076_v53 = vsel %vm3003_vm4, %v14521_v44, -inf  ;;  %v3010_v51 = vsel %vm3003_vm4, %v14447_v55, -inf }
 0x33e   : > { %3053 = vmax.xlane.f32.xlu1 %v3052_v52  ;;  %v2155_v36 = vpop.trf.xlu0  ;;  %v2549_v52 = vmul.f32 0.01, %v2485_v22 }
 0x33f   : > { %v2454_v15 = vrot.slane %v2155_v36, %v14214_v60  ;;  %v2551_v23 = vmul.f32 0.01, %v2487_v11  ;;  %vm2519_vm7 = vcmp.ge.f32.partialorder %v2487_v11, 0.0  ;;  %v2681_v60 = vsel %vm2649_vm5, 16843009, %v17582_v26  ;;  %v14537_v36 = vpop.trf.xlu1 }
 0x340   : > { %v2713_v20 = vunpack.c.0.s8 %v2681_v60  ;;  %17615 = vst [vmem:[#allocation53_spill] sm:$0xff] %v14537_v36  ;;  %v4895_v43 = vsel %vm3003_vm4, %v14537_v36, -inf }
 0x341   : > { %v2489_v35 = vadd.f32 %v2454_v15, %v14227_v6  ;;  %v2583_v62 = vsel %vm2519_vm7, %v2487_v11, %v2551_v23  ;;  %v17617_v11 = vld [vmem:[#allocation38_spill] sm:$0xff] }
 0x342   : > { %3059 = vmax.xlane.f32.xlu1 %v3058_v17  ;;  %v2581_v17 = vsel %vm2517_vm3, %v2485_v22, %v2549_v52  ;;  %v14531_v6 = vsel %vm2743_vm8, -9e+15, %v2583_v62  ;;  %vm2745_vm10 = vcmp.ne.s32.totalorder %v2713_v20, 0  ;;  %v3019_v15 = vsel %vm3003_vm4, %v17617_v11, -inf  ;;  %v14570_v62 = vpop.trf.xlu0  ;;  %v17636_v11 = vld [vmem:[#allocation39_spill] sm:$0xff] }
 0x343   : > { %v14527_v50 = vsel %vm2741_vm6, -9e+15, %v2581_v17  ;;  %v2553_v5 = vmul.f32 0.01, %v2489_v35  ;;  %vm2521_vm9 = vcmp.ge.f32.partialorder %v2489_v35, 0.0  ;;  %17613 = vst [vmem:[#allocation51_spill] sm:$0xff] %v14531_v6  ;;  %v14545_v52 = vpop.trf.xlu1 }
 0x344   : > { %17612 = vst [vmem:[#allocation50_spill] sm:$0xff] %v14527_v50  ;;  %v3082_v29 = vsel %vm3003_vm4, %v14527_v50, -inf  ;;  %v3088_v26 = vsel %vm3003_vm4, %v14531_v6, -inf  ;;  %17616 = vst [vmem:[#allocation54_spill] sm:$0xff] %v14545_v52 }
 0x345   : > { %v2585_v22 = vsel %vm2521_vm9, %v2489_v35, %v2553_v5  ;;  %17628 = vst [vmem:[#allocation65_spill] sm:$0xff] %v14570_v62 }
 0x346   : > { %3065 = vmax.xlane.f32.xlu1 %v3064_v40  ;;  %v14535_v41 = vsel %vm2745_vm10, -9e+15, %v2585_v22 }
 0x347   : > { %17614 = vst [vmem:[#allocation52_spill] sm:$0xff] %v14535_v41  ;;  %v3094_v40 = vsel %vm3003_vm4, %v14535_v41, -inf  ;;  %v14549_v18 = vpop.trf.xlu1 }
 0x348   : > { %17618 = vst [vmem:[#allocation55_spill] sm:$0xff] %v14549_v18 }
 0x34a   : > { %3071 = vmax.xlane.f32.xlu1 %v3070_v32 }
 0x34b   : > { %v14551_v59 = vpop.trf.xlu1 }
 0x34c   : > { %17619 = vst [vmem:[#allocation56_spill] sm:$0xff] %v14551_v59 }
 0x34e   : > { %3077 = vmax.xlane.f32.xlu1 %v3076_v53 }
 0x34f   : > { %v14553_v32 = vpop.trf.xlu1 }
 0x350   : > { %17620 = vst [vmem:[#allocation57_spill] sm:$0xff] %v14553_v32 }
 0x352   : > { %3083 = vmax.xlane.f32.xlu1 %v3082_v29  ;;  %v3006_v29 = vpop.xlane.xlu0 %3005 }
 0x353   : > { %v14555_v23 = vpop.trf.xlu1 }
 0x354   : > { %17621 = vst [vmem:[#allocation58_spill] sm:$0xff] %v14555_v23 }
 0x356   : > { %3089 = vmax.xlane.f32.xlu1 %v3088_v26  ;;  %v14574_v22 = vpop.trf.xlu0 }
 0x357   : > { %v14557_v35 = vpop.trf.xlu1  ;;  %17630 = vst [vmem:[#allocation67_spill] sm:$0xff] %v14574_v22 }
 0x358   : > { %17622 = vst [vmem:[#allocation59_spill] sm:$0xff] %v14557_v35 }
 0x35a   : > { %3095 = vmax.xlane.f32.xlu1 %v3094_v40 }
 0x35b   : > { %v14559_v17 = vpop.trf.xlu1 }
 0x35c   : > { %3011 = vmax.xlane.f32.xlu0 %v3010_v51  ;;  %17623 = vst [vmem:[#allocation60_spill] sm:$0xff] %v14559_v17 }
 0x35e   : > { %4896 = vmax.xlane.f32.xlu1 %v4895_v43 }
 0x35f   : > { %v14561_v31 = vpop.trf.xlu1 }
 0x360   : > { %3020 = vmax.xlane.f32.xlu0 %v3019_v15  ;;  %17624 = vst [vmem:[#allocation61_spill] sm:$0xff] %v14561_v31 }
 0x363   : > { %v14564_v60 = vpop.trf.xlu1 }
 0x364   : > { %17625 = vst [vmem:[#allocation62_spill] sm:$0xff] %v14564_v60  ;;  %v3025_v60 = vsel %vm3003_vm4, %v17636_v11, -inf }
 0x367   : > { %v14566_v53 = vpop.trf.xlu1 }
 0x368   : > { %17626 = vst [vmem:[#allocation63_spill] sm:$0xff] %v14566_v53 }
 0x36b   : > { %v14568_v5 = vpop.trf.xlu1 }
 0x36c   : > { %17627 = vst [vmem:[#allocation64_spill] sm:$0xff] %v14568_v5  ;;  %v17635_v5 = vld [vmem:[#allocation21_spill] sm:$0xff] }
 0x36f   : > { %v14572_v20 = vpop.trf.xlu1 }
 0x370   : > { %17629 = vst [vmem:[#allocation66_spill] sm:$0xff] %v14572_v20 }
 0x373   : > { %v14576_v26 = vpop.trf.xlu1 }
 0x374   : > { %17631 = vst [vmem:[#allocation68_spill] sm:$0xff] %v14576_v26 }
 0x377   : > { %v14578_v51 = vpop.trf.xlu1 }
 0x378   : > { %17632 = vst [vmem:[#allocation69_spill] sm:$0xff] %v14578_v51 }
 0x37b   : > { %v14584_v36 = vpop.permute.xlu1 %2781 }
 0x37f   : > { %v2786_v20 = vpop.permute.xlu1 %2785 }
 0x380   : > { %v2878_v55 = vadd.f32 %v13924_v9, %v2786_v20 }
 0x382   : > { %v2942_v31 = vmul.f32 0.01, %v2878_v55  ;;  %vm2910_vm12 = vcmp.ge.f32.partialorder %v2878_v55, 0.0 }
 0x383   : > { %v2790_v20 = vpop.permute.xlu1 %2789 }
 0x38d   : > { %3996 = vxpose.xlu0.b32.start.end [1/1] (short) (narrow) %v14400_v63, 8  ;;  %v17634_v63 = vld [vmem:[#allocation4_spill] sm:$0xff] }
 0x38e   : > { %v2875_v53 = vadd.f32 %v17635_v5, %v17634_v63  ;;  %v17642_v5 = vld [vmem:[#allocation22_spill] sm:$0xff] }
 0x38f   : > { %v3015_v40 = vpop.xlane.xlu0 %3014 }
 0x390   : > { %v2939_v26 = vmul.f32 0.01, %v2875_v53  ;;  %vm2907_vm11 = vcmp.ge.f32.partialorder %v2875_v53, 0.0 }
 0x392   : > { %v14591_v51 = vsel %vm2907_vm11, %v2875_v53, %v2939_v26  ;;  %v2880_v26 = vadd.f32 %v13932_v12, %v2790_v20  ;;  %v3031_v12 = vsel %vm3003_vm4, %v14252_v3, -inf }
 0x393   : > { %17637 = vst [vmem:[#allocation4_spill] sm:$0xff] %v14591_v51 }
 0x394   : > { %vm2912_vm14 = vcmp.ge.f32.partialorder %v2880_v26, 0.0 }
 0x3af   : > { %v14580_v43 = vpop.trf.xlu0 }
 0x3b0   : > { %17633 = vst [vmem:[#allocation70_spill] sm:$0xff] %v14580_v43  ;;  %v4898_v15 = vsel %vm3003_vm4, %v14580_v43, -inf  ;;  %v14594_v43 = vmax.f32 %v3006_v29, %v14591_v51  ;;  %v2944_v29 = vmul.f32 0.01, %v2880_v26 }
 0x3b1   : > { %4899 = vmax.xlane.f32.xlu1 %v4898_v15  ;;  %v14597_v15 = vsel %vm2910_vm12, %v2878_v55, %v2942_v31 }
 0x3b2   : > { %17638 = vst [vmem:[#allocation21_spill] sm:$0xff] %v14594_v43  ;;  %17639 = vst [vmem:[#allocation39_spill] sm:$0xff] %v14597_v15  ;;  %v14600_v63 = vmax.f32 %v3015_v40, %v14597_v15  ;;  %v14613_v40 = vsel %vm2912_vm14, %v2880_v26, %v2944_v29  ;;  %v3097_v15 = vsel %vm3003_vm4, %v14329_v13, -inf }
 0x3b3   : > { %17645 = vst [vmem:[#allocation72_spill] sm:$0xff] %v14613_v40 }
 0x3b4   : > { %17640 = vst [vmem:[#allocation71_spill] sm:$0xff] %v14600_v63 }
 0x3ba   : > { %3026 = vmax.xlane.f32.xlu0 %v3025_v60  ;;  %v17641_v60 = vld [vmem:[#allocation5_spill] sm:$0xff] }
 0x3bb   : > { %v2877_v9 = vadd.f32 %v17642_v5, %v17641_v60 }
 0x3bd   : > { %v2941_v53 = vmul.f32 0.01, %v2877_v9  ;;  %vm2909_vm13 = vcmp.ge.f32.partialorder %v2877_v9, 0.0 }
 0x3bf   : > { %v14607_v51 = vsel %vm2909_vm13, %v2877_v9, %v2941_v53  ;;  %v2794_v9 = vpop.permute.xlu1 %2793 }
 0x3c0   : > { %17643 = vst [vmem:[#allocation5_spill] sm:$0xff] %v14607_v51  ;;  %v2882_v20 = vadd.f32 %v13940_v16, %v2794_v9 }
 0x3c2   : > { %3134 = vperm.xlu1 %13070, %v14594_v43   ;;  %vm2914_vm15 = vcmp.ge.f32.partialorder %v2882_v20, 0.0 }
 0x3c6   : > { %3149 = vperm.xlu1 %13070, %v14600_v63  }
 0x3e7   : > { %4060 = vxpose.xlu0.b32.start.end [1/1] (short) (narrow) %v14415_v57, 8 }
 0x3e9   : > { %v3012_v55 = vpop.xlane.xlu0 %3011 }
 0x3ea   : > { %v14610_v31 = vmax.f32 %v3012_v55, %v14607_v51  ;;  %v2946_v55 = vmul.f32 0.01, %v2882_v20  ;;  %v3091_v51 = vsel %vm3003_vm4, %v14324_v58, -inf }
 0x3ec   : > { %17644 = vst [vmem:[#allocation22_spill] sm:$0xff] %v14610_v31  ;;  %3144 = vperm.xlu1 %13070, %v14610_v31   ;;  %v14625_v26 = vsel %vm2914_vm15, %v2882_v20, %v2946_v55 }
 0x3ed   : > { %v3021_v60 = vpop.xlane.xlu0 %3020  ;;  %17647 = vst [vmem:[#allocation74_spill] sm:$0xff] %v14625_v26 }
 0x3ee   : > { %v14616_v5 = vmax.f32 %v3021_v60, %v14613_v40  ;;  %v2798_v40 = vpop.permute.xlu1 %2797 }
 0x3ef   : > { %v2884_v16 = vadd.f32 %v13947_v19, %v2798_v40 }
 0x3f0   : > { %17646 = vst [vmem:[#allocation73_spill] sm:$0xff] %v14616_v5  ;;  %3159 = vperm.xlu1 %13070, %v14616_v5  }
 0x3f1   : > { %v2948_v5 = vmul.f32 0.01, %v2884_v16  ;;  %vm2916_vm1 = vcmp.ge.f32.partialorder %v2884_v16, 0.0 }
 0x3f3   : > { %v14637_v20 = vsel %vm2916_vm1, %v2884_v16, %v2948_v5 }
 0x3f4   : > { %17649 = vst [vmem:[#allocation76_spill] sm:$0xff] %v14637_v20 }
 0x40d   : > { %v14623_v53 = vpop.trf.xlu0 }
 0x414   : > { %3032 = vmax.xlane.f32.xlu0 %v3031_v12  ;;  %v3037_v12 = vsel %vm3003_vm4, %v14259_v61, -inf }
 0x441   : > { %4124 = vxpose.xlu0.b32.start.end [1/1] (short) (narrow) %v14432_v49, 8 }
 0x447   : > { %v3027_v29 = vpop.xlane.xlu0 %3026 }
 0x448   : > { %v14628_v60 = vmax.f32 %v3027_v29, %v14625_v26  ;;  %v2802_v26 = vpop.permute.xlu1 %2801 }
 0x449   : > { %v2886_v19 = vadd.f32 %v13954_v21, %v2802_v26 }
 0x44a   : > { %17648 = vst [vmem:[#allocation75_spill] sm:$0xff] %v14628_v60  ;;  %3169 = vperm.xlu1 %13070, %v14628_v60  }
 0x44b   : > { %v2950_v60 = vmul.f32 0.01, %v2886_v19  ;;  %vm2918_vm2 = vcmp.ge.f32.partialorder %v2886_v19, 0.0 }
 0x44d   : > { %v14649_v5 = vsel %vm2918_vm2, %v2886_v19, %v2950_v60 }
 0x44e   : > { %17651 = vst [vmem:[#allocation78_spill] sm:$0xff] %v14649_v5 }
 0x467   : > { %v14635_v9 = vpop.trf.xlu0 }
 0x46e   : > { %3038 = vmax.xlane.f32.xlu0 %v3037_v12  ;;  %v3043_v12 = vsel %vm3003_vm4, %v14264_v34, -inf }
 0x49b   : > { %4188 = vxpose.xlu0.b32.start.end [1/1] (short) (narrow) %v14451_v8, 8 }
 0x4a1   : > { %v3033_v55 = vpop.xlane.xlu0 %3032 }
 0x4a2   : > { %v14640_v29 = vmax.f32 %v3033_v55, %v14637_v20  ;;  %v2806_v20 = vpop.permute.xlu1 %2805 }
 0x4a3   : > { %v2888_v21 = vadd.f32 %v13961_v24, %v2806_v20 }
 0x4a4   : > { %17650 = vst [vmem:[#allocation77_spill] sm:$0xff] %v14640_v29  ;;  %3179 = vperm.xlu1 %13070, %v14640_v29  }
 0x4a5   : > { %v2952_v29 = vmul.f32 0.01, %v2888_v21  ;;  %vm2920_vm3 = vcmp.ge.f32.partialorder %v2888_v21, 0.0 }
 0x4a7   : > { %v14661_v60 = vsel %vm2920_vm3, %v2888_v21, %v2952_v29 }
 0x4a8   : > { %17653 = vst [vmem:[#allocation80_spill] sm:$0xff] %v14661_v60 }
 0x4c1   : > { %v14647_v40 = vpop.trf.xlu0 }
 0x4c8   : > { %3044 = vmax.xlane.f32.xlu0 %v3043_v12  ;;  %v3049_v12 = vsel %vm3003_vm4, %v14270_v10, -inf }
 0x4f5   : > { %4252 = vxpose.xlu0.b32.start.end [1/1] (short) (narrow) %v14466_v47, 8 }
 0x4fb   : > { %v3039_v16 = vpop.xlane.xlu0 %3038 }
 0x4fc   : > { %v14652_v55 = vmax.f32 %v3039_v16, %v14649_v5  ;;  %v2810_v5 = vpop.permute.xlu1 %2809 }
 0x4fd   : > { %v2890_v24 = vadd.f32 %v13969_v27, %v2810_v5 }
 0x4fe   : > { %17652 = vst [vmem:[#allocation79_spill] sm:$0xff] %v14652_v55  ;;  %3189 = vperm.xlu1 %13070, %v14652_v55  }
 0x4ff   : > { %v2954_v55 = vmul.f32 0.01, %v2890_v24  ;;  %vm2922_vm5 = vcmp.ge.f32.partialorder %v2890_v24, 0.0 }
 0x501   : > { %v14673_v29 = vsel %vm2922_vm5, %v2890_v24, %v2954_v55 }
 0x502   : > { %17655 = vst [vmem:[#allocation82_spill] sm:$0xff] %v14673_v29 }
 0x51b   : > { %v14659_v26 = vpop.trf.xlu0 }
 0x522   : > { %3050 = vmax.xlane.f32.xlu0 %v3049_v12  ;;  %v3055_v12 = vsel %vm3003_vm4, %v14276_v46, -inf }
 0x54f   : > { %4316 = vxpose.xlu0.b32.start.end [1/1] (short) (narrow) %v14476_v14, 8 }
 0x555   : > { %v3045_v19 = vpop.xlane.xlu0 %3044 }
 0x556   : > { %v14664_v16 = vmax.f32 %v3045_v19, %v14661_v60  ;;  %v2814_v60 = vpop.permute.xlu1 %2813 }
 0x557   : > { %v2892_v27 = vadd.f32 %v13976_v30, %v2814_v60 }
 0x558   : > { %17654 = vst [vmem:[#allocation81_spill] sm:$0xff] %v14664_v16  ;;  %3199 = vperm.xlu1 %13070, %v14664_v16  }
 0x559   : > { %v2956_v16 = vmul.f32 0.01, %v2892_v27  ;;  %vm2924_vm6 = vcmp.ge.f32.partialorder %v2892_v27, 0.0 }
 0x55b   : > { %v14685_v55 = vsel %vm2924_vm6, %v2892_v27, %v2956_v16 }
 0x55c   : > { %17657 = vst [vmem:[#allocation84_spill] sm:$0xff] %v14685_v55 }
 0x575   : > { %v14671_v20 = vpop.trf.xlu0 }
 0x57c   : > { %3056 = vmax.xlane.f32.xlu0 %v3055_v12  ;;  %v3061_v12 = vsel %vm3003_vm4, %v14285_v0, -inf }
 0x5a9   : > { %4380 = vxpose.xlu0.b32.start.end [1/1] (short) (narrow) %v14488_v1, 8 }
 0x5af   : > { %v3051_v21 = vpop.xlane.xlu0 %3050 }
 0x5b0   : > { %v14676_v19 = vmax.f32 %v3051_v21, %v14673_v29  ;;  %v2818_v29 = vpop.permute.xlu1 %2817 }
 0x5b1   : > { %v2894_v30 = vadd.f32 %v13982_v33, %v2818_v29 }
 0x5b2   : > { %17656 = vst [vmem:[#allocation83_spill] sm:$0xff] %v14676_v19  ;;  %3209 = vperm.xlu1 %13070, %v14676_v19  }
 0x5b3   : > { %v2958_v19 = vmul.f32 0.01, %v2894_v30  ;;  %vm2926_vm7 = vcmp.ge.f32.partialorder %v2894_v30, 0.0 }
 0x5b4   : > { %v2822_v33 = vpop.permute.xlu1 %2821 }
 0x5b5   : > { %v14698_v16 = vsel %vm2926_vm7, %v2894_v30, %v2958_v19  ;;  %v2896_v63 = vadd.f32 %v13991_v37, %v2822_v33 }
 0x5b6   : > { %17659 = vst [vmem:[#allocation86_spill] sm:$0xff] %v14698_v16 }
 0x5b7   : > { %vm2928_vm8 = vcmp.ge.f32.partialorder %v2896_v63, 0.0 }
 0x5b8   : > { %v14708_v29 = vpop.permute.xlu1 %2825 }
 0x5cf   : > { %v14683_v5 = vpop.trf.xlu0 }
 0x5d6   : > { %3062 = vmax.xlane.f32.xlu0 %v3061_v12  ;;  %v3067_v12 = vsel %vm3003_vm4, %v14296_v4, -inf }
 0x603   : > { %4444 = vxpose.xlu0.b32.start.end [1/1] (short) (narrow) %v14498_v25, 8 }
 0x609   : > { %v3057_v24 = vpop.xlane.xlu0 %3056 }
 0x60a   : > { %v14688_v21 = vmax.f32 %v3057_v24, %v14685_v55  ;;  %v3085_v55 = vsel %vm3003_vm4, %v14317_v54, -inf }
 0x60c   : > { %17658 = vst [vmem:[#allocation85_spill] sm:$0xff] %v14688_v21  ;;  %3219 = vperm.xlu1 %13070, %v14688_v21  }
 0x629   : > { %v14695_v60 = vpop.trf.xlu0 }
 0x630   : > { %3068 = vmax.xlane.f32.xlu0 %v3067_v12  ;;  %v14710_v12 = vpop.permute.xlu1 %2829 }
 0x634   : > { %v14712_v19 = vpop.permute.xlu1 %2833 }
 0x638   : > { %v14714_v30 = vpop.permute.xlu1 %2837 }
 0x65d   : > { %4508 = vxpose.xlu0.b32.start.end [1/1] (short) (narrow) %v14505_v56, 8 }
 0x661   : > { %4572 = vxpose.xlu0.b32.start.end [1/1] (short) (narrow) %v14513_v2, 8 }
 0x663   : > { %v3063_v27 = vpop.xlane.xlu0 %3062 }
 0x664   : > { %v14701_v24 = vmax.f32 %v3063_v27, %v14698_v16  ;;  %v3073_v27 = vsel %vm3003_vm4, %v14303_v28, -inf  ;;  %v3079_v16 = vsel %vm3003_vm4, %v14310_v38, -inf  ;;  %v17666_v28 = vld [vmem:[#allocation24_spill] sm:$0xff] }
 0x665   : > { %4636 = vxpose.xlu0.b32.start.end [1/1] (short) (narrow) %v14521_v44, 8 }
 0x666   : > { %17660 = vst [vmem:[#allocation87_spill] sm:$0xff] %v14701_v24  ;;  %3229 = vperm.xlu1 %13070, %v14701_v24   ;;  %v14720_v24 = vpop.permute.xlu1 %2841 }
 0x669   : > { %4700 = vxpose.xlu0.b32.start.end [1/1] (short) (narrow) %v14527_v50, 8 }
 0x66a   : > { %v3009_v21 = vpop.xlane.xlu1 %3008 }
 0x66d   : > { %4764 = vxpose.xlu0.b32.start.end [1/1] (short) (narrow) %v14531_v6, 8  ;;  %v17665_v6 = vld [vmem:[#allocation7_spill] sm:$0xff] }
 0x66e   : > { %v3018_v31 = vpop.xlane.xlu1 %3017  ;;  %v2881_v50 = vadd.f32 %v17666_v28, %v17665_v6 }
 0x670   : > { %vm2913_vm11 = vcmp.ge.f32.partialorder %v2881_v50, 0.0 }
 0x671   : > { %4828 = vxpose.xlu0.b32.start.end [1/1] (short) (narrow) %v14535_v41, 8 }
 0x683   : > { %v14731_v43 = vpop.trf.xlu0 }
 0x69e   : > { %3074 = vmax.xlane.f32.xlu0 %v3073_v27  ;;  %v4892_v27 = vsel %vm3003_vm4, %v14570_v62, -inf  ;;  %v17664_v62 = vld [vmem:[#allocation23_spill] sm:$0xff] }
 0x6a2   : > { %3080 = vmax.xlane.f32.xlu0 %v3079_v16  ;;  %v3024_v16 = vpop.xlane.xlu1 %3023 }
 0x6a6   : > { %3086 = vmax.xlane.f32.xlu0 %v3085_v55  ;;  %v2960_v55 = vmul.f32 0.01, %v2896_v63  ;;  %v3030_v41 = vpop.xlane.xlu1 %3029 }
 0x6a8   : > { %v14735_v58 = vsel %vm2928_vm8, %v2896_v63, %v2960_v55  ;;  %v17669_v63 = vld [vmem:[#allocation8_spill] sm:$0xff]  ;;  %v17670_v55 = vld [vmem:[#allocation25_spill] sm:$0xff] }
 0x6a9   : > { %17661 = vst [vmem:[#allocation88_spill] sm:$0xff] %v14735_v58 }
 0x6aa   : > { %3092 = vmax.xlane.f32.xlu0 %v3091_v51  ;;  %v2876_v51 = vadd.f32 %v13918_v7, %v14584_v36  ;;  %v3036_v13 = vpop.xlane.xlu1 %3035 }
 0x6ac   : > { %v2940_v33 = vmul.f32 0.01, %v2876_v51  ;;  %vm2908_vm9 = vcmp.ge.f32.partialorder %v2876_v51, 0.0 }
 0x6ae   : > { %3098 = vmax.xlane.f32.xlu0 %v3097_v15  ;;  %v14745_v44 = vsel %vm2908_vm9, %v2876_v51, %v2940_v33  ;;  %v3042_v7 = vpop.xlane.xlu1 %3041  ;;  %v17673_v51 = vld [vmem:[#allocation9_spill] sm:$0xff]  ;;  %v17674_v33 = vld [vmem:[#allocation26_spill] sm:$0xff] }
 0x6af   : > { %v14748_v36 = vmax.f32 %v3009_v21, %v14745_v44  ;;  %v2885_v21 = vadd.f32 %v17674_v33, %v17673_v51  ;;  %v17682_v51 = vld [vmem:[#allocation28_spill] sm:$0xff] }
 0x6b1   : > { %17668 = vst [vmem:[#allocation23_spill] sm:$0xff] %v14748_v36  ;;  %vm2917_vm13 = vcmp.ge.f32.partialorder %v2885_v21, 0.0 }
 0x6b2   : > { %4893 = vmax.xlane.f32.xlu0 %v4892_v27  ;;  %v17663_v27 = vld [vmem:[#allocation6_spill] sm:$0xff]  ;;  %v3048_v28 = vpop.xlane.xlu1 %3047 }
 0x6b3   : > { %v2879_v37 = vadd.f32 %v17664_v62, %v17663_v27  ;;  %17667 = vst [vmem:[#allocation6_spill] sm:$0xff] %v14745_v44 }
 0x6b5   : > { %v2943_v38 = vmul.f32 0.01, %v2879_v37  ;;  %vm2911_vm10 = vcmp.ge.f32.partialorder %v2879_v37, 0.0 }
 0x6b7   : > { %v14753_v62 = vsel %vm2911_vm10, %v2879_v37, %v2943_v38  ;;  %v2949_v38 = vmul.f32 0.01, %v2885_v21  ;;  %v17677_v37 = vld [vmem:[#allocation10_spill] sm:$0xff] }
 0x6b8   : > { %17671 = vst [vmem:[#allocation7_spill] sm:$0xff] %v14753_v62  ;;  %v14756_v27 = vmax.f32 %v3018_v31, %v14753_v62  ;;  %v3054_v62 = vpop.xlane.xlu1 %3053 }
 0x6b9   : > { %v14777_v33 = vsel %vm2917_vm13, %v2885_v21, %v2949_v38  ;;  %v17689_v38 = vld [vmem:[#allocation13_spill] sm:$0xff] }
 0x6ba   : > { %17672 = vst [vmem:[#allocation24_spill] sm:$0xff] %v14756_v27  ;;  %17683 = vst [vmem:[#allocation10_spill] sm:$0xff] %v14777_v33 }
 0x6bd   : > { %v3069_v54 = vpop.xlane.xlu0 %3068 }
 0x6be   : > { %v14738_v15 = vmax.f32 %v3069_v54, %v14735_v58  ;;  %v2945_v54 = vmul.f32 0.01, %v2881_v50  ;;  %v2883_v58 = vadd.f32 %v17670_v55, %v17669_v63  ;;  %v17678_v63 = vld [vmem:[#allocation27_spill] sm:$0xff] }
 0x6bf   : > { %v2887_v31 = vadd.f32 %v17678_v63, %v17677_v37  ;;  %v3060_v37 = vpop.xlane.xlu1 %3059  ;;  %v17686_v63 = vld [vmem:[#allocation29_spill] sm:$0xff] }
 0x6c0   : > { %17662 = vst [vmem:[#allocation89_spill] sm:$0xff] %v14738_v15  ;;  %3239 = vperm.xlu1 %13070, %v14738_v15   ;;  %v2947_v6 = vmul.f32 0.01, %v2883_v58  ;;  %v14761_v15 = vsel %vm2913_vm11, %v2881_v50, %v2945_v54  ;;  %vm2915_vm12 = vcmp.ge.f32.partialorder %v2883_v58, 0.0  ;;  %v17681_v54 = vld [vmem:[#allocation11_spill] sm:$0xff] }
 0x6c1   : > { %17675 = vst [vmem:[#allocation8_spill] sm:$0xff] %v14761_v15  ;;  %v2951_v50 = vmul.f32 0.01, %v2887_v31  ;;  %vm2919_vm14 = vcmp.ge.f32.partialorder %v2887_v31, 0.0 }
 0x6c2   : > { %v14769_v55 = vsel %vm2915_vm12, %v2883_v58, %v2947_v6  ;;  %v17685_v6 = vld [vmem:[#allocation12_spill] sm:$0xff] }
 0x6c3   : > { %17679 = vst [vmem:[#allocation9_spill] sm:$0xff] %v14769_v55 }
 0x6c8   : > { %3139 = vperm.xlu0 %13071, %v14748_v36   ;;  %v14764_v36 = vmax.f32 %v3024_v16, %v14761_v15  ;;  %v2889_v16 = vadd.f32 %v17682_v51, %v17681_v54  ;;  %v17690_v54 = vld [vmem:[#allocation30_spill] sm:$0xff] }
 0x6ca   : > { %17676 = vst [vmem:[#allocation25_spill] sm:$0xff] %v14764_v36  ;;  %v2953_v58 = vmul.f32 0.01, %v2889_v16  ;;  %vm2921_vm15 = vcmp.ge.f32.partialorder %v2889_v16, 0.0 }
 0x6cc   : > { %3154 = vperm.xlu0 %13071, %v14756_v27   ;;  %v14772_v27 = vmax.f32 %v3030_v41, %v14769_v55  ;;  %v2891_v41 = vadd.f32 %v17686_v63, %v17685_v6  ;;  %v14785_v55 = vsel %vm2919_vm14, %v2887_v31, %v2951_v50  ;;  %v14793_v51 = vsel %vm2921_vm15, %v2889_v16, %v2953_v58  ;;  %v17693_v50 = vld [vmem:[#allocation14_spill] sm:$0xff]  ;;  %v17694_v6 = vld [vmem:[#allocation31_spill] sm:$0xff] }
 0x6cd   : > { %17687 = vst [vmem:[#allocation11_spill] sm:$0xff] %v14785_v55  ;;  %17691 = vst [vmem:[#allocation12_spill] sm:$0xff] %v14793_v51  ;;  %v17697_v58 = vld [vmem:[#allocation15_spill] sm:$0xff]  ;;  %vm13674_vm15 = vmmov 0  }
 0x6ce   : > { %17680 = vst [vmem:[#allocation26_spill] sm:$0xff] %v14772_v27  ;;  %v2955_v21 = vmul.f32 0.01, %v2891_v41  ;;  %vm2923_vm1 = vcmp.ge.f32.partialorder %v2891_v41, 0.0 }
 0x6d0   : > { %3164 = vperm.xlu0 %13071, %v14764_v36   ;;  %v14780_v36 = vmax.f32 %v3036_v13, %v14777_v33  ;;  %v2893_v13 = vadd.f32 %v17690_v54, %v17689_v38  ;;  %v3066_v33 = vpop.xlane.xlu1 %3065  ;;  %v14801_v63 = vsel %vm2923_vm1, %v2891_v41, %v2955_v21  ;;  %v17698_v54 = vld [vmem:[#allocation32_spill] sm:$0xff]  ;;  %vm6270_vm1 = vcmask 31744  }
 0x6d1   : > { %17695 = vst [vmem:[#allocation13_spill] sm:$0xff] %v14801_v63  ;;  %v17701_v21 = vld [vmem:[#allocation16_spill] sm:$0xff] }
 0x6d2   : > { %17684 = vst [vmem:[#allocation27_spill] sm:$0xff] %v14780_v36  ;;  %v2957_v31 = vmul.f32 0.01, %v2893_v13  ;;  %vm2925_vm2 = vcmp.ge.f32.partialorder %v2893_v13, 0.0 }
 0x6d4   : > { %3174 = vperm.xlu0 %13071, %v14772_v27   ;;  %v14788_v27 = vmax.f32 %v3042_v7, %v14785_v55  ;;  %v2895_v7 = vadd.f32 %v17694_v6, %v17693_v50  ;;  %v3072_v38 = vpop.xlane.xlu1 %3071  ;;  %v17702_v50 = vld [vmem:[#allocation33_spill] sm:$0xff] }
 0x6d6   : > { %17688 = vst [vmem:[#allocation28_spill] sm:$0xff] %v14788_v27  ;;  %v2959_v16 = vmul.f32 0.01, %v2895_v7  ;;  %vm2927_vm3 = vcmp.ge.f32.partialorder %v2895_v7, 0.0 }
 0x6d8   : > { %3184 = vperm.xlu0 %13071, %v14780_v36   ;;  %v14796_v36 = vmax.f32 %v3048_v28, %v14793_v51  ;;  %v2897_v28 = vadd.f32 %v17698_v54, %v17697_v58  ;;  %v14809_v51 = vsel %vm2925_vm2, %v2893_v13, %v2957_v31  ;;  %v14817_v6 = vsel %vm2927_vm3, %v2895_v7, %v2959_v16  ;;  %v17705_v31 = vld [vmem:[#allocation17_spill] sm:$0xff]  ;;  %v17706_v58 = vld [vmem:[#allocation34_spill] sm:$0xff] }
 0x6d9   : > { %17699 = vst [vmem:[#allocation14_spill] sm:$0xff] %v14809_v51  ;;  %17703 = vst [vmem:[#allocation15_spill] sm:$0xff] %v14817_v6  ;;  %v17709_v16 = vld [vmem:[#allocation18_spill] sm:$0xff] }
 0x6da   : > { %17692 = vst [vmem:[#allocation29_spill] sm:$0xff] %v14796_v36  ;;  %v2961_v41 = vmul.f32 0.01, %v2897_v28  ;;  %vm2929_vm5 = vcmp.ge.f32.partialorder %v2897_v28, 0.0 }
 0x6dc   : > { %3194 = vperm.xlu0 %13071, %v14788_v27   ;;  %v14804_v27 = vmax.f32 %v3054_v62, %v14801_v63  ;;  %v2899_v62 = vadd.f32 %v17702_v50, %v17701_v21  ;;  %v3078_v63 = vpop.xlane.xlu1 %3077  ;;  %v14825_v54 = vsel %vm2929_vm5, %v2897_v28, %v2961_v41  ;;  %v17710_v50 = vld [vmem:[#allocation35_spill] sm:$0xff]  ;;  %v17712_v41 = vld [vmem:[#allocation20_spill] sm:$0xff] }
 0x6dd   : > { %17707 = vst [vmem:[#allocation16_spill] sm:$0xff] %v14825_v54 }
 0x6de   : > { %17696 = vst [vmem:[#allocation30_spill] sm:$0xff] %v14804_v27  ;;  %v2963_v13 = vmul.f32 0.01, %v2899_v62  ;;  %vm2931_vm6 = vcmp.ge.f32.partialorder %v2899_v62, 0.0 }
 0x6e0   : > { %3204 = vperm.xlu0 %13071, %v14796_v36   ;;  %v14812_v36 = vmax.f32 %v3060_v37, %v14809_v51  ;;  %v2901_v37 = vadd.f32 %v17706_v58, %v17705_v31  ;;  %v3084_v21 = vpop.xlane.xlu1 %3083  ;;  %v17713_v31 = vld [vmem:[#allocation37_spill] sm:$0xff] }
 0x6e2   : > { %17700 = vst [vmem:[#allocation31_spill] sm:$0xff] %v14812_v36  ;;  %v2965_v7 = vmul.f32 0.01, %v2901_v37  ;;  %vm2933_vm7 = vcmp.ge.f32.partialorder %v2901_v37, 0.0 }
 0x6e4   : > { %3214 = vperm.xlu0 %13071, %v14804_v27   ;;  %v14820_v27 = vmax.f32 %v3066_v33, %v14817_v6  ;;  %v2903_v33 = vadd.f32 %v17710_v50, %v17709_v16  ;;  %v14833_v6 = vsel %vm2931_vm6, %v2899_v62, %v2963_v13  ;;  %v14841_v58 = vsel %vm2933_vm7, %v2901_v37, %v2965_v7 }
 0x6e5   : > { %17711 = vst [vmem:[#allocation17_spill] sm:$0xff] %v14833_v6  ;;  %17714 = vst [vmem:[#allocation34_spill] sm:$0xff] %v14841_v58 }
 0x6e6   : > { %17704 = vst [vmem:[#allocation32_spill] sm:$0xff] %v14820_v27  ;;  %v2967_v28 = vmul.f32 0.01, %v2903_v33  ;;  %vm2935_vm8 = vcmp.ge.f32.partialorder %v2903_v33, 0.0 }
 0x6e8   : > { %3224 = vperm.xlu0 %13071, %v14812_v36   ;;  %v14828_v36 = vmax.f32 %v3072_v38, %v14825_v54  ;;  %v2905_v38 = vadd.f32 %v17713_v31, %v17712_v41  ;;  %v3090_v54 = vpop.xlane.xlu1 %3089  ;;  %v14847_v13 = vsel %vm2935_vm8, %v2903_v33, %v2967_v28  ;;  %v4907_v31 = vsel %vm3003_vm4, %v14545_v52, -inf }
 0x6e9   : > { %17715 = vst [vmem:[#allocation18_spill] sm:$0xff] %v14847_v13  ;;  %v4919_v52 = vsel %vm3003_vm4, %v14551_v59, -inf  ;;  %v2904_v59 = vadd.f32 %v14019_v48, %v14714_v30 }
 0x6ea   : > { %17708 = vst [vmem:[#allocation33_spill] sm:$0xff] %v14828_v36  ;;  %v2969_v62 = vmul.f32 0.01, %v2905_v38  ;;  %vm2937_vm9 = vcmp.ge.f32.partialorder %v2905_v38, 0.0 }
 0x6eb   : > { %vm2936_vm13 = vcmp.ge.f32.partialorder %v2904_v59, 0.0 }
 0x6ec   : > { %3234 = vperm.xlu0 %13071, %v14820_v27   ;;  %v14836_v27 = vmax.f32 %v3078_v63, %v14833_v6  ;;  %v14850_v63 = vmax.f32 %v3090_v54, %v14847_v13  ;;  %v3096_v16 = vpop.xlane.xlu1 %3095  ;;  %v14853_v50 = vsel %vm2937_vm9, %v2905_v38, %v2969_v62  ;;  %v4901_v54 = vsel %vm3003_vm4, %v14574_v22, -inf }
 0x6ed   : > { %17716 = vst [vmem:[#allocation35_spill] sm:$0xff] %v14853_v50  ;;  %v14856_v37 = vmax.f32 %v3096_v16, %v14853_v50  ;;  %v2898_v38 = vadd.f32 %v13997_v39, %v14708_v29  ;;  %v4913_v16 = vsel %vm3003_vm4, %v14549_v18, -inf  ;;  %v2902_v39 = vadd.f32 %v14012_v45, %v14712_v19 }
 0x6ef   : > { %17717 = vst [vmem:[#allocation20_spill] sm:$0xff] %v14856_v37  ;;  %v2962_v50 = vmul.f32 0.01, %v2898_v38  ;;  %vm2930_vm10 = vcmp.ge.f32.partialorder %v2898_v38, 0.0  ;;  %vm2934_vm12 = vcmp.ge.f32.partialorder %v2902_v39, 0.0 }
 0x6f0   : > { %3244 = vperm.xlu0 %13071, %v14828_v36   ;;  %v14844_v36 = vmax.f32 %v3084_v21, %v14841_v58  ;;  %v14859_v21 = vpop.trf.xlu0 }
 0x6f1   : > { %17718 = vst [vmem:[#allocation37_spill] sm:$0xff] %v14859_v21  ;;  %v14887_v29 = vsel %vm2930_vm10, %v2898_v38, %v2962_v50  ;;  %v4931_v38 = vsel %vm3003_vm4, %v14555_v23, -inf }
 0x6f2   : > { %17724 = vst [vmem:[#allocation95_spill] sm:$0xff] %v14887_v29 }
 0x6f4   : > { %3254 = vperm.xlu0 %13071, %v14836_v27   ;;  %v14861_v7 = vpop.trf.xlu0 }
 0x6f5   : > { %17719 = vst [vmem:[#allocation90_spill] sm:$0xff] %v14861_v7 }
 0x6f8   : > { %3264 = vperm.xlu0 %13071, %v14844_v36   ;;  %v14863_v33 = vpop.trf.xlu0 }
 0x6f9   : > { %17720 = vst [vmem:[#allocation91_spill] sm:$0xff] %v14863_v33 }
 0x6fc   : > { %3274 = vperm.xlu0 %13071, %v14850_v63   ;;  %v14865_v28 = vpop.trf.xlu0 }
 0x6fd   : > { %17721 = vst [vmem:[#allocation92_spill] sm:$0xff] %v14865_v28 }
 0x700   : > { %3284 = vperm.xlu0 %13071, %v14856_v37   ;;  %v14869_v41 = vpop.trf.xlu0  ;;  %v2900_v37 = vadd.f32 %v14004_v42, %v14710_v12  ;;  %v4925_v12 = vsel %vm3003_vm4, %v14553_v32, -inf  ;;  %v17726_v32 = vld [vmem:[#allocation19_spill] sm:$0xff] }
 0x701   : > { %17722 = vst [vmem:[#allocation93_spill] sm:$0xff] %v14869_v41  ;;  %v2906_v13 = vadd.f32 %v17726_v32, %v14720_v24 }
 0x702   : > { %v2964_v22 = vmul.f32 0.01, %v2900_v37  ;;  %vm2932_vm11 = vcmp.ge.f32.partialorder %v2900_v37, 0.0 }
 0x703   : > { %vm2938_vm14 = vcmp.ge.f32.partialorder %v2906_v13, 0.0 }
 0x704   : > { %v14875_v62 = vpop.trf.xlu0  ;;  %v14899_v45 = vsel %vm2932_vm11, %v2900_v37, %v2964_v22  ;;  %v4937_v37 = vsel %vm3003_vm4, %v14557_v35, -inf }
 0x705   : > { %17723 = vst [vmem:[#allocation94_spill] sm:$0xff] %v14875_v62  ;;  %17725 = vst [vmem:[#allocation96_spill] sm:$0xff] %v14899_v45 }
 0x71f   : > { %4902 = vmax.xlane.f32.xlu0 %v4901_v54  ;;  %v14881_v54 = vpop.xlane.xlu1 %4896 }
 0x723   : > { %4908 = vmax.xlane.f32.xlu0 %v4907_v31  ;;  %v14889_v18 = vpop.xlane.xlu1 %4899 }
 0x727   : > { %4914 = vmax.xlane.f32.xlu0 %v4913_v16  ;;  %v2966_v16 = vmul.f32 0.01, %v2902_v39  ;;  %v3135_v50 = vpop.permute.xlu1 %3134 }
 0x729   : > { %v14909_v48 = vsel %vm2934_vm12, %v2902_v39, %v2966_v16  ;;  %v17731_v39 = vld [vmem:[#allocation40_spill] sm:$0xff] }
 0x72a   : > { %17727 = vst [vmem:[#allocation19_spill] sm:$0xff] %v14909_v48  ;;  %v3292_v16 = vsub.f32 %v17731_v39, %v3135_v50  ;;  %v465_v50 = vld [vmem:[%s423_s13 + $0x8] sm:$0xff]  ;;  %v17733_v39 = vld [vmem:[#allocation46_spill] sm:$0xff] }
 0x72b   : > { %4920 = vmax.xlane.f32.xlu0 %v4919_v52  ;;  %v3075_v31 = vpop.xlane.xlu0 %3074  ;;  %v3150_v32 = vpop.permute.xlu1 %3149 }
 0x72c   : > { %v14892_v42 = vmax.f32 %v3075_v31, %v14887_v29  ;;  %v2968_v31 = vmul.f32 0.01, %v2904_v59 }
 0x72e   : > { %3249 = vperm.xlu1 %13070, %v14892_v42  }
 0x72f   : > { %4926 = vmax.xlane.f32.xlu0 %v4925_v12  ;;  %v3081_v52 = vpop.xlane.xlu0 %3080  ;;  %v2970_v12 = vmul.f32 0.01, %v2906_v13 }
 0x730   : > { %v14902_v19 = vmax.f32 %v3081_v52, %v14899_v45  ;;  %v14917_v52 = vsel %vm2936_vm13, %v2904_v59, %v2968_v31  ;;  %v3145_v59 = vpop.permute.xlu1 %3144  ;;  %v464_v31 = vld [vmem:[%s423_s13] sm:$0xff] }
 0x731   : > { %17729 = vst [vmem:[#allocation98_spill] sm:$0xff] %v14917_v52 }
 0x732   : > { %3259 = vperm.xlu1 %13070, %v14902_v19  }
 0x733   : > { %4932 = vmax.xlane.f32.xlu0 %v4931_v38  ;;  %v3087_v22 = vpop.xlane.xlu0 %3086  ;;  %v4943_v38 = vsel %vm3003_vm4, %v14559_v17, -inf  ;;  %v467_v17 = vld [vmem:[%s423_s13 + $0x18] sm:$0xff] }
 0x734   : > { %v14912_v30 = vmax.f32 %v3087_v22, %v14909_v48  ;;  %v14926_v22 = vsel %vm2938_vm14, %v2906_v13, %v2970_v12  ;;  %v17734_v13 = vld [vmem:[#allocation61_spill] sm:$0xff] }
 0x735   : > { %17732 = vst [vmem:[#allocation40_spill] sm:$0xff] %v14926_v22  ;;  %v4949_v12 = vsel %vm3003_vm4, %v17734_v13, -inf  ;;  %v17738_v13 = vld [vmem:[#allocation63_spill] sm:$0xff] }
 0x736   : > { %17728 = vst [vmem:[#allocation97_spill] sm:$0xff] %v14912_v30  ;;  %3269 = vperm.xlu1 %13070, %v14912_v30   ;;  %v3160_v30 = vpop.permute.xlu1 %3159 }
 0x737   : > { %4938 = vmax.xlane.f32.xlu0 %v4937_v37  ;;  %v3093_v23 = vpop.xlane.xlu0 %3092  ;;  %v3324_v37 = vmul.f32 1.442695, %v3292_v16 }
 0x738   : > { %v14920_v24 = vmax.f32 %v3093_v23, %v14917_v52  ;;  %v3295_v52 = vsub.f32 %v17733_v39, %v3150_v32  ;;  %v17736_v32 = vld [vmem:[#allocation62_spill] sm:$0xff] }
 0x739   : > { %13072 = vpow2.f32 %v3324_v37  ;;  %v17737_v39 = vld [vmem:[#allocation38_spill] sm:$0xff] }
 0x73a   : > { %17730 = vst [vmem:[#allocation99_spill] sm:$0xff] %v14920_v24  ;;  %3279 = vperm.xlu1 %13070, %v14920_v24   ;;  %v12994_v24 = vpack.c.bf16 %v465_v50, %v464_v31  ;;  %v4955_v31 = vsel %vm3003_vm4, %v17736_v32, -inf }
 0x73b   : > { %4944 = vmax.xlane.f32.xlu0 %v4943_v38  ;;  %v3099_v35 = vpop.xlane.xlu0 %3098  ;;  %v466_v38 = vld [vmem:[%s423_s13 + $0x10] sm:$0xff] }
 0x73c   : > { %v14934_v23 = vmax.f32 %v3099_v35, %v14926_v22  ;;  %12995 = vmatprep.subr.bf16.mxu0 %v12994_v24  ;;  %v3330_v35 = vmul.f32 1.442695, %v3295_v52  ;;  %v17735_v22 = vld [vmem:[#allocation48_spill] sm:$0xff]  ;;  %v12998_v16 = vpack.c.bf16 %v467_v17, %v466_v38  ;;  %v4961_v52 = vsel %vm3003_vm4, %v17738_v13, -inf  ;;  %v13585_v17 = vld [vmem:[%s13846_s28 + $0x10] sm:$0xff] }
 0x73d   : > { %12997 = vmatpush3.bf16.msra.mxu0 %v12994_v24  ;;  %v3294_v48 = vsub.f32 %v17735_v22, %v3145_v59  ;;  %v3297_v24 = vsub.f32 %v17737_v39, %v3160_v30  ;;  %v13584_v22 = vld [vmem:[%s13846_s28 + $0x8] sm:$0xff]  ;;  %v17739_v38 = vld [vmem:[#allocation64_spill] sm:$0xff] }
 0x73e   : > { %3289 = vperm.xlu1 %13070, %v14934_v23   ;;  %12999 = vmatprep.subr.bf16.mxu0 %v12998_v16  ;;  %13074 = vpow2.f32 %v3330_v35  ;;  %v4967_v30 = vsel %vm3003_vm4, %v17739_v38, -inf }
 0x73f   : > { %4950 = vmax.xlane.f32.xlu0 %v4949_v12  ;;  %v3328_v50 = vmul.f32 1.442695, %v3294_v48  ;;  %v3170_v12 = vpop.permute.xlu1 %3169  ;;  %v3334_v59 = vmul.f32 1.442695, %v3297_v24 }
 0x740   : > { %v3299_v37 = vsub.f32 %v17636_v11, %v3170_v12 }
 0x741   : > { %13001 = vmatpush3.bf16.msra.mxu0 %v12998_v16  ;;  %13076 = vpow2.f32 %v3328_v50  ;;  %v13586_v16 = vld [vmem:[%s13846_s28 + $0x18] sm:$0xff] }
 0x742   : > { %13078 = vpow2.f32 %v3334_v59  ;;  %v3338_v50 = vmul.f32 1.442695, %v3299_v37 }
 0x743   : > { %4956 = vmax.xlane.f32.xlu0 %v4955_v31  ;;  %v3180_v48 = vpop.permute.xlu1 %3179  ;;  %v14953_v35 = vpop.eup %13072  ;;  %v13587_v31 = vld [vmem:[%s13846_s28 + $0x20] sm:$0xff] }
 0x744   : > { %12571 = vmatmul.mubr.msk.f32.vlgmr.msra.gmra.mrb[0].mxu0 %vm472_vm0, %v13584_v22  ;;  %v3301_v39 = vsub.f32 %v14252_v3, %v3180_v48  ;;  %v3484_v24 = vsel %vm3003_vm4, %v14953_v35, 0.0  ;;  %v14966_v22 = vpop.xlane.xlu0 %4893  ;;  %13080 = vpow2.f32 %v3338_v50 }
 0x745   : > { %12573 = vmatprep.mubr.msk.f32.mxu0 %vm472_vm0, %v13585_v17  ;;  %v13589_v17 = vld [vmem:[%s13846_s28 + $0x30] sm:$0xff] }
 0x746   : > { %v3342_v59 = vmul.f32 1.442695, %v3301_v39 }
 0x747   : > { %4962 = vmax.xlane.f32.xlu0 %v4961_v52  ;;  %v3190_v11 = vpop.permute.xlu1 %3189  ;;  %v13588_v52 = vld [vmem:[%s13846_s28 + $0x28] sm:$0xff] }
 0x748   : > { %12574 = vmatmul.mubr.msk.f32.gmra.mrb[2].mxu0 %vm472_vm0, %v13586_v16  ;;  %v14962_v12 = vpop.eup %13074  ;;  %v3303_v3 = vsub.f32 %v14259_v61, %v3190_v11  ;;  %v13590_v16 = vld [vmem:[%s13846_s28 + $0x38] sm:$0xff]  ;;  %13082 = vpow2.f32 %v3342_v59 }
 0x749   : > { %12576 = vmatprep.mubr.msk.f32.mxu0 %vm472_vm0, %v13587_v31  ;;  %17740 = vst [vmem:[#allocation46_spill] sm:$0xff] %v14962_v12  ;;  %v3493_v48 = vsel %vm3003_vm4, %v14962_v12, 0.0  ;;  %v14977_v31 = vpop.permute.xlu0 %3139  ;;  %v17795_v12 = vld [vmem:[#allocation76_spill] sm:$0xff] }
 0x74a   : > { %v3346_v50 = vmul.f32 1.442695, %v3303_v3 }
 0x74b   : > { %4968 = vmax.xlane.f32.xlu0 %v4967_v30  ;;  %v3200_v37 = vpop.permute.xlu1 %3199  ;;  %v14973_v30 = vpop.eup %13076 }
 0x74c   : > { %12577 = vmatmul.mubr.msk.f32.gmra.mrb[4].mxu0 %vm472_vm0, %v13588_v52  ;;  %v3305_v61 = vsub.f32 %v14264_v34, %v3200_v37  ;;  %v3490_v11 = vsel %vm3003_vm4, %v14973_v30, 0.0  ;;  %v14984_v52 = vpop.eup %13078  ;;  %13084 = vpow2.f32 %v3346_v50 }
 0x74d   : > { %12579 = vmatprep.mubr.msk.f32.mxu0 %vm472_vm0, %v13589_v17  ;;  %17741 = vst [vmem:[#allocation48_spill] sm:$0xff] %v14984_v52  ;;  %v13592_v17 = vld [vmem:[%s13846_s28 + $0x48] sm:$0xff]  ;;  %v14991_v37 = vpop.permute.xlu0 %3154 }
 0x74e   : > { %v3350_v59 = vmul.f32 1.442695, %v3305_v61 }
 0x74f   : > { %3485 = vadd.xlane.f32.xlu0 %v3484_v24  ;;  %v13591_v24 = vld [vmem:[%s13846_s28 + $0x40] sm:$0xff]  ;;  %v3210_v39 = vpop.permute.xlu1 %3209 }
 0x750   : > { %12580 = vmatmul.mubr.msk.f32.gmra.mrb[6].mxu0 %vm472_vm0, %v13590_v16  ;;  %v3307_v3 = vsub.f32 %v14270_v10, %v3210_v39  ;;  %v3499_v16 = vsel %vm3003_vm4, %v14984_v52, 0.0  ;;  %13086 = vpow2.f32 %v3350_v59  ;;  %v13596_v52 = vld [vmem:[%s13846_s28 + $0x68] sm:$0xff] }
 0x751   : > { %12582 = vmatprep.mubr.msk.f32.mxu0 %vm472_vm0, %v13591_v24  ;;  %v14995_v24 = vpop.eup %13080 }
 0x752   : > { %17742 = vst [vmem:[#allocation38_spill] sm:$0xff] %v14995_v24  ;;  %v3354_v50 = vmul.f32 1.442695, %v3307_v3  ;;  %v3505_v39 = vsel %vm3003_vm4, %v14995_v24, 0.0  ;;  %v4904_v3 = vsel %vm3003_vm4, %v14623_v53, -inf  ;;  %v13613_v24 = vld [vmem:[%s13846_s28 + $0xf0] sm:$0xff] }
 0x753   : > { %3494 = vadd.xlane.f32.xlu0 %v3493_v48  ;;  %v13593_v48 = vld [vmem:[%s13846_s28 + $0x50] sm:$0xff]  ;;  %v3220_v34 = vpop.permute.xlu1 %3219 }
 0x754   : > { %12583 = vmatmul.mubr.msk.f32.gmra.mrb[8].mxu0 %vm472_vm0, %v13592_v17  ;;  %v13595_v17 = vld [vmem:[%s13846_s28 + $0x60] sm:$0xff]  ;;  %v3309_v10 = vsub.f32 %v14276_v46, %v3220_v34  ;;  %13088 = vpow2.f32 %v3354_v50 }
 0x755   : > { %12585 = vmatprep.mubr.msk.f32.mxu0 %vm472_vm0, %v13593_v48  ;;  %v15004_v48 = vpop.eup %13082  ;;  %v13599_v50 = vld [vmem:[%s13846_s28 + $0x80] sm:$0xff] }
 0x756   : > { %17743 = vst [vmem:[#allocation100_spill] sm:$0xff] %v15004_v48  ;;  %v3358_v59 = vmul.f32 1.442695, %v3309_v10 }
 0x757   : > { %3491 = vadd.xlane.f32.xlu0 %v3490_v11  ;;  %v13594_v11 = vld [vmem:[%s13846_s28 + $0x58] sm:$0xff]  ;;  %v3230_v61 = vpop.permute.xlu1 %3229 }
 0x758   : > { %12586 = vmatmul.mubr.msk.f32.gmra.mrb[10].mxu0 %vm472_vm0, %v13594_v11  ;;  %v13597_v11 = vld [vmem:[%s13846_s28 + $0x70] sm:$0xff]  ;;  %v3311_v46 = vsub.f32 %v14285_v0, %v3230_v61  ;;  %13090 = vpow2.f32 %v3358_v59  ;;  %v4910_v61 = vsel %vm3003_vm4, %v14635_v9, -inf }
 0x759   : > { %12588 = vmatprep.mubr.msk.f32.mxu0 %vm472_vm0, %v13595_v17  ;;  %v3511_v17 = vsel %vm3003_vm4, %v15004_v48, 0.0  ;;  %v13601_v59 = vld [vmem:[%s13846_s28 + $0x90] sm:$0xff] }
 0x75a   : > { %v3362_v0 = vmul.f32 1.442695, %v3311_v46  ;;  %v4916_v46 = vsel %vm3003_vm4, %v14647_v40, -inf }
 0x75b   : > { %3500 = vadd.xlane.f32.xlu0 %v3499_v16  ;;  %v15008_v16 = vpop.permute.xlu0 %3164  ;;  %v3240_v34 = vpop.permute.xlu1 %3239 }
 0x75c   : > { %12589 = vmatmul.mubr.msk.f32.gmra.mrb[12].mxu0 %vm472_vm0, %v13596_v52  ;;  %v13598_v52 = vld [vmem:[%s13846_s28 + $0x78] sm:$0xff]  ;;  %v3313_v10 = vsub.f32 %v14296_v4, %v3240_v34  ;;  %13092 = vpow2.f32 %v3362_v0  ;;  %v4922_v0 = vsel %vm3003_vm4, %v14659_v26, -inf }
 0x75d   : > { %12591 = vmatprep.mubr.msk.f32.mxu0 %vm472_vm0, %v13597_v11 }
 0x75e   : > { %v3366_v4 = vmul.f32 1.442695, %v3313_v10 }
 0x75f   : > { %3506 = vadd.xlane.f32.xlu0 %v3505_v39  ;;  %v15017_v39 = vpop.eup %13084  ;;  %v15026_v11 = vpop.permute.xlu0 %3174 }
 0x760   : > { %17744 = vst [vmem:[#allocation101_spill] sm:$0xff] %v15017_v39  ;;  %12592 = vmatmul.mubr.msk.f32.gmra.mrb[14].mxu0 %vm472_vm0, %v13598_v52  ;;  %v13600_v52 = vld [vmem:[%s13846_s28 + $0x88] sm:$0xff]  ;;  %13094 = vpow2.f32 %v3366_v4  ;;  %v4928_v4 = vsel %vm3003_vm4, %v14671_v20, -inf }
 0x761   : > { %12594 = vmatprep.mubr.msk.f32.mxu0 %vm472_vm0, %v13599_v50 }
 0x762   : > { %4905 = vmax.xlane.f32.xlu1 %v4904_v3  ;;  %v3517_v3 = vsel %vm3003_vm4, %v15017_v39, 0.0 }
 0x763   : > { %3512 = vadd.xlane.f32.xlu0 %v3511_v17  ;;  %v15030_v17 = vpop.eup %13086 }
 0x764   : > { %17745 = vst [vmem:[#allocation102_spill] sm:$0xff] %v15030_v17  ;;  %12595 = vmatmul.mubr.msk.f32.gmra.mrb[16].mxu0 %vm472_vm0, %v13600_v52  ;;  %v3523_v34 = vsel %vm3003_vm4, %v15030_v17, 0.0  ;;  %v15040_v50 = vpop.eup %13088  ;;  %v13603_v52 = vld [vmem:[%s13846_s28 + $0xa0] sm:$0xff] }
 0x765   : > { %12597 = vmatprep.mubr.msk.f32.mxu0 %vm472_vm0, %v13601_v59  ;;  %17746 = vst [vmem:[#allocation103_spill] sm:$0xff] %v15040_v50  ;;  %v3529_v10 = vsel %vm3003_vm4, %v15040_v50, 0.0  ;;  %v15052_v59 = vpop.eup %13090  ;;  %v13611_v17 = vld [vmem:[%s13846_s28 + $0xe0] sm:$0xff] }
 0x766   : > { %4911 = vmax.xlane.f32.xlu1 %v4910_v61  ;;  %v13602_v61 = vld [vmem:[%s13846_s28 + $0x98] sm:$0xff]  ;;  %17747 = vst [vmem:[#allocation104_spill] sm:$0xff] %v15052_v59 }
 0x767   : > { %3518 = vadd.xlane.f32.xlu0 %v3517_v3  ;;  %v15044_v3 = vpop.permute.xlu0 %3184 }
 0x768   : > { %12598 = vmatmul.mubr.msk.f32.gmra.mrb[18].mxu0 %vm472_vm0, %v13602_v61 }
 0x769   : > { %12600 = vmatprep.mubr.msk.f32.mxu0 %vm472_vm0, %v13603_v52  ;;  %v3535_v52 = vsel %vm3003_vm4, %v15052_v59, 0.0  ;;  %v13608_v59 = vld [vmem:[%s13846_s28 + $0xc8] sm:$0xff] }
 0x76a   : > { %4917 = vmax.xlane.f32.xlu1 %v4916_v46  ;;  %v13604_v46 = vld [vmem:[%s13846_s28 + $0xa8] sm:$0xff] }
 0x76b   : > { %3524 = vadd.xlane.f32.xlu0 %v3523_v34  ;;  %v13605_v34 = vld [vmem:[%s13846_s28 + $0xb0] sm:$0xff]  ;;  %v15060_v61 = vpop.permute.xlu0 %3194 }
 0x76c   : > { %12601 = vmatmul.mubr.msk.f32.gmra.mrb[20].mxu0 %vm472_vm0, %v13604_v46  ;;  %v13607_v46 = vld [vmem:[%s13846_s28 + $0xc0] sm:$0xff] }
 0x76d   : > { %12603 = vmatprep.mubr.msk.f32.mxu0 %vm472_vm0, %v13605_v34  ;;  %v4934_v34 = vsel %vm3003_vm4, %v14683_v5, -inf }
 0x76e   : > { %4923 = vmax.xlane.f32.xlu1 %v4922_v0  ;;  %v15064_v0 = vpop.eup %13092 }
 0x76f   : > { %3530 = vadd.xlane.f32.xlu0 %v3529_v10  ;;  %17748 = vst [vmem:[#allocation105_spill] sm:$0xff] %v15064_v0  ;;  %v13606_v10 = vld [vmem:[%s13846_s28 + $0xb8] sm:$0xff]  ;;  %v15074_v50 = vpop.eup %13094 }
 0x770   : > { %12604 = vmatmul.mubr.msk.f32.gmra.mrb[22].mxu0 %vm472_vm0, %v13606_v10  ;;  %17749 = vst [vmem:[#allocation106_spill] sm:$0xff] %v15074_v50  ;;  %v13609_v10 = vld [vmem:[%s13846_s28 + $0xd0] sm:$0xff] }
 0x771   : > { %12606 = vmatprep.mubr.msk.f32.mxu0 %vm472_vm0, %v13607_v46  ;;  %v4940_v46 = vsel %vm3003_vm4, %v14695_v60, -inf }
 0x772   : > { %4929 = vmax.xlane.f32.xlu1 %v4928_v4  ;;  %v3541_v4 = vsel %vm3003_vm4, %v15064_v0, 0.0  ;;  %v13610_v0 = vld [vmem:[%s13846_s28 + $0xd8] sm:$0xff] }
 0x773   : > { %3536 = vadd.xlane.f32.xlu0 %v3535_v52  ;;  %v3205_v52 = vpop.permute.xlu0 %3204 }
 0x774   : > { %12607 = vmatmul.mubr.msk.f32.gmra.mrb[24].mxu0 %vm472_vm0, %v13608_v59  ;;  %v17750_v59 = vld [vmem:[#allocation36_spill] sm:$0xff] }
 0x775   : > { %12609 = vmatprep.mubr.msk.f32.mxu0 %vm472_vm0, %v13609_v10  ;;  %v4946_v10 = vsel %vm3003_vm4, %v14731_v43, -inf }
 0x776   : > { %4935 = vmax.xlane.f32.xlu1 %v4934_v34  ;;  %v3547_v34 = vsel %vm3003_vm4, %v15074_v50, 0.0 }
 0x777   : > { %3542 = vadd.xlane.f32.xlu0 %v3541_v4  ;;  %v3293_v4 = vsub.f32 %v17750_v59, %v14977_v31  ;;  %v3215_v39 = vpop.permute.xlu0 %3214  ;;  %v4952_v31 = vsel %vm3003_vm4, %v14859_v21, -inf  ;;  %v3298_v59 = vsub.f32 %v14415_v57, %v15008_v16  ;;  %v3302_v57 = vsub.f32 %v14451_v8, %v15044_v3 }
 0x778   : > { %12610 = vmatmul.mubr.msk.f32.gmra.mrb[26].mxu0 %vm472_vm0, %v13610_v0  ;;  %v4970_v16 = vsel %vm3003_vm4, %v14865_v28, -inf  ;;  %v3306_v3 = vsub.f32 %v14476_v14, %v3205_v52 }
 0x779   : > { %12612 = vmatprep.mubr.msk.f32.mxu0 %vm472_vm0, %v13611_v17  ;;  %v3326_v50 = vmul.f32 1.442695, %v3293_v4  ;;  %v13614_v17 = vld [vmem:[%s13846_s28 + $0xf8] sm:$0xff]  ;;  %v4958_v4 = vsel %vm3003_vm4, %v14861_v7, -inf }
 0x77a   : > { %4941 = vmax.xlane.f32.xlu1 %v4940_v46  ;;  %v13612_v46 = vld [vmem:[%s13846_s28 + $0xe8] sm:$0xff] }
 0x77b   : > { %3548 = vadd.xlane.f32.xlu0 %v3547_v34  ;;  %v17751_v34 = vld [vmem:[#allocation47_spill] sm:$0xff]  ;;  %13096 = vpow2.f32 %v3326_v50 }
 0x77c   : > { %12613 = vmatmul.mubr.msk.f32.gmra.mrb[28].mxu0 %vm472_vm0, %v13612_v46  ;;  %v3296_v48 = vsub.f32 %v17751_v34, %v14991_v37  ;;  %v3336_v37 = vmul.f32 1.442695, %v3298_v59  ;;  %v4964_v46 = vsel %vm3003_vm4, %v14863_v33, -inf }
 0x77d   : > { %12615 = vmatprep.mubr.msk.f32.mxu0 %vm472_vm0, %v13613_v24  ;;  %v3300_v24 = vsub.f32 %v14432_v49, %v15026_v11  ;;  %v3304_v49 = vsub.f32 %v14466_v47, %v15060_v61  ;;  %v3352_v47 = vmul.f32 1.442695, %v3306_v3  ;;  %v3308_v61 = vsub.f32 %v14488_v1, %v3215_v39 }
 0x77e   : > { %4947 = vmax.xlane.f32.xlu1 %v4946_v10  ;;  %v3332_v0 = vmul.f32 1.442695, %v3296_v48  ;;  %v3225_v10 = vpop.permute.xlu0 %3224 }
 0x77f   : > { %v3340_v48 = vmul.f32 1.442695, %v3300_v24  ;;  %v3348_v8 = vmul.f32 1.442695, %v3304_v49  ;;  %v3310_v14 = vsub.f32 %v14498_v25, %v3225_v10 }
 0x780   : > { %12616 = vmatmul.mubr.msk.f32.gmra.mrb[30].mxu0 %vm472_vm0, %v13614_v17  ;;  %13098 = vpow2.f32 %v3332_v0  ;;  %vm6274_vm0 = vcmask 1043456  }
 0x781   : > { %13100 = vpow2.f32 %v3336_v37 }
 0x782   : > { %4953 = vmax.xlane.f32.xlu1 %v4952_v31  ;;  %v3235_v34 = vpop.permute.xlu0 %3234  ;;  %13102 = vpow2.f32 %v3340_v48  ;;  %v3344_v31 = vmul.f32 1.442695, %v3302_v57  ;;  %v3356_v48 = vmul.f32 1.442695, %v3308_v61 }
 0x783   : > { %v3312_v1 = vsub.f32 %v14505_v56, %v3235_v34  ;;  %v17759_v56 = vld [vmem:[#allocation49_spill] sm:$0xff] }
 0x784   : > { %13104 = vpow2.f32 %v3344_v31  ;;  %v3360_v31 = vmul.f32 1.442695, %v3310_v14 }
 0x785   : > { %v15114_v50 = vpop.eup %13096  ;;  %13106 = vpow2.f32 %v3348_v8  ;;  %v3364_v25 = vmul.f32 1.442695, %v3312_v1 }
 0x786   : > { %4959 = vmax.xlane.f32.xlu1 %v4958_v4  ;;  %17752 = vst [vmem:[#allocation36_spill] sm:$0xff] %v15114_v50  ;;  %v3245_v11 = vpop.permute.xlu0 %3244  ;;  %v3487_v17 = vsel %vm3003_vm4, %v15114_v50, 0.0  ;;  %13108 = vpow2.f32 %v3352_v47 }
 0x787   : > { %13110 = vpow2.f32 %v3356_v48  ;;  %v3314_v10 = vsub.f32 %v14513_v2, %v3245_v11  ;;  %v17761_v2 = vld [vmem:[#allocation50_spill] sm:$0xff] }
 0x788   : > { %13112 = vpow2.f32 %v3360_v31 }
 0x789   : > { %13114 = vpow2.f32 %v3364_v25 }
 0x78a   : > { %4965 = vmax.xlane.f32.xlu1 %v4964_v46  ;;  %v15120_v0 = vpop.eup %13098  ;;  %v3255_v37 = vpop.permute.xlu0 %3254 }
 0x78b   : > { %17753 = vst [vmem:[#allocation47_spill] sm:$0xff] %v15120_v0  ;;  %v3496_v59 = vsel %vm3003_vm4, %v15120_v0, 0.0  ;;  %v15125_v4 = vpop.eup %13100  ;;  %v3316_v34 = vsub.f32 %v17759_v56, %v3255_v37  ;;  %v17763_v37 = vld [vmem:[#allocation41_spill] sm:$0xff] }
 0x78c   : > { %17754 = vst [vmem:[#allocation107_spill] sm:$0xff] %v15125_v4  ;;  %v3502_v24 = vsel %vm3003_vm4, %v15125_v4, 0.0  ;;  %v15130_v46 = vpop.eup %13102  ;;  %v17790_v4 = vld [vmem:[#allocation72_spill] sm:$0xff] }
 0x78d   : > { %17755 = vst [vmem:[#allocation108_spill] sm:$0xff] %v15130_v46  ;;  %v3508_v57 = vsel %vm3003_vm4, %v15130_v46, 0.0  ;;  %v3372_v48 = vmul.f32 1.442695, %v3316_v34 }
 0x78e   : > { %4971 = vmax.xlane.f32.xlu1 %v4970_v16  ;;  %v3265_v52 = vpop.permute.xlu0 %3264  ;;  %v15135_v16 = vpop.eup %13104 }
 0x78f   : > { %17756 = vst [vmem:[#allocation109_spill] sm:$0xff] %v15135_v16  ;;  %v3514_v39 = vsel %vm3003_vm4, %v15135_v16, 0.0  ;;  %v15140_v49 = vpop.eup %13106  ;;  %v3318_v11 = vsub.f32 %v17761_v2, %v3265_v52  ;;  %v17766_v2 = vld [vmem:[#allocation42_spill] sm:$0xff]  ;;  %v17787_v16 = vld [vmem:[#allocation5_spill] sm:$0xff] }
 0x790   : > { %17757 = vst [vmem:[#allocation110_spill] sm:$0xff] %v15140_v49  ;;  %v3520_v8 = vsel %vm3003_vm4, %v15140_v49, 0.0  ;;  %v15145_v3 = vpop.eup %13108 }
 0x791   : > { %17758 = vst [vmem:[#allocation111_spill] sm:$0xff] %v15145_v3  ;;  %v3526_v61 = vsel %vm3003_vm4, %v15145_v3, 0.0  ;;  %v3376_v25 = vmul.f32 1.442695, %v3318_v11 }
 0x792   : > { %3488 = vadd.xlane.f32.xlu1 %v3487_v17  ;;  %v3275_v17 = vpop.permute.xlu0 %3274 }
 0x796   : > { %3497 = vadd.xlane.f32.xlu1 %v3496_v59  ;;  %v3368_v59 = vmul.f32 1.442695, %v3314_v10  ;;  %v3285_v47 = vpop.permute.xlu0 %3284  ;;  %v17764_v10 = vld [vmem:[#allocation51_spill] sm:$0xff] }
 0x798   : > { %13116 = vpow2.f32 %v3368_v59 }
 0x799   : > { %13118 = vpow2.f32 %v3372_v48 }
 0x79a   : > { %3503 = vadd.xlane.f32.xlu1 %v3502_v24  ;;  %v15150_v24 = vpop.eup %13110 }
 0x79b   : > { %17760 = vst [vmem:[#allocation49_spill] sm:$0xff] %v15150_v24  ;;  %v3532_v31 = vsel %vm3003_vm4, %v15150_v24, 0.0  ;;  %v15157_v1 = vpop.eup %13112 }
 0x79c   : > { %17762 = vst [vmem:[#allocation50_spill] sm:$0xff] %v15157_v1  ;;  %v3538_v52 = vsel %vm3003_vm4, %v15157_v1, 0.0 }
 0x79e   : > { %3509 = vadd.xlane.f32.xlu1 %v3508_v57 }
 0x7a2   : > { %3515 = vadd.xlane.f32.xlu1 %v3514_v39 }
 0x7a6   : > { %3521 = vadd.xlane.f32.xlu1 %v3520_v8  ;;  %v3320_v8 = vsub.f32 %v17764_v10, %v3275_v17 }
 0x7aa   : > { %3527 = vadd.xlane.f32.xlu1 %v3526_v61  ;;  %v15165_v61 = vpop.eup %13114 }
 0x7ab   : > { %17765 = vst [vmem:[#allocation41_spill] sm:$0xff] %v15165_v61  ;;  %v3544_v17 = vsel %vm3003_vm4, %v15165_v61, 0.0 }
 0x7ac   : > { %v15153_v14 = vpop.xlane.xlu0 %4902 }
 0x7ad   : > { %v3250_v57 = vpop.permute.xlu1 %3249 }
 0x7ae   : > { %v3315_v39 = vsub.f32 %v17763_v37, %v3250_v57  ;;  %3533 = vadd.xlane.f32.xlu1 %v3532_v31  ;;  %v3380_v57 = vmul.f32 1.442695, %v3320_v8  ;;  %v15172_v37 = vpop.eup %13116 }
 0x7af   : > { %17767 = vst [vmem:[#allocation51_spill] sm:$0xff] %v15172_v37  ;;  %v15180_v8 = vpop.eup %13118 }
 0x7b0   : > { %v3370_v56 = vmul.f32 1.442695, %v3315_v39  ;;  %v15161_v59 = vpop.xlane.xlu0 %4908  ;;  %v17768_v39 = vld [vmem:[#allocation43_spill] sm:$0xff]  ;;  %17770 = vst [vmem:[#allocation42_spill] sm:$0xff] %v15180_v8 }
 0x7b1   : > { %v3260_v34 = vpop.permute.xlu1 %3259 }
 0x7b2   : > { %13120 = vpow2.f32 %v3370_v56  ;;  %v3317_v28 = vsub.f32 %v17766_v2, %v3260_v34  ;;  %3539 = vadd.xlane.f32.xlu1 %v3538_v52  ;;  %v17769_v56 = vld [vmem:[#allocation52_spill] sm:$0xff] }
 0x7b3   : > { %13122 = vpow2.f32 %v3376_v25  ;;  %v3322_v1 = vsub.f32 %v17769_v56, %v3285_v47  ;;  %v17771_v2 = vld [vmem:[#allocation44_spill] sm:$0xff] }
 0x7b4   : > { %v3374_v31 = vmul.f32 1.442695, %v3317_v28  ;;  %v15168_v48 = vpop.xlane.xlu0 %4914  ;;  %v3550_v28 = vsel %vm3003_vm4, %v15172_v37, 0.0 }
 0x7b5   : > { %v3270_v11 = vpop.permute.xlu1 %3269 }
 0x7b6   : > { %13124 = vpow2.f32 %v3374_v31  ;;  %v3319_v10 = vsub.f32 %v17768_v39, %v3270_v11  ;;  %3545 = vadd.xlane.f32.xlu1 %v3544_v17  ;;  %v3384_v11 = vmul.f32 1.442695, %v3322_v1 }
 0x7b7   : > { %13126 = vpow2.f32 %v3380_v57 }
 0x7b8   : > { %v3378_v34 = vmul.f32 1.442695, %v3319_v10  ;;  %v15176_v52 = vpop.xlane.xlu0 %4920  ;;  %v3556_v10 = vsel %vm3003_vm4, %v15180_v8, 0.0 }
 0x7b9   : > { %v3280_v25 = vpop.permute.xlu1 %3279 }
 0x7ba   : > { %13128 = vpow2.f32 %v3378_v34  ;;  %v3321_v61 = vsub.f32 %v17771_v2, %v3280_v25  ;;  %3551 = vadd.xlane.f32.xlu1 %v3550_v28  ;;  %v17774_v34 = vld [vmem:[#allocation45_spill] sm:$0xff] }
 0x7bc   : > { %v15183_v31 = vpop.eup %13120  ;;  %v3382_v17 = vmul.f32 1.442695, %v3321_v61  ;;  %v15185_v57 = vpop.xlane.xlu0 %4926 }
 0x7bd   : > { %17772 = vst [vmem:[#allocation43_spill] sm:$0xff] %v15183_v31  ;;  %v3290_v47 = vpop.permute.xlu1 %3289  ;;  %v3553_v39 = vsel %vm3003_vm4, %v15183_v31, 0.0  ;;  %v15191_v56 = vpop.eup %13122  ;;  %v17783_v31 = vld [vmem:[#allocation71_spill] sm:$0xff] }
 0x7be   : > { %17773 = vst [vmem:[#allocation52_spill] sm:$0xff] %v15191_v56  ;;  %13130 = vpow2.f32 %v3382_v17  ;;  %v3323_v37 = vsub.f32 %v17774_v34, %v3290_v47  ;;  %3554 = vadd.xlane.f32.xlu0 %v3553_v39  ;;  %3557 = vadd.xlane.f32.xlu1 %v3556_v10  ;;  %v3562_v2 = vsel %vm3003_vm4, %v15191_v56, 0.0  ;;  %v17781_v56 = vld [vmem:[#allocation4_spill] sm:$0xff] }
 0x7bf   : > { %13132 = vpow2.f32 %v3384_v11 }
 0x7c0   : > { %v15194_v25 = vpop.eup %13124  ;;  %v3386_v1 = vmul.f32 1.442695, %v3323_v37  ;;  %v15196_v61 = vpop.xlane.xlu0 %4932 }
 0x7c1   : > { %17775 = vst [vmem:[#allocation44_spill] sm:$0xff] %v15194_v25  ;;  %v3559_v28 = vsel %vm3003_vm4, %v15194_v25, 0.0  ;;  %v15202_v8 = vpop.eup %13126 }
 0x7c2   : > { %17776 = vst [vmem:[#allocation45_spill] sm:$0xff] %v15202_v8  ;;  %13134 = vpow2.f32 %v3386_v1  ;;  %3560 = vadd.xlane.f32.xlu0 %v3559_v28  ;;  %3563 = vadd.xlane.f32.xlu1 %v3562_v2  ;;  %v3568_v11 = vsel %vm3003_vm4, %v15202_v8, 0.0  ;;  %v4976_v1 = vsel %vm3003_vm4, %v14869_v41, -inf  ;;  %v17780_v2 = vld [vmem:[#allocation21_spill] sm:$0xff]  ;;  %v17784_v41 = vld [vmem:[#allocation39_spill] sm:$0xff] }
 0x7c3   : > { %v3391_v24 = vsub.f32 %v17784_v41, %v17783_v31  ;;  %v17788_v31 = vld [vmem:[#allocation68_spill] sm:$0xff] }
 0x7c4   : > { %v15204_v17 = vpop.eup %13128  ;;  %v15206_v47 = vpop.xlane.xlu0 %4938 }
 0x7c5   : > { %17777 = vst [vmem:[#allocation112_spill] sm:$0xff] %v15204_v17  ;;  %v3565_v37 = vsel %vm3003_vm4, %v15204_v17, 0.0  ;;  %v3388_v17 = vsub.f32 %v17781_v56, %v17780_v2  ;;  %v4982_v2 = vsel %vm3003_vm4, %v14875_v62, -inf  ;;  %v3426_v49 = vmul.f32 1.442695, %v3391_v24 }
 0x7c6   : > { %3566 = vadd.xlane.f32.xlu0 %v3565_v37  ;;  %3569 = vadd.xlane.f32.xlu1 %v3568_v11 }
 0x7c7   : > { %v3420_v25 = vmul.f32 1.442695, %v3388_v17 }
 0x7c8   : > { %v15212_v39 = vpop.eup %13130  ;;  %v15214_v10 = vpop.xlane.xlu0 %4944 }
 0x7c9   : > { %17778 = vst [vmem:[#allocation113_spill] sm:$0xff] %v15212_v39  ;;  %v3571_v34 = vsel %vm3003_vm4, %v15212_v39, 0.0  ;;  %v15220_v28 = vpop.eup %13132  ;;  %13136 = vpow2.f32 %v3420_v25  ;;  %v17791_v25 = vld [vmem:[#allocation69_spill] sm:$0xff] }
 0x7ca   : > { %17779 = vst [vmem:[#allocation114_spill] sm:$0xff] %v15220_v28  ;;  %3572 = vadd.xlane.f32.xlu0 %v3571_v34  ;;  %4977 = vmax.xlane.f32.xlu1 %v4976_v1  ;;  %v3574_v39 = vsel %vm3003_vm4, %v15220_v28, 0.0  ;;  %v17785_v34 = vld [vmem:[#allocation66_spill] sm:$0xff]  ;;  %13138 = vpow2.f32 %v3426_v49  ;;  %v17789_v28 = vld [vmem:[#allocation73_spill] sm:$0xff]  ;;  %v4985_v24 = vsel %vm3003_vm4, %v17791_v25, -inf }
 0x7cb   : > { %v4973_v1 = vsel %vm3003_vm4, %v17785_v34, -inf  ;;  %v3393_v34 = vsub.f32 %v17790_v4, %v17789_v28  ;;  %v17794_v49 = vld [vmem:[#allocation77_spill] sm:$0xff]  ;;  %v17798_v25 = vld [vmem:[#allocation78_spill] sm:$0xff] }
 0x7cc   : > { %v15224_v8 = vpop.eup %13134  ;;  %v15226_v37 = vpop.xlane.xlu0 %4950  ;;  %v3397_v28 = vsub.f32 %v17795_v12, %v17794_v49 }
 0x7cd   : > { %17782 = vst [vmem:[#allocation21_spill] sm:$0xff] %v15224_v8  ;;  %v3577_v11 = vsel %vm3003_vm4, %v15224_v8, 0.0  ;;  %v17786_v8 = vld [vmem:[#allocation22_spill] sm:$0xff] }
 0x7ce   : > { %3578 = vadd.xlane.f32.xlu0 %v3577_v11  ;;  %3575 = vadd.xlane.f32.xlu1 %v3574_v39  ;;  %v3390_v46 = vsub.f32 %v17787_v16, %v17786_v8  ;;  %v4979_v39 = vsel %vm3003_vm4, %v17788_v31, -inf  ;;  %v3430_v8 = vmul.f32 1.442695, %v3393_v34 }
 0x7d0   : > { %v15234_v3 = vpop.xlane.xlu0 %4956  ;;  %v3424_v11 = vmul.f32 1.442695, %v3390_v46 }
 0x7d2   : > { %4974 = vmax.xlane.f32.xlu0 %v4973_v1  ;;  %4983 = vmax.xlane.f32.xlu1 %v4982_v2  ;;  %13140 = vpow2.f32 %v3424_v11  ;;  %v17792_v1 = vld [vmem:[#allocation75_spill] sm:$0xff]  ;;  %v17793_v2 = vld [vmem:[#allocation74_spill] sm:$0xff] }
 0x7d3   : > { %v3395_v62 = vsub.f32 %v17793_v2, %v17792_v1  ;;  %v13137_v38 = vpop.eup %13136  ;;  %13142 = vpow2.f32 %v3430_v8  ;;  %v3438_v1 = vmul.f32 1.442695, %v3397_v28  ;;  %v5023_v28 = vrot.slane %v17784_v41, 4 }
 0x7d4   : > { %v15242_v17 = vpop.xlane.xlu0 %4962  ;;  %v13139_v13 = vpop.eup %13138 }
 0x7d5   : > { %v3434_v46 = vmul.f32 1.442695, %v3395_v62 }
 0x7d6   : > { %4980 = vmax.xlane.f32.xlu0 %v4979_v39  ;;  %v5020_v39 = vrot.slane %v17781_v56, 4  ;;  %v15274_v56 = vmax.f32 %v15153_v14, %v5023_v28  ;;  %v17806_v28 = vld [vmem:[#allocation85_spill] sm:$0xff] }
 0x7d8   : > { %v15248_v0 = vpop.xlane.xlu0 %4968  ;;  %v15258_v11 = vmax.f32 %v14966_v22, %v5020_v39  ;;  %v17800_v39 = vld [vmem:[#allocation81_spill] sm:$0xff]  ;;  %17802 = vst [vmem:[#allocation73_spill] sm:$0xff] %v15274_v56 }
 0x7da   : > { %4986 = vmax.xlane.f32.xlu0 %v4985_v24  ;;  %17796 = vst [vmem:[#allocation71_spill] sm:$0xff] %v15258_v11  ;;  %v17797_v24 = vld [vmem:[#allocation79_spill] sm:$0xff] }
 0x7db   : > { %v3399_v7 = vsub.f32 %v17798_v25, %v17797_v24 }
 0x7dc   : > { %v3486_v33 = vpop.xlane.xlu0 %3485  ;;  %v13141_v62 = vpop.eup %13140 }
 0x7dd   : > { %v3580_v31 = vadd.f32 %v13137_v38, %v3486_v33  ;;  %v5022_v33 = vrot.slane %v17787_v16, 4  ;;  %v3442_v22 = vmul.f32 1.442695, %v3399_v7  ;;  %v13143_v24 = vpop.eup %13142  ;;  %v17804_v7 = vld [vmem:[#allocation82_spill] sm:$0xff] }
 0x7df   : > { %13144 = vrcp.f32 %v3580_v31  ;;  %v15265_v31 = vmax.f32 %v14889_v18, %v5022_v33 }
 0x7e0   : > { %v3495_v50 = vpop.xlane.xlu0 %3494  ;;  %13146 = vpow2.f32 %v3434_v46 }
 0x7e1   : > { %v3583_v34 = vadd.f32 %v13139_v13, %v3495_v50  ;;  %17799 = vst [vmem:[#allocation22_spill] sm:$0xff] %v15265_v31  ;;  %v17801_v50 = vld [vmem:[#allocation80_spill] sm:$0xff] }
 0x7e2   : > { %v3401_v46 = vsub.f32 %v17801_v50, %v17800_v39 }
 0x7e3   : > { %13148 = vrcp.f32 %v3583_v34  ;;  %5118 = vperm.xlu1 %13070, %v15258_v11  }
 0x7e4   : > { %v3492_v8 = vpop.xlane.xlu0 %3491  ;;  %13150 = vpow2.f32 %v3438_v1  ;;  %v3446_v33 = vmul.f32 1.442695, %v3401_v46  ;;  %v17803_v1 = vld [vmem:[#allocation83_spill] sm:$0xff] }
 0x7e5   : > { %v3582_v49 = vadd.f32 %v13141_v62, %v3492_v8  ;;  %v3403_v8 = vsub.f32 %v17804_v7, %v17803_v1 }
 0x7e7   : > { %13152 = vrcp.f32 %v3582_v49  ;;  %5128 = vperm.xlu1 %13070, %v15265_v31   ;;  %v5025_v49 = vrot.slane %v17790_v4, 4  ;;  %v5021_v31 = vrot.slane %v14745_v44, 4  ;;  %v5027_v4 = vrot.slane %v17793_v2, 4 }
 0x7e8   : > { %v3501_v34 = vpop.xlane.xlu0 %3500  ;;  %13154 = vpow2.f32 %v3442_v22  ;;  %v17807_v22 = vld [vmem:[#allocation84_spill] sm:$0xff]  ;;  %v5029_v2 = vrot.slane %v17795_v12, 4 }
 0x7e9   : > { %v15271_v16 = vpop.eup %13144  ;;  %v3585_v18 = vadd.f32 %v13143_v24, %v3501_v34  ;;  %v3405_v46 = vsub.f32 %v17807_v22, %v17806_v28  ;;  %v15289_v34 = vmax.f32 %v15161_v59, %v5025_v49  ;;  %v17811_v28 = vld [vmem:[#allocation7_spill] sm:$0xff] }
 0x7ea   : > { %v15279_v39 = vmul.f32 %v15271_v16, %v13137_v38  ;;  %v13147_v41 = vpop.eup %13146  ;;  %v15292_v38 = vmax.f32 %v14881_v54, %v5021_v31  ;;  %v5024_v21 = vrot.slane %v17811_v28, 4  ;;  %v15304_v31 = vmax.f32 %v15168_v48, %v5027_v4 }
 0x7eb   : > { %13156 = vrcp.f32 %v3585_v18  ;;  %5133 = vperm.xlu1 %13070, %v15274_v56   ;;  %17808 = vst [vmem:[#allocation77_spill] sm:$0xff] %v15289_v34  ;;  %v3450_v18 = vmul.f32 1.442695, %v3403_v8  ;;  %v3454_v54 = vmul.f32 1.442695, %v3405_v46  ;;  %v17814_v8 = vld [vmem:[#allocation86_spill] sm:$0xff] }
 0x7ec   : > { %17805 = vst [vmem:[#allocation75_spill] sm:$0xff] %v15279_v39  ;;  %v3507_v11 = vpop.xlane.xlu0 %3506  ;;  %17809 = vst [vmem:[#allocation79_spill] sm:$0xff] %v15292_v38  ;;  %13158 = vpow2.f32 %v3446_v33  ;;  %v17813_v33 = vld [vmem:[#allocation87_spill] sm:$0xff]  ;;  %v5026_v4 = vrot.slane %v14761_v15, 4 }
 0x7ed   : > { %v15284_v14 = vpop.eup %13148  ;;  %v3587_v1 = vadd.f32 %v13147_v41, %v3507_v11  ;;  %17812 = vst [vmem:[#allocation83_spill] sm:$0xff] %v15304_v31  ;;  %v3407_v49 = vsub.f32 %v17814_v8, %v17813_v33  ;;  %v17819_v33 = vld [vmem:[#allocation88_spill] sm:$0xff] }
 0x7ee   : > { %v15295_v39 = vmul.f32 %v15284_v14, %v13139_v13  ;;  %v13151_v32 = vpop.eup %13150 }
 0x7ef   : > { %13160 = vrcp.f32 %v3587_v1  ;;  %v4906_v56 = vpop.xlane.xlu1 %4905  ;;  %5143 = vperm.xlu1 %13070, %v15289_v34  }
 0x7f0   : > { %17810 = vst [vmem:[#allocation81_spill] sm:$0xff] %v15295_v39  ;;  %5123 = vperm.xlu0 %13071, %v15292_v38   ;;  %v3513_v59 = vpop.xlane.xlu0 %3512  ;;  %13162 = vpow2.f32 %v3450_v18  ;;  %v15308_v1 = vmax.f32 %v4906_v56, %v5024_v21  ;;  %v15320_v21 = vmax.f32 %v15176_v52, %v5029_v2  ;;  %v17822_v38 = vld [vmem:[#allocation9_spill] sm:$0xff] }
 0x7f1   : > { %v15301_v11 = vpop.eup %13152  ;;  %v3589_v13 = vadd.f32 %v13151_v32, %v3513_v59  ;;  %v17818_v59 = vld [vmem:[#allocation89_spill] sm:$0xff]  ;;  %v5028_v52 = vrot.slane %v17822_v38, 4 }
 0x7f2   : > { %17815 = vst [vmem:[#allocation85_spill] sm:$0xff] %v15308_v1  ;;  %v15311_v39 = vmul.f32 %v15301_v11, %v13141_v62  ;;  %v13155_v46 = vpop.eup %13154  ;;  %17817 = vst [vmem:[#allocation115_spill] sm:$0xff] %v15320_v21  ;;  %v3458_v62 = vmul.f32 1.442695, %v3407_v49 }
 0x7f3   : > { %13164 = vrcp.f32 %v3589_v13  ;;  %v4912_v34 = vpop.xlane.xlu1 %4911  ;;  %5153 = vperm.xlu1 %13070, %v15304_v31   ;;  %v3409_v13 = vsub.f32 %v17819_v33, %v17818_v59  ;;  %v5031_v31 = vrot.slane %v17798_v25, 4  ;;  %v5033_v59 = vrot.slane %v17801_v50, 4 }
 0x7f4   : > { %17816 = vst [vmem:[#allocation87_spill] sm:$0xff] %v15311_v39  ;;  %5138 = vperm.xlu0 %13071, %v15308_v1   ;;  %v3519_v48 = vpop.xlane.xlu0 %3518  ;;  %13166 = vpow2.f32 %v3454_v54  ;;  %v15324_v39 = vmax.f32 %v4912_v34, %v5026_v4 }
 0x7f5   : > { %v15317_v18 = vpop.eup %13156  ;;  %v3591_v56 = vadd.f32 %v13155_v46, %v3519_v48  ;;  %v15336_v34 = vmax.f32 %v15185_v57, %v5031_v31 }
 0x7f6   : > { %17820 = vst [vmem:[#allocation89_spill] sm:$0xff] %v15324_v39  ;;  %v15327_v12 = vmul.f32 %v15317_v18, %v13143_v24  ;;  %v13159_v54 = vpop.eup %13158  ;;  %v3462_v24 = vmul.f32 1.442695, %v3409_v13 }
 0x7f7   : > { %13168 = vrcp.f32 %v3591_v56  ;;  %v4918_v1 = vpop.xlane.xlu1 %4917  ;;  %5163 = vperm.xlu1 %13070, %v15320_v21   ;;  %17823 = vst [vmem:[#allocation117_spill] sm:$0xff] %v15336_v34  ;;  %v17826_v21 = vld [vmem:[#allocation10_spill] sm:$0xff] }
 0x7f8   : > { %17821 = vst [vmem:[#allocation116_spill] sm:$0xff] %v15327_v12  ;;  %5148 = vperm.xlu0 %13071, %v15324_v39   ;;  %v3525_v2 = vpop.xlane.xlu0 %3524  ;;  %13170 = vpow2.f32 %v3458_v62  ;;  %v15338_v48 = vmax.f32 %v4918_v1, %v5028_v52  ;;  %v5030_v39 = vrot.slane %v17826_v21, 4  ;;  %v15350_v1 = vmax.f32 %v15196_v61, %v5033_v59 }
 0x7f9   : > { %v15333_v49 = vpop.eup %13160  ;;  %v3593_v4 = vadd.f32 %v13159_v54, %v3525_v2  ;;  %v5035_v2 = vrot.slane %v17804_v7, 4  ;;  %v17833_v7 = vld [vmem:[#allocation12_spill] sm:$0xff] }
 0x7fa   : > { %17824 = vst [vmem:[#allocation118_spill] sm:$0xff] %v15338_v48  ;;  %v15341_v56 = vmul.f32 %v15333_v49, %v13147_v41  ;;  %v13163_v25 = vpop.eup %13162  ;;  %17827 = vst [vmem:[#allocation120_spill] sm:$0xff] %v15350_v1  ;;  %v5034_v50 = vrot.slane %v17833_v7, 4 }
 0x7fb   : > { %13172 = vrcp.f32 %v3593_v4  ;;  %v4924_v12 = vpop.xlane.xlu1 %4923  ;;  %5173 = vperm.xlu1 %13070, %v15336_v34  }
 0x7fc   : > { %17825 = vst [vmem:[#allocation119_spill] sm:$0xff] %v15341_v56  ;;  %5158 = vperm.xlu0 %13071, %v15338_v48   ;;  %v3531_v57 = vpop.xlane.xlu0 %3530  ;;  %13174 = vpow2.f32 %v3462_v24  ;;  %v15352_v41 = vmax.f32 %v4924_v12, %v5030_v39  ;;  %v5032_v56 = vrot.slane %v14785_v55, 4  ;;  %v15364_v12 = vmax.f32 %v15206_v47, %v5035_v2 }
 0x7fd   : > { %v15347_v31 = vpop.eup %13164  ;;  %v3595_v62 = vadd.f32 %v13163_v25, %v3531_v57  ;;  %v5037_v57 = vrot.slane %v17807_v22, 4  ;;  %v17837_v22 = vld [vmem:[#allocation13_spill] sm:$0xff] }
 0x7fe   : > { %17828 = vst [vmem:[#allocation121_spill] sm:$0xff] %v15352_v41  ;;  %v15355_v13 = vmul.f32 %v15347_v31, %v13151_v32  ;;  %v13167_v52 = vpop.eup %13166  ;;  %17830 = vst [vmem:[#allocation123_spill] sm:$0xff] %v15364_v12 }
 0x7ff   : > { %13176 = vrcp.f32 %v3595_v62  ;;  %v4930_v4 = vpop.xlane.xlu1 %4929  ;;  %5183 = vperm.xlu1 %13070, %v15350_v1  }
 0x800   : > { %17829 = vst [vmem:[#allocation122_spill] sm:$0xff] %v15355_v13  ;;  %5168 = vperm.xlu0 %13071, %v15352_v41   ;;  %v3537_v61 = vpop.xlane.xlu0 %3536  ;;  %v15366_v32 = vmax.f32 %v4930_v4, %v5032_v56  ;;  %v15378_v56 = vmax.f32 %v15214_v10, %v5037_v57 }
 0x801   : > { %v15361_v59 = vpop.eup %13168  ;;  %v3597_v39 = vadd.f32 %v13167_v52, %v3537_v61  ;;  %v5039_v61 = vrot.slane %v17814_v8, 4 }
 0x802   : > { %17831 = vst [vmem:[#allocation124_spill] sm:$0xff] %v15366_v32  ;;  %v15369_v24 = vmul.f32 %v15361_v59, %v13155_v46  ;;  %v13171_v13 = vpop.eup %13170  ;;  %17834 = vst [vmem:[#allocation126_spill] sm:$0xff] %v15378_v56 }
 0x803   : > { %13178 = vrcp.f32 %v3597_v39  ;;  %v4936_v62 = vpop.xlane.xlu1 %4935  ;;  %5193 = vperm.xlu1 %13070, %v15364_v12   ;;  %v5036_v12 = vrot.slane %v17837_v22, 4 }
 0x804   : > { %17832 = vst [vmem:[#allocation125_spill] sm:$0xff] %v15369_v24  ;;  %5178 = vperm.xlu0 %13071, %v15366_v32   ;;  %v3543_v1 = vpop.xlane.xlu0 %3542  ;;  %v15380_v46 = vmax.f32 %v4936_v62, %v5034_v50  ;;  %v15392_v50 = vmax.f32 %v15226_v37, %v5039_v61  ;;  %v5041_v62 = vrot.slane %v17819_v33, 4  ;;  %v17841_v37 = vld [vmem:[#allocation23_spill] sm:$0xff] }
 0x805   : > { %v15375_v47 = vpop.eup %13172  ;;  %v3599_v2 = vadd.f32 %v13171_v13, %v3543_v1 }
 0x806   : > { %17835 = vst [vmem:[#allocation127_spill] sm:$0xff] %v15380_v46  ;;  %v15383_v4 = vmul.f32 %v15375_v47, %v13159_v54  ;;  %v13175_v24 = vpop.eup %13174  ;;  %17838 = vst [vmem:[#allocation129_spill] sm:$0xff] %v15392_v50 }
 0x807   : > { %13180 = vrcp.f32 %v3599_v2  ;;  %v4942_v39 = vpop.xlane.xlu1 %4941  ;;  %5203 = vperm.xlu1 %13070, %v15378_v56   ;;  %v17846_v56 = vld [vmem:[#allocation24_spill] sm:$0xff] }
 0x808   : > { %17836 = vst [vmem:[#allocation128_spill] sm:$0xff] %v15383_v4  ;;  %5188 = vperm.xlu0 %13071, %v15380_v46   ;;  %v3549_v32 = vpop.xlane.xlu0 %3548  ;;  %v15394_v54 = vmax.f32 %v4942_v39, %v5036_v12  ;;  %v5038_v4 = vrot.slane %v14809_v51, 4  ;;  %v15408_v12 = vmax.f32 %v15234_v3, %v5041_v62  ;;  %v5043_v39 = vrot.slane %v14887_v29, 4  ;;  %v17861_v46 = vld [vmem:[#allocation30_spill] sm:$0xff] }
 0x809   : > { %v15389_v10 = vpop.eup %13176  ;;  %v3601_v1 = vadd.f32 %v13175_v24, %v3549_v32  ;;  %v3389_v32 = vsub.f32 %v14745_v44, %v17841_v37  ;;  %v3392_v3 = vsub.f32 %v17811_v28, %v17846_v56 }
 0x80a   : > { %17839 = vst [vmem:[#allocation130_spill] sm:$0xff] %v15394_v54  ;;  %v15397_v57 = vmul.f32 %v15389_v10, %v13163_v25  ;;  %17842 = vst [vmem:[#allocation23_spill] sm:$0xff] %v15408_v12 }
 0x80b   : > { %13182 = vrcp.f32 %v3601_v1  ;;  %v4948_v2 = vpop.xlane.xlu1 %4947  ;;  %5213 = vperm.xlu1 %13070, %v15392_v50   ;;  %v3422_v37 = vmul.f32 1.442695, %v3389_v32  ;;  %v17851_v32 = vld [vmem:[#allocation16_spill] sm:$0xff] }
 0x80c   : > { %17840 = vst [vmem:[#allocation131_spill] sm:$0xff] %v15397_v57  ;;  %5198 = vperm.xlu0 %13071, %v15394_v54   ;;  %v15410_v25 = vmax.f32 %v4948_v2, %v5038_v4  ;;  %v17845_v57 = vld [vmem:[#allocation15_spill] sm:$0xff]  ;;  %v15424_v4 = vmax.f32 %v15242_v17, %v5043_v39  ;;  %v5045_v2 = vrot.slane %v14899_v45, 4  ;;  %v5042_v54 = vrot.slane %v17851_v32, 4 }
 0x80d   : > { %v15403_v8 = vpop.eup %13178  ;;  %v5040_v33 = vrot.slane %v17845_v57, 4  ;;  %13184 = vpow2.f32 %v3422_v37  ;;  %v3428_v17 = vmul.f32 1.442695, %v3392_v3 }
 0x80e   : > { %17843 = vst [vmem:[#allocation132_spill] sm:$0xff] %v15410_v25  ;;  %v15413_v61 = vmul.f32 %v15403_v8, %v13167_v52  ;;  %17847 = vst [vmem:[#allocation24_spill] sm:$0xff] %v15424_v4 }
 0x80f   : > { %v4954_v1 = vpop.xlane.xlu1 %4953  ;;  %5223 = vperm.xlu1 %13070, %v15408_v12   ;;  %v17850_v12 = vld [vmem:[#allocation25_spill] sm:$0xff]  ;;  %13186 = vpow2.f32 %v3428_v17 }
 0x810   : > { %17844 = vst [vmem:[#allocation133_spill] sm:$0xff] %v15413_v61  ;;  %5208 = vperm.xlu0 %13071, %v15410_v25   ;;  %v15426_v52 = vmax.f32 %v4954_v1, %v5040_v33  ;;  %v3394_v25 = vsub.f32 %v14761_v15, %v17850_v12  ;;  %v15440_v33 = vmax.f32 %v15248_v0, %v5045_v2  ;;  %v17429_v2 = vmov 0.0  }
 0x811   : > { %v15419_v50 = vpop.eup %13180  ;;  %12674 = vmatprep.subr.mxu0 %v17429_v2  ;;  %12679 = vmatprep.subr.mxu1 %v17429_v2 }
 0x812   : > { %17848 = vst [vmem:[#allocation134_spill] sm:$0xff] %v15426_v52  ;;  %v15429_v62 = vmul.f32 %v15419_v50, %v13171_v13  ;;  %17852 = vst [vmem:[#allocation25_spill] sm:$0xff] %v15440_v33  ;;  %v3432_v12 = vmul.f32 1.442695, %v3394_v25  ;;  %12676 = vmatprep.mubr.msk.f32.mxu0 %vm13674_vm15, %v17429_v2  ;;  %12681 = vmatprep.mubr.msk.f32.mxu1 %vm13674_vm15, %v17429_v2 }
 0x813   : > { %v4960_v61 = vpop.xlane.xlu1 %4959  ;;  %5233 = vperm.xlu1 %13070, %v15424_v4  }
 0x814   : > { %17849 = vst [vmem:[#allocation135_spill] sm:$0xff] %v15429_v62  ;;  %5218 = vperm.xlu0 %13071, %v15426_v52   ;;  %v15442_v13 = vmax.f32 %v4960_v61, %v5042_v54  ;;  %v17855_v62 = vld [vmem:[#allocation26_spill] sm:$0xff]  ;;  %13188 = vpow2.f32 %v3432_v12  ;;  %v17858_v61 = vld [vmem:[#allocation27_spill] sm:$0xff] }
 0x815   : > { %v15437_v56 = vpop.eup %13182  ;;  %v3396_v4 = vsub.f32 %v17822_v38, %v17855_v62  ;;  %v3398_v3 = vsub.f32 %v17826_v21, %v17858_v61  ;;  %v17859_v61 = vld [vmem:[#allocation28_spill] sm:$0xff] }
 0x816   : > { %17853 = vst [vmem:[#allocation136_spill] sm:$0xff] %v15442_v13  ;;  %v15445_v39 = vmul.f32 %v15437_v56, %v13175_v24 }
 0x817   : > { %v15447_v1 = vpop.xlane.xlu1 %4965  ;;  %5243 = vperm.xlu1 %13070, %v15440_v33   ;;  %v15456_v0 = vpop.f32.mrb[0].mxu0  ;;  %v3436_v24 = vmul.f32 1.442695, %v3396_v4  ;;  %v3440_v12 = vmul.f32 1.442695, %v3398_v3 }
 0x818   : > { %17854 = vst [vmem:[#allocation137_spill] sm:$0xff] %v15445_v39  ;;  %5228 = vperm.xlu0 %13071, %v15442_v13   ;;  %17856 = vst [vmem:[#allocation26_spill] sm:$0xff] %v15456_v0  ;;  %v15458_v54 = vpop.f32.mrb[1].mxu0  ;;  %v6348_v25 = vrot.slane %v15456_v0, 4  ;;  %v3400_v39 = vsub.f32 %v14785_v55, %v17859_v61  ;;  %v17860_v61 = vld [vmem:[#allocation29_spill] sm:$0xff]  ;;  %v3404_v55 = vsub.f32 %v17837_v22, %v17861_v46 }
 0x819   : > { %17857 = vst [vmem:[#allocation138_spill] sm:$0xff] %v15458_v54  ;;  %v6269_v62 = vrot.slane %v15458_v54, 4  ;;  %13190 = vpow2.f32 %v3436_v24 }
 0x81a   : > { %12680 = vmatpush3.msk.msra.mxu1 %vm6274_vm0, %v6348_v25  ;;  %v3444_v3 = vmul.f32 1.442695, %v3400_v39  ;;  %v3402_v25 = vsub.f32 %v17833_v7, %v17860_v61  ;;  %v17862_v61 = vld [vmem:[#allocation31_spill] sm:$0xff] }
 0x81b   : > { %v15453_v37 = vpop.xlane.xlu1 %4971  ;;  %3646 = vperm.xlu1 %13070, %v15271_v16   ;;  %v13185_v16 = vpop.eup %13184  ;;  %12675 = vmatpush3.msk.msra.mxu0 %vm6274_vm0, %v6269_v62 }
 0x81c   : > { %12684 = vmatprep.subr.mxu0 %v17429_v2  ;;  %12689 = vmatprep.subr.mxu1 %v17429_v2  ;;  %v13187_v62 = vpop.eup %13186  ;;  %v3448_v2 = vmul.f32 1.442695, %v3402_v25 }
 0x81e   : > { %v13189_v13 = vpop.eup %13188 }
 0x81f   : > { %v3489_v17 = vpop.xlane.xlu1 %3488  ;;  %3661 = vperm.xlu1 %13070, %v15284_v14   ;;  %v15476_v14 = vpop.f32.mrb[2].mxu0 }
 0x820   : > { %v3581_v4 = vadd.f32 %v13185_v16, %v3489_v17  ;;  %v15480_v33 = vpop.f32.mrb[3].mxu0 }
 0x822   : > { %13192 = vrcp.f32 %v3581_v4 }
 0x823   : > { %v3498_v17 = vpop.xlane.xlu1 %3497  ;;  %3656 = vperm.xlu1 %13070, %v15301_v11   ;;  %13194 = vpow2.f32 %v3440_v12  ;;  %v13191_v11 = vpop.eup %13190  ;;  %v5044_v12 = vrot.slane %v14833_v6, 4 }
 0x824   : > { %v3584_v24 = vadd.f32 %v13187_v62, %v3498_v17 }
 0x825   : > { %v15494_v46 = vmax.f32 %v15447_v1, %v5044_v12 }
 0x826   : > { %13196 = vrcp.f32 %v3584_v24  ;;  %v3452_v24 = vmul.f32 1.442695, %v3404_v55 }
 0x827   : > { %v3504_v52 = vpop.xlane.xlu1 %3503  ;;  %3671 = vperm.xlu1 %13070, %v15317_v18   ;;  %13198 = vpow2.f32 %v3444_v3  ;;  %v3406_v18 = vsub.f32 %v14809_v51, %v17862_v61  ;;  %17864 = vst [vmem:[#allocation28_spill] sm:$0xff] %v15494_v46 }
 0x828   : > { %v3586_v4 = vadd.f32 %v13189_v13, %v3504_v52 }
 0x82a   : > { %13200 = vrcp.f32 %v3586_v4 }
 0x82b   : > { %v3510_v21 = vpop.xlane.xlu1 %3509  ;;  %3681 = vperm.xlu1 %13070, %v15333_v49   ;;  %13202 = vpow2.f32 %v3448_v2  ;;  %v17865_v2 = vld [vmem:[#allocation32_spill] sm:$0xff] }
 0x82c   : > { %v13193_v39 = vpop.eup %13192  ;;  %v3588_v17 = vadd.f32 %v13191_v11, %v3510_v21  ;;  %v3456_v21 = vmul.f32 1.442695, %v3406_v18  ;;  %v3408_v55 = vsub.f32 %v17845_v57, %v17865_v2 }
 0x82d   : > { %3651 = vperm.xlu0 %13071, %v13193_v39   ;;  %v15491_v52 = vmul.f32 %v13193_v39, %v13185_v16  ;;  %v13195_v3 = vpop.eup %13194 }
 0x82e   : > { %13204 = vrcp.f32 %v3588_v17  ;;  %v15503_v17 = vpop.f32.mrb[4].mxu0 }
 0x82f   : > { %17863 = vst [vmem:[#allocation27_spill] sm:$0xff] %v15491_v52  ;;  %v3516_v25 = vpop.xlane.xlu1 %3515  ;;  %3691 = vperm.xlu1 %13070, %v15347_v31   ;;  %13206 = vpow2.f32 %v3452_v24  ;;  %v3460_v31 = vmul.f32 1.442695, %v3408_v55  ;;  %v17867_v24 = vld [vmem:[#allocation33_spill] sm:$0xff] }
 0x830   : > { %v13197_v49 = vpop.eup %13196  ;;  %v3590_v4 = vadd.f32 %v13195_v3, %v3516_v25  ;;  %v3410_v18 = vsub.f32 %v17851_v32, %v17867_v24  ;;  %v15507_v25 = vpop.f32.mrb[5].mxu0 }
 0x831   : > { %5238 = vperm.xlu0 %13071, %v15494_v46   ;;  %v15500_v61 = vmul.f32 %v13197_v49, %v13187_v62  ;;  %v13199_v16 = vpop.eup %13198  ;;  %v15511_v62 = vpop.f32.mrb[6].mxu0 }
 0x832   : > { %13208 = vrcp.f32 %v3590_v4 }
 0x833   : > { %17866 = vst [vmem:[#allocation29_spill] sm:$0xff] %v15500_v61  ;;  %v3522_v39 = vpop.xlane.xlu1 %3521  ;;  %3701 = vperm.xlu1 %13070, %v15361_v59   ;;  %13210 = vpow2.f32 %v3456_v21  ;;  %v3412_v21 = vsub.f32 %v14833_v6, %v14836_v27 }
 0x834   : > { %v13201_v1 = vpop.eup %13200  ;;  %v3592_v12 = vadd.f32 %v13199_v16, %v3522_v39  ;;  %v15516_v39 = vpop.f32.mrb[7].mxu0 }
 0x835   : > { %3666 = vperm.xlu0 %13071, %v13197_v49   ;;  %v15509_v2 = vmul.f32 %v13201_v1, %v13189_v13  ;;  %v13203_v4 = vpop.eup %13202  ;;  %v3464_v49 = vmul.f32 1.442695, %v3410_v18  ;;  %v3411_v13 = vsub.f32 %v14887_v29, %v14892_v42  ;;  %v15522_v24 = vpop.f32.mrb[8].mxu0  ;;  %v3468_v27 = vmul.f32 1.442695, %v3412_v21 }
 0x836   : > { %13212 = vrcp.f32 %v3592_v12  ;;  %v15527_v18 = vpop.f32.mrb[9].mxu0 }
 0x837   : > { %17868 = vst [vmem:[#allocation30_spill] sm:$0xff] %v15509_v2  ;;  %v3528_v61 = vpop.xlane.xlu1 %3527  ;;  %3711 = vperm.xlu1 %13070, %v15375_v47   ;;  %13214 = vpow2.f32 %v3460_v31  ;;  %v3466_v42 = vmul.f32 1.442695, %v3411_v13 }
 0x838   : > { %v13205_v59 = vpop.eup %13204  ;;  %v3594_v55 = vadd.f32 %v13203_v4, %v3528_v61  ;;  %v3414_v61 = vsub.f32 %v14841_v58, %v14844_v36 }
 0x839   : > { %3676 = vperm.xlu0 %13071, %v13201_v1   ;;  %v15520_v12 = vmul.f32 %v13205_v59, %v13191_v11  ;;  %v13207_v2 = vpop.eup %13206  ;;  %v3413_v11 = vsub.f32 %v14899_v45, %v14902_v19 }
 0x83a   : > { %13216 = vrcp.f32 %v3594_v55  ;;  %v15533_v55 = vpop.f32.mrb[10].mxu0  ;;  %v3472_v36 = vmul.f32 1.442695, %v3414_v61 }
 0x83b   : > { %17869 = vst [vmem:[#allocation31_spill] sm:$0xff] %v15520_v12  ;;  %v3534_v47 = vpop.xlane.xlu1 %3533  ;;  %3721 = vperm.xlu1 %13070, %v15389_v10   ;;  %13218 = vpow2.f32 %v3464_v49  ;;  %v15538_v6 = vpop.f32.mrb[11].mxu0  ;;  %v3470_v19 = vmul.f32 1.442695, %v3413_v11  ;;  %v17875_v11 = vld [vmem:[#allocation99_spill] sm:$0xff] }
 0x83c   : > { %v13209_v52 = vpop.eup %13208  ;;  %v3596_v31 = vadd.f32 %v13207_v2, %v3534_v47  ;;  %v17871_v47 = vld [vmem:[#allocation18_spill] sm:$0xff]  ;;  %v15544_v45 = vpop.f32.mrb[12].mxu0 }
 0x83d   : > { %3686 = vperm.xlu0 %13071, %v13205_v59   ;;  %v15531_v1 = vmul.f32 %v13209_v52, %v13195_v3  ;;  %v13211_v10 = vpop.eup %13210  ;;  %v3416_v49 = vsub.f32 %v17871_v47, %v14850_v63  ;;  %v17872_v3 = vld [vmem:[#allocation97_spill] sm:$0xff]  ;;  %v17873_v59 = vld [vmem:[#allocation19_spill] sm:$0xff]  ;;  %v15547_v29 = vpop.f32.mrb[13].mxu0 }
 0x83e   : > { %13220 = vrcp.f32 %v3596_v31  ;;  %v3415_v31 = vsub.f32 %v17873_v59, %v17872_v3  ;;  %v17876_v3 = vld [vmem:[#allocation98_spill] sm:$0xff] }
 0x83f   : > { %17870 = vst [vmem:[#allocation32_spill] sm:$0xff] %v15531_v1  ;;  %v3540_v12 = vpop.xlane.xlu1 %3539  ;;  %3731 = vperm.xlu1 %13070, %v15403_v8   ;;  %13222 = vpow2.f32 %v3468_v27  ;;  %v3476_v63 = vmul.f32 1.442695, %v3416_v49  ;;  %v17878_v49 = vld [vmem:[#allocation20_spill] sm:$0xff] }
 0x840   : > { %v13213_v21 = vpop.eup %13212  ;;  %v3598_v13 = vadd.f32 %v13211_v10, %v3540_v12  ;;  %13224 = vpow2.f32 %v3466_v42  ;;  %v3474_v42 = vmul.f32 1.442695, %v3415_v31 }
 0x841   : > { %3696 = vperm.xlu0 %13071, %v13209_v52   ;;  %v15542_v1 = vmul.f32 %v13213_v21, %v13199_v16  ;;  %v13215_v8 = vpop.eup %13214  ;;  %v3417_v52 = vsub.f32 %v17876_v3, %v17875_v11  ;;  %v17880_v11 = vld [vmem:[#allocation40_spill] sm:$0xff] }
 0x842   : > { %13226 = vrcp.f32 %v3598_v13 }
 0x843   : > { %17874 = vst [vmem:[#allocation33_spill] sm:$0xff] %v15542_v1  ;;  %v3546_v27 = vpop.xlane.xlu1 %3545  ;;  %3741 = vperm.xlu1 %13070, %v15419_v50   ;;  %13228 = vpow2.f32 %v3472_v36  ;;  %v15554_v50 = vpop.f32.mrb[14].mxu0  ;;  %v3478_v31 = vmul.f32 1.442695, %v3417_v52 }
 0x844   : > { %v13217_v61 = vpop.eup %13216  ;;  %v3600_v12 = vadd.f32 %v13215_v8, %v3546_v27  ;;  %13230 = vpow2.f32 %v3470_v19  ;;  %v17879_v27 = vld [vmem:[#allocation35_spill] sm:$0xff] }
 0x845   : > { %3706 = vperm.xlu0 %13071, %v13213_v21   ;;  %v15551_v16 = vmul.f32 %v13217_v61, %v13203_v4  ;;  %v13219_v13 = vpop.eup %13218  ;;  %v3418_v46 = vsub.f32 %v17879_v27, %v17878_v49  ;;  %v3419_v21 = vsub.f32 %v17880_v11, %v14934_v23  ;;  %v15560_v4 = vpop.f32.mrb[15].mxu0 }
 0x846   : > { %13232 = vrcp.f32 %v3600_v12 }
 0x847   : > { %17877 = vst [vmem:[#allocation97_spill] sm:$0xff] %v15551_v16  ;;  %v3552_v1 = vpop.xlane.xlu1 %3551  ;;  %3751 = vperm.xlu1 %13070, %v15437_v56   ;;  %13234 = vpow2.f32 %v3476_v63  ;;  %v3480_v51 = vmul.f32 1.442695, %v3418_v46 }
 0x848   : > { %v13221_v36 = vpop.eup %13220  ;;  %v3602_v19 = vadd.f32 %v13219_v13, %v3552_v1  ;;  %13236 = vpow2.f32 %v3474_v42  ;;  %v15564_v1 = vpop.f32.mrb[16].mxu0  ;;  %v3482_v42 = vmul.f32 1.442695, %v3419_v21 }
 0x849   : > { %3716 = vperm.xlu0 %13071, %v13217_v61   ;;  %v15562_v12 = vmul.f32 %v13221_v36, %v13207_v2  ;;  %v13223_v16 = vpop.eup %13222  ;;  %v15568_v2 = vpop.f32.mrb[17].mxu0 }
 0x84a   : > { %13238 = vrcp.f32 %v3602_v19  ;;  %v13225_v56 = vpop.eup %13224 }
 0x84b   : > { %17881 = vst [vmem:[#allocation99_spill] sm:$0xff] %v15562_v12  ;;  %v3558_v32 = vpop.xlane.xlu1 %3557  ;;  %v3555_v57 = vpop.xlane.xlu0 %3554  ;;  %13240 = vpow2.f32 %v3478_v31 }
 0x84c   : > { %v13227_v63 = vpop.eup %13226  ;;  %v3604_v22 = vadd.f32 %v13223_v16, %v3558_v32  ;;  %v3603_v49 = vadd.f32 %v13225_v56, %v3555_v57  ;;  %v15570_v57 = vpop.f32.mrb[18].mxu0 }
 0x84d   : > { %3726 = vperm.xlu0 %13071, %v13221_v36   ;;  %v15566_v23 = vmul.f32 %v13227_v63, %v13211_v10  ;;  %v13229_v61 = vpop.eup %13228  ;;  %v15574_v36 = vpop.f32.mrb[19].mxu0 }
 0x84e   : > { %13242 = vrcp.f32 %v3604_v22  ;;  %v13231_v52 = vpop.eup %13230 }
 0x84f   : > { %17882 = vst [vmem:[#allocation20_spill] sm:$0xff] %v15566_v23  ;;  %13244 = vrcp.f32 %v3603_v49  ;;  %v3564_v19 = vpop.xlane.xlu1 %3563  ;;  %v3561_v12 = vpop.xlane.xlu0 %3560 }
 0x850   : > { %v13233_v7 = vpop.eup %13232  ;;  %13246 = vpow2.f32 %v3480_v51  ;;  %v3606_v46 = vadd.f32 %v13229_v61, %v3564_v19  ;;  %v3605_v32 = vadd.f32 %v13231_v52, %v3561_v12  ;;  %v15576_v51 = vpop.f32.mrb[20].mxu0 }
 0x851   : > { %13248 = vpow2.f32 %v3482_v42  ;;  %3736 = vperm.xlu0 %13071, %v13227_v63   ;;  %v15572_v31 = vmul.f32 %v13233_v7, %v13215_v8  ;;  %v13235_v10 = vpop.eup %13234  ;;  %17884 = vst [vmem:[#allocation140_spill] sm:$0xff] %v15576_v51  ;;  %v15580_v63 = vpop.f32.mrb[21].mxu0 }
 0x852   : > { %13250 = vrcp.f32 %v3606_v46  ;;  %v13237_v22 = vpop.eup %13236  ;;  %17886 = vst [vmem:[#allocation142_spill] sm:$0xff] %v15580_v63 }
 0x853   : > { %17883 = vst [vmem:[#allocation139_spill] sm:$0xff] %v15572_v31  ;;  %13252 = vrcp.f32 %v3605_v32  ;;  %v3570_v21 = vpop.xlane.xlu1 %3569  ;;  %v3567_v49 = vpop.xlane.xlu0 %3566 }
 0x854   : > { %v13239_v23 = vpop.eup %13238  ;;  %v3608_v34 = vadd.f32 %v13235_v10, %v3570_v21  ;;  %v3607_v41 = vadd.f32 %v13237_v22, %v3567_v49  ;;  %v15584_v31 = vpop.f32.mrb[22].mxu0 }
 0x855   : > { %3746 = vperm.xlu0 %13071, %v13233_v7   ;;  %v15578_v12 = vmul.f32 %v13239_v23, %v13219_v13  ;;  %v13241_v8 = vpop.eup %13240  ;;  %17887 = vst [vmem:[#allocation143_spill] sm:$0xff] %v15584_v31  ;;  %v15588_v7 = vpop.f32.mrb[23].mxu0 }
 0x856   : > { %13254 = vrcp.f32 %v3608_v34  ;;  %17889 = vst [vmem:[#allocation145_spill] sm:$0xff] %v15588_v7 }
 0x857   : > { %17885 = vst [vmem:[#allocation141_spill] sm:$0xff] %v15578_v12  ;;  %13256 = vrcp.f32 %v3607_v41  ;;  %v15582_v42 = vpop.xlane.xlu1 %4977  ;;  %v3573_v19 = vpop.xlane.xlu0 %3572 }
 0x858   : > { %v13243_v46 = vpop.eup %13242  ;;  %v3609_v32 = vadd.f32 %v13241_v8, %v3573_v19  ;;  %v15592_v19 = vpop.f32.mrb[24].mxu0 }
 0x859   : > { %v13245_v38 = vpop.eup %13244  ;;  %3756 = vperm.xlu0 %13071, %v13239_v23   ;;  %v15586_v21 = vmul.f32 %v13243_v46, %v13223_v16  ;;  %17891 = vst [vmem:[#allocation147_spill] sm:$0xff] %v15592_v19  ;;  %v15596_v16 = vpop.f32.mrb[25].mxu0 }
 0x85a   : > { %v13247_v49 = vpop.eup %13246  ;;  %13258 = vrcp.f32 %v3609_v32  ;;  %3761 = vperm.xlu1 %13070, %v13245_v38   ;;  %v15590_v34 = vmul.f32 %v13245_v38, %v13225_v56  ;;  %17893 = vst [vmem:[#allocation149_spill] sm:$0xff] %v15596_v16 }
 0x85b   : > { %17888 = vst [vmem:[#allocation144_spill] sm:$0xff] %v15586_v21  ;;  %v13249_v13 = vpop.eup %13248  ;;  %v3576_v41 = vpop.xlane.xlu1 %3575 }
 0x85c   : > { %17890 = vst [vmem:[#allocation146_spill] sm:$0xff] %v15590_v34  ;;  %v3579_v12 = vpop.xlane.xlu0 %3578  ;;  %v13251_v48 = vpop.eup %13250  ;;  %v3610_v15 = vadd.f32 %v13247_v49, %v3576_v41 }
 0x85d   : > { %v3611_v28 = vadd.f32 %v13249_v13, %v3579_v12  ;;  %v13253_v44 = vpop.eup %13252  ;;  %3766 = vperm.xlu0 %13071, %v13243_v46   ;;  %v15594_v23 = vmul.f32 %v13251_v48, %v13229_v61  ;;  %v15600_v34 = vpop.f32.mrb[26].mxu0 }
 0x85e   : > { %13260 = vrcp.f32 %v3610_v15  ;;  %3771 = vperm.xlu1 %13070, %v13253_v44   ;;  %v15598_v32 = vmul.f32 %v13253_v44, %v13231_v52  ;;  %17895 = vst [vmem:[#allocation151_spill] sm:$0xff] %v15600_v34  ;;  %v15604_v46 = vpop.f32.mrb[27].mxu0 }
 0x85f   : > { %17892 = vst [vmem:[#allocation148_spill] sm:$0xff] %v15594_v23  ;;  %13262 = vrcp.f32 %v3611_v28  ;;  %v4984_v38 = vpop.xlane.xlu1 %4983  ;;  %17897 = vst [vmem:[#allocation153_spill] sm:$0xff] %v15604_v46  ;;  %v15608_v0 = vpop.f32.mrb[28].mxu0 }
 0x860   : > { %17894 = vst [vmem:[#allocation150_spill] sm:$0xff] %v15598_v32  ;;  %v4975_v56 = vpop.xlane.xlu0 %4974  ;;  %v13255_v21 = vpop.eup %13254  ;;  %17899 = vst [vmem:[#allocation155_spill] sm:$0xff] %v15608_v0 }
 0x861   : > { %v13257_v41 = vpop.eup %13256  ;;  %3776 = vperm.xlu0 %13071, %v13251_v48   ;;  %v15602_v12 = vmul.f32 %v13255_v21, %v13235_v10  ;;  %v15612_v54 = vpop.f32.mrb[29].mxu0  ;;  %v5046_v10 = vrot.slane %v14841_v58, 4  ;;  %v5048_v58 = vrot.slane %v17871_v47, 4 }
 0x862   : > { %3781 = vperm.xlu1 %13070, %v13257_v41   ;;  %v15606_v61 = vmul.f32 %v13257_v41, %v13237_v22  ;;  %17901 = vst [vmem:[#allocation157_spill] sm:$0xff] %v15612_v54  ;;  %v5047_v41 = vrot.slane %v17873_v59, 4 }
 0x863   : > { %17896 = vst [vmem:[#allocation152_spill] sm:$0xff] %v15602_v12  ;;  %v5119_v15 = vpop.permute.xlu1 %5118  ;;  %v15615_v12 = vpop.f32.mrb[30].mxu0 }
 0x864   : > { %17898 = vst [vmem:[#allocation154_spill] sm:$0xff] %v15606_v61  ;;  %v13259_v23 = vpop.eup %13258  ;;  %v4981_v44 = vpop.xlane.xlu0 %4980  ;;  %17902 = vst [vmem:[#allocation158_spill] sm:$0xff] %v15615_v12  ;;  %v15627_v0 = vmax.f32 %v4975_v56, %v5047_v41  ;;  %v5051_v56 = vrot.slane %v17880_v11, 4 }
 0x865   : > { %3786 = vperm.xlu0 %13071, %v13255_v21   ;;  %v15610_v28 = vmul.f32 %v13259_v23, %v13241_v8  ;;  %v15620_v61 = vpop.f32.mrb[31].mxu0  ;;  %v15623_v8 = vmax.f32 %v15453_v37, %v5046_v10 }
 0x866   : > { %3791 = vperm.xlu1 %13070, %v13259_v23   ;;  %17904 = vst [vmem:[#allocation160_spill] sm:$0xff] %v15620_v61  ;;  %17907 = vst [vmem:[#allocation163_spill] sm:$0xff] %v15627_v0  ;;  %v17916_v61 = vld [vmem:[#allocation54_spill] sm:$0xff] }
 0x867   : > { %17900 = vst [vmem:[#allocation156_spill] sm:$0xff] %v15610_v28  ;;  %v5129_v52 = vpop.permute.xlu1 %5128  ;;  %17905 = vst [vmem:[#allocation161_spill] sm:$0xff] %v15623_v8 }
 0x868   : > { %v13261_v32 = vpop.eup %13260  ;;  %v4987_v21 = vpop.xlane.xlu0 %4986 }
 0x869   : > { %v13263_v48 = vpop.eup %13262  ;;  %3796 = vperm.xlu0 %13071, %v13261_v32   ;;  %v15617_v22 = vmul.f32 %v13261_v32, %v13247_v49  ;;  %v5049_v49 = vrot.slane %v17876_v3, 4  ;;  %v15634_v32 = vmax.f32 %v15582_v42, %v5048_v58  ;;  %v15644_v3 = vmax.f32 %v4987_v21, %v5051_v56 }
 0x86a   : > { %3801 = vperm.xlu1 %13070, %v13263_v48   ;;  %v15625_v28 = vmul.f32 %v13263_v48, %v13249_v13  ;;  %v5050_v13 = vrot.slane %v17879_v27, 4 }
 0x86b   : > { %17903 = vst [vmem:[#allocation159_spill] sm:$0xff] %v15617_v22  ;;  %v5134_v23 = vpop.permute.xlu1 %5133  ;;  %17908 = vst [vmem:[#allocation164_spill] sm:$0xff] %v15634_v32  ;;  %v15636_v10 = vmax.f32 %v4981_v44, %v5049_v49  ;;  %v17912_v49 = vld [vmem:[#allocation65_spill] sm:$0xff] }
 0x86c   : > { %17906 = vst [vmem:[#allocation162_spill] sm:$0xff] %v15625_v28  ;;  %v15642_v48 = vmax.f32 %v4984_v38, %v5050_v13  ;;  %17911 = vst [vmem:[#allocation167_spill] sm:$0xff] %v15644_v3  ;;  %v5276_v27 = vsub.f32 %v17912_v49, %v5119_v15 }
 0x86d   : > { %5248 = vperm.xlu0 %13071, %v15623_v8   ;;  %17909 = vst [vmem:[#allocation165_spill] sm:$0xff] %v15636_v10 }
 0x86e   : > { %5253 = vperm.xlu1 %13070, %v15627_v0   ;;  %17910 = vst [vmem:[#allocation166_spill] sm:$0xff] %v15642_v48  ;;  %v5308_v11 = vmul.f32 1.442695, %v5276_v27  ;;  %v17915_v0 = vld [vmem:[#allocation67_spill] sm:$0xff] }
 0x86f   : > { %v5144_v22 = vpop.permute.xlu1 %5143  ;;  %v5124_v37 = vpop.permute.xlu0 %5123 }
 0x870   : > { %13264 = vpow2.f32 %v5308_v11  ;;  %v5281_v27 = vsub.f32 %v17916_v61, %v5144_v22  ;;  %v17918_v22 = vld [vmem:[#allocation56_spill] sm:$0xff] }
 0x871   : > { %5258 = vperm.xlu0 %13071, %v15634_v32   ;;  %v17914_v32 = vld [vmem:[#allocation53_spill] sm:$0xff] }
 0x872   : > { %5263 = vperm.xlu1 %13070, %v15636_v10   ;;  %v17913_v10 = vld [vmem:[#allocation70_spill] sm:$0xff]  ;;  %v5277_v21 = vsub.f32 %v17914_v32, %v5124_v37  ;;  %v5318_v11 = vmul.f32 1.442695, %v5281_v27  ;;  %v17917_v37 = vld [vmem:[#allocation55_spill] sm:$0xff] }
 0x873   : > { %v5154_v41 = vpop.permute.xlu1 %5153  ;;  %v5139_v28 = vpop.permute.xlu0 %5138  ;;  %v5278_v38 = vsub.f32 %v17913_v10, %v5129_v52 }
 0x874   : > { %v5310_v12 = vmul.f32 1.442695, %v5277_v21  ;;  %v5280_v15 = vsub.f32 %v14623_v53, %v5139_v28 }
 0x875   : > { %5268 = vperm.xlu0 %13071, %v15642_v48   ;;  %v5312_v48 = vmul.f32 1.442695, %v5278_v38 }
 0x876   : > { %5273 = vperm.xlu1 %13070, %v15644_v3   ;;  %v5279_v3 = vsub.f32 %v17915_v0, %v5134_v23  ;;  %v5316_v10 = vmul.f32 1.442695, %v5280_v15  ;;  %v5283_v0 = vsub.f32 %v17917_v37, %v5154_v41 }
 0x877   : > { %v5164_v58 = vpop.permute.xlu1 %5163  ;;  %v5149_v42 = vpop.permute.xlu0 %5148  ;;  %13266 = vpow2.f32 %v5312_v48 }
 0x878   : > { %v5314_v49 = vmul.f32 1.442695, %v5279_v3  ;;  %13268 = vpow2.f32 %v5310_v12  ;;  %v5282_v32 = vsub.f32 %v14635_v9, %v5149_v42  ;;  %v5322_v28 = vmul.f32 1.442695, %v5283_v0  ;;  %v17920_v0 = vld [vmem:[#allocation58_spill] sm:$0xff] }
 0x879   : > { %v5285_v12 = vsub.f32 %v17918_v22, %v5164_v58  ;;  %v6425_v22 = vrot.slane %v15480_v33, 4 }
 0x87a   : > { %13270 = vpow2.f32 %v5314_v49  ;;  %v15666_v38 = vpop.eup %13264  ;;  %v5320_v53 = vmul.f32 1.442695, %v5282_v32 }
 0x87b   : > { %v5174_v44 = vpop.permute.xlu1 %5173  ;;  %v5159_v47 = vpop.permute.xlu0 %5158  ;;  %13272 = vpow2.f32 %v5316_v10  ;;  %v5532_v9 = vsel %vm3003_vm4, %v15666_v38, 0.0 }
 0x87c   : > { %v5284_v3 = vsub.f32 %v14647_v40, %v5159_v47  ;;  %13274 = vpow2.f32 %v5318_v11  ;;  %v5326_v40 = vmul.f32 1.442695, %v5285_v12  ;;  %v17919_v47 = vld [vmem:[#allocation57_spill] sm:$0xff] }
 0x87d   : > { %13276 = vpow2.f32 %v5320_v53  ;;  %v5287_v49 = vsub.f32 %v17919_v47, %v5174_v44  ;;  %v17921_v47 = vld [vmem:[#allocation59_spill] sm:$0xff] }
 0x87e   : > { %v5324_v41 = vmul.f32 1.442695, %v5284_v3  ;;  %13278 = vpow2.f32 %v5322_v28 }
 0x87f   : > { %v15649_v59 = vpop.permute.xlu1 %5183  ;;  %v5169_v56 = vpop.permute.xlu0 %5168  ;;  %v5330_v44 = vmul.f32 1.442695, %v5287_v49 }
 0x880   : > { %v5286_v21 = vsub.f32 %v14659_v26, %v5169_v56  ;;  %13280 = vpow2.f32 %v5324_v41  ;;  %v5289_v53 = vsub.f32 %v17920_v0, %v15649_v59  ;;  %v17923_v0 = vld [vmem:[#allocation60_spill] sm:$0xff] }
 0x881   : > { %v15674_v42 = vpop.eup %13266  ;;  %13282 = vpow2.f32 %v5326_v40 }
 0x882   : > { %v15677_v15 = vpop.eup %13268  ;;  %v5538_v10 = vsel %vm3003_vm4, %v15674_v42, 0.0  ;;  %v5328_v11 = vmul.f32 1.442695, %v5286_v21  ;;  %v5334_v40 = vmul.f32 1.442695, %v5289_v53 }
 0x883   : > { %v15652_v13 = vpop.permute.xlu1 %5193  ;;  %v5179_v54 = vpop.permute.xlu0 %5178  ;;  %v5535_v26 = vsel %vm3003_vm4, %v15677_v15, 0.0 }
 0x884   : > { %v15684_v32 = vpop.eup %13270  ;;  %v5288_v37 = vsub.f32 %v14671_v20, %v5179_v54  ;;  %13284 = vpow2.f32 %v5328_v11  ;;  %v5291_v49 = vsub.f32 %v17921_v47, %v15652_v13  ;;  %v17924_v47 = vld [vmem:[#allocation61_spill] sm:$0xff] }
 0x885   : > { %v15689_v56 = vpop.eup %13272  ;;  %v5541_v28 = vsel %vm3003_vm4, %v15684_v32, 0.0  ;;  %13286 = vpow2.f32 %v5330_v44 }
 0x886   : > { %v15696_v20 = vpop.eup %13274  ;;  %v5332_v54 = vmul.f32 1.442695, %v5288_v37  ;;  %v5544_v59 = vsel %vm3003_vm4, %v15689_v56, 0.0  ;;  %v5338_v44 = vmul.f32 1.442695, %v5291_v49 }
 0x887   : > { %v15656_v8 = vpop.permute.xlu1 %5203  ;;  %v5189_v61 = vpop.permute.xlu0 %5188 }
 0x888   : > { %v5290_v12 = vsub.f32 %v14683_v5, %v5189_v61  ;;  %v15702_v21 = vpop.eup %13276  ;;  %v5547_v5 = vsel %vm3003_vm4, %v15696_v20, 0.0  ;;  %13288 = vpow2.f32 %v5332_v54  ;;  %v5293_v53 = vsub.f32 %v17923_v0, %v15656_v8 }
 0x889   : > { %v15714_v61 = vpop.eup %13278  ;;  %v5550_v13 = vsel %vm3003_vm4, %v15702_v21, 0.0  ;;  %13290 = vpow2.f32 %v5334_v40 }
 0x88a   : > { %v5336_v11 = vmul.f32 1.442695, %v5290_v12  ;;  %v5342_v40 = vmul.f32 1.442695, %v5293_v53  ;;  %v17926_v53 = vld [vmem:[#allocation62_spill] sm:$0xff] }
 0x88b   : > { %v15660_v52 = vpop.permute.xlu1 %5213  ;;  %v5199_v27 = vpop.permute.xlu0 %5198 }
 0x88c   : > { %v5292_v37 = vsub.f32 %v14695_v60, %v5199_v27  ;;  %v6579_v60 = vrot.slane %v15507_v25, 4  ;;  %13292 = vpow2.f32 %v5336_v11  ;;  %v5295_v49 = vsub.f32 %v17924_v47, %v15660_v52  ;;  %v17925_v11 = vld [vmem:[#allocation37_spill] sm:$0xff]  ;;  %v17928_v47 = vld [vmem:[#allocation36_spill] sm:$0xff] }
 0x88d   : > { %13294 = vpow2.f32 %v5338_v44 }
 0x88e   : > { %v5340_v54 = vmul.f32 1.442695, %v5292_v37  ;;  %v5346_v0 = vmul.f32 1.442695, %v5295_v49 }
 0x88f   : > { %v15664_v23 = vpop.permute.xlu1 %5223 }
 0x890   : > { %13296 = vpow2.f32 %v5340_v54 }
 0x891   : > { %13298 = vpow2.f32 %v5342_v40 }
 0x893   : > { %v15670_v48 = vpop.permute.xlu1 %5233 }
 0x894   : > { %5533 = vadd.xlane.f32.xlu0 %v5532_v9  ;;  %v5209_v9 = vpop.permute.xlu0 %5208 }
 0x895   : > { %v5294_v12 = vsub.f32 %v14731_v43, %v5209_v9 }
 0x897   : > { %v15680_v58 = vpop.permute.xlu1 %5243  ;;  %v5344_v9 = vmul.f32 1.442695, %v5294_v12  ;;  %v17927_v12 = vld [vmem:[#allocation90_spill] sm:$0xff] }
 0x898   : > { %5539 = vadd.xlane.f32.xlu0 %v5538_v10 }
 0x899   : > { %13300 = vpow2.f32 %v5344_v9 }
 0x89a   : > { %5536 = vadd.xlane.f32.xlu1 %v5535_v26  ;;  %v15720_v26 = vpop.eup %13280  ;;  %13302 = vpow2.f32 %v5346_v0  ;;  %v17930_v0 = vld [vmem:[#allocation46_spill] sm:$0xff] }
 0x89b   : > { %v3647_v3 = vpop.permute.xlu1 %3646  ;;  %v15727_v27 = vpop.eup %13282  ;;  %v5556_v8 = vsel %vm3003_vm4, %v15720_v26, 0.0 }
 0x89c   : > { %v3804_v41 = vmul.f32 %v14953_v35, %v3647_v3  ;;  %5542 = vadd.xlane.f32.xlu0 %v5541_v28  ;;  %v17922_v35 = vmov 0.0   ;;  %v5219_v3 = vpop.permute.xlu0 %5218  ;;  %v5559_v43 = vsel %vm3003_vm4, %v15727_v27, 0.0 }
 0x89d   : > { %v5296_v37 = vsub.f32 %v17925_v11, %v5219_v3 }
 0x89e   : > { %5545 = vadd.xlane.f32.xlu1 %v5544_v59  ;;  %12677 = vmatmul.mubr.msk.f32.vlgmr.msra.gmra.mrb[32].mxu0 %vm6270_vm1, %v3804_v41  ;;  %v15733_v59 = vpop.eup %13284 }
 0x89f   : > { %v15707_v10 = vpop.permute.xlu1 %3661  ;;  %12685 = vmatpush3.msk.msra.mxu0 %vm6274_vm0, %v6425_v22  ;;  %12686 = vmatprep.mubr.msk.f32.mxu0 %vm13674_vm15, %v17922_v35  ;;  %v5553_v22 = vsel %vm3003_vm4, %v15714_v61, 0.0  ;;  %v5348_v54 = vmul.f32 1.442695, %v5296_v37 }
 0x8a0   : > { %5548 = vadd.xlane.f32.xlu0 %v5547_v5  ;;  %12694 = vmatprep.subr.mxu0 %v17922_v35  ;;  %v5229_v52 = vpop.permute.xlu0 %5228 }
 0x8a1   : > { %13304 = vpow2.f32 %v5348_v54 }
 0x8a2   : > { %5551 = vadd.xlane.f32.xlu1 %v5550_v13  ;;  %v5562_v13 = vsel %vm3003_vm4, %v15733_v59, 0.0 }
 0x8a3   : > { %v3657_v28 = vpop.permute.xlu1 %3656 }
 0x8a4   : > { %v3806_v41 = vmul.f32 %v14973_v30, %v3657_v28  ;;  %5554 = vadd.xlane.f32.xlu0 %v5553_v22  ;;  %v15745_v30 = vpop.eup %13286  ;;  %v5297_v28 = vsub.f32 %v17926_v53, %v15664_v23 }
 0x8a5   : > { %v15751_v44 = vpop.eup %13288  ;;  %v5565_v3 = vsel %vm3003_vm4, %v15745_v30, 0.0 }
 0x8a6   : > { %5557 = vadd.xlane.f32.xlu1 %v5556_v8  ;;  %12687 = vmatmul.mubr.msk.f32.vlgmr.msra.gmra.mrb[34].mxu0 %vm6270_vm1, %v3806_v41  ;;  %v5298_v41 = vsub.f32 %v17927_v12, %v5229_v52  ;;  %v6502_v8 = vrot.slane %v15476_v14, 4  ;;  %v5568_v23 = vsel %vm3003_vm4, %v15751_v44, 0.0  ;;  %v5350_v11 = vmul.f32 1.442695, %v5297_v28 }
 0x8a7   : > { %v15738_v5 = vpop.permute.xlu1 %3671  ;;  %12695 = vmatpush3.msk.msra.mxu0 %vm6274_vm0, %v6579_v60  ;;  %12696 = vmatprep.mubr.msk.f32.mxu0 %vm13674_vm15, %v17922_v35  ;;  %v15759_v60 = vpop.eup %13290  ;;  %v6656_v12 = vrot.slane %v15503_v17, 4  ;;  %v3807_v28 = vmul.f32 %v17930_v0, %v15707_v10  ;;  %v17933_v0 = vld [vmem:[#allocation48_spill] sm:$0xff] }
 0x8a8   : > { %5560 = vadd.xlane.f32.xlu0 %v5559_v43  ;;  %12704 = vmatprep.subr.mxu0 %v17922_v35  ;;  %v15766_v43 = vpop.eup %13292  ;;  %v5571_v37 = vsel %vm3003_vm4, %v15759_v60, 0.0  ;;  %v5352_v53 = vmul.f32 1.442695, %v5298_v41  ;;  %13306 = vpow2.f32 %v5350_v11  ;;  %v17932_v11 = vld [vmem:[#allocation64_spill] sm:$0xff] }
 0x8a9   : > { %v15773_v52 = vpop.eup %13294 }
 0x8aa   : > { %5563 = vadd.xlane.f32.xlu1 %v5562_v13  ;;  %v17929_v13 = vld [vmem:[#allocation63_spill] sm:$0xff]  ;;  %v15785_v54 = vpop.eup %13296  ;;  %v5577_v10 = vsel %vm3003_vm4, %v15773_v52, 0.0  ;;  %13308 = vpow2.f32 %v5352_v53 }
 0x8ab   : > { %v15755_v22 = vpop.permute.xlu1 %3681  ;;  %v5299_v9 = vsub.f32 %v17929_v13, %v15670_v48  ;;  %v17931_v48 = vld [vmem:[#allocation91_spill] sm:$0xff]  ;;  %v5580_v53 = vsel %vm3003_vm4, %v15785_v54, 0.0 }
 0x8ac   : > { %5566 = vadd.xlane.f32.xlu0 %v5565_v3  ;;  %v3652_v40 = vpop.permute.xlu0 %3651 }
 0x8ad   : > { %v3805_v49 = vmul.f32 %v17928_v47, %v3652_v40  ;;  %v5354_v41 = vmul.f32 1.442695, %v5299_v9  ;;  %v5301_v9 = vsub.f32 %v17932_v11, %v15680_v58 }
 0x8ae   : > { %5569 = vadd.xlane.f32.xlu1 %v5568_v23 }
 0x8af   : > { %12682 = vmatmul.mubr.msk.f32.vlgmr.msra.gmra.mrb[32].mxu1 %vm6270_vm1, %v3805_v49  ;;  %v3692_v40 = vpop.permute.xlu1 %3691  ;;  %v5574_v49 = vsel %vm3003_vm4, %v15766_v43, 0.0  ;;  %13310 = vpow2.f32 %v5354_v41  ;;  %v5358_v11 = vmul.f32 1.442695, %v5301_v9  ;;  %v17935_v41 = vld [vmem:[#allocation38_spill] sm:$0xff] }
 0x8b0   : > { %5572 = vadd.xlane.f32.xlu0 %v5571_v37  ;;  %v5239_v3 = vpop.permute.xlu0 %5238  ;;  %12690 = vmatpush3.msk.msra.mxu1 %vm6274_vm0, %v6502_v8  ;;  %v15790_v8 = vpop.eup %13298  ;;  %v6810_v37 = vrot.slane %v15511_v62, 4 }
 0x8b1   : > { %v5300_v47 = vsub.f32 %v17931_v48, %v5239_v3  ;;  %12691 = vmatprep.mubr.msk.f32.mxu1 %vm13674_vm15, %v17922_v35  ;;  %12699 = vmatprep.subr.mxu1 %v17922_v35  ;;  %v6733_v3 = vrot.slane %v15516_v39, 4  ;;  %v17934_v48 = vld [vmem:[#allocation47_spill] sm:$0xff]  ;;  %v5583_v58 = vsel %vm3003_vm4, %v15790_v8, 0.0 }
 0x8b2   : > { %5575 = vadd.xlane.f32.xlu1 %v5574_v49 }
 0x8b3   : > { %12692 = vmatmul.mubr.msk.f32.vlgmr.msra.gmra.mrb[34].mxu1 %vm6270_vm1, %v3807_v28  ;;  %v5356_v23 = vmul.f32 1.442695, %v5300_v47  ;;  %v3809_v28 = vmul.f32 %v17933_v0, %v15738_v5  ;;  %v15805_v47 = vpop.eup %13300  ;;  %v3811_v0 = vmul.f32 %v17935_v41, %v15755_v22 }
 0x8b4   : > { %5578 = vadd.xlane.f32.xlu0 %v5577_v10  ;;  %v3667_v13 = vpop.permute.xlu0 %3666  ;;  %12700 = vmatpush3.msk.msra.mxu1 %vm6274_vm0, %v6656_v12  ;;  %v3702_v12 = vpop.permute.xlu1 %3701 }
 0x8b5   : > { %v3808_v49 = vmul.f32 %v17934_v48, %v3667_v13  ;;  %12701 = vmatprep.mubr.msk.f32.mxu1 %vm13674_vm15, %v17922_v35  ;;  %12709 = vmatprep.subr.mxu1 %v17922_v35  ;;  %v15811_v5 = vpop.eup %13302  ;;  %13312 = vpow2.f32 %v5356_v23  ;;  %v6887_v13 = vrot.slane %v15527_v18, 4  ;;  %v17936_v48 = vld [vmem:[#allocation107_spill] sm:$0xff] }
 0x8b6   : > { %5581 = vadd.xlane.f32.xlu1 %v5580_v53  ;;  %v15823_v23 = vpop.eup %13304  ;;  %v5589_v22 = vsel %vm3003_vm4, %v15811_v5, 0.0  ;;  %13314 = vpow2.f32 %v5358_v11  ;;  %v7041_v11 = vrot.slane %v15538_v6, 4 }
 0x8b7   : > { %12697 = vmatmul.mubr.msk.f32.vlgmr.msra.gmra.mrb[36].mxu0 %vm6270_vm1, %v3808_v49  ;;  %12702 = vmatmul.mubr.msk.f32.vlgmr.msra.gmra.mrb[36].mxu1 %vm6270_vm1, %v3809_v28  ;;  %v5586_v28 = vsel %vm3003_vm4, %v15805_v47, 0.0  ;;  %17937 = vst [vmem:[#allocation65_spill] sm:$0xff] %v15823_v23  ;;  %v5592_v41 = vsel %vm3003_vm4, %v15823_v23, 0.0 }
 0x8b8   : > { %5584 = vadd.xlane.f32.xlu0 %v5583_v58  ;;  %v3677_v10 = vpop.permute.xlu0 %3676  ;;  %12705 = vmatpush3.msk.msra.mxu0 %vm6274_vm0, %v6733_v3  ;;  %v6964_v3 = vrot.slane %v15522_v24, 4  ;;  %v3712_v53 = vpop.permute.xlu1 %3711  ;;  %v17939_v58 = vld [vmem:[#allocation108_spill] sm:$0xff] }
 0x8b9   : > { %v3810_v49 = vmul.f32 %v17936_v48, %v3677_v10  ;;  %12706 = vmatprep.mubr.msk.f32.mxu0 %vm13674_vm15, %v17922_v35  ;;  %12710 = vmatpush3.msk.msra.mxu1 %vm6274_vm0, %v6810_v37  ;;  %v15833_v37 = vpop.eup %13306  ;;  %v17941_v48 = vld [vmem:[#allocation100_spill] sm:$0xff] }
 0x8ba   : > { %5587 = vadd.xlane.f32.xlu1 %v5586_v28  ;;  %12711 = vmatprep.mubr.msk.f32.mxu1 %vm13674_vm15, %v17922_v35  ;;  %17938 = vst [vmem:[#allocation70_spill] sm:$0xff] %v15833_v37  ;;  %v7118_v28 = vrot.slane %v15533_v55, 4 }
 0x8bb   : > { %12707 = vmatmul.mubr.msk.f32.vlgmr.msra.gmra.mrb[38].mxu0 %vm6270_vm1, %v3810_v49  ;;  %12712 = vmatmul.mubr.msk.f32.vlgmr.msra.gmra.mrb[38].mxu1 %vm6270_vm1, %v3811_v0  ;;  %v15840_v0 = vpop.eup %13308  ;;  %v3813_v49 = vmul.f32 %v17941_v48, %v3692_v40  ;;  %v5595_v40 = vsel %vm3003_vm4, %v15833_v37, 0.0 }
 0x8bc   : > { %5590 = vadd.xlane.f32.xlu0 %v5589_v22  ;;  %v3687_v9 = vpop.permute.xlu0 %3686  ;;  %12714 = vmatprep.subr.mxu0 %v17922_v35  ;;  %17940 = vst [vmem:[#allocation53_spill] sm:$0xff] %v15840_v0  ;;  %v15854_v22 = vpop.eup %13310 }
 0x8bd   : > { %v3812_v10 = vmul.f32 %v17939_v58, %v3687_v9  ;;  %12719 = vmatprep.subr.mxu1 %v17922_v35  ;;  %12715 = vmatpush3.msk.msra.mxu0 %vm6274_vm0, %v6887_v13  ;;  %17942 = vst [vmem:[#allocation67_spill] sm:$0xff] %v15854_v22  ;;  %v17943_v9 = vld [vmem:[#allocation109_spill] sm:$0xff]  ;;  %v5598_v58 = vsel %vm3003_vm4, %v15840_v0, 0.0  ;;  %v17948_v0 = vld [vmem:[#allocation102_spill] sm:$0xff] }
 0x8be   : > { %5593 = vadd.xlane.f32.xlu1 %v5592_v41  ;;  %12716 = vmatprep.mubr.msk.f32.mxu0 %vm13674_vm15, %v17922_v35 }
 0x8bf   : > { %12720 = vmatpush3.msk.msra.mxu1 %vm6274_vm0, %v6964_v3  ;;  %12721 = vmatprep.mubr.msk.f32.mxu1 %vm13674_vm15, %v17922_v35  ;;  %v15860_v41 = vpop.eup %13312 }
 0x8c0   : > { %12717 = vmatmul.mubr.msk.f32.vlgmr.msra.gmra.mrb[40].mxu0 %vm6270_vm1, %v3812_v10  ;;  %12722 = vmatmul.mubr.msk.f32.vlgmr.msra.gmra.mrb[40].mxu1 %vm6270_vm1, %v3813_v49  ;;  %v3697_v13 = vpop.permute.xlu0 %3696  ;;  %17944 = vst [vmem:[#allocation54_spill] sm:$0xff] %v15860_v41  ;;  %v17945_v10 = vld [vmem:[#allocation101_spill] sm:$0xff]  ;;  %v3722_v49 = vpop.permute.xlu1 %3721 }
 0x8c1   : > { %5596 = vadd.xlane.f32.xlu0 %v5595_v40  ;;  %v3814_v3 = vmul.f32 %v17943_v9, %v3697_v13  ;;  %12724 = vmatprep.subr.mxu0 %v17922_v35  ;;  %v3815_v48 = vmul.f32 %v17945_v10, %v3702_v12  ;;  %v7195_v40 = vrot.slane %v15547_v29, 4  ;;  %v7272_v9 = vrot.slane %v15544_v45, 4  ;;  %v15879_v10 = vpop.eup %13314 }
 0x8c2   : > { %5599 = vadd.xlane.f32.xlu1 %v5598_v58  ;;  %12729 = vmatprep.subr.mxu1 %v17922_v35  ;;  %v5601_v12 = vsel %vm3003_vm4, %v15854_v22, 0.0  ;;  %17947 = vst [vmem:[#allocation55_spill] sm:$0xff] %v15879_v10 }
 0x8c3   : > { %12725 = vmatpush3.msk.msra.mxu0 %vm6274_vm0, %v7041_v11  ;;  %12726 = vmatprep.mubr.msk.f32.mxu0 %vm13674_vm15, %v17922_v35  ;;  %v5604_v11 = vsel %vm3003_vm4, %v15860_v41, 0.0 }
 0x8c4   : > { %12730 = vmatpush3.msk.msra.mxu1 %vm6274_vm0, %v7118_v28  ;;  %12731 = vmatprep.mubr.msk.f32.mxu1 %vm13674_vm15, %v17922_v35  ;;  %v3707_v13 = vpop.permute.xlu0 %3706  ;;  %v17946_v28 = vld [vmem:[#allocation110_spill] sm:$0xff] }
 0x8c5   : > { %12727 = vmatmul.mubr.msk.f32.vlgmr.msra.gmra.mrb[42].mxu0 %vm6270_vm1, %v3814_v3  ;;  %12732 = vmatmul.mubr.msk.f32.vlgmr.msra.gmra.mrb[42].mxu1 %vm6270_vm1, %v3815_v48  ;;  %v3816_v58 = vmul.f32 %v17946_v28, %v3707_v13  ;;  %v3817_v3 = vmul.f32 %v17948_v0, %v3712_v53  ;;  %v7349_v48 = vrot.slane %v15560_v4, 4  ;;  %v7426_v13 = vrot.slane %v15554_v50, 4  ;;  %v17949_v0 = vld [vmem:[#allocation111_spill] sm:$0xff] }
 0x8c6   : > { %5602 = vadd.xlane.f32.xlu0 %v5601_v12  ;;  %5605 = vadd.xlane.f32.xlu1 %v5604_v11  ;;  %v3732_v12 = vpop.permute.xlu1 %3731  ;;  %v5607_v53 = vsel %vm3003_vm4, %v15879_v10, 0.0  ;;  %v17950_v28 = vld [vmem:[#allocation103_spill] sm:$0xff]  ;;  %v17991_v10 = vld [vmem:[#allocation6_spill] sm:$0xff] }
 0x8c7   : > { %12734 = vmatprep.subr.mxu0 %v17922_v35  ;;  %12739 = vmatprep.subr.mxu1 %v17922_v35  ;;  %v3819_v22 = vmul.f32 %v17950_v28, %v3722_v49  ;;  %v7657_v49 = vrot.slane %v15574_v36, 4  ;;  %v7734_v28 = vrot.slane %v15570_v57, 4 }
 0x8c8   : > { %12735 = vmatpush3.msk.msra.mxu0 %vm6274_vm0, %v7195_v40  ;;  %12736 = vmatprep.mubr.msk.f32.mxu0 %vm13674_vm15, %v17922_v35  ;;  %v3717_v41 = vpop.permute.xlu0 %3716 }
 0x8c9   : > { %12740 = vmatpush3.msk.msra.mxu1 %vm6274_vm0, %v7272_v9  ;;  %12741 = vmatprep.mubr.msk.f32.mxu1 %vm13674_vm15, %v17922_v35  ;;  %v3818_v40 = vmul.f32 %v17949_v0, %v3717_v41  ;;  %v7503_v9 = vrot.slane %v15568_v2, 4  ;;  %v17951_v41 = vld [vmem:[#allocation49_spill] sm:$0xff] }
 0x8ca   : > { %12737 = vmatmul.mubr.msk.f32.vlgmr.msra.gmra.mrb[44].mxu0 %vm6270_vm1, %v3816_v58  ;;  %12742 = vmatmul.mubr.msk.f32.vlgmr.msra.gmra.mrb[44].mxu1 %vm6270_vm1, %v3817_v3  ;;  %v7580_v58 = vrot.slane %v15564_v1, 4 }
 0x8cb   : > { %5608 = vadd.xlane.f32.xlu0 %v5607_v53  ;;  %12744 = vmatprep.subr.mxu0 %v17922_v35 }
 0x8cc   : > { %12749 = vmatprep.subr.mxu1 %v17922_v35  ;;  %12745 = vmatpush3.msk.msra.mxu0 %vm6274_vm0, %v7349_v48  ;;  %v3727_v11 = vpop.permute.xlu0 %3726  ;;  %v3742_v48 = vpop.permute.xlu1 %3741 }
 0x8cd   : > { %12746 = vmatprep.mubr.msk.f32.mxu0 %vm13674_vm15, %v17922_v35  ;;  %12750 = vmatpush3.msk.msra.mxu1 %vm6274_vm0, %v7426_v13  ;;  %v3820_v3 = vmul.f32 %v17951_v41, %v3727_v11  ;;  %v17952_v13 = vld [vmem:[#allocation104_spill] sm:$0xff]  ;;  %v17954_v11 = vld [vmem:[#allocation105_spill] sm:$0xff] }
 0x8ce   : > { %12751 = vmatprep.mubr.msk.f32.mxu1 %vm13674_vm15, %v17922_v35  ;;  %12747 = vmatmul.mubr.msk.f32.vlgmr.msra.gmra.mrb[46].mxu0 %vm6270_vm1, %v3818_v40  ;;  %v3821_v0 = vmul.f32 %v17952_v13, %v3732_v12  ;;  %v7811_v12 = vrot.slane %v15580_v63, 4  ;;  %v7888_v13 = vrot.slane %v15576_v51, 4  ;;  %v17995_v51 = vld [vmem:[#allocation7_spill] sm:$0xff] }
 0x8cf   : > { %12752 = vmatmul.mubr.msk.f32.vlgmr.msra.gmra.mrb[46].mxu1 %vm6270_vm1, %v3819_v22  ;;  %12754 = vmatprep.subr.mxu0 %v17922_v35  ;;  %v17953_v22 = vld [vmem:[#allocation50_spill] sm:$0xff] }
 0x8d0   : > { %12759 = vmatprep.subr.mxu1 %v17922_v35  ;;  %12755 = vmatpush3.msk.msra.mxu0 %vm6274_vm0, %v7503_v9  ;;  %v3737_v53 = vpop.permute.xlu0 %3736  ;;  %v3752_v41 = vpop.permute.xlu1 %3751 }
 0x8d1   : > { %12756 = vmatprep.mubr.msk.f32.mxu0 %vm13674_vm15, %v17922_v35  ;;  %12760 = vmatpush3.msk.msra.mxu1 %vm6274_vm0, %v7580_v58  ;;  %v3822_v40 = vmul.f32 %v17953_v22, %v3737_v53  ;;  %v3823_v58 = vmul.f32 %v17954_v11, %v3742_v48  ;;  %v7965_v48 = vrot.slane %v15588_v7, 4  ;;  %v8042_v22 = vrot.slane %v15584_v31, 4  ;;  %v17958_v11 = vld [vmem:[#allocation43_spill] sm:$0xff] }
 0x8d2   : > { %12761 = vmatprep.mubr.msk.f32.mxu1 %vm13674_vm15, %v17922_v35  ;;  %12757 = vmatmul.mubr.msk.f32.vlgmr.msra.gmra.mrb[48].mxu0 %vm6270_vm1, %v3820_v3  ;;  %v17955_v3 = vld [vmem:[#allocation41_spill] sm:$0xff] }
 0x8d3   : > { %12762 = vmatmul.mubr.msk.f32.vlgmr.msra.gmra.mrb[48].mxu1 %vm6270_vm1, %v3821_v0  ;;  %12764 = vmatprep.subr.mxu0 %v17922_v35  ;;  %v17956_v0 = vld [vmem:[#allocation106_spill] sm:$0xff] }
 0x8d4   : > { %12769 = vmatprep.subr.mxu1 %v17922_v35  ;;  %12765 = vmatpush3.msk.msra.mxu0 %vm6274_vm0, %v7657_v49  ;;  %v3747_v9 = vpop.permute.xlu0 %3746 }
 0x8d5   : > { %12766 = vmatprep.mubr.msk.f32.mxu0 %vm13674_vm15, %v17922_v35  ;;  %12770 = vmatpush3.msk.msra.mxu1 %vm6274_vm0, %v7734_v28  ;;  %v3824_v49 = vmul.f32 %v17955_v3, %v3747_v9  ;;  %v3825_v28 = vmul.f32 %v17956_v0, %v3752_v41  ;;  %v17957_v9 = vld [vmem:[#allocation51_spill] sm:$0xff]  ;;  %v8119_v41 = vrot.slane %v15596_v16, 4  ;;  %v8196_v3 = vrot.slane %v15592_v19, 4  ;;  %v17992_v16 = vld [vmem:[#allocation85_spill] sm:$0xff] }
 0x8d6   : > { %12771 = vmatprep.mubr.msk.f32.mxu1 %vm13674_vm15, %v17922_v35  ;;  %12767 = vmatmul.mubr.msk.f32.vlgmr.msra.gmra.mrb[50].mxu0 %vm6270_vm1, %v3822_v40  ;;  %v5376_v31 = vrot.slane %v17992_v16, 4  ;;  %v17999_v16 = vld [vmem:[#allocation8_spill] sm:$0xff] }
 0x8d7   : > { %12772 = vmatmul.mubr.msk.f32.vlgmr.msra.gmra.mrb[50].mxu1 %vm6270_vm1, %v3823_v58  ;;  %12774 = vmatprep.subr.mxu0 %v17922_v35 }
 0x8d8   : > { %12779 = vmatprep.subr.mxu1 %v17922_v35  ;;  %12775 = vmatpush3.msk.msra.mxu0 %vm6274_vm0, %v7811_v12  ;;  %v3757_v53 = vpop.permute.xlu0 %3756 }
 0x8d9   : > { %12776 = vmatprep.mubr.msk.f32.mxu0 %vm13674_vm15, %v17922_v35  ;;  %12780 = vmatpush3.msk.msra.mxu1 %vm6274_vm0, %v7888_v13  ;;  %v3762_v40 = vpop.permute.xlu1 %3761  ;;  %v3826_v12 = vmul.f32 %v17957_v9, %v3757_v53  ;;  %v17959_v53 = vld [vmem:[#allocation42_spill] sm:$0xff]  ;;  %v8350_v9 = vrot.slane %v15600_v34, 4 }
 0x8da   : > { %12781 = vmatprep.mubr.msk.f32.mxu1 %vm13674_vm15, %v17922_v35  ;;  %12777 = vmatmul.mubr.msk.f32.vlgmr.msra.gmra.mrb[52].mxu0 %vm6270_vm1, %v3824_v49  ;;  %v3827_v58 = vmul.f32 %v17958_v11, %v3762_v40  ;;  %v17961_v11 = vld [vmem:[#allocation52_spill] sm:$0xff] }
 0x8db   : > { %12782 = vmatmul.mubr.msk.f32.vlgmr.msra.gmra.mrb[52].mxu1 %vm6270_vm1, %v3825_v28  ;;  %12784 = vmatprep.subr.mxu0 %v17922_v35 }
 0x8dc   : > { %12789 = vmatprep.subr.mxu1 %v17922_v35  ;;  %12785 = vmatpush3.msk.msra.mxu0 %vm6274_vm0, %v7965_v48  ;;  %v3767_v13 = vpop.permute.xlu0 %3766  ;;  %v17960_v48 = vld [vmem:[#allocation44_spill] sm:$0xff] }
 0x8dd   : > { %12786 = vmatprep.mubr.msk.f32.mxu0 %vm13674_vm15, %v17922_v35  ;;  %12790 = vmatpush3.msk.msra.mxu1 %vm6274_vm0, %v8042_v22  ;;  %v3772_v49 = vpop.permute.xlu1 %3771  ;;  %v3828_v0 = vmul.f32 %v17959_v53, %v3767_v13  ;;  %v8273_v22 = vrot.slane %v15604_v46, 4  ;;  %v17990_v46 = vld [vmem:[#allocation73_spill] sm:$0xff] }
 0x8de   : > { %12791 = vmatprep.mubr.msk.f32.mxu1 %vm13674_vm15, %v17922_v35  ;;  %12787 = vmatmul.mubr.msk.f32.vlgmr.msra.gmra.mrb[54].mxu0 %vm6270_vm1, %v3826_v12  ;;  %v3829_v28 = vmul.f32 %v17960_v48, %v3772_v49  ;;  %v17963_v49 = vld [vmem:[#allocation157_spill] sm:$0xff]  ;;  %v17964_v48 = vld [vmem:[#allocation155_spill] sm:$0xff]  ;;  %v5375_v19 = vrot.slane %v17990_v46, 4 }
 0x8df   : > { %12792 = vmatmul.mubr.msk.f32.vlgmr.msra.gmra.mrb[54].mxu1 %vm6270_vm1, %v3827_v58  ;;  %12794 = vmatprep.subr.mxu0 %v17922_v35  ;;  %v8504_v34 = vrot.slane %v17964_v48, 4  ;;  %v17968_v48 = vld [vmem:[#allocation158_spill] sm:$0xff]  ;;  %v17998_v46 = vld [vmem:[#allocation83_spill] sm:$0xff] }
 0x8e0   : > { %12799 = vmatprep.subr.mxu1 %v17922_v35  ;;  %12795 = vmatpush3.msk.msra.mxu0 %vm6274_vm0, %v8119_v41  ;;  %v3777_v40 = vpop.permute.xlu0 %3776  ;;  %v17962_v41 = vld [vmem:[#allocation112_spill] sm:$0xff]  ;;  %v5379_v37 = vrot.slane %v17998_v46, 4  ;;  %v18007_v46 = vld [vmem:[#allocation117_spill] sm:$0xff] }
 0x8e1   : > { %12796 = vmatprep.mubr.msk.f32.mxu0 %vm13674_vm15, %v17922_v35  ;;  %12800 = vmatpush3.msk.msra.mxu1 %vm6274_vm0, %v8196_v3  ;;  %v3782_v12 = vpop.permute.xlu1 %3781  ;;  %v3830_v58 = vmul.f32 %v17961_v11, %v3777_v40  ;;  %v8427_v3 = vrot.slane %v17963_v49, 4  ;;  %v17967_v11 = vld [vmem:[#allocation160_spill] sm:$0xff]  ;;  %v8658_v49 = vrot.slane %v17968_v48, 4  ;;  %v17975_v48 = vld [vmem:[#allocation26_spill] sm:$0xff] }
 0x8e2   : > { %12801 = vmatprep.mubr.msk.f32.mxu1 %vm13674_vm15, %v17922_v35  ;;  %12797 = vmatmul.mubr.msk.f32.vlgmr.msra.gmra.mrb[56].mxu0 %vm6270_vm1, %v3828_v0  ;;  %v3831_v13 = vmul.f32 %v17962_v41, %v3782_v12 }
 0x8e3   : > { %12802 = vmatmul.mubr.msk.f32.vlgmr.msra.gmra.mrb[56].mxu1 %vm6270_vm1, %v3829_v28  ;;  %12804 = vmatprep.subr.mxu0 %v17922_v35  ;;  %v17965_v28 = vld [vmem:[#allocation45_spill] sm:$0xff] }
 0x8e4   : > { %12809 = vmatprep.subr.mxu1 %v17922_v35  ;;  %12805 = vmatpush3.msk.msra.mxu0 %vm6274_vm0, %v8273_v22  ;;  %v3787_v53 = vpop.permute.xlu0 %3786  ;;  %v17966_v22 = vld [vmem:[#allocation113_spill] sm:$0xff] }
 0x8e5   : > { %12806 = vmatprep.mubr.msk.f32.mxu0 %vm13674_vm15, %v17922_v35  ;;  %12810 = vmatpush3.msk.msra.mxu1 %vm6274_vm0, %v8350_v9  ;;  %v3792_v0 = vpop.permute.xlu1 %3791  ;;  %v3832_v40 = vmul.f32 %v17965_v28, %v3787_v53  ;;  %v8581_v9 = vrot.slane %v17967_v11, 4  ;;  %v17987_v11 = vld [vmem:[#allocation4_spill] sm:$0xff] }
 0x8e6   : > { %12811 = vmatprep.mubr.msk.f32.mxu1 %vm13674_vm15, %v17922_v35  ;;  %12807 = vmatmul.mubr.msk.f32.vlgmr.msra.gmra.mrb[58].mxu0 %vm6270_vm1, %v3830_v58  ;;  %v3833_v12 = vmul.f32 %v17966_v22, %v3792_v0 }
 0x8e7   : > { %12812 = vmatmul.mubr.msk.f32.vlgmr.msra.gmra.mrb[58].mxu1 %vm6270_vm1, %v3831_v13  ;;  %12814 = vmatprep.subr.mxu0 %v17922_v35  ;;  %v17969_v13 = vld [vmem:[#allocation114_spill] sm:$0xff] }
 0x8e8   : > { %12819 = vmatprep.subr.mxu1 %v17922_v35  ;;  %12815 = vmatpush3.msk.msra.mxu0 %vm6274_vm0, %v8427_v3  ;;  %v3797_v41 = vpop.permute.xlu0 %3796  ;;  %v17970_v3 = vld [vmem:[#allocation21_spill] sm:$0xff] }
 0x8e9   : > { %12816 = vmatprep.mubr.msk.f32.mxu0 %vm13674_vm15, %v17922_v35  ;;  %12820 = vmatpush3.msk.msra.mxu1 %vm6274_vm0, %v8504_v34  ;;  %v3802_v58 = vpop.permute.xlu1 %3801  ;;  %v3834_v53 = vmul.f32 %v17969_v13, %v3797_v41 }
 0x8ea   : > { %12821 = vmatprep.mubr.msk.f32.mxu1 %vm13674_vm15, %v17922_v35  ;;  %12817 = vmatmul.mubr.msk.f32.vlgmr.msra.gmra.mrb[60].mxu0 %vm6270_vm1, %v3832_v40  ;;  %v3835_v0 = vmul.f32 %v17970_v3, %v3802_v58  ;;  %v17971_v40 = vld [vmem:[#allocation92_spill] sm:$0xff] }
 0x8eb   : > { %12822 = vmatmul.mubr.msk.f32.vlgmr.msra.gmra.mrb[60].mxu1 %vm6270_vm1, %v3833_v12  ;;  %12824 = vmatprep.subr.mxu0 %v17922_v35  ;;  %v17972_v12 = vld [vmem:[#allocation66_spill] sm:$0xff] }
 0x8ec   : > { %12829 = vmatprep.subr.mxu1 %v17922_v35  ;;  %12825 = vmatpush3.msk.msra.mxu0 %vm6274_vm0, %v8581_v9  ;;  %v5249_v28 = vpop.permute.xlu0 %5248 }
 0x8ed   : > { %12826 = vmatprep.mubr.msk.f32.mxu0 %vm13674_vm15, %v17922_v35  ;;  %12830 = vmatpush3.msk.msra.mxu1 %vm6274_vm0, %v8658_v49  ;;  %v5254_v34 = vpop.permute.xlu1 %5253  ;;  %v5302_v22 = vsub.f32 %v17971_v40, %v5249_v28  ;;  %v17973_v49 = vld [vmem:[#allocation138_spill] sm:$0xff]  ;;  %v17974_v28 = vld [vmem:[#allocation93_spill] sm:$0xff] }
 0x8ee   : > { %12831 = vmatprep.mubr.msk.f32.mxu1 %vm13674_vm15, %v17922_v35  ;;  %12827 = vmatmul.mubr.msk.f32.vlgmr.msra.gmra.mrb[62].mxu0 %vm6270_vm1, %v3834_v53  ;;  %v5303_v41 = vsub.f32 %v17972_v12, %v5254_v34  ;;  %v17976_v53 = vld [vmem:[#allocation68_spill] sm:$0xff] }
 0x8ef   : > { %12832 = vmatmul.mubr.msk.f32.vlgmr.msra.gmra.mrb[62].mxu1 %vm6270_vm1, %v3835_v0  ;;  %v5360_v58 = vmul.f32 1.442695, %v5302_v22  ;;  %12834 = vmatprep.subr.mxu0 %v17922_v35 }
 0x8f0   : > { %v5362_v9 = vmul.f32 1.442695, %v5303_v41  ;;  %v5259_v13 = vpop.permute.xlu0 %5258  ;;  %12839 = vmatprep.subr.mxu1 %v17922_v35  ;;  %12835 = vmatpush3.msk.msra.mxu0 %vm6274_vm0, %v17973_v49 }
 0x8f1   : > { %13316 = vpow2.f32 %v5360_v58  ;;  %v5264_v3 = vpop.permute.xlu1 %5263  ;;  %v5304_v40 = vsub.f32 %v17974_v28, %v5259_v13  ;;  %12840 = vmatpush3.msk.msra.mxu1 %vm6274_vm0, %v17975_v48  ;;  %12836 = vmatprep.mubr.msk.f32.mxu0 %vm13674_vm15, %v17922_v35  ;;  %v17977_v58 = vld [vmem:[#allocation94_spill] sm:$0xff]  ;;  %v17978_v28 = vld [vmem:[#allocation69_spill] sm:$0xff] }
 0x8f2   : > { %13318 = vpow2.f32 %v5362_v9  ;;  %v5305_v0 = vsub.f32 %v17976_v53, %v5264_v3  ;;  %12844 = vmatprep.subr.mxu0 %v17922_v35  ;;  %12841 = vmatprep.mubr.msk.f32.mxu1 %vm13674_vm15, %v17922_v35 }
 0x8f3   : > { %v5364_v34 = vmul.f32 1.442695, %v5304_v40  ;;  %12849 = vmatprep.subr.mxu1 %v17922_v35 }
 0x8f4   : > { %v5366_v22 = vmul.f32 1.442695, %v5305_v0  ;;  %v5269_v12 = vpop.permute.xlu0 %5268 }
 0x8f5   : > { %13320 = vpow2.f32 %v5364_v34  ;;  %v5274_v41 = vpop.permute.xlu1 %5273  ;;  %v5306_v13 = vsub.f32 %v17977_v58, %v5269_v12 }
 0x8f6   : > { %13322 = vpow2.f32 %v5366_v22  ;;  %v5307_v48 = vsub.f32 %v17978_v28, %v5274_v41  ;;  %v17985_v28 = vld [vmem:[#allocation71_spill] sm:$0xff] }
 0x8f7   : > { %v5368_v9 = vmul.f32 1.442695, %v5306_v13 }
 0x8f8   : > { %v5370_v49 = vmul.f32 1.442695, %v5307_v48 }
 0x8f9   : > { %13324 = vpow2.f32 %v5368_v9  ;;  %v5372_v9 = vrot.slane %v17985_v28, 4  ;;  %v17994_v28 = vld [vmem:[#allocation77_spill] sm:$0xff] }
 0x8fa   : > { %13326 = vpow2.f32 %v5370_v49  ;;  %v5377_v7 = vrot.slane %v17994_v28, 4  ;;  %v18002_v28 = vld [vmem:[#allocation115_spill] sm:$0xff] }
 0x8fb   : > { %v16038_v3 = vpop.eup %13316 }
 0x8fc   : > { %17979 = vst [vmem:[#allocation56_spill] sm:$0xff] %v16038_v3  ;;  %v16040_v53 = vpop.eup %13318  ;;  %v5610_v40 = vsel %vm3003_vm4, %v16038_v3, 0.0 }
 0x8fd   : > { %17980 = vst [vmem:[#allocation57_spill] sm:$0xff] %v16040_v53  ;;  %v5613_v0 = vsel %vm3003_vm4, %v16040_v53, 0.0  ;;  %5611 = vadd.xlane.f32.xlu1 %v5610_v40  ;;  %v17986_v40 = vld [vmem:[#allocation22_spill] sm:$0xff] }
 0x8fe   : > { %5614 = vadd.xlane.f32.xlu0 %v5613_v0  ;;  %v5374_v0 = vrot.slane %v17986_v40, 4 }
 0x8ff   : > { %v16046_v34 = vpop.eup %13320 }
 0x900   : > { %17981 = vst [vmem:[#allocation58_spill] sm:$0xff] %v16046_v34  ;;  %v16048_v22 = vpop.eup %13322  ;;  %v5616_v48 = vsel %vm3003_vm4, %v16046_v34, 0.0  ;;  %v17989_v34 = vld [vmem:[#allocation5_spill] sm:$0xff] }
 0x901   : > { %17982 = vst [vmem:[#allocation59_spill] sm:$0xff] %v16048_v22  ;;  %v5619_v49 = vsel %vm3003_vm4, %v16048_v22, 0.0  ;;  %5617 = vadd.xlane.f32.xlu1 %v5616_v48  ;;  %v5436_v22 = vsub.f32 %v17987_v11, %v5372_v9  ;;  %v17988_v48 = vld [vmem:[#allocation79_spill] sm:$0xff]  ;;  %v5438_v53 = vsub.f32 %v17989_v34, %v5374_v0  ;;  %v5440_v11 = vsub.f32 %v17995_v51, %v5376_v31  ;;  %v17996_v9 = vld [vmem:[#allocation89_spill] sm:$0xff] }
 0x902   : > { %5620 = vadd.xlane.f32.xlu0 %v5619_v49  ;;  %v5373_v49 = vrot.slane %v17988_v48, 4  ;;  %v5378_v48 = vrot.slane %v17996_v9, 4  ;;  %v5381_v31 = vrot.slane %v18002_v28, 4  ;;  %v18005_v9 = vld [vmem:[#allocation121_spill] sm:$0xff] }
 0x903   : > { %v16054_v12 = vpop.eup %13324  ;;  %v5468_v3 = vmul.f32 1.442695, %v5436_v22  ;;  %v17997_v22 = vld [vmem:[#allocation72_spill] sm:$0xff] }
 0x904   : > { %17983 = vst [vmem:[#allocation60_spill] sm:$0xff] %v16054_v12  ;;  %v16056_v41 = vpop.eup %13326  ;;  %v5622_v58 = vsel %vm3003_vm4, %v16054_v12, 0.0  ;;  %v5437_v12 = vsub.f32 %v17991_v10, %v5373_v49  ;;  %v5441_v0 = vsub.f32 %v17997_v22, %v5377_v7  ;;  %v5476_v10 = vmul.f32 1.442695, %v5440_v11  ;;  %v18006_v11 = vld [vmem:[#allocation76_spill] sm:$0xff] }
 0x905   : > { %17984 = vst [vmem:[#allocation61_spill] sm:$0xff] %v16056_v41  ;;  %v5625_v13 = vsel %vm3003_vm4, %v16056_v41, 0.0  ;;  %5623 = vadd.xlane.f32.xlu1 %v5622_v58  ;;  %v5472_v41 = vmul.f32 1.442695, %v5438_v53  ;;  %13328 = vpow2.f32 %v5468_v3  ;;  %v17993_v58 = vld [vmem:[#allocation39_spill] sm:$0xff]  ;;  %v5442_v53 = vsub.f32 %v17999_v16, %v5378_v48  ;;  %v18000_v3 = vld [vmem:[#allocation118_spill] sm:$0xff] }
 0x906   : > { %5626 = vadd.xlane.f32.xlu0 %v5625_v13  ;;  %v5439_v13 = vsub.f32 %v17993_v58, %v5375_v19  ;;  %v5470_v40 = vmul.f32 1.442695, %v5437_v12  ;;  %v5380_v49 = vrot.slane %v18000_v3, 4  ;;  %v5478_v19 = vmul.f32 1.442695, %v5441_v0  ;;  %v18001_v58 = vld [vmem:[#allocation74_spill] sm:$0xff] }
 0x907   : > { %13330 = vpow2.f32 %v5472_v41  ;;  %v5443_v12 = vsub.f32 %v18001_v58, %v5379_v37  ;;  %v5480_v41 = vmul.f32 1.442695, %v5442_v53  ;;  %v5382_v22 = vrot.slane %v18005_v9, 4  ;;  %v18009_v3 = vld [vmem:[#allocation10_spill] sm:$0xff]  ;;  %v18013_v9 = vld [vmem:[#allocation120_spill] sm:$0xff] }
 0x908   : > { %v5474_v34 = vmul.f32 1.442695, %v5439_v13  ;;  %13332 = vpow2.f32 %v5470_v40  ;;  %v18004_v13 = vld [vmem:[#allocation9_spill] sm:$0xff]  ;;  %v5445_v48 = vsub.f32 %v18006_v11, %v5381_v31  ;;  %v5383_v16 = vrot.slane %v18007_v46, 4 }
 0x909   : > { %v5444_v7 = vsub.f32 %v18004_v13, %v5380_v49  ;;  %v5482_v40 = vmul.f32 1.442695, %v5443_v12  ;;  %v5446_v58 = vsub.f32 %v18009_v3, %v5382_v22  ;;  %v18012_v12 = vld [vmem:[#allocation78_spill] sm:$0xff]  ;;  %v5385_v11 = vrot.slane %v18013_v9, 4  ;;  %v18016_v3 = vld [vmem:[#allocation127_spill] sm:$0xff] }
 0x90a   : > { %13334 = vpow2.f32 %v5474_v34  ;;  %v5447_v31 = vsub.f32 %v18012_v12, %v5383_v16  ;;  %v18018_v12 = vld [vmem:[#allocation80_spill] sm:$0xff]  ;;  %v18019_v9 = vld [vmem:[#allocation123_spill] sm:$0xff]  ;;  %vm11582_vm4 = vcmask 257024  }
 0x90b   : > { %13336 = vpow2.f32 %v5476_v10  ;;  %v5484_v37 = vmul.f32 1.442695, %v5444_v7  ;;  %v18010_v10 = vld [vmem:[#allocation124_spill] sm:$0xff]  ;;  %v18015_v7 = vld [vmem:[#allocation11_spill] sm:$0xff] }
 0x90c   : > { %13338 = vpow2.f32 %v5478_v19  ;;  %v5384_v53 = vrot.slane %v18010_v10, 4  ;;  %v5486_v19 = vmul.f32 1.442695, %v5445_v48  ;;  %v5386_v10 = vrot.slane %v18016_v3, 4 }
 0x90d   : > { %13340 = vpow2.f32 %v5480_v41  ;;  %v5488_v41 = vmul.f32 1.442695, %v5446_v58  ;;  %v5490_v16 = vmul.f32 1.442695, %v5447_v31 }
 0x90e   : > { %13342 = vpow2.f32 %v5482_v40  ;;  %v5448_v22 = vsub.f32 %v18015_v7, %v5384_v53 }
 0x90f   : > { %v16080_v51 = vpop.eup %13328 }
 0x910   : > { %18003 = vst [vmem:[#allocation37_spill] sm:$0xff] %v16080_v51  ;;  %v5660_v34 = vrot.slane %v16080_v51, 4  ;;  %v5492_v7 = vmul.f32 1.442695, %v5448_v22 }
 0x911   : > { %v16087_v0 = vpop.eup %13330 }
 0x912   : > { %18008 = vst [vmem:[#allocation62_spill] sm:$0xff] %v16087_v0  ;;  %v16091_v13 = vpop.eup %13332  ;;  %v5662_v46 = vrot.slane %v16087_v0, 4  ;;  %v5387_v0 = vrot.slane %v18019_v9, 4 }
 0x913   : > { %18011 = vst [vmem:[#allocation90_spill] sm:$0xff] %v16091_v13  ;;  %v5661_v40 = vrot.slane %v16091_v13, 4 }
 0x914   : > { %v16096_v51 = vpop.eup %13334 }
 0x915   : > { %18014 = vst [vmem:[#allocation36_spill] sm:$0xff] %v16096_v51  ;;  %v16101_v48 = vpop.eup %13336  ;;  %v5663_v58 = vrot.slane %v16096_v51, 4 }
 0x916   : > { %18017 = vst [vmem:[#allocation63_spill] sm:$0xff] %v16101_v48  ;;  %v16106_v53 = vpop.eup %13338  ;;  %v5664_v31 = vrot.slane %v16101_v48, 4 }
 0x917   : > { %18020 = vst [vmem:[#allocation46_spill] sm:$0xff] %v16106_v53  ;;  %v5665_v22 = vrot.slane %v16106_v53, 4 }
 0x921   : > { %v5534_v28 = vpop.xlane.xlu0 %5533 }
 0x922   : > { %v5724_v49 = vadd.f32 %v5660_v34, %v5534_v28 }
 0x924   : > { %13344 = vrcp.f32 %v5724_v49  ;;  %v5449_v49 = vsub.f32 %v18018_v12, %v5385_v11  ;;  %v16111_v11 = vpop.eup %13340  ;;  %v18025_v12 = vld [vmem:[#allocation126_spill] sm:$0xff] }
 0x925   : > { %13346 = vpow2.f32 %v5484_v37  ;;  %v5540_v34 = vpop.xlane.xlu0 %5539  ;;  %18023 = vst [vmem:[#allocation91_spill] sm:$0xff] %v16111_v11  ;;  %v5389_v9 = vrot.slane %v18025_v12, 4  ;;  %v18031_v12 = vld [vmem:[#allocation129_spill] sm:$0xff] }
 0x926   : > { %v5726_v28 = vadd.f32 %v5662_v46, %v5540_v34  ;;  %13348 = vpow2.f32 %v5486_v19  ;;  %v18021_v46 = vld [vmem:[#allocation12_spill] sm:$0xff]  ;;  %v18022_v34 = vld [vmem:[#allocation130_spill] sm:$0xff] }
 0x927   : > { %v5537_v23 = vpop.xlane.xlu1 %5536  ;;  %v5450_v3 = vsub.f32 %v18021_v46, %v5386_v10  ;;  %v5388_v13 = vrot.slane %v18022_v34, 4  ;;  %v16116_v10 = vpop.eup %13342  ;;  %v18028_v46 = vld [vmem:[#allocation132_spill] sm:$0xff] }
 0x928   : > { %13350 = vrcp.f32 %v5726_v28  ;;  %v5725_v37 = vadd.f32 %v5661_v40, %v5537_v23  ;;  %v5494_v28 = vmul.f32 1.442695, %v5449_v49  ;;  %v18024_v23 = vld [vmem:[#allocation82_spill] sm:$0xff]  ;;  %18026 = vst [vmem:[#allocation64_spill] sm:$0xff] %v16116_v10  ;;  %v5390_v34 = vrot.slane %v18028_v46, 4 }
 0x929   : > { %13352 = vpow2.f32 %v5488_v41  ;;  %v5543_v63 = vpop.xlane.xlu0 %5542  ;;  %v5451_v40 = vsub.f32 %v18024_v23, %v5387_v0  ;;  %v5666_v49 = vrot.slane %v16111_v11, 4  ;;  %v18034_v11 = vld [vmem:[#allocation134_spill] sm:$0xff] }
 0x92a   : > { %13354 = vrcp.f32 %v5725_v37  ;;  %v5727_v19 = vadd.f32 %v5663_v58, %v5543_v63  ;;  %v5496_v37 = vmul.f32 1.442695, %v5450_v3  ;;  %v18027_v63 = vld [vmem:[#allocation13_spill] sm:$0xff] }
 0x92b   : > { %13356 = vpow2.f32 %v5490_v16  ;;  %v5546_v51 = vpop.xlane.xlu1 %5545  ;;  %v5452_v58 = vsub.f32 %v18027_v63, %v5388_v13  ;;  %v5667_v63 = vrot.slane %v16116_v10, 4  ;;  %v18038_v10 = vld [vmem:[#allocation23_spill] sm:$0xff] }
 0x92c   : > { %13358 = vrcp.f32 %v5727_v19  ;;  %v5728_v41 = vadd.f32 %v5664_v31, %v5546_v51  ;;  %v5498_v51 = vmul.f32 1.442695, %v5451_v40  ;;  %v18030_v19 = vld [vmem:[#allocation84_spill] sm:$0xff] }
 0x92d   : > { %13360 = vpow2.f32 %v5492_v7  ;;  %v5549_v48 = vpop.xlane.xlu0 %5548  ;;  %v5453_v31 = vsub.f32 %v18030_v19, %v5389_v9  ;;  %v5391_v7 = vrot.slane %v18031_v12, 4 }
 0x92e   : > { %v16120_v16 = vpop.eup %13344  ;;  %13362 = vrcp.f32 %v5728_v41  ;;  %v5729_v0 = vadd.f32 %v5665_v22, %v5549_v48  ;;  %v5500_v48 = vmul.f32 1.442695, %v5452_v58  ;;  %v18033_v41 = vld [vmem:[#allocation14_spill] sm:$0xff] }
 0x92f   : > { %v16123_v23 = vpop.eup %13346  ;;  %13364 = vpow2.f32 %v5494_v28  ;;  %v5552_v3 = vpop.xlane.xlu1 %5551  ;;  %5790 = vperm.xlu1 %13070, %v16120_v16   ;;  %v5454_v22 = vsub.f32 %v18033_v41, %v5390_v34  ;;  %v5392_v28 = vrot.slane %v18034_v11, 4 }
 0x930   : > { %18029 = vst [vmem:[#allocation48_spill] sm:$0xff] %v16123_v23  ;;  %13366 = vrcp.f32 %v5729_v0  ;;  %v5730_v13 = vadd.f32 %v5666_v49, %v5552_v3  ;;  %v16129_v46 = vpop.eup %13348  ;;  %v5668_v19 = vrot.slane %v16123_v23, 4  ;;  %v5502_v0 = vmul.f32 1.442695, %v5453_v31  ;;  %v18037_v49 = vld [vmem:[#allocation86_spill] sm:$0xff]  ;;  %v18042_v31 = vld [vmem:[#allocation136_spill] sm:$0xff] }
 0x931   : > { %18032 = vst [vmem:[#allocation47_spill] sm:$0xff] %v16129_v46  ;;  %13368 = vpow2.f32 %v5496_v37  ;;  %v5555_v40 = vpop.xlane.xlu0 %5554  ;;  %v5455_v3 = vsub.f32 %v18037_v49, %v5391_v7  ;;  %v5393_v37 = vrot.slane %v18038_v10, 4  ;;  %v5504_v41 = vmul.f32 1.442695, %v5454_v22  ;;  %v18045_v22 = vld [vmem:[#allocation24_spill] sm:$0xff] }
 0x932   : > { %v16133_v53 = vpop.eup %13350  ;;  %13370 = vrcp.f32 %v5730_v13  ;;  %v5731_v9 = vadd.f32 %v5667_v63, %v5555_v40  ;;  %v5669_v13 = vrot.slane %v16129_v46, 4  ;;  %v18041_v40 = vld [vmem:[#allocation15_spill] sm:$0xff]  ;;  %v5394_v23 = vrot.slane %v18042_v31, 4  ;;  %v18044_v46 = vld [vmem:[#allocation88_spill] sm:$0xff] }
 0x933   : > { %18035 = vst [vmem:[#allocation38_spill] sm:$0xff] %v16133_v53  ;;  %v16136_v12 = vpop.eup %13352  ;;  %13372 = vpow2.f32 %v5498_v51  ;;  %v5558_v58 = vpop.xlane.xlu1 %5557  ;;  %5800 = vperm.xlu1 %13070, %v16133_v53   ;;  %v5456_v51 = vsub.f32 %v18041_v40, %v5392_v28  ;;  %v5395_v53 = vrot.slane %v18045_v22, 4 }
 0x934   : > { %18036 = vst [vmem:[#allocation107_spill] sm:$0xff] %v16136_v12  ;;  %v16141_v34 = vpop.eup %13354  ;;  %13374 = vrcp.f32 %v5731_v9  ;;  %v5732_v11 = vadd.f32 %v5668_v19, %v5558_v58  ;;  %v5670_v9 = vrot.slane %v16136_v12, 4  ;;  %v5506_v58 = vmul.f32 1.442695, %v5455_v3  ;;  %v18048_v12 = vld [vmem:[#allocation16_spill] sm:$0xff] }
 0x935   : > { %18039 = vst [vmem:[#allocation108_spill] sm:$0xff] %v16141_v34  ;;  %v16144_v63 = vpop.eup %13356  ;;  %13376 = vpow2.f32 %v5500_v48  ;;  %5795 = vperm.xlu0 %13071, %v16141_v34   ;;  %v5561_v10 = vpop.xlane.xlu0 %5560  ;;  %v5457_v48 = vsub.f32 %v18044_v46, %v5393_v37  ;;  %v18049_v3 = vld [vmem:[#allocation28_spill] sm:$0xff] }
 0x936   : > { %18040 = vst [vmem:[#allocation100_spill] sm:$0xff] %v16144_v63  ;;  %v16149_v7 = vpop.eup %13358  ;;  %13378 = vrcp.f32 %v5732_v11  ;;  %v5733_v49 = vadd.f32 %v5669_v13, %v5561_v10  ;;  %v5671_v11 = vrot.slane %v16144_v63, 4  ;;  %v5508_v10 = vmul.f32 1.442695, %v5456_v51  ;;  %v18051_v63 = vld [vmem:[#allocation95_spill] sm:$0xff] }
 0x937   : > { %v16152_v19 = vpop.eup %13360  ;;  %13380 = vpow2.f32 %v5502_v0  ;;  %v5564_v28 = vpop.xlane.xlu1 %5563  ;;  %5805 = vperm.xlu1 %13070, %v16149_v7   ;;  %v5458_v0 = vsub.f32 %v18048_v12, %v5394_v23  ;;  %v5396_v34 = vrot.slane %v18049_v3, 4 }
 0x938   : > { %18043 = vst [vmem:[#allocation109_spill] sm:$0xff] %v16152_v19  ;;  %v16157_v40 = vpop.eup %13362  ;;  %13382 = vrcp.f32 %v5733_v49  ;;  %v5734_v31 = vadd.f32 %v5670_v9, %v5564_v28  ;;  %v5672_v49 = vrot.slane %v16152_v19, 4  ;;  %v5510_v28 = vmul.f32 1.442695, %v5457_v48  ;;  %v18055_v19 = vld [vmem:[#allocation17_spill] sm:$0xff] }
 0x939   : > { %18046 = vst [vmem:[#allocation101_spill] sm:$0xff] %v16157_v40  ;;  %v16160_v13 = vpop.eup %13364  ;;  %13384 = vpow2.f32 %v5504_v41  ;;  %5810 = vperm.xlu0 %13071, %v16157_v40   ;;  %v5567_v46 = vpop.xlane.xlu0 %5566  ;;  %v5459_v41 = vsub.f32 %v18051_v63, %v5395_v53 }
 0x93a   : > { %18047 = vst [vmem:[#allocation110_spill] sm:$0xff] %v16160_v13  ;;  %v16165_v37 = vpop.eup %13366  ;;  %13386 = vrcp.f32 %v5734_v31  ;;  %v5735_v22 = vadd.f32 %v5671_v11, %v5567_v46  ;;  %v5673_v3 = vrot.slane %v16160_v13, 4  ;;  %v18054_v31 = vld [vmem:[#allocation25_spill] sm:$0xff]  ;;  %v5512_v46 = vmul.f32 1.442695, %v5458_v0 }
 0x93b   : > { %v16168_v9 = vpop.eup %13368  ;;  %13388 = vpow2.f32 %v5506_v58  ;;  %v5570_v51 = vpop.xlane.xlu1 %5569  ;;  %5815 = vperm.xlu1 %13070, %v16165_v37   ;;  %v5397_v11 = vrot.slane %v18054_v31, 4  ;;  %v5460_v58 = vsub.f32 %v18055_v19, %v5396_v34  ;;  %v18060_v31 = vld [vmem:[#allocation96_spill] sm:$0xff] }
 0x93c   : > { %18050 = vst [vmem:[#allocation102_spill] sm:$0xff] %v16168_v9  ;;  %v16172_v23 = vpop.eup %13370  ;;  %13390 = vrcp.f32 %v5735_v22  ;;  %v5736_v12 = vadd.f32 %v5672_v49, %v5570_v51  ;;  %v5674_v22 = vrot.slane %v16168_v9, 4  ;;  %v5514_v51 = vmul.f32 1.442695, %v5459_v41 }
 0x93d   : > { %18052 = vst [vmem:[#allocation111_spill] sm:$0xff] %v16172_v23  ;;  %v16175_v40 = vpop.eup %13372  ;;  %13392 = vpow2.f32 %v5508_v10  ;;  %5820 = vperm.xlu0 %13071, %v16172_v23   ;;  %v5573_v53 = vpop.xlane.xlu0 %5572 }
 0x93e   : > { %18053 = vst [vmem:[#allocation103_spill] sm:$0xff] %v16175_v40  ;;  %v16180_v63 = vpop.eup %13374  ;;  %13394 = vrcp.f32 %v5736_v12  ;;  %v5737_v48 = vadd.f32 %v5673_v3, %v5573_v53  ;;  %v5675_v19 = vrot.slane %v16175_v40, 4  ;;  %v5461_v12 = vsub.f32 %v18060_v31, %v5397_v11 }
 0x93f   : > { %18056 = vst [vmem:[#allocation49_spill] sm:$0xff] %v16180_v63  ;;  %v16183_v49 = vpop.eup %13376  ;;  %13396 = vpow2.f32 %v5510_v28  ;;  %v5576_v13 = vpop.xlane.xlu1 %5575  ;;  %5825 = vperm.xlu1 %13070, %v16180_v63   ;;  %v5516_v3 = vmul.f32 1.442695, %v5460_v58 }
 0x940   : > { %18057 = vst [vmem:[#allocation104_spill] sm:$0xff] %v16183_v49  ;;  %v16186_v10 = vpop.eup %13378  ;;  %13398 = vrcp.f32 %v5737_v48  ;;  %v5738_v34 = vadd.f32 %v5674_v22, %v5576_v13  ;;  %v5676_v9 = vrot.slane %v16183_v49, 4  ;;  %v5518_v22 = vmul.f32 1.442695, %v5461_v12 }
 0x941   : > { %18058 = vst [vmem:[#allocation50_spill] sm:$0xff] %v16186_v10  ;;  %v16189_v0 = vpop.eup %13380  ;;  %13400 = vpow2.f32 %v5512_v46  ;;  %5830 = vperm.xlu0 %13071, %v16186_v10   ;;  %v5579_v53 = vpop.xlane.xlu0 %5578 }
 0x942   : > { %18059 = vst [vmem:[#allocation105_spill] sm:$0xff] %v16189_v0  ;;  %v16193_v28 = vpop.eup %13382  ;;  %13402 = vrcp.f32 %v5738_v34  ;;  %v5739_v41 = vadd.f32 %v5675_v19, %v5579_v53  ;;  %v5677_v46 = vrot.slane %v16189_v0, 4 }
 0x943   : > { %18061 = vst [vmem:[#allocation41_spill] sm:$0xff] %v16193_v28  ;;  %v16196_v63 = vpop.eup %13384  ;;  %13404 = vpow2.f32 %v5514_v51  ;;  %v5582_v13 = vpop.xlane.xlu1 %5581  ;;  %5835 = vperm.xlu1 %13070, %v16193_v28  }
 0x944   : > { %18062 = vst [vmem:[#allocation106_spill] sm:$0xff] %v16196_v63  ;;  %v16199_v48 = vpop.eup %13386  ;;  %13406 = vrcp.f32 %v5739_v41  ;;  %v5740_v11 = vadd.f32 %v5676_v9, %v5582_v13  ;;  %v5678_v31 = vrot.slane %v16196_v63, 4 }
 0x945   : > { %18063 = vst [vmem:[#allocation51_spill] sm:$0xff] %v16199_v48  ;;  %v16202_v58 = vpop.eup %13388  ;;  %13408 = vpow2.f32 %v5516_v3  ;;  %5840 = vperm.xlu0 %13071, %v16199_v48   ;;  %v5585_v34 = vpop.xlane.xlu0 %5584  ;;  %v18094_v48 = vld [vmem:[#allocation166_spill] sm:$0xff] }
 0x946   : > { %18064 = vst [vmem:[#allocation43_spill] sm:$0xff] %v16202_v58  ;;  %v16205_v19 = vpop.eup %13390  ;;  %13410 = vrcp.f32 %v5740_v11  ;;  %v5741_v51 = vadd.f32 %v5677_v46, %v5585_v34  ;;  %v5679_v12 = vrot.slane %v16202_v58, 4 }
 0x947   : > { %18065 = vst [vmem:[#allocation42_spill] sm:$0xff] %v16205_v19  ;;  %v16208_v53 = vpop.eup %13392  ;;  %v5588_v49 = vpop.xlane.xlu1 %5587  ;;  %5845 = vperm.xlu1 %13070, %v16205_v19  }
 0x948   : > { %18066 = vst [vmem:[#allocation44_spill] sm:$0xff] %v16208_v53  ;;  %v16211_v9 = vpop.eup %13394  ;;  %13412 = vrcp.f32 %v5741_v51  ;;  %v5742_v41 = vadd.f32 %v5678_v31, %v5588_v49  ;;  %v5680_v34 = vrot.slane %v16208_v53, 4 }
 0x949   : > { %18067 = vst [vmem:[#allocation52_spill] sm:$0xff] %v16211_v9  ;;  %v16214_v3 = vpop.eup %13396  ;;  %13414 = vpow2.f32 %v5518_v22  ;;  %5850 = vperm.xlu0 %13071, %v16211_v9   ;;  %v5591_v13 = vpop.xlane.xlu0 %5590  ;;  %v18093_v9 = vld [vmem:[#allocation18_spill] sm:$0xff] }
 0x94a   : > { %18068 = vst [vmem:[#allocation112_spill] sm:$0xff] %v16214_v3  ;;  %v16217_v11 = vpop.eup %13398  ;;  %13416 = vrcp.f32 %v5742_v41  ;;  %v5743_v46 = vadd.f32 %v5679_v12, %v5591_v13  ;;  %v5681_v22 = vrot.slane %v16214_v3, 4 }
 0x94b   : > { %18069 = vst [vmem:[#allocation45_spill] sm:$0xff] %v16217_v11  ;;  %v16220_v63 = vpop.eup %13400  ;;  %v5594_v0 = vpop.xlane.xlu1 %5593  ;;  %5855 = vperm.xlu1 %13070, %v16217_v11  }
 0x94c   : > { %18070 = vst [vmem:[#allocation113_spill] sm:$0xff] %v16220_v63  ;;  %v16223_v49 = vpop.eup %13402  ;;  %13418 = vrcp.f32 %v5743_v46  ;;  %v5744_v51 = vadd.f32 %v5680_v34, %v5594_v0  ;;  %v5682_v12 = vrot.slane %v16220_v63, 4 }
 0x94d   : > { %18071 = vst [vmem:[#allocation114_spill] sm:$0xff] %v16223_v49  ;;  %v16225_v31 = vpop.eup %13404  ;;  %5860 = vperm.xlu0 %13071, %v16223_v49  }
 0x94e   : > { %18072 = vst [vmem:[#allocation21_spill] sm:$0xff] %v16225_v31  ;;  %v16229_v58 = vpop.eup %13406  ;;  %13420 = vrcp.f32 %v5744_v51  ;;  %v5597_v41 = vpop.xlane.xlu0 %5596  ;;  %v5683_v51 = vrot.slane %v16225_v31, 4 }
 0x94f   : > { %18073 = vst [vmem:[#allocation92_spill] sm:$0xff] %v16229_v58  ;;  %v16232_v13 = vpop.eup %13408  ;;  %v5745_v53 = vadd.f32 %v5681_v22, %v5597_v41  ;;  %v5600_v40 = vpop.xlane.xlu1 %5599  ;;  %5865 = vperm.xlu1 %13070, %v16229_v58  }
 0x950   : > { %18074 = vst [vmem:[#allocation66_spill] sm:$0xff] %v16232_v13  ;;  %v16235_v46 = vpop.eup %13410  ;;  %v5746_v0 = vadd.f32 %v5682_v12, %v5600_v40  ;;  %v5684_v3 = vrot.slane %v16232_v13, 4 }
 0x951   : > { %18075 = vst [vmem:[#allocation93_spill] sm:$0xff] %v16235_v46  ;;  %13422 = vrcp.f32 %v5745_v53  ;;  %5870 = vperm.xlu0 %13071, %v16235_v46  }
 0x952   : > { %v16238_v34 = vpop.eup %13412  ;;  %13424 = vrcp.f32 %v5746_v0 }
 0x953   : > { %18076 = vst [vmem:[#allocation68_spill] sm:$0xff] %v16238_v34  ;;  %v16242_v63 = vpop.eup %13414  ;;  %v5603_v49 = vpop.xlane.xlu0 %5602  ;;  %5875 = vperm.xlu1 %13070, %v16238_v34  }
 0x954   : > { %18077 = vst [vmem:[#allocation94_spill] sm:$0xff] %v16242_v63  ;;  %v5606_v22 = vpop.xlane.xlu1 %5605  ;;  %v16245_v41 = vpop.eup %13416  ;;  %v5747_v58 = vadd.f32 %v5683_v51, %v5603_v49  ;;  %v5685_v12 = vrot.slane %v16242_v63, 4  ;;  %v18086_v51 = vld [vmem:[#allocation161_spill] sm:$0xff] }
 0x955   : > { %18078 = vst [vmem:[#allocation69_spill] sm:$0xff] %v16245_v41  ;;  %v5748_v40 = vadd.f32 %v5684_v3, %v5606_v22  ;;  %5880 = vperm.xlu0 %13071, %v16245_v41   ;;  %v18087_v22 = vld [vmem:[#allocation163_spill] sm:$0xff] }
 0x956   : > { %v16248_v53 = vpop.eup %13418  ;;  %13426 = vrcp.f32 %v5747_v58  ;;  %v18091_v41 = vld [vmem:[#allocation19_spill] sm:$0xff] }
 0x957   : > { %18079 = vst [vmem:[#allocation71_spill] sm:$0xff] %v16248_v53  ;;  %13428 = vrcp.f32 %v5748_v40  ;;  %5885 = vperm.xlu1 %13070, %v16248_v53   ;;  %v5399_v40 = vrot.slane %v18087_v22, 4  ;;  %v18096_v22 = vld [vmem:[#allocation167_spill] sm:$0xff] }
 0x958   : > { %v16252_v0 = vpop.eup %13420  ;;  %v5609_v13 = vpop.xlane.xlu0 %5608  ;;  %v5403_v23 = vrot.slane %v18096_v22, 4 }
 0x959   : > { %18080 = vst [vmem:[#allocation22_spill] sm:$0xff] %v16252_v0  ;;  %v5749_v31 = vadd.f32 %v5685_v12, %v5609_v13  ;;  %5890 = vperm.xlu0 %13071, %v16252_v0   ;;  %v18090_v0 = vld [vmem:[#allocation164_spill] sm:$0xff]  ;;  %v5463_v46 = vsub.f32 %v18091_v41, %v5399_v40 }
 0x95a   : > { %v5400_v53 = vrot.slane %v18090_v0, 4  ;;  %v18098_v0 = vld [vmem:[#allocation35_spill] sm:$0xff] }
 0x95b   : > { %v16255_v34 = vpop.eup %13422  ;;  %13430 = vrcp.f32 %v5749_v31  ;;  %v5398_v31 = vrot.slane %v18086_v51, 4  ;;  %v5522_v28 = vmul.f32 1.442695, %v5463_v46  ;;  %v18095_v51 = vld [vmem:[#allocation98_spill] sm:$0xff] }
 0x95c   : > { %18081 = vst [vmem:[#allocation4_spill] sm:$0xff] %v16255_v34  ;;  %v16257_v3 = vpop.eup %13424  ;;  %5895 = vperm.xlu1 %13070, %v16255_v34   ;;  %v5464_v19 = vsub.f32 %v18093_v9, %v5400_v53 }
 0x95d   : > { %18082 = vst [vmem:[#allocation79_spill] sm:$0xff] %v16257_v3  ;;  %5900 = vperm.xlu0 %13071, %v16257_v3   ;;  %v18089_v3 = vld [vmem:[#allocation34_spill] sm:$0xff] }
 0x95e   : > { %v5462_v34 = vsub.f32 %v18089_v3, %v5398_v31  ;;  %v5524_v3 = vmul.f32 1.442695, %v5464_v19 }
 0x960   : > { %v16261_v58 = vpop.eup %13426 }
 0x961   : > { %18083 = vst [vmem:[#allocation5_spill] sm:$0xff] %v16261_v58  ;;  %v16263_v49 = vpop.eup %13428  ;;  %5905 = vperm.xlu1 %13070, %v16261_v58   ;;  %v18092_v58 = vld [vmem:[#allocation165_spill] sm:$0xff] }
 0x962   : > { %18084 = vst [vmem:[#allocation73_spill] sm:$0xff] %v16263_v49  ;;  %5910 = vperm.xlu0 %13071, %v16263_v49   ;;  %v5401_v11 = vrot.slane %v18092_v58, 4  ;;  %v5520_v49 = vmul.f32 1.442695, %v5462_v34  ;;  %v18099_v58 = vld [vmem:[#allocation40_spill] sm:$0xff] }
 0x963   : > { %v5467_v34 = vsub.f32 %v18099_v58, %v5403_v23 }
 0x964   : > { %v5465_v10 = vsub.f32 %v18095_v51, %v5401_v11  ;;  %13432 = vpow2.f32 %v5520_v49 }
 0x965   : > { %v16267_v13 = vpop.eup %13430  ;;  %13434 = vpow2.f32 %v5522_v28 }
 0x966   : > { %18085 = vst [vmem:[#allocation6_spill] sm:$0xff] %v16267_v13  ;;  %5915 = vperm.xlu1 %13070, %v16267_v13   ;;  %v5402_v13 = vrot.slane %v18094_v48, 4  ;;  %v5526_v41 = vmul.f32 1.442695, %v5465_v10  ;;  %13436 = vpow2.f32 %v5524_v3  ;;  %v5530_v48 = vmul.f32 1.442695, %v5467_v34 }
 0x968   : > { %v5466_v31 = vsub.f32 %v18098_v0, %v5402_v13  ;;  %13438 = vpow2.f32 %v5526_v41 }
 0x96a   : > { %v5528_v9 = vmul.f32 1.442695, %v5466_v31 }
 0x96c   : > { %13440 = vpow2.f32 %v5528_v9 }
 0x96d   : > { %13442 = vpow2.f32 %v5530_v48 }
 0x96e   : > { %v16288_v53 = vpop.eup %13432 }
 0x96f   : > { %v16292_v19 = vpop.eup %13434  ;;  %v5686_v10 = vrot.slane %v16288_v53, 4 }
 0x970   : > { %v16295_v28 = vpop.eup %13436  ;;  %v5687_v13 = vrot.slane %v16292_v19, 4 }
 0x971   : > { %v16272_v12 = vpop.f32.mrb[32].mxu0  ;;  %v5688_v34 = vrot.slane %v16295_v28, 4 }
 0x972   : > { %18088 = vst [vmem:[#allocation85_spill] sm:$0xff] %v16272_v12  ;;  %v12678_v63 = vpop.f32.mrb[33].mxu0  ;;  %v16300_v22 = vpop.eup %13438 }
 0x973   : > { %18103 = vst [vmem:[#allocation72_spill] sm:$0xff] %v16300_v22 }
 0x976   : > { %v16305_v9 = vpop.eup %13440 }
 0x977   : > { %18105 = vst [vmem:[#allocation8_spill] sm:$0xff] %v16305_v9 }
 0x979   : > { %v16282_v12 = vpop.f32.mrb[34].mxu0 }
 0x97a   : > { %18097 = vst [vmem:[#allocation39_spill] sm:$0xff] %v16282_v12  ;;  %v12688_v63 = vpop.f32.mrb[35].mxu0 }
 0x982   : > { %v16286_v46 = vpop.f32.mrb[32].mxu1 }
 0x983   : > { %18100 = vst [vmem:[#allocation77_spill] sm:$0xff] %v16286_v46  ;;  %v12683_v11 = vpop.f32.mrb[33].mxu1 }
 0x984   : > { %v5689_v11 = vrot.slane %v16300_v22, 4 }
 0x986   : > { %v16290_v40 = vpop.f32.mrb[34].mxu1 }
 0x987   : > { %18101 = vst [vmem:[#allocation7_spill] sm:$0xff] %v16290_v40  ;;  %v12693_v49 = vpop.f32.mrb[35].mxu1 }
 0x98a   : > { %v5612_v23 = vpop.xlane.xlu1 %5611  ;;  %v16298_v51 = vpop.f32.mrb[36].mxu0 }
 0x98b   : > { %18102 = vst [vmem:[#allocation89_spill] sm:$0xff] %v16298_v51  ;;  %v5750_v63 = vadd.f32 %v5686_v10, %v5612_v23  ;;  %v5615_v3 = vpop.xlane.xlu0 %5614  ;;  %v16302_v0 = vpop.f32.mrb[36].mxu1 }
 0x98c   : > { %18104 = vst [vmem:[#allocation83_spill] sm:$0xff] %v16302_v0  ;;  %v5751_v31 = vadd.f32 %v5687_v13, %v5615_v3  ;;  %v12698_v41 = vpop.f32.mrb[37].mxu0  ;;  %v12703_v58 = vpop.f32.mrb[37].mxu1 }
 0x98d   : > { %13444 = vrcp.f32 %v5750_v63  ;;  %v16310_v51 = vpop.eup %13442  ;;  %v5690_v63 = vrot.slane %v16305_v9, 4 }
 0x98e   : > { %13446 = vrcp.f32 %v5751_v31  ;;  %v5618_v48 = vpop.xlane.xlu1 %5617  ;;  %v16308_v49 = vpop.f32.mrb[38].mxu0  ;;  %18107 = vst [vmem:[#allocation74_spill] sm:$0xff] %v16310_v51  ;;  %v5691_v31 = vrot.slane %v16310_v51, 4 }
 0x98f   : > { %18106 = vst [vmem:[#allocation118_spill] sm:$0xff] %v16308_v49  ;;  %v5752_v10 = vadd.f32 %v5688_v34, %v5618_v48  ;;  %v5621_v23 = vpop.xlane.xlu0 %5620  ;;  %v16312_v40 = vpop.f32.mrb[38].mxu1 }
 0x990   : > { %18108 = vst [vmem:[#allocation115_spill] sm:$0xff] %v16312_v40  ;;  %v5753_v13 = vadd.f32 %v5689_v11, %v5621_v23  ;;  %v12708_v3 = vpop.f32.mrb[39].mxu0  ;;  %v12713_v41 = vpop.f32.mrb[39].mxu1  ;;  %v18121_v40 = vld [vmem:[#allocation87_spill] sm:$0xff] }
 0x991   : > { %13448 = vrcp.f32 %v5752_v10 }
 0x992   : > { %13450 = vrcp.f32 %v5753_v13  ;;  %v5624_v58 = vpop.xlane.xlu1 %5623 }
 0x993   : > { %v5754_v0 = vadd.f32 %v5690_v63, %v5624_v58  ;;  %v5627_v12 = vpop.xlane.xlu0 %5626  ;;  %v16316_v46 = vpop.f32.mrb[40].mxu0 }
 0x994   : > { %18109 = vst [vmem:[#allocation9_spill] sm:$0xff] %v16316_v46  ;;  %v5755_v49 = vadd.f32 %v5691_v31, %v5627_v12  ;;  %v16318_v22 = vpop.f32.mrb[40].mxu1  ;;  %v12718_v34 = vpop.f32.mrb[41].mxu0 }
 0x995   : > { %18110 = vst [vmem:[#allocation121_spill] sm:$0xff] %v16318_v22  ;;  %13452 = vrcp.f32 %v5754_v0  ;;  %v12723_v48 = vpop.f32.mrb[41].mxu1 }
 0x996   : > { %13454 = vrcp.f32 %v5755_v49 }
 0x997   : > { %v16320_v11 = vpop.eup %13444 }
 0x998   : > { %v16322_v10 = vpop.eup %13446  ;;  %v16324_v23 = vpop.f32.mrb[42].mxu0  ;;  %5920 = vperm.xlu0 %13071, %v16320_v11  }
 0x999   : > { %18111 = vst [vmem:[#allocation76_spill] sm:$0xff] %v16324_v23  ;;  %v16326_v13 = vpop.f32.mrb[42].mxu1  ;;  %v12728_v3 = vpop.f32.mrb[43].mxu0  ;;  %5925 = vperm.xlu1 %13070, %v16322_v10   ;;  %v18117_v23 = vld [vmem:[#allocation75_spill] sm:$0xff] }
 0x99a   : > { %18112 = vst [vmem:[#allocation117_spill] sm:$0xff] %v16326_v13  ;;  %v12733_v41 = vpop.f32.mrb[43].mxu1 }
 0x99b   : > { %v16330_v12 = vpop.eup %13448 }
 0x99c   : > { %v16332_v63 = vpop.eup %13450  ;;  %5930 = vperm.xlu0 %13071, %v16330_v12  }
 0x99d   : > { %v16335_v0 = vpop.f32.mrb[44].mxu0  ;;  %v16337_v49 = vpop.f32.mrb[44].mxu1  ;;  %5935 = vperm.xlu1 %13070, %v16332_v63  }
 0x99e   : > { %18113 = vst [vmem:[#allocation10_spill] sm:$0xff] %v16335_v0  ;;  %18114 = vst [vmem:[#allocation124_spill] sm:$0xff] %v16337_v49  ;;  %v12738_v58 = vpop.f32.mrb[45].mxu0  ;;  %v12743_v31 = vpop.f32.mrb[45].mxu1 }
 0x99f   : > { %v16340_v34 = vpop.eup %13452  ;;  %v18119_v58 = vld [vmem:[#allocation27_spill] sm:$0xff] }
 0x9a0   : > { %v16342_v48 = vpop.eup %13454  ;;  %5940 = vperm.xlu0 %13071, %v16340_v34  }
 0x9a1   : > { %v16345_v3 = vpop.f32.mrb[46].mxu0  ;;  %5945 = vperm.xlu1 %13070, %v16342_v48  }
 0x9a2   : > { %18115 = vst [vmem:[#allocation78_spill] sm:$0xff] %v16345_v3  ;;  %v16348_v41 = vpop.f32.mrb[46].mxu1  ;;  %v12748_v13 = vpop.f32.mrb[47].mxu0  ;;  %v18123_v3 = vld [vmem:[#allocation81_spill] sm:$0xff] }
 0x9a3   : > { %18116 = vst [vmem:[#allocation120_spill] sm:$0xff] %v16348_v41  ;;  %v12753_v0 = vpop.f32.mrb[47].mxu1  ;;  %v18125_v41 = vld [vmem:[#allocation29_spill] sm:$0xff] }
 0x9a4   : > { %6078 = vperm.xlu0 %13071, %v18117_v23  }
 0x9a5   : > { %v16351_v49 = vpop.f32.mrb[48].mxu0  ;;  %6083 = vperm.xlu1 %13070, %v18119_v58  }
 0x9a6   : > { %18118 = vst [vmem:[#allocation11_spill] sm:$0xff] %v16351_v49  ;;  %v16354_v31 = vpop.f32.mrb[48].mxu1  ;;  %v12758_v22 = vpop.f32.mrb[49].mxu0  ;;  %v18126_v49 = vld [vmem:[#allocation116_spill] sm:$0xff] }
 0x9a7   : > { %18120 = vst [vmem:[#allocation127_spill] sm:$0xff] %v16354_v31  ;;  %v12763_v46 = vpop.f32.mrb[49].mxu1 }
 0x9a8   : > { %6088 = vperm.xlu0 %13071, %v18121_v40  }
 0x9a9   : > { %v16357_v51 = vpop.f32.mrb[50].mxu0  ;;  %6093 = vperm.xlu1 %13070, %v18123_v3  }
 0x9aa   : > { %18122 = vst [vmem:[#allocation80_spill] sm:$0xff] %v16357_v51  ;;  %v16360_v9 = vpop.f32.mrb[50].mxu1  ;;  %v12768_v13 = vpop.f32.mrb[51].mxu0  ;;  %v18127_v51 = vld [vmem:[#allocation30_spill] sm:$0xff] }
 0x9ab   : > { %18124 = vst [vmem:[#allocation123_spill] sm:$0xff] %v16360_v9  ;;  %v12773_v0 = vpop.f32.mrb[51].mxu1  ;;  %v18128_v9 = vld [vmem:[#allocation119_spill] sm:$0xff] }
 0x9ac   : > { %6098 = vperm.xlu0 %13071, %v18125_v41  }
 0x9ad   : > { %v16363_v23 = vpop.f32.mrb[52].mxu0  ;;  %6103 = vperm.xlu1 %13070, %v18126_v49  }
 0x9ae   : > { %v16366_v58 = vpop.f32.mrb[52].mxu1  ;;  %v12778_v22 = vpop.f32.mrb[53].mxu0 }
 0x9af   : > { %v12783_v46 = vpop.f32.mrb[53].mxu1  ;;  %v5791_v31 = vpop.permute.xlu1 %5790 }
 0x9b0   : > { %v5948_v40 = vmul.f32 %v15666_v38, %v5791_v31  ;;  %6108 = vperm.xlu0 %13071, %v18127_v51   ;;  %v18129_v31 = vld [vmem:[#allocation31_spill] sm:$0xff]  ;;  %v18130_v46 = vld [vmem:[#allocation122_spill] sm:$0xff] }
 0x9b1   : > { %v16370_v3 = vpop.f32.mrb[54].mxu0  ;;  %6113 = vperm.xlu1 %13070, %v18128_v9  }
 0x9b2   : > { %v16373_v13 = vpop.f32.mrb[54].mxu1  ;;  %v12788_v41 = vpop.f32.mrb[55].mxu0  ;;  %12837 = vmatmul.mubr.msk.f32.vlgmr.msra.gmra.mrb[64].mxu0 %vm6270_vm1, %v5948_v40 }
 0x9b3   : > { %v12793_v0 = vpop.f32.mrb[55].mxu1  ;;  %12845 = vmatpush3.msk.msra.mxu0 %vm6274_vm0, %v15480_v33  ;;  %v5801_v49 = vpop.permute.xlu1 %5800  ;;  %12846 = vmatprep.mubr.msk.f32.mxu0 %vm13674_vm15, %v17922_v35 }
 0x9b4   : > { %v5950_v38 = vmul.f32 %v15674_v42, %v5801_v49  ;;  %v5796_v51 = vpop.permute.xlu0 %5795  ;;  %6118 = vperm.xlu0 %13071, %v18129_v31   ;;  %12854 = vmatprep.subr.mxu0 %v17922_v35 }
 0x9b5   : > { %v16383_v9 = vpop.f32.mrb[56].mxu0  ;;  %v5949_v22 = vmul.f32 %v15677_v15, %v5796_v51  ;;  %6123 = vperm.xlu1 %13070, %v18130_v46   ;;  %v18131_v51 = vld [vmem:[#allocation32_spill] sm:$0xff] }
 0x9b6   : > { %v16387_v40 = vpop.f32.mrb[56].mxu1  ;;  %v12798_v41 = vpop.f32.mrb[57].mxu0  ;;  %12847 = vmatmul.mubr.msk.f32.vlgmr.msra.gmra.mrb[66].mxu0 %vm6270_vm1, %v5950_v38  ;;  %v18132_v38 = vld [vmem:[#allocation125_spill] sm:$0xff] }
 0x9b7   : > { %v12803_v0 = vpop.f32.mrb[57].mxu1  ;;  %12855 = vmatpush3.msk.msra.mxu0 %vm6274_vm0, %v15507_v25  ;;  %v5806_v42 = vpop.permute.xlu1 %5805  ;;  %12842 = vmatmul.mubr.msk.f32.vlgmr.msra.gmra.mrb[64].mxu1 %vm6270_vm1, %v5949_v22 }
 0x9b8   : > { %v5951_v49 = vmul.f32 %v15684_v32, %v5806_v42  ;;  %12850 = vmatpush3.msk.msra.mxu1 %vm6274_vm0, %v15476_v14  ;;  %v5811_v15 = vpop.permute.xlu0 %5810  ;;  %6128 = vperm.xlu0 %13071, %v18131_v51  }
 0x9b9   : > { %v16397_v31 = vpop.f32.mrb[58].mxu0  ;;  %v5952_v46 = vmul.f32 %v15689_v56, %v5811_v15  ;;  %6133 = vperm.xlu1 %13070, %v18132_v38   ;;  %12851 = vmatprep.mubr.msk.f32.mxu1 %vm13674_vm15, %v17922_v35  ;;  %v18135_v38 = vld [vmem:[#allocation33_spill] sm:$0xff] }
 0x9ba   : > { %v16403_v41 = vpop.f32.mrb[58].mxu1  ;;  %v12808_v22 = vpop.f32.mrb[59].mxu0  ;;  %12856 = vmatprep.mubr.msk.f32.mxu0 %vm13674_vm15, %v17922_v35  ;;  %12859 = vmatprep.subr.mxu1 %v17922_v35 }
 0x9bb   : > { %18133 = vst [vmem:[#allocation12_spill] sm:$0xff] %v16403_v41  ;;  %v12813_v32 = vpop.f32.mrb[59].mxu1  ;;  %12864 = vmatprep.subr.mxu0 %v17922_v35  ;;  %v5816_v0 = vpop.permute.xlu1 %5815  ;;  %12852 = vmatmul.mubr.msk.f32.vlgmr.msra.gmra.mrb[66].mxu1 %vm6270_vm1, %v5951_v49  ;;  %v18219_v41 = vld [vmem:[#allocation21_spill] sm:$0xff] }
 0x9bc   : > { %v5953_v56 = vmul.f32 %v15696_v20, %v5816_v0  ;;  %12857 = vmatmul.mubr.msk.f32.vlgmr.msra.gmra.mrb[68].mxu0 %vm6270_vm1, %v5952_v46  ;;  %12860 = vmatpush3.msk.msra.mxu1 %vm6274_vm0, %v15503_v17  ;;  %v5821_v42 = vpop.permute.xlu0 %5820  ;;  %v18137_v32 = vld [vmem:[#allocation128_spill] sm:$0xff] }
 0x9bd   : > { %v16414_v15 = vpop.f32.mrb[60].mxu0  ;;  %12865 = vmatpush3.msk.msra.mxu0 %vm6274_vm0, %v15516_v39  ;;  %v5954_v51 = vmul.f32 %v15702_v21, %v5821_v42  ;;  %6138 = vperm.xlu0 %13071, %v18135_v38  }
 0x9be   : > { %18134 = vst [vmem:[#allocation130_spill] sm:$0xff] %v16414_v15  ;;  %v16420_v22 = vpop.f32.mrb[60].mxu1  ;;  %v12818_v49 = vpop.f32.mrb[61].mxu0  ;;  %6143 = vperm.xlu1 %13070, %v18137_v32   ;;  %12861 = vmatprep.mubr.msk.f32.mxu1 %vm13674_vm15, %v17922_v35  ;;  %v18189_v15 = vld [vmem:[#allocation47_spill] sm:$0xff] }
 0x9bf   : > { %18136 = vst [vmem:[#allocation82_spill] sm:$0xff] %v16420_v22  ;;  %v12823_v20 = vpop.f32.mrb[61].mxu1  ;;  %12866 = vmatprep.mubr.msk.f32.mxu0 %vm13674_vm15, %v17922_v35  ;;  %12869 = vmatprep.subr.mxu1 %v17922_v35  ;;  %v5826_v46 = vpop.permute.xlu1 %5825  ;;  %v18141_v22 = vld [vmem:[#allocation131_spill] sm:$0xff] }
 0x9c0   : > { %12874 = vmatprep.subr.mxu0 %v17922_v35  ;;  %12862 = vmatmul.mubr.msk.f32.vlgmr.msra.gmra.mrb[68].mxu1 %vm6270_vm1, %v5953_v56  ;;  %v5831_v21 = vpop.permute.xlu0 %5830  ;;  %v5955_v0 = vmul.f32 %v15714_v61, %v5826_v46  ;;  %v18140_v20 = vld [vmem:[#allocation97_spill] sm:$0xff]  ;;  %v18142_v46 = vld [vmem:[#allocation99_spill] sm:$0xff] }
 0x9c1   : > { %v16431_v42 = vpop.f32.mrb[62].mxu0  ;;  %12867 = vmatmul.mubr.msk.f32.vlgmr.msra.gmra.mrb[70].mxu0 %vm6270_vm1, %v5954_v51  ;;  %12870 = vmatpush3.msk.msra.mxu1 %vm6274_vm0, %v15511_v62  ;;  %v5956_v49 = vmul.f32 %v15720_v26, %v5831_v21 }
 0x9c2   : > { %18138 = vst [vmem:[#allocation126_spill] sm:$0xff] %v16431_v42  ;;  %v16436_v38 = vpop.f32.mrb[62].mxu1  ;;  %12875 = vmatpush3.msk.msra.mxu0 %vm6274_vm0, %v15527_v18  ;;  %v12828_v32 = vpop.f32.mrb[63].mxu0  ;;  %6148 = vperm.xlu0 %13071, %v18140_v20   ;;  %v18144_v20 = vld [vmem:[#allocation20_spill] sm:$0xff] }
 0x9c3   : > { %18139 = vst [vmem:[#allocation13_spill] sm:$0xff] %v16436_v38  ;;  %v12833_v56 = vpop.f32.mrb[63].mxu1  ;;  %6153 = vperm.xlu1 %13070, %v18141_v22   ;;  %12871 = vmatprep.mubr.msk.f32.mxu1 %vm13674_vm15, %v17922_v35  ;;  %v5836_v61 = vpop.permute.xlu1 %5835  ;;  %v18143_v32 = vld [vmem:[#allocation133_spill] sm:$0xff] }
 0x9c4   : > { %12876 = vmatprep.mubr.msk.f32.mxu0 %vm13674_vm15, %v17922_v35  ;;  %12879 = vmatprep.subr.mxu1 %v17922_v35  ;;  %v5841_v51 = vpop.permute.xlu0 %5840  ;;  %v5957_v26 = vmul.f32 %v15727_v27, %v5836_v61  ;;  %v18145_v61 = vld [vmem:[#allocation135_spill] sm:$0xff] }
 0x9c5   : > { %12884 = vmatprep.subr.mxu0 %v17922_v35  ;;  %12872 = vmatmul.mubr.msk.f32.vlgmr.msra.gmra.mrb[70].mxu1 %vm6270_vm1, %v5955_v0  ;;  %v5958_v22 = vmul.f32 %v15733_v59, %v5841_v51 }
 0x9c6   : > { %12877 = vmatmul.mubr.msk.f32.vlgmr.msra.gmra.mrb[72].mxu0 %vm6270_vm1, %v5956_v49  ;;  %12880 = vmatpush3.msk.msra.mxu1 %vm6274_vm0, %v15522_v24 }
 0x9c7   : > { %12885 = vmatpush3.msk.msra.mxu0 %vm6274_vm0, %v15538_v6  ;;  %6158 = vperm.xlu0 %13071, %v18142_v46   ;;  %v5846_v21 = vpop.permute.xlu1 %5845  ;;  %v18147_v46 = vld [vmem:[#allocation137_spill] sm:$0xff] }
 0x9c8   : > { %6163 = vperm.xlu1 %13070, %v18143_v32   ;;  %12881 = vmatprep.mubr.msk.f32.mxu1 %vm13674_vm15, %v17922_v35  ;;  %v5851_v0 = vpop.permute.xlu0 %5850  ;;  %v5959_v27 = vmul.f32 %v15745_v30, %v5846_v21 }
 0x9c9   : > { %12886 = vmatprep.mubr.msk.f32.mxu0 %vm13674_vm15, %v17922_v35  ;;  %12889 = vmatprep.subr.mxu1 %v17922_v35  ;;  %v5960_v49 = vmul.f32 %v15751_v44, %v5851_v0  ;;  %v18148_v0 = vld [vmem:[#allocation141_spill] sm:$0xff] }
 0x9ca   : > { %12894 = vmatprep.subr.mxu0 %v17922_v35  ;;  %12882 = vmatmul.mubr.msk.f32.vlgmr.msra.gmra.mrb[72].mxu1 %vm6270_vm1, %v5957_v26 }
 0x9cb   : > { %12887 = vmatmul.mubr.msk.f32.vlgmr.msra.gmra.mrb[74].mxu0 %vm6270_vm1, %v5958_v22  ;;  %12890 = vmatpush3.msk.msra.mxu1 %vm6274_vm0, %v15533_v55  ;;  %v5856_v59 = vpop.permute.xlu1 %5855  ;;  %v18146_v22 = vld [vmem:[#allocation139_spill] sm:$0xff] }
 0x9cc   : > { %12895 = vmatpush3.msk.msra.mxu0 %vm6274_vm0, %v15547_v29  ;;  %6168 = vperm.xlu0 %13071, %v18144_v20   ;;  %v5861_v56 = vpop.permute.xlu0 %5860  ;;  %v5961_v44 = vmul.f32 %v15759_v60, %v5856_v59 }
 0x9cd   : > { %6173 = vperm.xlu1 %13070, %v18145_v61   ;;  %12891 = vmatprep.mubr.msk.f32.mxu1 %vm13674_vm15, %v17922_v35  ;;  %v5962_v26 = vmul.f32 %v15766_v43, %v5861_v56  ;;  %v18151_v56 = vld [vmem:[#allocation150_spill] sm:$0xff] }
 0x9ce   : > { %12896 = vmatprep.mubr.msk.f32.mxu0 %vm13674_vm15, %v17922_v35  ;;  %12899 = vmatprep.subr.mxu1 %v17922_v35  ;;  %v18152_v61 = vld [vmem:[#allocation142_spill] sm:$0xff] }
 0x9cf   : > { %12904 = vmatprep.subr.mxu0 %v17922_v35  ;;  %12892 = vmatmul.mubr.msk.f32.vlgmr.msra.gmra.mrb[74].mxu1 %vm6270_vm1, %v5959_v27  ;;  %v5866_v30 = vpop.permute.xlu1 %5865  ;;  %v18149_v27 = vld [vmem:[#allocation146_spill] sm:$0xff] }
 0x9d0   : > { %12897 = vmatmul.mubr.msk.f32.vlgmr.msra.gmra.mrb[76].mxu0 %vm6270_vm1, %v5960_v49  ;;  %12900 = vmatpush3.msk.msra.mxu1 %vm6274_vm0, %v15544_v45  ;;  %v5871_v51 = vpop.permute.xlu0 %5870  ;;  %v5963_v21 = vmul.f32 %v15773_v52, %v5866_v30  ;;  %v18150_v49 = vld [vmem:[#allocation144_spill] sm:$0xff]  ;;  %v18153_v30 = vld [vmem:[#allocation65_spill] sm:$0xff] }
 0x9d1   : > { %12905 = vmatpush3.msk.msra.mxu0 %vm6274_vm0, %v15560_v4  ;;  %6178 = vperm.xlu0 %13071, %v18146_v22   ;;  %v5964_v32 = vmul.f32 %v15785_v54, %v5871_v51  ;;  %v18154_v51 = vld [vmem:[#allocation148_spill] sm:$0xff] }
 0x9d2   : > { %6183 = vperm.xlu1 %13070, %v18147_v46   ;;  %12901 = vmatprep.mubr.msk.f32.mxu1 %vm13674_vm15, %v17922_v35 }
 0x9d3   : > { %12906 = vmatprep.mubr.msk.f32.mxu0 %vm13674_vm15, %v17922_v35  ;;  %12909 = vmatprep.subr.mxu1 %v17922_v35  ;;  %v5876_v60 = vpop.permute.xlu1 %5875 }
 0x9d4   : > { %12914 = vmatprep.subr.mxu0 %v17922_v35  ;;  %12902 = vmatmul.mubr.msk.f32.vlgmr.msra.gmra.mrb[76].mxu1 %vm6270_vm1, %v5961_v44  ;;  %v5881_v43 = vpop.permute.xlu0 %5880  ;;  %v5965_v59 = vmul.f32 %v15790_v8, %v5876_v60  ;;  %v18157_v60 = vld [vmem:[#allocation140_spill] sm:$0xff] }
 0x9d5   : > { %12907 = vmatmul.mubr.msk.f32.vlgmr.msra.gmra.mrb[78].mxu0 %vm6270_vm1, %v5962_v26  ;;  %12910 = vmatpush3.msk.msra.mxu1 %vm6274_vm0, %v15554_v50  ;;  %v5966_v54 = vmul.f32 %v15805_v47, %v5881_v43  ;;  %v18155_v26 = vld [vmem:[#allocation154_spill] sm:$0xff]  ;;  %v18158_v43 = vld [vmem:[#allocation145_spill] sm:$0xff] }
 0x9d6   : > { %12915 = vmatpush3.msk.msra.mxu0 %vm6274_vm0, %v15568_v2  ;;  %6188 = vperm.xlu0 %13071, %v18148_v0  }
 0x9d7   : > { %6193 = vperm.xlu1 %13070, %v18149_v27   ;;  %12911 = vmatprep.mubr.msk.f32.mxu1 %vm13674_vm15, %v17922_v35  ;;  %v5886_v52 = vpop.permute.xlu1 %5885  ;;  %v18160_v27 = vld [vmem:[#allocation152_spill] sm:$0xff] }
 0x9d8   : > { %12916 = vmatprep.mubr.msk.f32.mxu0 %vm13674_vm15, %v17922_v35  ;;  %12919 = vmatprep.subr.mxu1 %v17922_v35  ;;  %v5891_v20 = vpop.permute.xlu0 %5890  ;;  %v5967_v47 = vmul.f32 %v15811_v5, %v5886_v52  ;;  %v18156_v5 = vld [vmem:[#allocation70_spill] sm:$0xff]  ;;  %v18161_v52 = vld [vmem:[#allocation156_spill] sm:$0xff] }
 0x9d9   : > { %12924 = vmatprep.subr.mxu0 %v17922_v35  ;;  %12912 = vmatmul.mubr.msk.f32.vlgmr.msra.gmra.mrb[78].mxu1 %vm6270_vm1, %v5963_v21  ;;  %v5968_v44 = vmul.f32 %v18153_v30, %v5891_v20  ;;  %v18163_v20 = vld [vmem:[#allocation143_spill] sm:$0xff] }
 0x9da   : > { %12917 = vmatmul.mubr.msk.f32.vlgmr.msra.gmra.mrb[80].mxu0 %vm6270_vm1, %v5964_v32  ;;  %12920 = vmatpush3.msk.msra.mxu1 %vm6274_vm0, %v15564_v1  ;;  %v18159_v32 = vld [vmem:[#allocation53_spill] sm:$0xff] }
 0x9db   : > { %12925 = vmatpush3.msk.msra.mxu0 %vm6274_vm0, %v15574_v36  ;;  %6198 = vperm.xlu0 %13071, %v18150_v49   ;;  %v5896_v8 = vpop.permute.xlu1 %5895 }
 0x9dc   : > { %6203 = vperm.xlu1 %13070, %v18151_v56   ;;  %12921 = vmatprep.mubr.msk.f32.mxu1 %vm13674_vm15, %v17922_v35  ;;  %v5901_v22 = vpop.permute.xlu0 %5900  ;;  %v5969_v46 = vmul.f32 %v18156_v5, %v5896_v8  ;;  %v5980_v56 = vrot.slane %v16120_v16, 4  ;;  %v18164_v8 = vld [vmem:[#allocation149_spill] sm:$0xff]  ;;  %v18168_v5 = vld [vmem:[#allocation162_spill] sm:$0xff]  ;;  %v18169_v16 = vld [vmem:[#allocation55_spill] sm:$0xff] }
 0x9dd   : > { %12926 = vmatprep.mubr.msk.f32.mxu0 %vm13674_vm15, %v17922_v35  ;;  %12929 = vmatprep.subr.mxu1 %v17922_v35  ;;  %v5970_v0 = vmul.f32 %v18159_v32, %v5901_v22 }
 0x9de   : > { %12934 = vmatprep.subr.mxu0 %v17922_v35  ;;  %12922 = vmatmul.mubr.msk.f32.vlgmr.msra.gmra.mrb[80].mxu1 %vm6270_vm1, %v5965_v59 }
 0x9df   : > { %12927 = vmatmul.mubr.msk.f32.vlgmr.msra.gmra.mrb[82].mxu0 %vm6270_vm1, %v5966_v54  ;;  %12930 = vmatpush3.msk.msra.mxu1 %vm6274_vm0, %v15570_v57  ;;  %v18162_v54 = vld [vmem:[#allocation67_spill] sm:$0xff] }
 0x9e0   : > { %12935 = vmatpush3.msk.msra.mxu0 %vm6274_vm0, %v18152_v61  ;;  %6208 = vperm.xlu0 %13071, %v18154_v51   ;;  %v5906_v21 = vpop.permute.xlu1 %5905 }
 0x9e1   : > { %6213 = vperm.xlu1 %13070, %v18155_v26   ;;  %12931 = vmatprep.mubr.msk.f32.mxu1 %vm13674_vm15, %v17922_v35  ;;  %v5911_v59 = vpop.permute.xlu0 %5910  ;;  %v5971_v49 = vmul.f32 %v18162_v54, %v5906_v21  ;;  %v18167_v26 = vld [vmem:[#allocation108_spill] sm:$0xff]  ;;  %v18170_v21 = vld [vmem:[#allocation37_spill] sm:$0xff] }
 0x9e2   : > { %12936 = vmatprep.mubr.msk.f32.mxu0 %vm13674_vm15, %v17922_v35  ;;  %12939 = vmatprep.subr.mxu1 %v17922_v35  ;;  %v5981_v22 = vrot.slane %v18167_v26, 4  ;;  %v6044_v32 = vmul.f32 %v18170_v21, %v5980_v56  ;;  %v18177_v26 = vld [vmem:[#allocation151_spill] sm:$0xff] }
 0x9e3   : > { %12944 = vmatprep.subr.mxu0 %v17922_v35  ;;  %12932 = vmatmul.mubr.msk.f32.vlgmr.msra.gmra.mrb[82].mxu1 %vm6270_vm1, %v5967_v47  ;;  %v18165_v47 = vld [vmem:[#allocation54_spill] sm:$0xff]  ;;  %v18180_v21 = vld [vmem:[#allocation111_spill] sm:$0xff] }
 0x9e4   : > { %12937 = vmatmul.mubr.msk.f32.vlgmr.msra.gmra.mrb[84].mxu0 %vm6270_vm1, %v5968_v44  ;;  %12940 = vmatpush3.msk.msra.mxu1 %vm6274_vm0, %v18157_v60  ;;  %v5972_v30 = vmul.f32 %v18165_v47, %v5911_v59  ;;  %v18166_v44 = vld [vmem:[#allocation159_spill] sm:$0xff]  ;;  %v18173_v59 = vld [vmem:[#allocation90_spill] sm:$0xff]  ;;  %v5983_v47 = vrot.slane %v16149_v7, 4  ;;  %v18178_v7 = vld [vmem:[#allocation36_spill] sm:$0xff] }
 0x9e5   : > { %12945 = vmatpush3.msk.msra.mxu0 %vm6274_vm0, %v18158_v43  ;;  %6218 = vperm.xlu0 %13071, %v18160_v27   ;;  %v5916_v51 = vpop.permute.xlu1 %5915  ;;  %v6045_v54 = vmul.f32 %v18173_v59, %v5981_v22  ;;  %v18182_v59 = vld [vmem:[#allocation49_spill] sm:$0xff] }
 0x9e6   : > { %6223 = vperm.xlu1 %13070, %v18161_v52   ;;  %12941 = vmatprep.mubr.msk.f32.mxu1 %vm13674_vm15, %v17922_v35  ;;  %v18172_v52 = vld [vmem:[#allocation147_spill] sm:$0xff]  ;;  %v6047_v22 = vmul.f32 %v18178_v7, %v5983_v47 }
 0x9e7   : > { %12946 = vmatprep.mubr.msk.f32.mxu0 %vm13674_vm15, %v17922_v35  ;;  %12949 = vmatprep.subr.mxu1 %v17922_v35 }
 0x9e8   : > { %12954 = vmatprep.subr.mxu0 %v17922_v35  ;;  %12942 = vmatmul.mubr.msk.f32.vlgmr.msra.gmra.mrb[84].mxu1 %vm6270_vm1, %v5969_v46  ;;  %v5973_v46 = vmul.f32 %v18169_v16, %v5916_v51  ;;  %v18179_v16 = vld [vmem:[#allocation63_spill] sm:$0xff] }
 0x9e9   : > { %12947 = vmatmul.mubr.msk.f32.vlgmr.msra.gmra.mrb[86].mxu0 %vm6270_vm1, %v5970_v0  ;;  %12950 = vmatpush3.msk.msra.mxu1 %vm6274_vm0, %v18163_v20  ;;  %v18171_v0 = vld [vmem:[#allocation38_spill] sm:$0xff] }
 0x9ea   : > { %12955 = vmatpush3.msk.msra.mxu0 %vm6274_vm0, %v18164_v8  ;;  %6228 = vperm.xlu0 %13071, %v18166_v44   ;;  %v5982_v27 = vrot.slane %v18171_v0, 4  ;;  %v18174_v44 = vld [vmem:[#allocation153_spill] sm:$0xff]  ;;  %v18181_v0 = vld [vmem:[#allocation46_spill] sm:$0xff] }
 0x9eb   : > { %6233 = vperm.xlu1 %13070, %v18168_v5   ;;  %12951 = vmatprep.mubr.msk.f32.mxu1 %vm13674_vm15, %v17922_v35  ;;  %v5985_v5 = vrot.slane %v16165_v37, 4  ;;  %v5987_v37 = vrot.slane %v18182_v59, 4 }
 0x9ec   : > { %12956 = vmatprep.mubr.msk.f32.mxu0 %vm13674_vm15, %v17922_v35  ;;  %12959 = vmatprep.subr.mxu1 %v17922_v35 }
 0x9ed   : > { %12964 = vmatprep.subr.mxu0 %v17922_v35  ;;  %12952 = vmatmul.mubr.msk.f32.vlgmr.msra.gmra.mrb[86].mxu1 %vm6270_vm1, %v5971_v49  ;;  %v18175_v49 = vld [vmem:[#allocation62_spill] sm:$0xff] }
 0x9ee   : > { %12957 = vmatmul.mubr.msk.f32.vlgmr.msra.gmra.mrb[88].mxu0 %vm6270_vm1, %v5972_v30  ;;  %12960 = vmatpush3.msk.msra.mxu1 %vm6274_vm0, %v18172_v52  ;;  %v6046_v56 = vmul.f32 %v18175_v49, %v5982_v27  ;;  %v18176_v30 = vld [vmem:[#allocation101_spill] sm:$0xff]  ;;  %v6049_v27 = vmul.f32 %v18181_v0, %v5985_v5  ;;  %v18184_v49 = vld [vmem:[#allocation50_spill] sm:$0xff] }
 0x9ef   : > { %12965 = vmatpush3.msk.msra.mxu0 %vm6274_vm0, %v18174_v44  ;;  %8736 = vperm.xlu0 %13071, %v6044_v32   ;;  %v5984_v51 = vrot.slane %v18176_v30, 4  ;;  %v5986_v32 = vrot.slane %v18180_v21, 4  ;;  %v18185_v30 = vld [vmem:[#allocation64_spill] sm:$0xff]  ;;  %v18188_v21 = vld [vmem:[#allocation51_spill] sm:$0xff]  ;;  %v18190_v0 = vld [vmem:[#allocation42_spill] sm:$0xff] }
 0x9f0   : > { %8741 = vperm.xlu1 %13070, %v6045_v54   ;;  %12961 = vmatprep.mubr.msk.f32.mxu1 %vm13674_vm15, %v17922_v35  ;;  %v18183_v54 = vld [vmem:[#allocation91_spill] sm:$0xff]  ;;  %v6051_v7 = vmul.f32 %v18185_v30, %v5987_v37  ;;  %v5990_v42 = vrot.slane %v18188_v21, 4  ;;  %v5991_v59 = vrot.slane %v18190_v0, 4  ;;  %v18194_v30 = vld [vmem:[#allocation45_spill] sm:$0xff]  ;;  %v18197_v21 = vld [vmem:[#allocation110_spill] sm:$0xff] }
 0x9f1   : > { %12969 = vmatprep.subr.mxu1 %v17922_v35  ;;  %12962 = vmatmul.mubr.msk.f32.vlgmr.msra.gmra.mrb[88].mxu1 %vm6270_vm1, %v5973_v46  ;;  %v6048_v46 = vmul.f32 %v18179_v16, %v5984_v51  ;;  %v6050_v47 = vmul.f32 %v18183_v54, %v5986_v32  ;;  %v18187_v51 = vld [vmem:[#allocation48_spill] sm:$0xff] }
 0x9f2   : > { %12970 = vmatpush3.msk.msra.mxu1 %vm6274_vm0, %v18177_v26  ;;  %12966 = vmatprep.mubr.msk.f32.mxu0 %vm13674_vm15, %v17922_v35 }
 0x9f3   : > { %8746 = vperm.xlu0 %13071, %v6046_v56   ;;  %12971 = vmatprep.mubr.msk.f32.mxu1 %vm13674_vm15, %v17922_v35  ;;  %v5988_v56 = vrot.slane %v18184_v49, 4  ;;  %v18193_v49 = vld [vmem:[#allocation100_spill] sm:$0xff] }
 0x9f4   : > { %8751 = vperm.xlu1 %13070, %v6047_v22   ;;  %12974 = vmatprep.subr.mxu0 %v17922_v35  ;;  %v18186_v22 = vld [vmem:[#allocation41_spill] sm:$0xff]  ;;  %v6055_v37 = vmul.f32 %v18193_v49, %v5991_v59  ;;  %v18202_v49 = vld [vmem:[#allocation68_spill] sm:$0xff] }
 0x9f5   : > { %12979 = vmatprep.subr.mxu1 %v17922_v35  ;;  %v5989_v38 = vrot.slane %v18186_v22, 4  ;;  %v6052_v16 = vmul.f32 %v18187_v51, %v5988_v56  ;;  %v5993_v22 = vrot.slane %v18194_v30, 4  ;;  %v5997_v30 = vrot.slane %v18202_v49, 4 }
 0x9f7   : > { %8756 = vperm.xlu0 %13071, %v6048_v46   ;;  %v6053_v5 = vmul.f32 %v18189_v15, %v5989_v38  ;;  %v18191_v46 = vld [vmem:[#allocation107_spill] sm:$0xff]  ;;  %v6057_v15 = vmul.f32 %v18197_v21, %v5993_v22  ;;  %v18198_v38 = vld [vmem:[#allocation92_spill] sm:$0xff] }
 0x9f8   : > { %8761 = vperm.xlu1 %13070, %v6049_v27   ;;  %v6054_v32 = vmul.f32 %v18191_v46, %v5990_v42  ;;  %v18192_v27 = vld [vmem:[#allocation52_spill] sm:$0xff]  ;;  %v5995_v0 = vrot.slane %v18198_v38, 4  ;;  %v18206_v21 = vld [vmem:[#allocation71_spill] sm:$0xff] }
 0x9f9   : > { %v5992_v54 = vrot.slane %v18192_v27, 4  ;;  %v18201_v27 = vld [vmem:[#allocation103_spill] sm:$0xff]  ;;  %v5999_v38 = vrot.slane %v18206_v21, 4 }
 0x9fa   : > { %v6059_v59 = vmul.f32 %v18201_v27, %v5995_v0  ;;  %v18210_v27 = vld [vmem:[#allocation4_spill] sm:$0xff] }
 0x9fb   : > { %8766 = vperm.xlu0 %13071, %v6050_v47   ;;  %v18195_v47 = vld [vmem:[#allocation109_spill] sm:$0xff]  ;;  %v6001_v49 = vrot.slane %v18210_v27, 4 }
 0x9fc   : > { %8771 = vperm.xlu1 %13070, %v6051_v7   ;;  %v6056_v56 = vmul.f32 %v18195_v47, %v5992_v54  ;;  %v18196_v7 = vld [vmem:[#allocation114_spill] sm:$0xff] }
 0x9fd   : > { %v5994_v51 = vrot.slane %v18196_v7, 4  ;;  %v18205_v7 = vld [vmem:[#allocation105_spill] sm:$0xff] }
 0x9fe   : > { %v6061_v22 = vmul.f32 %v18205_v7, %v5997_v30  ;;  %v18214_v7 = vld [vmem:[#allocation5_spill] sm:$0xff] }
 0x9ff   : > { %8776 = vperm.xlu0 %13071, %v6052_v16   ;;  %v18199_v16 = vld [vmem:[#allocation102_spill] sm:$0xff]  ;;  %v6003_v21 = vrot.slane %v18214_v7, 4 }
 0xa00   : > { %8781 = vperm.xlu1 %13070, %v6053_v5   ;;  %v6058_v42 = vmul.f32 %v18199_v16, %v5994_v51  ;;  %v18200_v5 = vld [vmem:[#allocation93_spill] sm:$0xff]  ;;  %v18223_v7 = vld [vmem:[#allocation66_spill] sm:$0xff] }
 0xa01   : > { %v5996_v46 = vrot.slane %v18200_v5, 4  ;;  %v18209_v5 = vld [vmem:[#allocation43_spill] sm:$0xff] }
 0xa02   : > { %v6063_v0 = vmul.f32 %v18209_v5, %v5999_v38  ;;  %v18217_v5 = vld [vmem:[#allocation73_spill] sm:$0xff] }
 0xa03   : > { %8786 = vperm.xlu0 %13071, %v6054_v32   ;;  %v18203_v32 = vld [vmem:[#allocation104_spill] sm:$0xff]  ;;  %v6004_v27 = vrot.slane %v18217_v5, 4 }
 0xa04   : > { %8791 = vperm.xlu1 %13070, %v6055_v37   ;;  %v6060_v54 = vmul.f32 %v18203_v32, %v5996_v46  ;;  %v18204_v37 = vld [vmem:[#allocation69_spill] sm:$0xff] }
 0xa05   : > { %v5998_v47 = vrot.slane %v18204_v37, 4  ;;  %v18213_v37 = vld [vmem:[#allocation112_spill] sm:$0xff] }
 0xa06   : > { %v6065_v30 = vmul.f32 %v18213_v37, %v6001_v49 }
 0xa07   : > { %8796 = vperm.xlu0 %13071, %v6056_v56   ;;  %v18207_v56 = vld [vmem:[#allocation106_spill] sm:$0xff] }
 0xa08   : > { %8801 = vperm.xlu1 %13070, %v6057_v15   ;;  %v6062_v51 = vmul.f32 %v18207_v56, %v5998_v47  ;;  %v18208_v15 = vld [vmem:[#allocation22_spill] sm:$0xff] }
 0xa09   : > { %v6000_v16 = vrot.slane %v18208_v15, 4  ;;  %v18216_v15 = vld [vmem:[#allocation113_spill] sm:$0xff] }
 0xa0b   : > { %8806 = vperm.xlu0 %13071, %v6058_v42   ;;  %v18211_v42 = vld [vmem:[#allocation44_spill] sm:$0xff] }
 0xa0c   : > { %8811 = vperm.xlu1 %13070, %v6059_v59   ;;  %v6064_v46 = vmul.f32 %v18211_v42, %v6000_v16  ;;  %v18212_v59 = vld [vmem:[#allocation79_spill] sm:$0xff]  ;;  %v6067_v16 = vmul.f32 %v18219_v41, %v6003_v21  ;;  %v18220_v42 = vld [vmem:[#allocation6_spill] sm:$0xff] }
 0xa0d   : > { %v6002_v32 = vrot.slane %v18212_v59, 4  ;;  %v6005_v59 = vrot.slane %v18220_v42, 4  ;;  %v18224_v41 = vld [vmem:[#allocation155_spill] sm:$0xff]  ;;  %v18229_v42 = vld [vmem:[#allocation61_spill] sm:$0xff] }
 0xa0e   : > { %v18225_v21 = vld [vmem:[#allocation59_spill] sm:$0xff] }
 0xa0f   : > { %8816 = vperm.xlu0 %13071, %v6060_v54   ;;  %v6066_v38 = vmul.f32 %v18216_v15, %v6002_v32  ;;  %v18222_v32 = vld [vmem:[#allocation58_spill] sm:$0xff] }
 0xa10   : > { %8821 = vperm.xlu1 %13070, %v6061_v22   ;;  %v18215_v22 = vld [vmem:[#allocation56_spill] sm:$0xff] }
 0xa13   : > { %8826 = vperm.xlu0 %13071, %v6062_v51   ;;  %v18218_v51 = vld [vmem:[#allocation57_spill] sm:$0xff] }
 0xa14   : > { %8831 = vperm.xlu1 %13070, %v6063_v0  }
 0xa17   : > { %8836 = vperm.xlu0 %13071, %v6064_v46   ;;  %v5921_v54 = vpop.permute.xlu0 %5920  ;;  %v18221_v46 = vld [vmem:[#allocation157_spill] sm:$0xff] }
 0xa18   : > { %8841 = vperm.xlu1 %13070, %v6065_v30   ;;  %v5926_v47 = vpop.permute.xlu1 %5925  ;;  %v5974_v56 = vmul.f32 %v18215_v22, %v5921_v54  ;;  %v6068_v54 = vmul.f32 %v18223_v7, %v6004_v27  ;;  %v18227_v27 = vld [vmem:[#allocation60_spill] sm:$0xff] }
 0xa19   : > { %v5975_v0 = vmul.f32 %v18218_v51, %v5926_v47  ;;  %v6006_v47 = vrot.slane %v16320_v11, 4 }
 0xa1a   : > { %12967 = vmatmul.mubr.msk.f32.vlgmr.msra.gmra.mrb[90].mxu0 %vm6270_vm1, %v5974_v56  ;;  %v18226_v56 = vld [vmem:[#allocation94_spill] sm:$0xff] }
 0xa1b   : > { %8846 = vperm.xlu0 %13071, %v6066_v38   ;;  %12972 = vmatmul.mubr.msk.f32.vlgmr.msra.gmra.mrb[90].mxu1 %vm6270_vm1, %v5975_v0  ;;  %v5931_v49 = vpop.permute.xlu0 %5930  ;;  %v6069_v15 = vmul.f32 %v18226_v56, %v6005_v59  ;;  %v6007_v38 = vrot.slane %v16322_v10, 4  ;;  %v6070_v0 = vmul.f32 %v16288_v53, %v6006_v47  ;;  %v18228_v10 = vld [vmem:[#allocation160_spill] sm:$0xff]  ;;  %v6011_v56 = vrot.slane %v16342_v48, 4  ;;  %v18238_v48 = vld [vmem:[#allocation39_spill] sm:$0xff] }
 0xa1c   : > { %8851 = vperm.xlu1 %13070, %v6067_v16   ;;  %12975 = vmatpush3.msk.msra.mxu0 %vm6274_vm0, %v18221_v46  ;;  %v5936_v37 = vpop.permute.xlu1 %5935  ;;  %v5976_v30 = vmul.f32 %v18222_v32, %v5931_v49  ;;  %v6008_v16 = vrot.slane %v16330_v12, 4  ;;  %v18230_v32 = vld [vmem:[#allocation158_spill] sm:$0xff] }
 0xa1d   : > { %12980 = vmatpush3.msk.msra.mxu1 %vm6274_vm0, %v18224_v41  ;;  %v5977_v22 = vmul.f32 %v18225_v21, %v5936_v37  ;;  %12976 = vmatprep.mubr.msk.f32.mxu0 %vm13674_vm15, %v17922_v35  ;;  %v6071_v49 = vmul.f32 %v16292_v19, %v6007_v38  ;;  %v6009_v37 = vrot.slane %v16332_v63, 4  ;;  %v6010_v63 = vrot.slane %v16340_v34, 4  ;;  %v18233_v21 = vld [vmem:[#allocation72_spill] sm:$0xff]  ;;  %v18235_v38 = vld [vmem:[#allocation77_spill] sm:$0xff] }
 0xa1e   : > { %12981 = vmatprep.mubr.msk.f32.mxu1 %vm13674_vm15, %v17922_v35  ;;  %12984 = vmatprep.subr.mxu0 %v17922_v35  ;;  %v6072_v19 = vmul.f32 %v16295_v28, %v6008_v16  ;;  %v18236_v34 = vld [vmem:[#allocation8_spill] sm:$0xff] }
 0xa1f   : > { %8856 = vperm.xlu0 %13071, %v6068_v54   ;;  %12989 = vmatprep.subr.mxu1 %v17922_v35  ;;  %v5941_v11 = vpop.permute.xlu0 %5940  ;;  %v18232_v54 = vld [vmem:[#allocation26_spill] sm:$0xff] }
 0xa20   : > { %8861 = vperm.xlu1 %13070, %v6069_v15   ;;  %12977 = vmatmul.mubr.msk.f32.vlgmr.msra.gmra.mrb[92].mxu0 %vm6270_vm1, %v5976_v30  ;;  %v5946_v5 = vpop.permute.xlu1 %5945  ;;  %v5978_v51 = vmul.f32 %v18227_v27, %v5941_v11  ;;  %v18231_v30 = vld [vmem:[#allocation138_spill] sm:$0xff] }
 0xa21   : > { %12982 = vmatmul.mubr.msk.f32.vlgmr.msra.gmra.mrb[92].mxu1 %vm6270_vm1, %v5977_v22  ;;  %12985 = vmatpush3.msk.msra.mxu0 %vm6274_vm0, %v18228_v10  ;;  %v5979_v59 = vmul.f32 %v18229_v42, %v5946_v5  ;;  %v6073_v22 = vmul.f32 %v18233_v21, %v6009_v37 }
 0xa22   : > { %12990 = vmatpush3.msk.msra.mxu1 %vm6274_vm0, %v18230_v32  ;;  %12986 = vmatprep.mubr.msk.f32.mxu0 %vm13674_vm15, %v17922_v35 }
 0xa23   : > { %8866 = vperm.xlu0 %13071, %v6070_v0   ;;  %12991 = vmatprep.mubr.msk.f32.mxu1 %vm13674_vm15, %v17922_v35  ;;  %v6079_v53 = vpop.permute.xlu0 %6078  ;;  %v18234_v35 = vld [vmem:[#allocation85_spill] sm:$0xff]  ;;  %v6074_v0 = vmul.f32 %v18236_v34, %v6010_v63 }
 0xa24   : > { %8871 = vperm.xlu1 %13070, %v6071_v49   ;;  %12987 = vmatmul.mubr.msk.f32.vlgmr.msra.gmra.mrb[94].mxu0 %vm6270_vm1, %v5978_v51  ;;  %v6084_v12 = vpop.permute.xlu1 %6083  ;;  %v6236_v7 = vmul.f32 %v6079_v53, %v18231_v30  ;;  %v18239_v53 = vld [vmem:[#allocation7_spill] sm:$0xff] }
 0xa25   : > { %12992 = vmatmul.mubr.msk.f32.vlgmr.msra.gmra.mrb[94].mxu1 %vm6270_vm1, %v5979_v59  ;;  %v6237_v47 = vmul.f32 %v18232_v54, %v6084_v12  ;;  %v18237_v59 = vld [vmem:[#allocation74_spill] sm:$0xff] }
 0xa26   : > { %v6344_v15 = vadd.f32 %v18234_v35, %v6236_v7  ;;  %v6075_v49 = vmul.f32 %v18237_v59, %v6011_v56  ;;  %v18240_v56 = vld [vmem:[#allocation89_spill] sm:$0xff] }
 0xa27   : > { %8876 = vperm.xlu0 %13071, %v6072_v19   ;;  %v6421_v11 = vadd.f32 %v18235_v38, %v6237_v47  ;;  %v6089_v5 = vpop.permute.xlu0 %6088  ;;  %v18241_v38 = vld [vmem:[#allocation83_spill] sm:$0xff] }
 0xa28   : > { %8881 = vperm.xlu1 %13070, %v6073_v22   ;;  %v11454_v27 = vmul.f32 1.442695, %v6344_v15  ;;  %v6094_v51 = vpop.permute.xlu1 %6093  ;;  %v6238_v28 = vmul.f32 %v6089_v5, %v15480_v33  ;;  %vm11422_vm2 = vcmp.gt.f32.partialorder %v6344_v15, 0.0 }
 0xa29   : > { %v11456_v16 = vmul.f32 1.442695, %v6421_v11  ;;  %v6239_v42 = vmul.f32 %v15476_v14, %v6094_v51  ;;  %vm11423_vm3 = vcmp.gt.f32.partialorder %v6421_v11, 0.0 }
 0xa2a   : > { %13456 = vpow2.f32 %v11454_v27  ;;  %v6498_v37 = vadd.f32 %v18238_v48, %v6238_v28 }
 0xa2b   : > { %8886 = vperm.xlu0 %13071, %v6074_v0   ;;  %13458 = vpow2.f32 %v11456_v16  ;;  %v16698_v12 = vadd.f32 %v18239_v53, %v6239_v42  ;;  %v6099_v7 = vpop.permute.xlu0 %6098  ;;  %v18242_v42 = vld [vmem:[#allocation118_spill] sm:$0xff] }
 0xa2c   : > { %8891 = vperm.xlu1 %13070, %v6075_v49   ;;  %v11458_v19 = vmul.f32 1.442695, %v6498_v37  ;;  %v6104_v47 = vpop.permute.xlu1 %6103  ;;  %v6240_v21 = vmul.f32 %v6099_v7, %v15507_v25  ;;  %v18243_v49 = vld [vmem:[#allocation115_spill] sm:$0xff]  ;;  %vm11424_vm5 = vcmp.gt.f32.partialorder %v6498_v37, 0.0 }
 0xa2d   : > { %v11460_v63 = vmul.f32 1.442695, %v16698_v12  ;;  %v6241_v22 = vmul.f32 %v15503_v17, %v6104_v47  ;;  %vm11425_vm6 = vcmp.gt.f32.partialorder %v16698_v12, 0.0 }
 0xa2e   : > { %13460 = vpow2.f32 %v11458_v19  ;;  %v16704_v35 = vadd.f32 %v18240_v56, %v6240_v21 }
 0xa2f   : > { %13462 = vpow2.f32 %v11460_v63  ;;  %v16707_v5 = vadd.f32 %v18241_v38, %v6241_v22  ;;  %v6109_v27 = vpop.permute.xlu0 %6108 }
 0xa30   : > { %v11462_v51 = vmul.f32 1.442695, %v16704_v35  ;;  %v6114_v28 = vpop.permute.xlu1 %6113  ;;  %v6242_v34 = vmul.f32 %v6109_v27, %v15516_v39  ;;  %vm11426_vm7 = vcmp.gt.f32.partialorder %v16704_v35, 0.0 }
 0xa31   : > { %v11464_v0 = vmul.f32 1.442695, %v16707_v5  ;;  %v6243_v16 = vmul.f32 %v15511_v62, %v6114_v28  ;;  %vm11427_vm8 = vcmp.gt.f32.partialorder %v16707_v5, 0.0 }
 0xa32   : > { %13464 = vpow2.f32 %v11462_v51  ;;  %v16714_v59 = vadd.f32 %v18242_v42, %v6242_v34  ;;  %v18244_v51 = vld [vmem:[#allocation9_spill] sm:$0xff] }
 0xa33   : > { %13466 = vpow2.f32 %v11464_v0  ;;  %v16717_v48 = vadd.f32 %v18243_v49, %v6243_v16  ;;  %v6119_v53 = vpop.permute.xlu0 %6118  ;;  %v18245_v0 = vld [vmem:[#allocation121_spill] sm:$0xff] }
 0xa34   : > { %v13457_v7 = vpop.eup %13456  ;;  %v11466_v19 = vmul.f32 1.442695, %v16714_v59  ;;  %v6124_v47 = vpop.permute.xlu1 %6123  ;;  %v6244_v21 = vmul.f32 %v6119_v53, %v15527_v18  ;;  %vm11428_vm9 = vcmp.gt.f32.partialorder %v16714_v59, 0.0 }
 0xa35   : > { %v13459_v63 = vpop.eup %13458  ;;  %v12288_v22 = vadd.f32 -1.0, %v13457_v7  ;;  %v11468_v56 = vmul.f32 1.442695, %v16717_v48  ;;  %v6245_v38 = vmul.f32 %v15522_v24, %v6124_v47  ;;  %vm11429_vm10 = vcmp.gt.f32.partialorder %v16717_v48, 0.0 }
 0xa36   : > { %v12289_v27 = vadd.f32 -1.0, %v13459_v63  ;;  %13468 = vpow2.f32 %v11466_v19  ;;  %v16724_v28 = vadd.f32 %v18244_v51, %v6244_v21  ;;  %v18247_v51 = vld [vmem:[#allocation117_spill] sm:$0xff] }
 0xa37   : > { %v11550_v34 = vsel %vm11422_vm2, %v6344_v15, %v12288_v22  ;;  %13470 = vpow2.f32 %v11468_v56  ;;  %v16727_v16 = vadd.f32 %v18245_v0, %v6245_v38  ;;  %v6129_v42 = vpop.permute.xlu0 %6128  ;;  %v18246_v56 = vld [vmem:[#allocation76_spill] sm:$0xff] }
 0xa38   : > { %v13461_v49 = vpop.eup %13460  ;;  %v11551_v53 = vsel %vm11423_vm3, %v6421_v11, %v12289_v27  ;;  %11583 = vst.msk [vmem:[%s16730_s14] sm:$0xf] %vm11582_vm4, %v11550_v34  ;;  %v11470_v7 = vmul.f32 1.442695, %v16724_v28  ;;  %v6134_v19 = vpop.permute.xlu1 %6133  ;;  %v6246_v47 = vmul.f32 %v6129_v42, %v15538_v6  ;;  %vm11430_vm11 = vcmp.gt.f32.partialorder %v16724_v28, 0.0 }
 0xa39   : > { %v13463_v15 = vpop.eup %13462  ;;  %11584 = vst.msk [vmem:[%s16730_s14 + $0x8] sm:$0xf] %vm11582_vm4, %v11551_v53  ;;  %v12290_v21 = vadd.f32 -1.0, %v13461_v49  ;;  %v11472_v63 = vmul.f32 1.442695, %v16727_v16  ;;  %v6247_v11 = vmul.f32 %v15533_v55, %v6134_v19  ;;  %vm11431_vm12 = vcmp.gt.f32.partialorder %v16727_v16, 0.0 }
 0xa3a   : > { %v12291_v22 = vadd.f32 -1.0, %v13463_v15  ;;  %13472 = vpow2.f32 %v11470_v7  ;;  %v16741_v38 = vadd.f32 %v18246_v56, %v6246_v47 }
 0xa3b   : > { %v11552_v27 = vsel %vm11424_vm5, %v6498_v37, %v12290_v21  ;;  %13474 = vpow2.f32 %v11472_v63  ;;  %v16745_v34 = vadd.f32 %v18247_v51, %v6247_v11  ;;  %v18248_v11 = vld [vmem:[#allocation10_spill] sm:$0xff]  ;;  %v18249_v51 = vld [vmem:[#allocation124_spill] sm:$0xff] }
 0xa3c   : > { %v13465_v0 = vpop.eup %13464  ;;  %v11553_v42 = vsel %vm11425_vm6, %v16698_v12, %v12291_v22  ;;  %11585 = vst.msk [vmem:[%s16730_s14 + $0x10] sm:$0xf] %vm11582_vm4, %v11552_v27  ;;  %v11474_v49 = vmul.f32 1.442695, %v16741_v38  ;;  %v6139_v53 = vpop.permute.xlu0 %6138  ;;  %vm11432_vm13 = vcmp.gt.f32.partialorder %v16741_v38, 0.0 }
 0xa3d   : > { %v13467_v19 = vpop.eup %13466  ;;  %11586 = vst.msk [vmem:[%s16730_s14 + $0x18] sm:$0xf] %vm11582_vm4, %v11553_v42  ;;  %v12292_v7 = vadd.f32 -1.0, %v13465_v0  ;;  %v11476_v47 = vmul.f32 1.442695, %v16745_v34  ;;  %v6144_v37 = vpop.permute.xlu1 %6143  ;;  %v6248_v15 = vmul.f32 %v6139_v53, %v15547_v29  ;;  %vm11433_vm14 = vcmp.gt.f32.partialorder %v16745_v34, 0.0 }
 0xa3e   : > { %v12293_v21 = vadd.f32 -1.0, %v13467_v19  ;;  %13476 = vpow2.f32 %v11474_v49  ;;  %v6249_v12 = vmul.f32 %v15544_v45, %v6144_v37 }
 0xa3f   : > { %v11554_v63 = vsel %vm11426_vm7, %v16704_v35, %v12292_v7  ;;  %13478 = vpow2.f32 %v11476_v47  ;;  %v16760_v22 = vadd.f32 %v18248_v11, %v6248_v15 }
 0xa40   : > { %v13469_v56 = vpop.eup %13468  ;;  %v11555_v27 = vsel %vm11427_vm8, %v16707_v5, %v12293_v21  ;;  %11587 = vst.msk [vmem:[%s16730_s14 + $0x20] sm:$0xf] %vm11582_vm4, %v11554_v63  ;;  %v16766_v0 = vadd.f32 %v18249_v51, %v6249_v12  ;;  %v18250_v63 = vld [vmem:[#allocation78_spill] sm:$0xff]  ;;  %v18251_v51 = vld [vmem:[#allocation120_spill] sm:$0xff] }
 0xa41   : > { %v13471_v42 = vpop.eup %13470  ;;  %11588 = vst.msk [vmem:[%s16730_s14 + $0x28] sm:$0xf] %vm11582_vm4, %v11555_v27  ;;  %v12294_v49 = vadd.f32 -1.0, %v13469_v56  ;;  %v11478_v53 = vmul.f32 1.442695, %v16760_v22  ;;  %v6149_v35 = vpop.permute.xlu0 %6148  ;;  %vm11434_vm0 = vcmp.gt.f32.partialorder %v16760_v22, 0.0 }
 0xa42   : > { %v12295_v19 = vadd.f32 -1.0, %v13471_v42  ;;  %v11480_v7 = vmul.f32 1.442695, %v16766_v0  ;;  %v6154_v5 = vpop.permute.xlu1 %6153  ;;  %v6250_v47 = vmul.f32 %v6149_v35, %v15560_v4  ;;  %vm11435_vm15 = vcmp.gt.f32.partialorder %v16766_v0, 0.0 }
 0xa43   : > { %v11556_v37 = vsel %vm11428_vm9, %v16714_v59, %v12294_v49  ;;  %13480 = vpow2.f32 %v11478_v53  ;;  %v6251_v15 = vmul.f32 %v15554_v50, %v6154_v5 }
 0xa44   : > { %v13473_v21 = vpop.eup %13472  ;;  %v11557_v12 = vsel %vm11429_vm10, %v16717_v48, %v12295_v19  ;;  %11589 = vst.msk [vmem:[%s16730_s14 + $0x30] sm:$0xf] %vm11582_vm4, %v11556_v37  ;;  %13482 = vpow2.f32 %v11480_v7  ;;  %v16781_v11 = vadd.f32 %v18250_v63, %v6250_v47 }
 0xa45   : > { %v13475_v56 = vpop.eup %13474  ;;  %11590 = vst.msk [vmem:[%s16730_s14 + $0x38] sm:$0xf] %vm11582_vm4, %v11557_v12  ;;  %v12296_v27 = vadd.f32 -1.0, %v13473_v21  ;;  %v16786_v42 = vadd.f32 %v18251_v51, %v6251_v15 }
 0xa46   : > { %v12297_v59 = vadd.f32 -1.0, %v13475_v56  ;;  %v11482_v48 = vmul.f32 1.442695, %v16781_v11  ;;  %v6159_v49 = vpop.permute.xlu0 %6158  ;;  %v18253_v56 = vld [vmem:[#allocation127_spill] sm:$0xff]  ;;  %vm11436_vm1 = vcmp.gt.f32.partialorder %v16781_v11, 0.0 }
 0xa47   : > { %v11558_v53 = vsel %vm11430_vm11, %v16724_v28, %v12296_v27  ;;  %v11484_v35 = vmul.f32 1.442695, %v16786_v42  ;;  %v6164_v19 = vpop.permute.xlu1 %6163  ;;  %v6252_v7 = vmul.f32 %v6159_v49, %v15568_v2  ;;  %v18252_v28 = vld [vmem:[#allocation11_spill] sm:$0xff]  ;;  %vm11437_vm2 = vcmp.gt.f32.partialorder %v16786_v42, 0.0 }
 0xa48   : > { %v13477_v5 = vpop.eup %13476  ;;  %v11559_v47 = vsel %vm11431_vm12, %v16727_v16, %v12297_v59  ;;  %11591 = vst.msk [vmem:[%s16730_s14 + $0x40] sm:$0xf] %vm11582_vm4, %v11558_v53  ;;  %13484 = vpow2.f32 %v11482_v48  ;;  %v6253_v37 = vmul.f32 %v15564_v1, %v6164_v19 }
 0xa49   : > { %v13479_v15 = vpop.eup %13478  ;;  %11592 = vst.msk [vmem:[%s16730_s14 + $0x48] sm:$0xf] %vm11582_vm4, %v11559_v47  ;;  %v12298_v21 = vadd.f32 -1.0, %v13477_v5  ;;  %13486 = vpow2.f32 %v11484_v35  ;;  %v16801_v12 = vadd.f32 %v18252_v28, %v6252_v7  ;;  %v18254_v47 = vld [vmem:[#allocation80_spill] sm:$0xff] }
 0xa4a   : > { %v12299_v63 = vadd.f32 -1.0, %v13479_v15  ;;  %v16805_v16 = vadd.f32 %v18253_v56, %v6253_v37  ;;  %v18255_v15 = vld [vmem:[#allocation123_spill] sm:$0xff] }
 0xa4b   : > { %v11560_v27 = vsel %vm11432_vm13, %v16741_v38, %v12298_v21  ;;  %v11486_v51 = vmul.f32 1.442695, %v16801_v12  ;;  %v6169_v59 = vpop.permute.xlu0 %6168  ;;  %vm11438_vm3 = vcmp.gt.f32.partialorder %v16801_v12, 0.0 }
 0xa4c   : > { %v11561_v48 = vsel %vm11433_vm14, %v16745_v34, %v12299_v63  ;;  %11593 = vst.msk [vmem:[%s16730_s14 + $0x50] sm:$0xf] %vm11582_vm4, %v11560_v27  ;;  %v11488_v49 = vmul.f32 1.442695, %v16805_v16  ;;  %v6174_v53 = vpop.permute.xlu1 %6173  ;;  %v6254_v35 = vmul.f32 %v6169_v59, %v15574_v36  ;;  %vm11439_vm5 = vcmp.gt.f32.partialorder %v16805_v16, 0.0 }
 0xa4d   : > { %v13481_v19 = vpop.eup %13480  ;;  %11594 = vst.msk [vmem:[%s16730_s14 + $0x58] sm:$0xf] %vm11582_vm4, %v11561_v48  ;;  %13488 = vpow2.f32 %v11486_v51  ;;  %v6255_v7 = vmul.f32 %v15570_v57, %v6174_v53 }
 0xa4e   : > { %v13483_v38 = vpop.eup %13482  ;;  %v12300_v5 = vadd.f32 -1.0, %v13481_v19  ;;  %13490 = vpow2.f32 %v11488_v49  ;;  %v16819_v34 = vadd.f32 %v18254_v47, %v6254_v35 }
 0xa4f   : > { %v12301_v37 = vadd.f32 -1.0, %v13483_v38  ;;  %v16823_v21 = vadd.f32 %v18255_v15, %v6255_v7 }
 0xa50   : > { %v11562_v28 = vsel %vm11434_vm0, %v16760_v22, %v12300_v5  ;;  %v11490_v63 = vmul.f32 1.442695, %v16819_v34  ;;  %v6179_v56 = vpop.permute.xlu0 %6178  ;;  %vm11440_vm6 = vcmp.gt.f32.partialorder %v16819_v34, 0.0 }
 0xa51   : > { %v11563_v27 = vsel %vm11435_vm15, %v16766_v0, %v12301_v37  ;;  %11595 = vst.msk [vmem:[%s16730_s14 + $0x60] sm:$0xf] %vm11582_vm4, %v11562_v28  ;;  %v11492_v51 = vmul.f32 1.442695, %v16823_v21  ;;  %v6184_v59 = vpop.permute.xlu1 %6183  ;;  %v6256_v48 = vmul.f32 %v6179_v56, %v18152_v61  ;;  %vm11441_vm7 = vcmp.gt.f32.partialorder %v16823_v21, 0.0 }
 0xa52   : > { %v13485_v49 = vpop.eup %13484  ;;  %11596 = vst.msk [vmem:[%s16730_s14 + $0x68] sm:$0xf] %vm11582_vm4, %v11563_v27  ;;  %13492 = vpow2.f32 %v11490_v63  ;;  %v6257_v53 = vmul.f32 %v18157_v60, %v6184_v59 }
 0xa53   : > { %v13487_v22 = vpop.eup %13486  ;;  %v12302_v35 = vadd.f32 -1.0, %v13485_v49  ;;  %13494 = vpow2.f32 %v11492_v51  ;;  %v16837_v0 = vadd.f32 %v16363_v23, %v6256_v48 }
 0xa54   : > { %v12303_v19 = vadd.f32 -1.0, %v13487_v22  ;;  %v16841_v7 = vadd.f32 %v16366_v58, %v6257_v53 }
 0xa55   : > { %v11564_v38 = vsel %vm11436_vm1, %v16781_v11, %v12302_v35  ;;  %v11494_v5 = vmul.f32 1.442695, %v16837_v0  ;;  %v6189_v47 = vpop.permute.xlu0 %6188  ;;  %vm11442_vm8 = vcmp.gt.f32.partialorder %v16837_v0, 0.0 }
 0xa56   : > { %v11565_v37 = vsel %vm11437_vm2, %v16786_v42, %v12303_v19  ;;  %11597 = vst.msk [vmem:[%s16730_s14 + $0x70] sm:$0xf] %vm11582_vm4, %v11564_v38  ;;  %v11496_v23 = vmul.f32 1.442695, %v16841_v7  ;;  %v6194_v15 = vpop.permute.xlu1 %6193  ;;  %v6258_v28 = vmul.f32 %v6189_v47, %v18158_v43  ;;  %vm11443_vm9 = vcmp.gt.f32.partialorder %v16841_v7, 0.0 }
 0xa57   : > { %v13489_v63 = vpop.eup %13488  ;;  %11598 = vst.msk [vmem:[%s16730_s14 + $0x78] sm:$0xf] %vm11582_vm4, %v11565_v37  ;;  %13496 = vpow2.f32 %v11494_v5  ;;  %v6259_v58 = vmul.f32 %v18163_v20, %v6194_v15 }
 0xa58   : > { %v13491_v11 = vpop.eup %13490  ;;  %v12304_v56 = vadd.f32 -1.0, %v13489_v63  ;;  %13498 = vpow2.f32 %v11496_v23  ;;  %v16855_v42 = vadd.f32 %v16370_v3, %v6258_v28 }
 0xa59   : > { %v12305_v27 = vadd.f32 -1.0, %v13491_v11  ;;  %v16859_v51 = vadd.f32 %v16373_v13, %v6259_v58 }
 0xa5a   : > { %v11566_v59 = vsel %vm11438_vm3, %v16801_v12, %v12304_v56  ;;  %v11498_v48 = vmul.f32 1.442695, %v16855_v42  ;;  %v6199_v49 = vpop.permute.xlu0 %6198  ;;  %vm11444_vm10 = vcmp.gt.f32.partialorder %v16855_v42, 0.0 }
 0xa5b   : > { %v11567_v53 = vsel %vm11439_vm5, %v16805_v16, %v12305_v27  ;;  %11599 = vst.msk [vmem:[%s16730_s14 + $0x80] sm:$0xf] %vm11582_vm4, %v11566_v59  ;;  %v11500_v3 = vmul.f32 1.442695, %v16859_v51  ;;  %v6204_v22 = vpop.permute.xlu1 %6203  ;;  %v6260_v35 = vmul.f32 %v6199_v49, %v18164_v8  ;;  %v18256_v59 = vld [vmem:[#allocation12_spill] sm:$0xff]  ;;  %vm11445_vm11 = vcmp.gt.f32.partialorder %v16859_v51, 0.0 }
 0xa5c   : > { %v13493_v19 = vpop.eup %13492  ;;  %11600 = vst.msk [vmem:[%s16730_s14 + $0x88] sm:$0xf] %vm11582_vm4, %v11567_v53  ;;  %13500 = vpow2.f32 %v11498_v48  ;;  %v6261_v13 = vmul.f32 %v18172_v52, %v6204_v22 }
 0xa5d   : > { %v13495_v12 = vpop.eup %13494  ;;  %v12306_v38 = vadd.f32 -1.0, %v13493_v19  ;;  %13502 = vpow2.f32 %v11500_v3  ;;  %v16873_v16 = vadd.f32 %v16383_v9, %v6260_v35 }
 0xa5e   : > { %v12307_v5 = vadd.f32 -1.0, %v13495_v12  ;;  %v16877_v47 = vadd.f32 %v16387_v40, %v6261_v13 }
 0xa5f   : > { %v11568_v37 = vsel %vm11440_vm6, %v16819_v34, %v12306_v38  ;;  %v11502_v23 = vmul.f32 1.442695, %v16873_v16  ;;  %v6209_v15 = vpop.permute.xlu0 %6208  ;;  %vm11446_vm12 = vcmp.gt.f32.partialorder %v16873_v16, 0.0 }
 0xa60   : > { %v11569_v28 = vsel %vm11441_vm7, %v16823_v21, %v12307_v5  ;;  %11601 = vst.msk [vmem:[%s16730_s14 + $0x90] sm:$0xf] %vm11582_vm4, %v11568_v37  ;;  %v11504_v9 = vmul.f32 1.442695, %v16877_v47  ;;  %v6214_v63 = vpop.permute.xlu1 %6213  ;;  %v6262_v58 = vmul.f32 %v6209_v15, %v18174_v44  ;;  %vm11447_vm13 = vcmp.gt.f32.partialorder %v16877_v47, 0.0 }
 0xa61   : > { %v13497_v11 = vpop.eup %13496  ;;  %11602 = vst.msk [vmem:[%s16730_s14 + $0x98] sm:$0xf] %vm11582_vm4, %v11569_v28  ;;  %13504 = vpow2.f32 %v11502_v23  ;;  %v6263_v40 = vmul.f32 %v18177_v26, %v6214_v63  ;;  %v18258_v23 = vld [vmem:[#allocation82_spill] sm:$0xff] }
 0xa62   : > { %v13499_v34 = vpop.eup %13498  ;;  %v12308_v56 = vadd.f32 -1.0, %v13497_v11  ;;  %13506 = vpow2.f32 %v11504_v9  ;;  %v8346_v21 = vadd.f32 %v16397_v31, %v6262_v58 }
 0xa63   : > { %v12309_v27 = vadd.f32 -1.0, %v13499_v34  ;;  %v8423_v48 = vadd.f32 %v18256_v59, %v6263_v40 }
 0xa64   : > { %v11570_v49 = vsel %vm11442_vm8, %v16837_v0, %v12308_v56  ;;  %v11506_v53 = vmul.f32 1.442695, %v8346_v21  ;;  %v6219_v3 = vpop.permute.xlu0 %6218  ;;  %v18257_v0 = vld [vmem:[#allocation130_spill] sm:$0xff]  ;;  %vm11448_vm14 = vcmp.gt.f32.partialorder %v8346_v21, 0.0 }
 0xa65   : > { %v11571_v22 = vsel %vm11443_vm9, %v16841_v7, %v12309_v27  ;;  %11603 = vst.msk [vmem:[%s16730_s14 + $0xa0] sm:$0xf] %vm11582_vm4, %v11570_v49  ;;  %v11508_v35 = vmul.f32 1.442695, %v8423_v48  ;;  %v6224_v19 = vpop.permute.xlu1 %6223  ;;  %v6264_v13 = vmul.f32 %v6219_v3, %v18221_v46  ;;  %v18259_v49 = vld [vmem:[#allocation126_spill] sm:$0xff]  ;;  %v18260_v3 = vld [vmem:[#allocation13_spill] sm:$0xff] }
 0xa66   : > { %v13501_v31 = vpop.eup %13500  ;;  %11604 = vst.msk [vmem:[%s16730_s14 + $0xa8] sm:$0xf] %vm11582_vm4, %v11571_v22  ;;  %13508 = vpow2.f32 %v11506_v53  ;;  %v6265_v12 = vmul.f32 %v18224_v41, %v6224_v19  ;;  %vm11449_vm0 = vcmp.gt.f32.partialorder %v8423_v48, 0.0 }
 0xa67   : > { %v13503_v38 = vpop.eup %13502  ;;  %v12310_v5 = vadd.f32 -1.0, %v13501_v31  ;;  %13510 = vpow2.f32 %v11508_v35  ;;  %v8500_v37 = vadd.f32 %v18257_v0, %v6264_v13 }
 0xa68   : > { %v12311_v7 = vadd.f32 -1.0, %v13503_v38  ;;  %v8577_v15 = vadd.f32 %v18258_v23, %v6265_v12 }
 0xa69   : > { %v11572_v28 = vsel %vm11444_vm10, %v16855_v42, %v12310_v5  ;;  %v11510_v9 = vmul.f32 1.442695, %v8500_v37  ;;  %v6229_v63 = vpop.permute.xlu0 %6228  ;;  %vm11450_vm15 = vcmp.gt.f32.partialorder %v8500_v37, 0.0 }
 0xa6a   : > { %v11573_v58 = vsel %vm11445_vm11, %v16859_v51, %v12311_v7  ;;  %11605 = vst.msk [vmem:[%s16730_s14 + $0xb0] sm:$0xf] %vm11582_vm4, %v11572_v28  ;;  %v11512_v11 = vmul.f32 1.442695, %v8577_v15  ;;  %v6234_v40 = vpop.permute.xlu1 %6233  ;;  %v6266_v34 = vmul.f32 %v6229_v63, %v18228_v10  ;;  %vm11451_vm1 = vcmp.gt.f32.partialorder %v8577_v15, 0.0 }
 0xa6b   : > { %v13505_v56 = vpop.eup %13504  ;;  %11606 = vst.msk [vmem:[%s16730_s14 + $0xb8] sm:$0xf] %vm11582_vm4, %v11573_v58  ;;  %13512 = vpow2.f32 %v11510_v9  ;;  %v6267_v27 = vmul.f32 %v18230_v32, %v6234_v40 }
 0xa6c   : > { %v13507_v59 = vpop.eup %13506  ;;  %v12312_v42 = vadd.f32 -1.0, %v13505_v56  ;;  %13514 = vpow2.f32 %v11512_v11  ;;  %v8654_v53 = vadd.f32 %v18259_v49, %v6266_v34 }
 0xa6d   : > { %v12313_v51 = vadd.f32 -1.0, %v13507_v59  ;;  %v8731_v22 = vadd.f32 %v18260_v3, %v6267_v27 }
 0xa6e   : > { %v11574_v35 = vsel %vm11446_vm12, %v16873_v16, %v12312_v42  ;;  %v11514_v19 = vmul.f32 1.442695, %v8654_v53  ;;  %v8737_v12 = vpop.permute.xlu0 %8736  ;;  %vm11452_vm2 = vcmp.gt.f32.partialorder %v8654_v53, 0.0 }
 0xa6f   : > { %v11575_v13 = vsel %vm11447_vm13, %v16877_v47, %v12313_v51  ;;  %11607 = vst.msk [vmem:[%s16730_s14 + $0xc0] sm:$0xf] %vm11582_vm4, %v11574_v35  ;;  %v11516_v31 = vmul.f32 1.442695, %v8731_v22  ;;  %v8742_v23 = vpop.permute.xlu1 %8741  ;;  %vm11453_vm3 = vcmp.gt.f32.partialorder %v8731_v22, 0.0 }
 0xa70   : > { %v13509_v38 = vpop.eup %13508  ;;  %11608 = vst.msk [vmem:[%s16730_s14 + $0xc8] sm:$0xf] %vm11582_vm4, %v11575_v13  ;;  %13516 = vpow2.f32 %v11514_v19  ;;  %v8895_v13 = vmul.f32 %v18232_v54, %v8742_v23 }
 0xa71   : > { %v13511_v5 = vpop.eup %13510  ;;  %v12314_v0 = vadd.f32 -1.0, %v13509_v38  ;;  %13518 = vpow2.f32 %v11516_v31 }
 0xa72   : > { %v12315_v7 = vadd.f32 -1.0, %v13511_v5  ;;  %v8747_v9 = vpop.permute.xlu0 %8746 }
 0xa73   : > { %v11576_v16 = vsel %vm11448_vm14, %v8346_v21, %v12314_v0  ;;  %v8752_v21 = vpop.permute.xlu1 %8751  ;;  %v8896_v19 = vmul.f32 %v8747_v9, %v15480_v33 }
 0xa74   : > { %v11577_v47 = vsel %vm11449_vm0, %v8423_v48, %v12315_v7  ;;  %11609 = vst.msk [vmem:[%s16730_s14 + $0xd0] sm:$0xf] %vm11582_vm4, %v11576_v16  ;;  %v9005_v16 = vrot.slane %v8895_v13, 4 }
 0xa75   : > { %v13513_v28 = vpop.eup %13512  ;;  %11610 = vst.msk [vmem:[%s16730_s14 + $0xd8] sm:$0xf] %vm11582_vm4, %v11577_v47  ;;  %v8897_v47 = vmul.f32 %v15476_v14, %v8752_v21 }
 0xa76   : > { %v13515_v63 = vpop.eup %13514  ;;  %v12316_v58 = vadd.f32 -1.0, %v13513_v28  ;;  %v8757_v59 = vpop.permute.xlu0 %8756 }
 0xa77   : > { %v12317_v11 = vadd.f32 -1.0, %v13515_v63  ;;  %v8898_v63 = vmul.f32 %v8757_v59, %v15507_v25 }
 0xa78   : > { %v11578_v40 = vsel %vm11450_vm15, %v8500_v37, %v12316_v58  ;;  %v8762_v37 = vpop.permute.xlu1 %8761 }
 0xa79   : > { %v11579_v34 = vsel %vm11451_vm1, %v8577_v15, %v12317_v11  ;;  %11611 = vst.msk [vmem:[%s16730_s14 + $0xe0] sm:$0xf] %vm11582_vm4, %v11578_v40  ;;  %v8894_v15 = vmul.f32 %v8737_v12, %v18231_v30  ;;  %v9161_v11 = vrot.slane %v8897_v47, 4  ;;  %v8899_v14 = vmul.f32 %v15503_v17, %v8762_v37 }
 0xa7a   : > { %v13517_v56 = vpop.eup %13516  ;;  %11612 = vst.msk [vmem:[%s16730_s14 + $0xe8] sm:$0xf] %vm11582_vm4, %v11579_v34  ;;  %v8767_v3 = vpop.permute.xlu0 %8766  ;;  %v9239_v21 = vrot.slane %v8898_v63, 4 }
 0xa7b   : > { %v13519_v48 = vpop.eup %13518  ;;  %v12318_v27 = vadd.f32 -1.0, %v13517_v56  ;;  %v8927_v35 = vrot.slane %v8894_v15, 4  ;;  %v8900_v56 = vmul.f32 %v8767_v3, %v15516_v39 }
 0xa7c   : > { %v12319_v42 = vadd.f32 -1.0, %v13519_v48  ;;  %v8772_v31 = vpop.permute.xlu1 %8771 }
 0xa7d   : > { %v11580_v49 = vsel %vm11452_vm2, %v8654_v53, %v12318_v27  ;;  %v9083_v53 = vrot.slane %v8896_v19, 4  ;;  %v8901_v17 = vmul.f32 %v15511_v62, %v8772_v31  ;;  %v9395_v37 = vrot.slane %v8900_v56, 4 }
 0xa7e   : > { %v11581_v51 = vsel %vm11453_vm3, %v8731_v22, %v12319_v42  ;;  %11613 = vst.msk [vmem:[%s16730_s14 + $0xf0] sm:$0xf] %vm11582_vm4, %v11580_v49  ;;  %v8777_v7 = vpop.permute.xlu0 %8776 }
 0xa7f   : > { %11614 = vst.msk [vmem:[%s16730_s14 + $0xf8] sm:$0xf] %vm11582_vm4, %v11581_v51  ;;  %v9473_v31 = vrot.slane %v8901_v17, 4 }
 0xa80   : > { %v8782_v33 = vpop.permute.xlu1 %8781 }
 0xa82   : > { %v8787_v40 = vpop.permute.xlu0 %8786 }
 0xa84   : > { %v8792_v51 = vpop.permute.xlu1 %8791 }
 0xa85   : > { %v9000_v38 = vpop.f32.mrb[64].mxu0 }
 0xa86   : > { %v9001_v5 = vadd.f32 %v9000_v38, %v8927_v35  ;;  %v12838_v0 = vpop.f32.mrb[65].mxu0  ;;  %v9317_v35 = vrot.slane %v8899_v14, 4  ;;  %v8797_v13 = vpop.permute.xlu0 %8796  ;;  %v8902_v38 = vmul.f32 %v8777_v7, %v15527_v18  ;;  %v8903_v18 = vmul.f32 %v15522_v24, %v8782_v33 }
 0xa88   : > { %v11647_v22 = vmul.f32 1.442695, %v9001_v5  ;;  %vm11615_vm5 = vcmp.gt.f32.partialorder %v9001_v5, 0.0  ;;  %v8802_v63 = vpop.permute.xlu1 %8801  ;;  %v9551_v7 = vrot.slane %v8902_v38, 4 }
 0xa89   : > { %v9156_v28 = vpop.f32.mrb[66].mxu0 }
 0xa8a   : > { %13520 = vpow2.f32 %v11647_v22  ;;  %v16941_v30 = vadd.f32 %v9156_v28, %v9083_v53  ;;  %v9078_v12 = vpop.f32.mrb[64].mxu1  ;;  %v12848_v54 = vpop.f32.mrb[67].mxu0 }
 0xa8b   : > { %v16943_v9 = vadd.f32 %v9078_v12, %v9005_v16  ;;  %v12843_v58 = vpop.f32.mrb[65].mxu1  ;;  %v8807_v56 = vpop.permute.xlu0 %8806 }
 0xa8c   : > { %v11651_v23 = vmul.f32 1.442695, %v16941_v30  ;;  %vm11617_vm6 = vcmp.gt.f32.partialorder %v16941_v30, 0.0 }
 0xa8d   : > { %v11649_v34 = vmul.f32 1.442695, %v16943_v9  ;;  %vm11616_vm7 = vcmp.gt.f32.partialorder %v16943_v9, 0.0 }
 0xa8e   : > { %13522 = vpow2.f32 %v11651_v23  ;;  %v9234_v25 = vpop.f32.mrb[66].mxu1 }
 0xa8f   : > { %13524 = vpow2.f32 %v11649_v34  ;;  %v16949_v48 = vadd.f32 %v9234_v25, %v9161_v11  ;;  %v9312_v27 = vpop.f32.mrb[68].mxu0  ;;  %v12853_v42 = vpop.f32.mrb[67].mxu1  ;;  %v8904_v34 = vmul.f32 %v8787_v40, %v15538_v6  ;;  %v9629_v40 = vrot.slane %v8903_v18, 4 }
 0xa90   : > { %v16951_v59 = vadd.f32 %v9312_v27, %v9239_v21  ;;  %v12858_v49 = vpop.f32.mrb[69].mxu0 }
 0xa91   : > { %v11653_v15 = vmul.f32 1.442695, %v16949_v48  ;;  %v9707_v17 = vrot.slane %v8904_v34, 4  ;;  %vm11618_vm8 = vcmp.gt.f32.partialorder %v16949_v48, 0.0 }
 0xa92   : > { %v11655_v19 = vmul.f32 1.442695, %v16951_v59  ;;  %vm11619_vm9 = vcmp.gt.f32.partialorder %v16951_v59, 0.0 }
 0xa93   : > { %13526 = vpow2.f32 %v11653_v15  ;;  %v9390_v39 = vpop.f32.mrb[68].mxu1 }
 0xa94   : > { %v13521_v3 = vpop.eup %13520  ;;  %13528 = vpow2.f32 %v11655_v19  ;;  %v16957_v0 = vadd.f32 %v9390_v39, %v9317_v35  ;;  %v9468_v53 = vpop.f32.mrb[70].mxu0  ;;  %v8905_v19 = vmul.f32 %v15533_v55, %v8792_v51 }
 0xa95   : > { %v12863_v22 = vpop.f32.mrb[69].mxu1  ;;  %v12320_v16 = vadd.f32 -1.0, %v13521_v3  ;;  %v16959_v47 = vadd.f32 %v9468_v53, %v9395_v37  ;;  %v12868_v28 = vpop.f32.mrb[71].mxu0  ;;  %v8906_v3 = vmul.f32 %v8797_v13, %v15547_v29 }
 0xa96   : > { %v11657_v62 = vmul.f32 1.442695, %v16957_v0  ;;  %v8812_v37 = vpop.permute.xlu1 %8811  ;;  %v9785_v13 = vrot.slane %v8905_v19, 4  ;;  %vm11620_vm10 = vcmp.gt.f32.partialorder %v16957_v0, 0.0 }
 0xa97   : > { %v11743_v12 = vsel %vm11615_vm5, %v9001_v5, %v12320_v16  ;;  %v11659_v54 = vmul.f32 1.442695, %v16959_v47  ;;  %v8817_v16 = vpop.permute.xlu0 %8816  ;;  %v9863_v18 = vrot.slane %v8906_v3, 4  ;;  %vm11621_vm11 = vcmp.gt.f32.partialorder %v16959_v47, 0.0 }
 0xa98   : > { %v13523_v23 = vpop.eup %13522  ;;  %11775 = vst.msk [vmem:[%s16730_s14 + $0x4] sm:$0xf] %vm11582_vm4, %v11743_v12  ;;  %13530 = vpow2.f32 %v11657_v62  ;;  %v9546_v58 = vpop.f32.mrb[70].mxu1  ;;  %v8910_v19 = vmul.f32 %v8817_v16, %v15568_v2 }
 0xa99   : > { %v13525_v11 = vpop.eup %13524  ;;  %v12322_v14 = vadd.f32 -1.0, %v13523_v23  ;;  %13532 = vpow2.f32 %v11659_v54  ;;  %v16967_v21 = vadd.f32 %v9546_v58, %v9473_v31  ;;  %v9624_v25 = vpop.f32.mrb[72].mxu0  ;;  %v8907_v23 = vmul.f32 %v15544_v45, %v8802_v63 }
 0xa9a   : > { %v12873_v5 = vpop.f32.mrb[71].mxu1  ;;  %v12321_v24 = vadd.f32 -1.0, %v13525_v11  ;;  %v16970_v33 = vadd.f32 %v9624_v25, %v9551_v7  ;;  %v12878_v27 = vpop.f32.mrb[73].mxu0  ;;  %v8908_v58 = vmul.f32 %v8807_v56, %v15560_v4 }
 0xa9b   : > { %v11745_v42 = vsel %vm11617_vm6, %v16941_v30, %v12322_v14  ;;  %v11661_v6 = vmul.f32 1.442695, %v16967_v21  ;;  %v8822_v11 = vpop.permute.xlu1 %8821  ;;  %v9941_v56 = vrot.slane %v8907_v23, 4  ;;  %v8827_v27 = vpop.permute.xlu0 %8826  ;;  %vm11622_vm12 = vcmp.gt.f32.partialorder %v16967_v21, 0.0 }
 0xa9c   : > { %11777 = vst.msk [vmem:[%s16730_s14 + $0x14] sm:$0xf] %vm11582_vm4, %v11745_v42  ;;  %v11744_v49 = vsel %vm11616_vm7, %v16943_v9, %v12321_v24  ;;  %v11663_v15 = vmul.f32 1.442695, %v16970_v33  ;;  %vm11623_vm13 = vcmp.gt.f32.partialorder %v16970_v33, 0.0 }
 0xa9d   : > { %v13527_v35 = vpop.eup %13526  ;;  %11776 = vst.msk [vmem:[%s16730_s14 + $0xc] sm:$0xf] %vm11582_vm4, %v11744_v49  ;;  %13534 = vpow2.f32 %v11661_v6  ;;  %v9702_v30 = vpop.f32.mrb[72].mxu1  ;;  %v8909_v49 = vmul.f32 %v15554_v50, %v8812_v37 }
 0xa9e   : > { %v13529_v39 = vpop.eup %13528  ;;  %v12323_v38 = vadd.f32 -1.0, %v13527_v35  ;;  %13536 = vpow2.f32 %v11663_v15  ;;  %v16983_v53 = vadd.f32 %v9702_v30, %v9629_v40  ;;  %v9780_v9 = vpop.f32.mrb[74].mxu0  ;;  %v10019_v15 = vrot.slane %v8908_v58, 4 }
 0xa9f   : > { %v12324_v22 = vadd.f32 -1.0, %v13529_v39  ;;  %v16986_v55 = vadd.f32 %v9780_v9, %v9707_v17  ;;  %v12883_v51 = vpop.f32.mrb[73].mxu1  ;;  %v12888_v29 = vpop.f32.mrb[75].mxu0 }
 0xaa0   : > { %v11746_v28 = vsel %vm11618_vm8, %v16949_v48, %v12323_v38  ;;  %v11665_v62 = vmul.f32 1.442695, %v16983_v53  ;;  %v8832_v3 = vpop.permute.xlu1 %8831  ;;  %v10175_v29 = vrot.slane %v8910_v19, 4  ;;  %vm11624_vm14 = vcmp.gt.f32.partialorder %v16983_v53, 0.0 }
 0xaa1   : > { %11778 = vst.msk [vmem:[%s16730_s14 + $0x1c] sm:$0xf] %vm11582_vm4, %v11746_v28  ;;  %v11747_v31 = vsel %vm11619_vm9, %v16951_v59, %v12324_v22  ;;  %v11667_v12 = vmul.f32 1.442695, %v16986_v55  ;;  %v10097_v22 = vrot.slane %v8909_v49, 4  ;;  %vm11625_vm0 = vcmp.gt.f32.partialorder %v16986_v55, 0.0 }
 0xaa2   : > { %v13531_v54 = vpop.eup %13530  ;;  %11779 = vst.msk [vmem:[%s16730_s14 + $0x24] sm:$0xf] %vm11582_vm4, %v11747_v31  ;;  %13538 = vpow2.f32 %v11665_v62  ;;  %v9858_v48 = vpop.f32.mrb[74].mxu1  ;;  %v8911_v62 = vmul.f32 %v15564_v1, %v8822_v11 }
 0xaa3   : > { %v13533_v7 = vpop.eup %13532  ;;  %v12325_v34 = vadd.f32 -1.0, %v13531_v54  ;;  %13540 = vpow2.f32 %v11667_v12  ;;  %v16999_v14 = vadd.f32 %v9858_v48, %v9785_v13  ;;  %v9936_v59 = vpop.f32.mrb[76].mxu0  ;;  %v8912_v12 = vmul.f32 %v8827_v27, %v15574_v36 }
 0xaa4   : > { %v12326_v25 = vadd.f32 -1.0, %v13533_v7  ;;  %v17002_v45 = vadd.f32 %v9936_v59, %v9863_v18  ;;  %v12893_v63 = vpop.f32.mrb[75].mxu1  ;;  %v12898_v5 = vpop.f32.mrb[77].mxu0 }
 0xaa5   : > { %v11748_v24 = vsel %vm11620_vm10, %v16957_v0, %v12325_v34  ;;  %v11669_v4 = vmul.f32 1.442695, %v16999_v14  ;;  %v8837_v13 = vpop.permute.xlu0 %8836  ;;  %v8842_v58 = vpop.permute.xlu1 %8841  ;;  %v10253_v34 = vrot.slane %v8911_v62, 4  ;;  %v8913_v5 = vmul.f32 %v15570_v57, %v8832_v3 }
 0xaa6   : > { %11780 = vst.msk [vmem:[%s16730_s14 + $0x2c] sm:$0xf] %vm11582_vm4, %v11748_v24  ;;  %v11749_v42 = vsel %vm11621_vm11, %v16959_v47, %v12326_v25  ;;  %v11671_v6 = vmul.f32 1.442695, %v17002_v45  ;;  %v10331_v24 = vrot.slane %v8912_v12, 4  ;;  %vm11626_vm15 = vcmp.gt.f32.partialorder %v16999_v14, 0.0 }
 0xaa7   : > { %v13535_v40 = vpop.eup %13534  ;;  %11781 = vst.msk [vmem:[%s16730_s14 + $0x34] sm:$0xf] %vm11582_vm4, %v11749_v42  ;;  %13542 = vpow2.f32 %v11669_v4  ;;  %v10014_v0 = vpop.f32.mrb[76].mxu1  ;;  %vm11627_vm1 = vcmp.gt.f32.partialorder %v17002_v45, 0.0  ;;  %v8915_v3 = vmul.f32 %v18157_v60, %v8842_v58 }
 0xaa8   : > { %v13537_v35 = vpop.eup %13536  ;;  %v12327_v17 = vadd.f32 -1.0, %v13535_v40  ;;  %13544 = vpow2.f32 %v11671_v6  ;;  %v17015_v30 = vadd.f32 %v10014_v0, %v9941_v56  ;;  %v10092_v39 = vpop.f32.mrb[78].mxu0  ;;  %v8914_v56 = vmul.f32 %v8837_v13, %v18152_v61 }
 0xaa9   : > { %v12903_v47 = vpop.f32.mrb[77].mxu1  ;;  %v12328_v50 = vadd.f32 -1.0, %v13537_v35  ;;  %v17018_v37 = vadd.f32 %v10092_v39, %v10019_v15  ;;  %v12908_v38 = vpop.f32.mrb[79].mxu0  ;;  %v10409_v35 = vrot.slane %v8913_v5, 4  ;;  %v10565_v13 = vrot.slane %v8915_v3, 4 }
 0xaaa   : > { %v11750_v9 = vsel %vm11622_vm12, %v16967_v21, %v12327_v17  ;;  %v11673_v2 = vmul.f32 1.442695, %v17015_v30  ;;  %v8847_v40 = vpop.permute.xlu0 %8846  ;;  %v8852_v19 = vpop.permute.xlu1 %8851  ;;  %vm11628_vm2 = vcmp.gt.f32.partialorder %v17015_v30, 0.0 }
 0xaab   : > { %11782 = vst.msk [vmem:[%s16730_s14 + $0x3c] sm:$0xf] %vm11582_vm4, %v11750_v9  ;;  %v11751_v51 = vsel %vm11623_vm13, %v16970_v33, %v12328_v50  ;;  %v11675_v16 = vmul.f32 1.442695, %v17018_v37  ;;  %v10487_v50 = vrot.slane %v8914_v56, 4  ;;  %v8916_v9 = vmul.f32 %v8847_v40, %v18158_v43 }
 0xaac   : > { %v13539_v28 = vpop.eup %13538  ;;  %11783 = vst.msk [vmem:[%s16730_s14 + $0x44] sm:$0xf] %vm11582_vm4, %v11751_v51  ;;  %13546 = vpow2.f32 %v11673_v2  ;;  %v10170_v21 = vpop.f32.mrb[78].mxu1  ;;  %vm11629_vm3 = vcmp.gt.f32.partialorder %v17018_v37, 0.0 }
 0xaad   : > { %v13541_v31 = vpop.eup %13540  ;;  %v12329_v54 = vadd.f32 -1.0, %v13539_v28  ;;  %13548 = vpow2.f32 %v11675_v16  ;;  %v17031_v23 = vadd.f32 %v10170_v21, %v10097_v22  ;;  %v10248_v33 = vpop.f32.mrb[80].mxu0 }
 0xaae   : > { %v12913_v18 = vpop.f32.mrb[79].mxu1  ;;  %v12330_v1 = vadd.f32 -1.0, %v13541_v31  ;;  %v17034_v48 = vadd.f32 %v10248_v33, %v10175_v29  ;;  %v12918_v7 = vpop.f32.mrb[81].mxu0  ;;  %v10643_v33 = vrot.slane %v8916_v9, 4 }
 0xaaf   : > { %v11752_v11 = vsel %vm11624_vm14, %v16983_v53, %v12329_v54  ;;  %v11677_v36 = vmul.f32 1.442695, %v17031_v23  ;;  %v8857_v62 = vpop.permute.xlu0 %8856  ;;  %v8917_v54 = vmul.f32 %v18163_v20, %v8852_v19  ;;  %v8862_v18 = vpop.permute.xlu1 %8861  ;;  %vm11630_vm5 = vcmp.gt.f32.partialorder %v17031_v23, 0.0 }
 0xab0   : > { %11784 = vst.msk [vmem:[%s16730_s14 + $0x4c] sm:$0xf] %vm11582_vm4, %v11752_v11  ;;  %v11753_v59 = vsel %vm11625_vm0, %v16986_v55, %v12330_v1  ;;  %v11679_v25 = vmul.f32 1.442695, %v17034_v48  ;;  %v8918_v7 = vmul.f32 %v8857_v62, %v18164_v8  ;;  %vm11631_vm6 = vcmp.gt.f32.partialorder %v17034_v48, 0.0 }
 0xab1   : > { %v13543_v63 = vpop.eup %13542  ;;  %11785 = vst.msk [vmem:[%s16730_s14 + $0x54] sm:$0xf] %vm11582_vm4, %v11753_v59  ;;  %13550 = vpow2.f32 %v11677_v36  ;;  %v10326_v4 = vpop.f32.mrb[80].mxu1  ;;  %v10721_v5 = vrot.slane %v8917_v54, 4 }
 0xab2   : > { %v13545_v53 = vpop.eup %13544  ;;  %v12331_v27 = vadd.f32 -1.0, %v13543_v63  ;;  %13552 = vpow2.f32 %v11679_v25  ;;  %v17047_v42 = vadd.f32 %v10326_v4, %v10253_v34  ;;  %v10404_v6 = vpop.f32.mrb[82].mxu0  ;;  %v10799_v56 = vrot.slane %v8918_v7, 4 }
 0xab3   : > { %v12923_v55 = vpop.f32.mrb[81].mxu1  ;;  %v12332_v57 = vadd.f32 -1.0, %v13545_v53  ;;  %v17050_v49 = vadd.f32 %v10404_v6, %v10331_v24  ;;  %v12928_v15 = vpop.f32.mrb[83].mxu0  ;;  %v8919_v24 = vmul.f32 %v18172_v52, %v8862_v18 }
 0xab4   : > { %v11754_v0 = vsel %vm11626_vm15, %v16999_v14, %v12331_v27  ;;  %v11681_v61 = vmul.f32 1.442695, %v17047_v42  ;;  %vm11632_vm7 = vcmp.gt.f32.partialorder %v17047_v42, 0.0  ;;  %v8867_v18 = vpop.permute.xlu0 %8866 }
 0xab5   : > { %11786 = vst.msk [vmem:[%s16730_s14 + $0x5c] sm:$0xf] %vm11582_vm4, %v11754_v0  ;;  %v11755_v17 = vsel %vm11627_vm1, %v17002_v45, %v12332_v57  ;;  %v11683_v39 = vmul.f32 1.442695, %v17050_v49  ;;  %v10877_v0 = vrot.slane %v8919_v24, 4  ;;  %vm11633_vm8 = vcmp.gt.f32.partialorder %v17050_v49, 0.0 }
 0xab6   : > { %v13547_v47 = vpop.eup %13546  ;;  %11787 = vst.msk [vmem:[%s16730_s14 + $0x64] sm:$0xf] %vm11582_vm4, %v11755_v17  ;;  %13554 = vpow2.f32 %v11681_v61  ;;  %v10482_v14 = vpop.f32.mrb[82].mxu1 }
 0xab7   : > { %v13549_v38 = vpop.eup %13548  ;;  %v12333_v2 = vadd.f32 -1.0, %v13547_v47  ;;  %13556 = vpow2.f32 %v11683_v39  ;;  %v17063_v22 = vadd.f32 %v10482_v14, %v10409_v35  ;;  %v10560_v51 = vpop.f32.mrb[84].mxu0 }
 0xab8   : > { %v12933_v45 = vpop.f32.mrb[83].mxu1  ;;  %v12334_v16 = vadd.f32 -1.0, %v13549_v38  ;;  %v17066_v60 = vadd.f32 %v10560_v51, %v10487_v50  ;;  %v12938_v28 = vpop.f32.mrb[85].mxu0 }
 0xab9   : > { %v11756_v29 = vsel %vm11628_vm2, %v17015_v30, %v12333_v2  ;;  %v11685_v43 = vmul.f32 1.442695, %v17063_v22  ;;  %vm11634_vm9 = vcmp.gt.f32.partialorder %v17063_v22, 0.0 }
 0xaba   : > { %11788 = vst.msk [vmem:[%s16730_s14 + $0x6c] sm:$0xf] %vm11582_vm4, %v11756_v29  ;;  %v11757_v21 = vsel %vm11629_vm3, %v17018_v37, %v12334_v16  ;;  %v11687_v31 = vmul.f32 1.442695, %v17066_v60  ;;  %vm11635_vm10 = vcmp.gt.f32.partialorder %v17066_v60, 0.0 }
 0xabb   : > { %v13551_v12 = vpop.eup %13550  ;;  %11789 = vst.msk [vmem:[%s16730_s14 + $0x74] sm:$0xf] %vm11582_vm4, %v11757_v21  ;;  %13558 = vpow2.f32 %v11685_v43  ;;  %v10638_v30 = vpop.f32.mrb[84].mxu1 }
 0xabc   : > { %v13553_v1 = vpop.eup %13552  ;;  %v12335_v58 = vadd.f32 -1.0, %v13551_v12  ;;  %13560 = vpow2.f32 %v11687_v31  ;;  %v10639_v11 = vadd.f32 %v10638_v30, %v10565_v13  ;;  %v10716_v36 = vpop.f32.mrb[86].mxu0 }
 0xabd   : > { %v12943_v37 = vpop.f32.mrb[85].mxu1  ;;  %v12336_v34 = vadd.f32 -1.0, %v13553_v1  ;;  %v10717_v20 = vadd.f32 %v10716_v36, %v10643_v33  ;;  %v12948_v59 = vpop.f32.mrb[87].mxu0  ;;  %v8920_v1 = vmul.f32 %v8867_v18, %v18174_v44  ;;  %v11916_v18 = vld [vmem:[%s16730_s14 + $0x20] sm:$0xff] (%p13748_p6) }
 0xabe   : > { %v11758_v25 = vsel %vm11630_vm5, %v17031_v23, %v12335_v58  ;;  %v11689_v63 = vmul.f32 1.442695, %v10639_v11  ;;  %vm11636_vm11 = vcmp.gt.f32.partialorder %v10639_v11, 0.0  ;;  %v8872_v30 = vpop.permute.xlu1 %8871  ;;  %v8877_v58 = vpop.permute.xlu0 %8876  ;;  %11917 = vst [vmem:[%s17148_s15 + $0x40] sm:$0xff] (%p13748_p6), %v11916_v18 }
 0xabf   : > { %11790 = vst.msk [vmem:[%s16730_s14 + $0x7c] sm:$0xf] %vm11582_vm4, %v11758_v25  ;;  %v11759_v8 = vsel %vm11631_vm6, %v17034_v48, %v12336_v34  ;;  %v11691_v4 = vmul.f32 1.442695, %v10717_v20  ;;  %vm11637_vm12 = vcmp.gt.f32.partialorder %v10717_v20, 0.0  ;;  %v8921_v7 = vmul.f32 %v18177_v26, %v8872_v30  ;;  %v11918_v30 = vld [vmem:[%s16730_s14 + $0x28] sm:$0xff] (%p13748_p6) }
 0xac0   : > { %v13555_v53 = vpop.eup %13554  ;;  %11791 = vst.msk [vmem:[%s16730_s14 + $0x84] sm:$0xf] %vm11582_vm4, %v11759_v8  ;;  %13562 = vpow2.f32 %v11689_v63  ;;  %v10794_v27 = vpop.f32.mrb[86].mxu1  ;;  %v10955_v36 = vrot.slane %v8920_v1, 4  ;;  %v11920_v1 = vld [vmem:[%s16730_s14 + $0x30] sm:$0xff] (%p13748_p6)  ;;  %11919 = vst [vmem:[%s17148_s15 + $0x50] sm:$0xff] (%p13748_p6), %v11918_v30 }
 0xac1   : > { %v13557_v6 = vpop.eup %13556  ;;  %v12337_v23 = vadd.f32 -1.0, %v13555_v53  ;;  %13564 = vpow2.f32 %v11691_v4  ;;  %v10795_v55 = vadd.f32 %v10794_v27, %v10721_v5  ;;  %v10872_v40 = vpop.f32.mrb[88].mxu0  ;;  %v11033_v37 = vrot.slane %v8921_v7, 4  ;;  %v11922_v7 = vld [vmem:[%s16730_s14 + $0x38] sm:$0xff] (%p13748_p6)  ;;  %11921 = vst [vmem:[%s17148_s15 + $0x60] sm:$0xff] (%p13748_p6), %v11920_v1 }
 0xac2   : > { %v12953_v57 = vpop.f32.mrb[87].mxu1  ;;  %v12338_v52 = vadd.f32 -1.0, %v13557_v6  ;;  %v10873_v15 = vadd.f32 %v10872_v40, %v10799_v56  ;;  %v12958_v48 = vpop.f32.mrb[89].mxu0  ;;  %11923 = vst [vmem:[%s17148_s15 + $0x70] sm:$0xff] (%p13748_p6), %v11922_v7 }
 0xac3   : > { %v11760_v61 = vsel %vm11632_vm7, %v17047_v42, %v12337_v23  ;;  %v11693_v35 = vmul.f32 1.442695, %v10795_v55  ;;  %vm11638_vm13 = vcmp.gt.f32.partialorder %v10795_v55, 0.0  ;;  %v8887_v24 = vpop.permute.xlu0 %8886 }
 0xac4   : > { %11792 = vst.msk [vmem:[%s16730_s14 + $0x8c] sm:$0xf] %vm11582_vm4, %v11760_v61  ;;  %v11761_v19 = vsel %vm11633_vm8, %v17050_v49, %v12338_v52  ;;  %v11695_v17 = vmul.f32 1.442695, %v10873_v15  ;;  %v10950_v39 = vpop.f32.mrb[88].mxu1  ;;  %vm11639_vm14 = vcmp.gt.f32.partialorder %v10873_v15, 0.0  ;;  %v8924_v26 = vmul.f32 %v8887_v24, %v18228_v10 }
 0xac5   : > { %v13559_v47 = vpop.eup %13558  ;;  %11793 = vst.msk [vmem:[%s16730_s14 + $0x94] sm:$0xf] %vm11582_vm4, %v11761_v19  ;;  %13566 = vpow2.f32 %v11693_v35  ;;  %v10951_v3 = vadd.f32 %v10950_v39, %v10877_v0  ;;  %v12963_v50 = vpop.f32.mrb[89].mxu1 }
 0xac6   : > { %v13561_v14 = vpop.eup %13560  ;;  %v12339_v38 = vadd.f32 -1.0, %v13559_v47  ;;  %13568 = vpow2.f32 %v11695_v17 }
 0xac7   : > { %v12340_v42 = vadd.f32 -1.0, %v13561_v14  ;;  %v11697_v9 = vmul.f32 1.442695, %v10951_v3  ;;  %vm11640_vm0 = vcmp.gt.f32.partialorder %v10951_v3, 0.0 }
 0xac8   : > { %v11762_v49 = vsel %vm11634_vm9, %v17063_v22, %v12339_v38 }
 0xac9   : > { %11794 = vst.msk [vmem:[%s16730_s14 + $0x9c] sm:$0xf] %vm11582_vm4, %v11762_v49  ;;  %v11763_v2 = vsel %vm11635_vm10, %v17066_v60, %v12340_v42  ;;  %13570 = vpow2.f32 %v11697_v9 }
 0xaca   : > { %v13563_v51 = vpop.eup %13562  ;;  %11795 = vst.msk [vmem:[%s16730_s14 + $0xa4] sm:$0xf] %vm11582_vm4, %v11763_v2 }
 0xacb   : > { %v13565_v45 = vpop.eup %13564  ;;  %v12341_v16 = vadd.f32 -1.0, %v13563_v51 }
 0xacc   : > { %v12342_v28 = vadd.f32 -1.0, %v13565_v45  ;;  %v11944_v24 = vld [vmem:[%s16730_s14 + $0x90] sm:$0xff] (%p13748_p6) }
 0xacd   : > { %v11764_v62 = vsel %vm11636_vm11, %v10639_v11, %v12341_v16  ;;  %v8882_v11 = vpop.permute.xlu1 %8881  ;;  %11945 = vst [vmem:[%s17148_s15 + $0x120] sm:$0xff] (%p13748_p6), %v11944_v24 }
 0xace   : > { %11796 = vst.msk [vmem:[%s16730_s14 + $0xac] sm:$0xf] %vm11582_vm4, %v11764_v62  ;;  %v11765_v22 = vsel %vm11637_vm12, %v10717_v20, %v12342_v28  ;;  %v8922_v20 = vmul.f32 %v8877_v58, %v18221_v46  ;;  %v8923_v5 = vmul.f32 %v18224_v41, %v8882_v11  ;;  %v11924_v58 = vld [vmem:[%s16730_s14 + $0x40] sm:$0xff] (%p13748_p6)  ;;  %v11926_v11 = vld [vmem:[%s16730_s14 + $0x48] sm:$0xff] (%p13748_p6) }
 0xacf   : > { %v13567_v29 = vpop.eup %13566  ;;  %11797 = vst.msk [vmem:[%s16730_s14 + $0xb4] sm:$0xf] %vm11582_vm4, %v11765_v22  ;;  %11925 = vst [vmem:[%s17148_s15 + $0x80] sm:$0xff] (%p13748_p6), %v11924_v58 }
 0xad0   : > { %v13569_v60 = vpop.eup %13568  ;;  %v12343_v43 = vadd.f32 -1.0, %v13567_v29  ;;  %v11111_v27 = vrot.slane %v8922_v20, 4  ;;  %v11189_v6 = vrot.slane %v8923_v5, 4  ;;  %11927 = vst [vmem:[%s17148_s15 + $0x90] sm:$0xff] (%p13748_p6), %v11926_v11  ;;  %v11934_v20 = vld [vmem:[%s16730_s14 + $0x68] sm:$0xff] (%p13748_p6) }
 0xad1   : > { %v12344_v13 = vadd.f32 -1.0, %v13569_v60  ;;  %v8892_v53 = vpop.permute.xlu1 %8891  ;;  %11935 = vst [vmem:[%s17148_s15 + $0xd0] sm:$0xff] (%p13748_p6), %v11934_v20  ;;  %v11942_v5 = vld [vmem:[%s16730_s14 + $0x88] sm:$0xff] (%p13748_p6) }
 0xad2   : > { %v11766_v21 = vsel %vm11638_vm13, %v10795_v55, %v12343_v43  ;;  %v8925_v23 = vmul.f32 %v18230_v32, %v8892_v53  ;;  %11943 = vst [vmem:[%s17148_s15 + $0x110] sm:$0xff] (%p13748_p6), %v11942_v5 }
 0xad3   : > { %v13571_v31 = vpop.eup %13570  ;;  %11798 = vst.msk [vmem:[%s16730_s14 + $0xbc] sm:$0xf] %vm11582_vm4, %v11766_v21  ;;  %v11767_v12 = vsel %vm11639_vm14, %v10873_v15, %v12344_v13  ;;  %v11267_v15 = vrot.slane %v8924_v26, 4 }
 0xad4   : > { %11799 = vst.msk [vmem:[%s16730_s14 + $0xc4] sm:$0xf] %vm11582_vm4, %v11767_v12  ;;  %v12345_v54 = vadd.f32 -1.0, %v13571_v31  ;;  %v11345_v0 = vrot.slane %v8925_v23, 4  ;;  %v11908_v31 = vld [vmem:[%s16730_s14] sm:$0xff] (%p13748_p6)  ;;  %v11910_v12 = vld [vmem:[%s16730_s14 + $0x8] sm:$0xff] (%p13748_p6) }
 0xad5   : > { %11909 = vst [vmem:[%s17148_s15] sm:$0xff] (%p13748_p6), %v11908_v31  ;;  %11911 = vst [vmem:[%s17148_s15 + $0x10] sm:$0xff] (%p13748_p6), %v11910_v12  ;;  %v11950_v53 = vld [vmem:[%s16730_s14 + $0xa8] sm:$0xff] (%p13748_p6) }
 0xad6   : > { %v11768_v33 = vsel %vm11640_vm0, %v10951_v3, %v12345_v54  ;;  %v11912_v54 = vld [vmem:[%s16730_s14 + $0x10] sm:$0xff] (%p13748_p6)  ;;  %11951 = vst [vmem:[%s17148_s15 + $0x150] sm:$0xff] (%p13748_p6), %v11950_v53 }
 0xad7   : > { %11800 = vst.msk [vmem:[%s16730_s14 + $0xcc] sm:$0xf] %vm11582_vm4, %v11768_v33  ;;  %v11914_v33 = vld [vmem:[%s16730_s14 + $0x18] sm:$0xff] (%p13748_p6)  ;;  %11913 = vst [vmem:[%s17148_s15 + $0x20] sm:$0xff] (%p13748_p6), %v11912_v54 }
 0xad8   : > { %11915 = vst [vmem:[%s17148_s15 + $0x30] sm:$0xff] (%p13748_p6), %v11914_v33 }
 0xade   : > { %v11958_v26 = vld [vmem:[%s16730_s14 + $0xc8] sm:$0xff] (%p13748_p6) }
 0xadf   : > { %11959 = vst [vmem:[%s17148_s15 + $0x190] sm:$0xff] (%p13748_p6), %v11958_v26 }
 0xaed   : > { %v11028_v34 = vpop.f32.mrb[90].mxu0 }
 0xaee   : > { %v11029_v59 = vadd.f32 %v11028_v34, %v10955_v36  ;;  %v11106_v25 = vpop.f32.mrb[90].mxu1  ;;  %v12968_v63 = vpop.f32.mrb[91].mxu0  ;;  %v11928_v36 = vld [vmem:[%s16730_s14 + $0x50] sm:$0xff] (%p13748_p6)  ;;  %v11932_v34 = vld [vmem:[%s16730_s14 + $0x60] sm:$0xff] (%p13748_p6) }
 0xaef   : > { %v11107_v8 = vadd.f32 %v11106_v25, %v11033_v37  ;;  %v12973_v4 = vpop.f32.mrb[91].mxu1  ;;  %v11930_v37 = vld [vmem:[%s16730_s14 + $0x58] sm:$0xff] (%p13748_p6)  ;;  %11929 = vst [vmem:[%s17148_s15 + $0xa0] sm:$0xff] (%p13748_p6), %v11928_v36  ;;  %11933 = vst [vmem:[%s17148_s15 + $0xc0] sm:$0xff] (%p13748_p6), %v11932_v34  ;;  %v11940_v63 = vld [vmem:[%s16730_s14 + $0x80] sm:$0xff] (%p13748_p6) }
 0xaf0   : > { %v11699_v56 = vmul.f32 1.442695, %v11029_v59  ;;  %vm11641_vm15 = vcmp.gt.f32.partialorder %v11029_v59, 0.0  ;;  %11931 = vst [vmem:[%s17148_s15 + $0xb0] sm:$0xff] (%p13748_p6), %v11930_v37  ;;  %v11938_v25 = vld [vmem:[%s16730_s14 + $0x78] sm:$0xff] (%p13748_p6)  ;;  %11941 = vst [vmem:[%s17148_s15 + $0x100] sm:$0xff] (%p13748_p6), %v11940_v63 }
 0xaf1   : > { %v11701_v44 = vmul.f32 1.442695, %v11107_v8  ;;  %vm11642_vm1 = vcmp.gt.f32.partialorder %v11107_v8, 0.0  ;;  %11939 = vst [vmem:[%s17148_s15 + $0xf0] sm:$0xff] (%p13748_p6), %v11938_v25  ;;  %v11948_v4 = vld [vmem:[%s16730_s14 + $0xa0] sm:$0xff] (%p13748_p6) }
 0xaf2   : > { %13572 = vpow2.f32 %v11699_v56  ;;  %11949 = vst [vmem:[%s17148_s15 + $0x140] sm:$0xff] (%p13748_p6), %v11948_v4  ;;  %v11952_v56 = vld [vmem:[%s16730_s14 + $0xb0] sm:$0xff] (%p13748_p6) }
 0xaf3   : > { %13574 = vpow2.f32 %v11701_v44  ;;  %v11184_v46 = vpop.f32.mrb[92].mxu0  ;;  %v11954_v44 = vld [vmem:[%s16730_s14 + $0xb8] sm:$0xff] (%p13748_p6)  ;;  %11953 = vst [vmem:[%s17148_s15 + $0x160] sm:$0xff] (%p13748_p6), %v11952_v56 }
 0xaf4   : > { %v11185_v55 = vadd.f32 %v11184_v46, %v11111_v27  ;;  %v11262_v40 = vpop.f32.mrb[92].mxu1  ;;  %v12978_v57 = vpop.f32.mrb[93].mxu0  ;;  %11955 = vst [vmem:[%s17148_s15 + $0x170] sm:$0xff] (%p13748_p6), %v11954_v44  ;;  %v11956_v27 = vld [vmem:[%s16730_s14 + $0xc0] sm:$0xff] (%p13748_p6) }
 0xaf5   : > { %v11263_v52 = vadd.f32 %v11262_v40, %v11189_v6  ;;  %v12983_v41 = vpop.f32.mrb[93].mxu1  ;;  %11957 = vst [vmem:[%s17148_s15 + $0x180] sm:$0xff] (%p13748_p6), %v11956_v27 }
 0xaf6   : > { %v11703_v48 = vmul.f32 1.442695, %v11185_v55  ;;  %vm11643_vm2 = vcmp.gt.f32.partialorder %v11185_v55, 0.0 }
 0xaf7   : > { %v11705_v61 = vmul.f32 1.442695, %v11263_v52  ;;  %v11340_v35 = vpop.f32.mrb[94].mxu0  ;;  %vm11644_vm3 = vcmp.gt.f32.partialorder %v11263_v52, 0.0 }
 0xaf8   : > { %13576 = vpow2.f32 %v11703_v48  ;;  %v11341_v19 = vadd.f32 %v11340_v35, %v11267_v15  ;;  %v11418_v17 = vpop.f32.mrb[94].mxu1  ;;  %v12988_v10 = vpop.f32.mrb[95].mxu0 }
 0xaf9   : > { %13578 = vpow2.f32 %v11705_v61  ;;  %v11419_v32 = vadd.f32 %v11418_v17, %v11345_v0  ;;  %v12993_v39 = vpop.f32.mrb[95].mxu1 }
 0xafa   : > { %v11707_v47 = vmul.f32 1.442695, %v11341_v19  ;;  %vm11645_vm5 = vcmp.gt.f32.partialorder %v11341_v19, 0.0 }
 0xafb   : > { %v11709_v3 = vmul.f32 1.442695, %v11419_v32  ;;  %vm11646_vm6 = vcmp.gt.f32.partialorder %v11419_v32, 0.0 }
 0xafc   : > { %v13573_v50 = vpop.eup %13572  ;;  %13580 = vpow2.f32 %v11707_v47 }
 0xafd   : > { %v13575_v14 = vpop.eup %13574  ;;  %v12346_v38 = vadd.f32 -1.0, %v13573_v50  ;;  %13582 = vpow2.f32 %v11709_v3 }
 0xafe   : > { %v12347_v42 = vadd.f32 -1.0, %v13575_v14 }
 0xaff   : > { %v11769_v9 = vsel %vm11641_vm15, %v11029_v59, %v12346_v38  ;;  %v11936_v59 = vld [vmem:[%s16730_s14 + $0x70] sm:$0xff] (%p13748_p6) }
 0xb00   : > { %11801 = vst.msk [vmem:[%s16730_s14 + $0xd4] sm:$0xf] %vm11582_vm4, %v11769_v9  ;;  %v11770_v49 = vsel %vm11642_vm1, %v11107_v8, %v12347_v42  ;;  %11937 = vst [vmem:[%s17148_s15 + $0xe0] sm:$0xff] (%p13748_p6), %v11936_v59  ;;  %v11946_v8 = vld [vmem:[%s16730_s14 + $0x98] sm:$0xff] (%p13748_p6) }
 0xb01   : > { %11802 = vst.msk [vmem:[%s16730_s14 + $0xdc] sm:$0xf] %vm11582_vm4, %v11770_v49  ;;  %11947 = vst [vmem:[%s17148_s15 + $0x130] sm:$0xff] (%p13748_p6), %v11946_v8 }
 0xb02   : > { %v13577_v2 = vpop.eup %13576 }
 0xb03   : > { %v13579_v51 = vpop.eup %13578  ;;  %v12348_v45 = vadd.f32 -1.0, %v13577_v2 }
 0xb04   : > { %v12349_v16 = vadd.f32 -1.0, %v13579_v51 }
 0xb05   : > { %v11771_v28 = vsel %vm11643_vm2, %v11185_v55, %v12348_v45  ;;  %11813 = sbr.rel (!%p13748_p6) target bundleno = 2836 (0xb14), region = 78 }
 0xb06   : > { %v13581_v62 = vpop.eup %13580  ;;  %11803 = vst.msk [vmem:[%s16730_s14 + $0xe4] sm:$0xf] %vm11582_vm4, %v11771_v28  ;;  %v11772_v22 = vsel %vm11644_vm3, %v11263_v52, %v12349_v16 }
 0xb07   : > { %v13583_v29 = vpop.eup %13582  ;;  %11804 = vst.msk [vmem:[%s16730_s14 + $0xec] sm:$0xf] %vm11582_vm4, %v11772_v22  ;;  %v12350_v60 = vadd.f32 -1.0, %v13581_v62  ;;  %v11960_v6 = vld [vmem:[%s16730_s14 + $0xd0] sm:$0xff] (%p13748_p6) }
 0xb08   : > { %v12351_v43 = vadd.f32 -1.0, %v13583_v29  ;;  %11961 = vst [vmem:[%s17148_s15 + $0x1a0] sm:$0xff] (%p13748_p6), %v11960_v6  ;;  %v11962_v23 = vld [vmem:[%s16730_s14 + $0xd8] sm:$0xff] (%p13748_p6) }
 0xb09   : > { %v11773_v13 = vsel %vm11645_vm5, %v11341_v19, %v12350_v60  ;;  %11963 = vst [vmem:[%s17148_s15 + $0x1b0] sm:$0xff] (%p13748_p6), %v11962_v23 }
 0xb0a   : > { %11805 = vst.msk [vmem:[%s16730_s14 + $0xf4] sm:$0xf] %vm11582_vm4, %v11773_v13  ;;  %v11774_v21 = vsel %vm11646_vm6, %v11419_v32, %v12351_v43 }
 0xb0b   : > { %11806 = vst.msk [vmem:[%s16730_s14 + $0xfc] sm:$0xf] %vm11582_vm4, %v11774_v21 }
 0xb0d   : > { %v11964_v46 = vld [vmem:[%s16730_s14 + $0xe0] sm:$0xff] }
 0xb0e   : > { %v11966_v55 = vld [vmem:[%s16730_s14 + $0xe8] sm:$0xff]  ;;  %11965 = vst [vmem:[%s17148_s15 + $0x1c0] sm:$0xff] %v11964_v46 }
 0xb0f   : > { %11967 = vst [vmem:[%s17148_s15 + $0x1d0] sm:$0xff] %v11966_v55 }
 0xb11   : > { %v11968_v40 = vld [vmem:[%s16730_s14 + $0xf0] sm:$0xff] }
 0xb12   : > { %v11970_v57 = vld [vmem:[%s16730_s14 + $0xf8] sm:$0xff]  ;;  %11969 = vst [vmem:[%s17148_s15 + $0x1e0] sm:$0xff] %v11968_v40 }
 0xb13   : > { %11971 = vst [vmem:[%s17148_s15 + $0x1f0] sm:$0xff] %v11970_v57 }
 0xb14 PF: > { %s14_s21 = sadd.s32 1, %s13669_s21   ;;  %s18261_s15 = smov %s13649_s16 }
 0xb15   : > { %p11_p0 = scmp.ge.s32.totalorder %s14_s21, 6   ;;  %s18262_s16 = smov %s13756_s30 }
 0xb16   : > { %s18263_s17 = smov %s13661_s19  ;;  %s18264_s18 = smov %s13665_s20 }
 0xb17   : > { %s18265_s19 = smov %s18268_s22  ;;  %s18266_s20 = smov %s18272_s23 }
 0xb18   :  { %13 = sbr.rel (!%p11_p0) target bundleno = 4 (0x4), region = 156 }

</bundles_post_ra>
